<compile_context>
chip_gen: v5e
topology: v5e:2x2
jax: 0.10.0
libtpu: 0.0.40
codegen_flags: <defaults>
</compile_context>

<pallas_src>
import functools

import jax
import jax.numpy as jnp
from jax.experimental import pallas as pl
from jax.experimental.pallas import tpu as pltpu

WEIGHT_DTYPE = jnp.bfloat16   # streamed from HBM; upcast to f32 in-kernel
HID = 1200                    # original hidden size (nn.Linear)
HID_PAD = 1280                # 10 * 128 -> lane-dense tiling
VMEM_LIMIT = 48 * 1024 * 1024 # <= 64 MiB physical VMEM on v7x


# ----------------------------------------------------------------------------
# Fused Linear (+ activation) kernel, 2-D grid: N (parallel) x K (arbitrary)
# ----------------------------------------------------------------------------
def _linear_kernel(x_ref, w_ref, b_ref, o_ref, acc_ref, *, activation):
    k = pl.program_id(1)

    @pl.when(k == 0)
    def _():
        acc_ref[...] = jnp.zeros_like(acc_ref)

    # bf16 weights upcast to f32; f32 accumulation.
    acc_ref[...] += jnp.dot(
        x_ref[...],
        w_ref[...].astype(jnp.float32),
        preferred_element_type=jnp.float32,
    )

    @pl.when(k == pl.num_programs(1) - 1)
    def _():
        y = acc_ref[...] + b_ref[...]
        if activation == "relu":
            y = jnp.maximum(y, 0.0)
        elif activation == "tanh":
            y = jnp.tanh(y)
        elif activation == "sigmoid":
            y = jax.nn.sigmoid(y)
        # activation == "none": identity
        o_ref[...] = y.astype(o_ref.dtype)


def linear(x, w, b, *, activation="none", tn=None, tk=None):
    """y = act(x @ w + b).  x: [M, K] f32, w: [K, N] (bf16 or f32), b: [N] f32."""
    M, K = x.shape
    Kw, N = w.shape
    assert K == Kw
    if tn is None or N % tn != 0:
        tn = N
    if tk is None or K % tk != 0:
        tk = K
    grid = (N // tn, K // tk)

    kernel = functools.partial(_linear_kernel, activation=activation)
    return pl.pallas_call(
        kernel,
        out_shape=jax.ShapeDtypeStruct((M, N), jnp.float32),
        grid_spec=pltpu.PrefetchScalarGridSpec(
            num_scalar_prefetch=0,
            grid=grid,
            in_specs=[
                pl.BlockSpec((M, tk), lambda i, k: (0, k)),
                pl.BlockSpec((tk, tn), lambda i, k: (k, i)),
                pl.BlockSpec((1, tn), lambda i, k: (0, i)),
            ],
            out_specs=pl.BlockSpec((M, tn), lambda i, k: (0, i)),
            scratch_shapes=[pltpu.VMEM((M, tn), jnp.float32)],
        ),
        compiler_params=pltpu.CompilerParams(
            dimension_semantics=("parallel", "arbitrary"),
            vmem_limit_bytes=VMEM_LIMIT,
        ),
    )(x, w, b.reshape(1, -1))


# ----------------------------------------------------------------------------
# Fused fc2 + fc3 + reparameterization + fc4 (tanh) in a single pallas_call.
#   stats = h1 @ [W2||W3] + [b2||b3]      -> mu, logvar
#   z     = mu + eps * exp(0.5 * logvar)   (uniform eps, as in the reference)
#   h3    = tanh(z @ W4 + b4)
# Everything stays in VMEM; mu/logvar leave as tiny (B, z) outputs.
# ----------------------------------------------------------------------------
def _fused_latent_kernel(h1_ref, w23_ref, b23_ref, eps_ref, w4_ref, b4_ref,
                         mu_ref, logvar_ref, h3_ref, *, z):
    h1 = h1_ref[...]
    stats = jnp.dot(
        h1, w23_ref[...].astype(jnp.float32),
        preferred_element_type=jnp.float32,
    ) + b23_ref[...]
    mu = stats[:, :z]
    logvar = stats[:, z:]
    std = jnp.exp(0.5 * logvar)
    z_lat = mu + eps_ref[...] * std
    h3 = jnp.tanh(
        jnp.dot(
            z_lat, w4_ref[...].astype(jnp.float32),
            preferred_element_type=jnp.float32,
        ) + b4_ref[...]
    )
    mu_ref[...] = mu.astype(mu_ref.dtype)
    logvar_ref[...] = logvar.astype(logvar_ref.dtype)
    h3_ref[...] = h3.astype(h3_ref.dtype)


def fused_latent(h1, w23, b23, eps, w4, b4, *, z):
    B = h1.shape[0]
    Hp = w4.shape[1]
    return pl.pallas_call(
        functools.partial(_fused_latent_kernel, z=z),
        out_shape=(
            jax.ShapeDtypeStruct((B, z), jnp.float32),   # mu
            jax.ShapeDtypeStruct((B, z), jnp.float32),   # logvar
            jax.ShapeDtypeStruct((B, Hp), jnp.float32),  # h3
        ),
        compiler_params=pltpu.CompilerParams(
            vmem_limit_bytes=VMEM_LIMIT,
        ),
    )(h1, w23, b23.reshape(1, -1), eps, w4, b4.reshape(1, -1))


# ----------------------------------------------------------------------------
# Parameter setup: init at the module's true shapes, then zero-pad 1200->1280
# and cast weights to bf16 for streaming.
# ----------------------------------------------------------------------------
def _pad_axis(a, axis, new_size):
    pad = new_size - a.shape[axis]
    if pad == 0:
        return a
    widths = [(0, 0)] * a.ndim
    widths[axis] = (0, pad)
    return jnp.pad(a, widths)


def init_params(key, z_size=4):
    """Deterministic init matching nn.Linear shapes (stored as [in, out])."""
    dims = [
        ("fc1", 4096, HID),
        ("fc2", HID, z_size),
        ("fc3", HID, z_size),
        ("fc4", z_size, HID),
        ("fc5", HID, HID),
        ("fc6", HID, 4096),
    ]
    raw = {}
    keys = jax.random.split(key, 2 * len(dims))
    for i, (name, fin, fout) in enumerate(dims):
        bound = 1.0 / jnp.sqrt(fin)
        w = jax.random.uniform(
            keys[2 * i], (fin, fout), jnp.float32, -bound, bound
        )
        b = jax.random.uniform(
            keys[2 * i + 1], (fout,), jnp.float32, -bound, bound
        )
        raw[name] = (w, b)

    w1, b1 = raw["fc1"]
    w2, b2 = raw["fc2"]
    w3, b3 = raw["fc3"]
    w4, b4 = raw["fc4"]
    w5, b5 = raw["fc5"]
    w6, b6 = raw["fc6"]

    params = {
        # fc1: pad out 1200 -> 1280 (extra columns -> relu(0) = 0)
        "w1": _pad_axis(w1, 1, HID_PAD).astype(WEIGHT_DTYPE),
        "b1": _pad_axis(b1, 0, HID_PAD),
        # fc2 || fc3 concatenated along the output dim; input padded to 1280
        "w23": _pad_axis(jnp.concatenate([w2, w3], axis=1), 0, HID_PAD).astype(
            WEIGHT_DTYPE
        ),
        "b23": jnp.concatenate([b2, b3], axis=0),
        # fc4: pad out 1200 -> 1280 (extra columns -> tanh(0) = 0)
        "w4": _pad_axis(w4, 1, HID_PAD).astype(WEIGHT_DTYPE),
        "b4": _pad_axis(b4, 0, HID_PAD),
        # fc5: pad both dims (padded rows contribute 0, padded cols -> tanh(0)=0)
        "w5": _pad_axis(_pad_axis(w5, 0, HID_PAD), 1, HID_PAD).astype(
            WEIGHT_DTYPE
        ),
        "b5": _pad_axis(b5, 0, HID_PAD),
        # fc6: pad in 1200 -> 1280 (padded rows contribute 0)
        "w6": _pad_axis(w6, 0, HID_PAD).astype(WEIGHT_DTYPE),
        "b6": b6,
    }
    return params


# ----------------------------------------------------------------------------
# DSpritesVAE forward: 4 pallas_calls total
# ----------------------------------------------------------------------------
# TODO(synk): a single whole-network pallas_call with emit_pipeline /
# cross-call weight prefetch would also hide the remaining launch gaps.
def dsprites_vae_forward(params, x, eps):
    z = eps.shape[1]
    # encode: fc1 + relu  ([B,4096] @ [4096,1280])
    h1 = linear(x, params["w1"], params["b1"],
                activation="relu", tn=640, tk=1024)
    # fc2 + fc3 + reparameterization + fc4(tanh), fused
    mu, logvar, h3 = fused_latent(
        h1, params["w23"], params["b23"], eps, params["w4"], params["b4"], z=z
    )
    # decode: fc5 + tanh  ([B,1280] @ [1280,1280])
    h4 = linear(h3, params["w5"], params["b5"],
                activation="tanh", tn=640, tk=640)
    # fc6 + sigmoid  ([B,1280] @ [1280,4096])
    x_ = linear(h4, params["w6"], params["b6"],
                activation="sigmoid", tn=1024, tk=640)
    return x_, mu, logvar


if __name__ == "__main__":
    z_size = 4
    batch = 8

    key = jax.random.PRNGKey(0)
    k_params, k_x, k_eps = jax.random.split(key, 3)

    params = init_params(k_params, z_size=z_size)
    # dSprites images are binary 64x64 -> flattened to 4096 features
    x = (jax.random.uniform(k_x, (batch, 4096), jnp.float32) > 0.5).astype(
        jnp.float32
    )
    # uniform [0,1) noise, mirroring torch.rand_like in DSpritesVAE.sample
    eps = jax.random.uniform(k_eps, (batch, z_size), jnp.float32)

    fwd = jax.jit(dsprites_vae_forward)
    x_rec, mu, logvar = fwd(params, x, eps)
    jax.block_until_ready((x_rec, mu, logvar))

    assert x_rec.shape == (batch, 4096)
    assert mu.shape == (batch, z_size)
    assert logvar.shape == (batch, z_size)
    print("KERNEL_OK")
</pallas_src>

<mosaic_0001>
module attributes {stable_mosaic.version = 11 : i64} {
  func.func @_fused_latent_kernel(%arg0: memref<8x1280xf32, #tpu.memory_space<vmem>>, %arg1: memref<1280x8xbf16, #tpu.memory_space<vmem>>, %arg2: memref<1x8xf32, #tpu.memory_space<vmem>>, %arg3: memref<8x4xf32, #tpu.memory_space<vmem>>, %arg4: memref<4x1280xbf16, #tpu.memory_space<vmem>>, %arg5: memref<1x1280xf32, #tpu.memory_space<vmem>>, %arg6: memref<8x4xf32, #tpu.memory_space<vmem>>, %arg7: memref<8x4xf32, #tpu.memory_space<vmem>>, %arg8: memref<8x1280xf32, #tpu.memory_space<vmem>>) attributes {dimension_semantics = [], scalar_prefetch = 0 : i64, scratch_operands = 0 : i64, tpu.core_type = #tpu.core_type<tc>} {
    %c0 = arith.constant 0 : index
    %c0_0 = arith.constant 0 : index
    %0 = vector.load %arg0[%c0, %c0_0] : memref<8x1280xf32, #tpu.memory_space<vmem>>, vector<8x1280xf32>
    %c0_1 = arith.constant 0 : index
    %c0_2 = arith.constant 0 : index
    %1 = vector.load %arg1[%c0_1, %c0_2] : memref<1280x8xbf16, #tpu.memory_space<vmem>>, vector<1280x8xbf16>
    %2 = arith.extf %1 : vector<1280x8xbf16> to vector<1280x8xf32>
    %cst = arith.constant dense<0.000000e+00> : vector<8x8xf32>
    %3 = tpu.matmul %0, %2, %cst {dimension_numbers = #tpu.dot_dimension_numbers<[1], [0], [0], [1], [0, 0, 1, 1], [], []>} : vector<8x1280xf32>, vector<1280x8xf32>, vector<8x8xf32> -> vector<8x8xf32>
    %c0_3 = arith.constant 0 : index
    %c0_4 = arith.constant 0 : index
    %4 = vector.load %arg2[%c0_3, %c0_4] : memref<1x8xf32, #tpu.memory_space<vmem>>, vector<1x8xf32>
    %5 = vector.broadcast %4 : vector<1x8xf32> to vector<8x8xf32>
    %6 = arith.addf %3, %5 : vector<8x8xf32>
    %7 = vector.extract_strided_slice %6 {offsets = [0, 0], sizes = [8, 4], strides = [1, 1]} : vector<8x8xf32> to vector<8x4xf32>
    %8 = vector.extract_strided_slice %6 {offsets = [0, 4], sizes = [8, 4], strides = [1, 1]} : vector<8x8xf32> to vector<8x4xf32>
    %cst_5 = arith.constant 5.000000e-01 : f32
    %9 = vector.broadcast %cst_5 : f32 to vector<8x4xf32>
    %10 = arith.mulf %9, %8 : vector<8x4xf32>
    %11 = math.exp %10 : vector<8x4xf32>
    %c0_6 = arith.constant 0 : index
    %c0_7 = arith.constant 0 : index
    %12 = vector.load %arg3[%c0_6, %c0_7] : memref<8x4xf32, #tpu.memory_space<vmem>>, vector<8x4xf32>
    %13 = arith.mulf %12, %11 : vector<8x4xf32>
    %14 = arith.addf %7, %13 : vector<8x4xf32>
    %c0_8 = arith.constant 0 : index
    %c0_9 = arith.constant 0 : index
    %15 = vector.load %arg4[%c0_8, %c0_9] : memref<4x1280xbf16, #tpu.memory_space<vmem>>, vector<4x1280xbf16>
    %16 = arith.extf %15 : vector<4x1280xbf16> to vector<4x1280xf32>
    %cst_10 = arith.constant dense<0.000000e+00> : vector<8x1280xf32>
    %17 = tpu.matmul %14, %16, %cst_10 {dimension_numbers = #tpu.dot_dimension_numbers<[1], [0], [0], [1], [0, 0, 1, 1], [], []>} : vector<8x4xf32>, vector<4x1280xf32>, vector<8x1280xf32> -> vector<8x1280xf32>
    %c0_11 = arith.constant 0 : index
    %c0_12 = arith.constant 0 : index
    %18 = vector.load %arg5[%c0_11, %c0_12] : memref<1x1280xf32, #tpu.memory_space<vmem>>, vector<1x1280xf32>
    %19 = vector.broadcast %18 : vector<1x1280xf32> to vector<8x1280xf32>
    %20 = arith.addf %17, %19 : vector<8x1280xf32>
    %21 = math.tanh %20 : vector<8x1280xf32>
    %c0_13 = arith.constant 0 : index
    %c0_14 = arith.constant 0 : index
    %22 = vector.load %arg6[%c0_13, %c0_14] : memref<8x4xf32, #tpu.memory_space<vmem>>, vector<8x4xf32>
    tpu.vector_store %arg6[%c0_13, %c0_14], %7 {strides = array<i32>} : memref<8x4xf32, #tpu.memory_space<vmem>>, vector<8x4xf32>,
    %c0_15 = arith.constant 0 : index
    %c0_16 = arith.constant 0 : index
    %23 = vector.load %arg7[%c0_15, %c0_16] : memref<8x4xf32, #tpu.memory_space<vmem>>, vector<8x4xf32>
    tpu.vector_store %arg7[%c0_15, %c0_16], %8 {strides = array<i32>} : memref<8x4xf32, #tpu.memory_space<vmem>>, vector<8x4xf32>,
    %c0_17 = arith.constant 0 : index
    %c0_18 = arith.constant 0 : index
    %24 = vector.load %arg8[%c0_17, %c0_18] : memref<8x1280xf32, #tpu.memory_space<vmem>>, vector<8x1280xf32>
    tpu.vector_store %arg8[%c0_17, %c0_18], %21 {strides = array<i32>} : memref<8x1280xf32, #tpu.memory_space<vmem>>, vector<8x1280xf32>,
    return
  }
}

module attributes {stable_mosaic.version = 11 : i64} {
  func.func @_linear_kernel(%arg0: i32, %arg1: i32, %arg2: memref<8x1024xf32, #tpu.memory_space<vmem>>, %arg3: memref<1024x640xbf16, #tpu.memory_space<vmem>>, %arg4: memref<1x640xf32, #tpu.memory_space<vmem>>, %arg5: memref<8x640xf32, #tpu.memory_space<vmem>>, %arg6: memref<8x640xf32, #tpu.memory_space<vmem>>) attributes {dimension_semantics = [#tpu.dimension_semantics<parallel>, #tpu.dimension_semantics<arbitrary>], iteration_bounds = array<i64: 2, 4>, scalar_prefetch = 0 : i64, scratch_operands = 1 : i64, tpu.core_type = #tpu.core_type<tc>, window_params = [{transform_indices = @transform_0, window_bounds = array<i64: 8, 1024>}, {transform_indices = @transform_1, window_bounds = array<i64: 1024, 640>}, {transform_indices = @transform_2, window_bounds = array<i64: 1, 640>}, {transform_indices = @transform_3, window_bounds = array<i64: 8, 640>}]} {
    %c0_i32 = arith.constant 0 : i32
    %0 = arith.cmpi eq, %arg1, %c0_i32 : i32
    %1 = arith.extui %0 : i1 to i32
    %c0_i32_0 = arith.constant 0 : i32
    %2 = arith.cmpi ne, %1, %c0_i32_0 : i32
    scf.if %2 {
      %cst_9 = arith.constant 0.000000e+00 : f32
      %13 = vector.broadcast %cst_9 : f32 to vector<8x640xf32>
      %c0_10 = arith.constant 0 : index
      %c0_11 = arith.constant 0 : index
      %14 = vector.load %arg6[%c0_10, %c0_11] : memref<8x640xf32, #tpu.memory_space<vmem>>, vector<8x640xf32>
      tpu.vector_store %arg6[%c0_10, %c0_11], %13 {strides = array<i32>} : memref<8x640xf32, #tpu.memory_space<vmem>>, vector<8x640xf32>,
    } else {
    }
    %c0 = arith.constant 0 : index
    %c0_1 = arith.constant 0 : index
    %3 = vector.load %arg6[%c0, %c0_1] : memref<8x640xf32, #tpu.memory_space<vmem>>, vector<8x640xf32>
    %c0_2 = arith.constant 0 : index
    %c0_3 = arith.constant 0 : index
    %4 = vector.load %arg2[%c0_2, %c0_3] : memref<8x1024xf32, #tpu.memory_space<vmem>>, vector<8x1024xf32>
    %c0_4 = arith.constant 0 : index
    %c0_5 = arith.constant 0 : index
    %5 = vector.load %arg3[%c0_4, %c0_5] : memref<1024x640xbf16, #tpu.memory_space<vmem>>, vector<1024x640xbf16>
    %6 = arith.extf %5 : vector<1024x640xbf16> to vector<1024x640xf32>
    %cst = arith.constant dense<0.000000e+00> : vector<8x640xf32>
    %7 = tpu.matmul %4, %6, %cst {dimension_numbers = #tpu.dot_dimension_numbers<[1], [0], [0], [1], [0, 0, 1, 1], [], []>} : vector<8x1024xf32>, vector<1024x640xf32>, vector<8x640xf32> -> vector<8x640xf32>
    %8 = arith.addf %3, %7 : vector<8x640xf32>
    %c0_6 = arith.constant 0 : index
    %c0_7 = arith.constant 0 : index
    %9 = vector.load %arg6[%c0_6, %c0_7] : memref<8x640xf32, #tpu.memory_space<vmem>>, vector<8x640xf32>
    tpu.vector_store %arg6[%c0_6, %c0_7], %8 {strides = array<i32>} : memref<8x640xf32, #tpu.memory_space<vmem>>, vector<8x640xf32>,
    %c3_i32 = arith.constant 3 : i32
    %10 = arith.cmpi eq, %arg1, %c3_i32 : i32
    %11 = arith.extui %10 : i1 to i32
    %c0_i32_8 = arith.constant 0 : i32
    %12 = arith.cmpi ne, %11, %c0_i32_8 : i32
    scf.if %12 {
      %c0_9 = arith.constant 0 : index
      %c0_10 = arith.constant 0 : index
      %13 = vector.load %arg6[%c0_9, %c0_10] : memref<8x640xf32, #tpu.memory_space<vmem>>, vector<8x640xf32>
      %c0_11 = arith.constant 0 : index
      %c0_12 = arith.constant 0 : index
      %14 = vector.load %arg4[%c0_11, %c0_12] : memref<1x640xf32, #tpu.memory_space<vmem>>, vector<1x640xf32>
      %15 = vector.broadcast %14 : vector<1x640xf32> to vector<8x640xf32>
      %16 = arith.addf %13, %15 : vector<8x640xf32>
      %cst_13 = arith.constant 0.000000e+00 : f32
      %17 = vector.broadcast %cst_13 : f32 to vector<8x640xf32>
      %18 = arith.maximumf %16, %17 : vector<8x640xf32>
      %c0_14 = arith.constant 0 : index
      %c0_15 = arith.constant 0 : index
      %19 = vector.load %arg5[%c0_14, %c0_15] : memref<8x640xf32, #tpu.memory_space<vmem>>, vector<8x640xf32>
      tpu.vector_store %arg5[%c0_14, %c0_15], %18 {strides = array<i32>} : memref<8x640xf32, #tpu.memory_space<vmem>>, vector<8x640xf32>,
    } else {
    }
    return
  }
  func.func @transform_0(%arg0: i32, %arg1: i32) -> (i32, i32) {
    %c0_i32 = arith.constant 0 : i32
    %c0_i32_0 = arith.constant 0 : i32
    return %c0_i32, %arg1 : i32, i32
  }
  func.func @transform_1(%arg0: i32, %arg1: i32) -> (i32, i32) {
    %c0_i32 = arith.constant 0 : i32
    return %arg1, %arg0 : i32, i32
  }
  func.func @transform_2(%arg0: i32, %arg1: i32) -> (i32, i32) {
    %c0_i32 = arith.constant 0 : i32
    %c0_i32_0 = arith.constant 0 : i32
    return %c0_i32, %arg0 : i32, i32
  }
  func.func @transform_3(%arg0: i32, %arg1: i32) -> (i32, i32) {
    %c0_i32 = arith.constant 0 : i32
    %c0_i32_0 = arith.constant 0 : i32
    return %c0_i32, %arg0 : i32, i32
  }
}

module attributes {stable_mosaic.version = 11 : i64} {
  func.func @_linear_kernel(%arg0: i32, %arg1: i32, %arg2: memref<8x640xf32, #tpu.memory_space<vmem>>, %arg3: memref<640x640xbf16, #tpu.memory_space<vmem>>, %arg4: memref<1x640xf32, #tpu.memory_space<vmem>>, %arg5: memref<8x640xf32, #tpu.memory_space<vmem>>, %arg6: memref<8x640xf32, #tpu.memory_space<vmem>>) attributes {dimension_semantics = [#tpu.dimension_semantics<parallel>, #tpu.dimension_semantics<arbitrary>], iteration_bounds = array<i64: 2, 2>, scalar_prefetch = 0 : i64, scratch_operands = 1 : i64, tpu.core_type = #tpu.core_type<tc>, window_params = [{transform_indices = @transform_0, window_bounds = array<i64: 8, 640>}, {transform_indices = @transform_1, window_bounds = array<i64: 640, 640>}, {transform_indices = @transform_2, window_bounds = array<i64: 1, 640>}, {transform_indices = @transform_3, window_bounds = array<i64: 8, 640>}]} {
    %c0_i32 = arith.constant 0 : i32
    %0 = arith.cmpi eq, %arg1, %c0_i32 : i32
    %1 = arith.extui %0 : i1 to i32
    %c0_i32_0 = arith.constant 0 : i32
    %2 = arith.cmpi ne, %1, %c0_i32_0 : i32
    scf.if %2 {
      %cst_9 = arith.constant 0.000000e+00 : f32
      %13 = vector.broadcast %cst_9 : f32 to vector<8x640xf32>
      %c0_10 = arith.constant 0 : index
      %c0_11 = arith.constant 0 : index
      %14 = vector.load %arg6[%c0_10, %c0_11] : memref<8x640xf32, #tpu.memory_space<vmem>>, vector<8x640xf32>
      tpu.vector_store %arg6[%c0_10, %c0_11], %13 {strides = array<i32>} : memref<8x640xf32, #tpu.memory_space<vmem>>, vector<8x640xf32>,
    } else {
    }
    %c0 = arith.constant 0 : index
    %c0_1 = arith.constant 0 : index
    %3 = vector.load %arg6[%c0, %c0_1] : memref<8x640xf32, #tpu.memory_space<vmem>>, vector<8x640xf32>
    %c0_2 = arith.constant 0 : index
    %c0_3 = arith.constant 0 : index
    %4 = vector.load %arg2[%c0_2, %c0_3] : memref<8x640xf32, #tpu.memory_space<vmem>>, vector<8x640xf32>
    %c0_4 = arith.constant 0 : index
    %c0_5 = arith.constant 0 : index
    %5 = vector.load %arg3[%c0_4, %c0_5] : memref<640x640xbf16, #tpu.memory_space<vmem>>, vector<640x640xbf16>
    %6 = arith.extf %5 : vector<640x640xbf16> to vector<640x640xf32>
    %cst = arith.constant dense<0.000000e+00> : vector<8x640xf32>
    %7 = tpu.matmul %4, %6, %cst {dimension_numbers = #tpu.dot_dimension_numbers<[1], [0], [0], [1], [0, 0, 1, 1], [], []>} : vector<8x640xf32>, vector<640x640xf32>, vector<8x640xf32> -> vector<8x640xf32>
    %8 = arith.addf %3, %7 : vector<8x640xf32>
    %c0_6 = arith.constant 0 : index
    %c0_7 = arith.constant 0 : index
    %9 = vector.load %arg6[%c0_6, %c0_7] : memref<8x640xf32, #tpu.memory_space<vmem>>, vector<8x640xf32>
    tpu.vector_store %arg6[%c0_6, %c0_7], %8 {strides = array<i32>} : memref<8x640xf32, #tpu.memory_space<vmem>>, vector<8x640xf32>,
    %c1_i32 = arith.constant 1 : i32
    %10 = arith.cmpi eq, %arg1, %c1_i32 : i32
    %11 = arith.extui %10 : i1 to i32
    %c0_i32_8 = arith.constant 0 : i32
    %12 = arith.cmpi ne, %11, %c0_i32_8 : i32
    scf.if %12 {
      %c0_9 = arith.constant 0 : index
      %c0_10 = arith.constant 0 : index
      %13 = vector.load %arg6[%c0_9, %c0_10] : memref<8x640xf32, #tpu.memory_space<vmem>>, vector<8x640xf32>
      %c0_11 = arith.constant 0 : index
      %c0_12 = arith.constant 0 : index
      %14 = vector.load %arg4[%c0_11, %c0_12] : memref<1x640xf32, #tpu.memory_space<vmem>>, vector<1x640xf32>
      %15 = vector.broadcast %14 : vector<1x640xf32> to vector<8x640xf32>
      %16 = arith.addf %13, %15 : vector<8x640xf32>
      %17 = math.tanh %16 : vector<8x640xf32>
      %c0_13 = arith.constant 0 : index
      %c0_14 = arith.constant 0 : index
      %18 = vector.load %arg5[%c0_13, %c0_14] : memref<8x640xf32, #tpu.memory_space<vmem>>, vector<8x640xf32>
      tpu.vector_store %arg5[%c0_13, %c0_14], %17 {strides = array<i32>} : memref<8x640xf32, #tpu.memory_space<vmem>>, vector<8x640xf32>,
    } else {
    }
    return
  }
  func.func @transform_0(%arg0: i32, %arg1: i32) -> (i32, i32) {
    %c0_i32 = arith.constant 0 : i32
    %c0_i32_0 = arith.constant 0 : i32
    return %c0_i32, %arg1 : i32, i32
  }
  func.func @transform_1(%arg0: i32, %arg1: i32) -> (i32, i32) {
    %c0_i32 = arith.constant 0 : i32
    return %arg1, %arg0 : i32, i32
  }
  func.func @transform_2(%arg0: i32, %arg1: i32) -> (i32, i32) {
    %c0_i32 = arith.constant 0 : i32
    %c0_i32_0 = arith.constant 0 : i32
    return %c0_i32, %arg0 : i32, i32
  }
  func.func @transform_3(%arg0: i32, %arg1: i32) -> (i32, i32) {
    %c0_i32 = arith.constant 0 : i32
    %c0_i32_0 = arith.constant 0 : i32
    return %c0_i32, %arg0 : i32, i32
  }
}

module attributes {stable_mosaic.version = 11 : i64} {
  func.func @_linear_kernel(%arg0: i32, %arg1: i32, %arg2: memref<8x640xf32, #tpu.memory_space<vmem>>, %arg3: memref<640x1024xbf16, #tpu.memory_space<vmem>>, %arg4: memref<1x1024xf32, #tpu.memory_space<vmem>>, %arg5: memref<8x1024xf32, #tpu.memory_space<vmem>>, %arg6: memref<8x1024xf32, #tpu.memory_space<vmem>>) attributes {dimension_semantics = [#tpu.dimension_semantics<parallel>, #tpu.dimension_semantics<arbitrary>], iteration_bounds = array<i64: 4, 2>, scalar_prefetch = 0 : i64, scratch_operands = 1 : i64, tpu.core_type = #tpu.core_type<tc>, window_params = [{transform_indices = @transform_0, window_bounds = array<i64: 8, 640>}, {transform_indices = @transform_1, window_bounds = array<i64: 640, 1024>}, {transform_indices = @transform_2, window_bounds = array<i64: 1, 1024>}, {transform_indices = @transform_3, window_bounds = array<i64: 8, 1024>}]} {
    %c0_i32 = arith.constant 0 : i32
    %0 = arith.cmpi eq, %arg1, %c0_i32 : i32
    %1 = arith.extui %0 : i1 to i32
    %c0_i32_0 = arith.constant 0 : i32
    %2 = arith.cmpi ne, %1, %c0_i32_0 : i32
    scf.if %2 {
      %cst_9 = arith.constant 0.000000e+00 : f32
      %13 = vector.broadcast %cst_9 : f32 to vector<8x1024xf32>
      %c0_10 = arith.constant 0 : index
      %c0_11 = arith.constant 0 : index
      %14 = vector.load %arg6[%c0_10, %c0_11] : memref<8x1024xf32, #tpu.memory_space<vmem>>, vector<8x1024xf32>
      tpu.vector_store %arg6[%c0_10, %c0_11], %13 {strides = array<i32>} : memref<8x1024xf32, #tpu.memory_space<vmem>>, vector<8x1024xf32>,
    } else {
    }
    %c0 = arith.constant 0 : index
    %c0_1 = arith.constant 0 : index
    %3 = vector.load %arg6[%c0, %c0_1] : memref<8x1024xf32, #tpu.memory_space<vmem>>, vector<8x1024xf32>
    %c0_2 = arith.constant 0 : index
    %c0_3 = arith.constant 0 : index
    %4 = vector.load %arg2[%c0_2, %c0_3] : memref<8x640xf32, #tpu.memory_space<vmem>>, vector<8x640xf32>
    %c0_4 = arith.constant 0 : index
    %c0_5 = arith.constant 0 : index
    %5 = vector.load %arg3[%c0_4, %c0_5] : memref<640x1024xbf16, #tpu.memory_space<vmem>>, vector<640x1024xbf16>
    %6 = arith.extf %5 : vector<640x1024xbf16> to vector<640x1024xf32>
    %cst = arith.constant dense<0.000000e+00> : vector<8x1024xf32>
    %7 = tpu.matmul %4, %6, %cst {dimension_numbers = #tpu.dot_dimension_numbers<[1], [0], [0], [1], [0, 0, 1, 1], [], []>} : vector<8x640xf32>, vector<640x1024xf32>, vector<8x1024xf32> -> vector<8x1024xf32>
    %8 = arith.addf %3, %7 : vector<8x1024xf32>
    %c0_6 = arith.constant 0 : index
    %c0_7 = arith.constant 0 : index
    %9 = vector.load %arg6[%c0_6, %c0_7] : memref<8x1024xf32, #tpu.memory_space<vmem>>, vector<8x1024xf32>
    tpu.vector_store %arg6[%c0_6, %c0_7], %8 {strides = array<i32>} : memref<8x1024xf32, #tpu.memory_space<vmem>>, vector<8x1024xf32>,
    %c1_i32 = arith.constant 1 : i32
    %10 = arith.cmpi eq, %arg1, %c1_i32 : i32
    %11 = arith.extui %10 : i1 to i32
    %c0_i32_8 = arith.constant 0 : i32
    %12 = arith.cmpi ne, %11, %c0_i32_8 : i32
    scf.if %12 {
      %c0_9 = arith.constant 0 : index
      %c0_10 = arith.constant 0 : index
      %13 = vector.load %arg6[%c0_9, %c0_10] : memref<8x1024xf32, #tpu.memory_space<vmem>>, vector<8x1024xf32>
      %c0_11 = arith.constant 0 : index
      %c0_12 = arith.constant 0 : index
      %14 = vector.load %arg4[%c0_11, %c0_12] : memref<1x1024xf32, #tpu.memory_space<vmem>>, vector<1x1024xf32>
      %15 = vector.broadcast %14 : vector<1x1024xf32> to vector<8x1024xf32>
      %16 = arith.addf %13, %15 : vector<8x1024xf32>
      %17 = arith.negf %16 : vector<8x1024xf32>
      %18 = math.exp %17 : vector<8x1024xf32>
      %cst_13 = arith.constant 1.000000e+00 : f32
      %19 = vector.broadcast %cst_13 : f32 to vector<8x1024xf32>
      %20 = arith.addf %19, %18 : vector<8x1024xf32>
      %21 = arith.divf %19, %20 : vector<8x1024xf32>
      %c0_14 = arith.constant 0 : index
      %c0_15 = arith.constant 0 : index
      %22 = vector.load %arg5[%c0_14, %c0_15] : memref<8x1024xf32, #tpu.memory_space<vmem>>, vector<8x1024xf32>
      tpu.vector_store %arg5[%c0_14, %c0_15], %21 {strides = array<i32>} : memref<8x1024xf32, #tpu.memory_space<vmem>>, vector<8x1024xf32>,
    } else {
    }
    return
  }
  func.func @transform_0(%arg0: i32, %arg1: i32) -> (i32, i32) {
    %c0_i32 = arith.constant 0 : i32
    %c0_i32_0 = arith.constant 0 : i32
    return %c0_i32, %arg1 : i32, i32
  }
  func.func @transform_1(%arg0: i32, %arg1: i32) -> (i32, i32) {
    %c0_i32 = arith.constant 0 : i32
    return %arg1, %arg0 : i32, i32
  }
  func.func @transform_2(%arg0: i32, %arg1: i32) -> (i32, i32) {
    %c0_i32 = arith.constant 0 : i32
    %c0_i32_0 = arith.constant 0 : i32
    return %c0_i32, %arg0 : i32, i32
  }
  func.func @transform_3(%arg0: i32, %arg1: i32) -> (i32, i32) {
    %c0_i32 = arith.constant 0 : i32
    %c0_i32_0 = arith.constant 0 : i32
    return %c0_i32, %arg0 : i32, i32
  }
}

</mosaic_0001>

<bundles_post_ra>
// kernel: dsprites_vae_forward.5
= control target key start
LH: loop header
LB: loop body
LE: loop exit
PB: predicated region body
PF: predicated region fallthrough
CT: control target
= control target key end

     0   :  { %14 = vsyncpa [#allocation3], 0  ;;  %s1806_s0 = inlined_call_operand.vmem [shape: f32[8,1280], index: 0, kind: input, shape index: {}]   ;;  %s1807_s1 = inlined_call_operand.vmem [shape: bf16[1280,8], index: 1, kind: input, shape index: {}]   ;;  %s1808_s2 = inlined_call_operand.hbm [shape: f32[1,8], index: 2, kind: input, shape index: {}]   ;;  %s1809_s3 = inlined_call_operand.vmem [shape: f32[8,4], index: 3, kind: input, shape index: {}]   ;;  %s1810_s4 = inlined_call_operand.hbm [shape: bf16[4,1280], index: 4, kind: input, shape index: {}]   ;;  %s1811_s5 = inlined_call_operand.vmem [shape: f32[1,1280], index: 5, kind: input, shape index: {}]   ;;  %s1812_s6 = inlined_call_operand.vmem [shape: f32[8,4], index: 6, kind: output, shape index: {0}]   ;;  %s1813_s7 = inlined_call_operand.vmem [shape: f32[8,4], index: 7, kind: output, shape index: {1}]   ;;  %s1814_s8 = inlined_call_operand.vmem [shape: f32[8,1280], index: 8, kind: output, shape index: {2}]  }
   0x1   :  { %s25_s29 = sshll.u32 %s1808_s2, 4  ;;  %s26_s29 = int_to_ptr.hbm [resolvable:$true] %s25_s29 }
   0x2   :  { %15 = vsyncpa [#allocation5], 0  ;;  %s1415_s30 = smov [#allocation2]   ;;  %s38_s12 = sshll.u32 %s1810_s4, 4  ;;  %s39_s12 = int_to_ptr.hbm [resolvable:$true] %s38_s12 }
   0x3   :  { %s27_s9 = sshll.u32 %s1415_s30, 4  ;;  %s1416_s13 = smov [#allocation4]   ;;  %s28_s9 = int_to_ptr.vmem [resolvable:$true] %s27_s9 }
   0x4   :  { %30 = dma.hbm_to_vmem [thread:$0]  %s26_s29, 16, %s28_s9, [#allocation3]  }
   0x5   :  { %s40_s14 = sshll.u32 %s1416_s13, 4  ;;  %s41_s14 = int_to_ptr.vmem [resolvable:$true] %s40_s14 }
   0x6   :  { %43 = dma.hbm_to_vmem [thread:$0]  %s39_s12, 320, %s41_s14, [#allocation5]  }
   0x7   :  { %1411 = dma.done.wait [#allocation3], 16  }
   0x8   :  { %1412 = vsyncadd [#allocation3], 4294967280 }
   0x9   :  { %1413 = dma.done.wait [#allocation5], 320  }
   0xa   :  { %1414 = vsyncadd [#allocation5], 4294966976  ;;  %v1264_v0 = vld [vmem:[%s1807_s1 + $0x38] sm:$0xff]   ;;  %v1263_v2 = vld [vmem:[%s1807_s1 + $0x30] sm:$0xff]   ;;  %vm657_vm0 = vcmask 1043456   ;;  %vm653_vm1 = vcmask 31744  }
   0xb   :  { %v1272_v1 = vld [vmem:[%s1807_s1 + $0x78] sm:$0xff]   ;;  %v969_v3 = vunpack.c.h.bf16 %v1264_v0  ;;  %v968_v4 = vunpack.c.l.bf16 %v1264_v0  ;;  %v1271_v6 = vld [vmem:[%s1807_s1 + $0x70] sm:$0xff]   ;;  %v965_v12 = vunpack.c.h.bf16 %v1263_v2  ;;  %v1262_v17 = vld [vmem:[%s1807_s1 + $0x28] sm:$0xff]   ;;  %v964_v21 = vunpack.c.l.bf16 %v1263_v2  ;;  %s1417_s25 = smov 124  }
   0xc   :  { %v1001_v5 = vunpack.c.h.bf16 %v1272_v1  ;;  %v1280_v7 = vld [vmem:[%s1807_s1 + $0xb8] sm:$0xff]   ;;  %v1000_v8 = vunpack.c.l.bf16 %v1272_v1  ;;  %v1279_v11 = vld [vmem:[%s1807_s1 + $0xb0] sm:$0xff]   ;;  %v997_v13 = vunpack.c.h.bf16 %v1271_v6  ;;  %v1270_v18 = vld [vmem:[%s1807_s1 + $0x68] sm:$0xff]   ;;  %v996_v22 = vunpack.c.l.bf16 %v1271_v6 }
   0xd   :  { %v1033_v9 = vunpack.c.h.bf16 %v1280_v7  ;;  %v1288_v10 = vld [vmem:[%s1807_s1 + $0xf8] sm:$0xff]   ;;  %388 = vmatpush.msra.mxu0 %v969_v3  ;;  %v1032_v14 = vunpack.c.l.bf16 %v1280_v7  ;;  %v1287_v16 = vld [vmem:[%s1807_s1 + $0xf0] sm:$0xff]   ;;  %v1029_v19 = vunpack.c.h.bf16 %v1279_v11  ;;  %v1278_v23 = vld [vmem:[%s1807_s1 + $0xa8] sm:$0xff]   ;;  %v1028_v24 = vunpack.c.l.bf16 %v1279_v11 }
   0xe   :  { %408 = vmatpush.msra.mxu1 %v1001_v5  ;;  %v1065_v15 = vunpack.c.h.bf16 %v1288_v10  ;;  %v1064_v20 = vunpack.c.l.bf16 %v1288_v10  ;;  %v1061_v25 = vunpack.c.h.bf16 %v1287_v16  ;;  %v961_v26 = vunpack.c.h.bf16 %v1262_v17  ;;  %v1286_v28 = vld [vmem:[%s1807_s1 + $0xe8] sm:$0xff]   ;;  %v1261_v29 = vld [vmem:[%s1807_s1 + $0x20] sm:$0xff]   ;;  %v1260_v41 = vld [vmem:[%s1807_s1 + $0x18] sm:$0xff]  }
   0xf   :  { %428 = vmatpush.msra.mxu2 %v1033_v9  ;;  %389 = vmatpush.msra.mxu0 %v968_v4  ;;  %v993_v27 = vunpack.c.h.bf16 %v1270_v18  ;;  %v1269_v30 = vld [vmem:[%s1807_s1 + $0x60] sm:$0xff]   ;;  %v1025_v31 = vunpack.c.h.bf16 %v1278_v23  ;;  %v1060_v32 = vunpack.c.l.bf16 %v1287_v16  ;;  %v960_v33 = vunpack.c.l.bf16 %v1262_v17  ;;  %v1268_v42 = vld [vmem:[%s1807_s1 + $0x58] sm:$0xff]   ;;  %v1259_v53 = vld [vmem:[%s1807_s1 + $0x10] sm:$0xff]  }
  0x10   :  { %409 = vmatpush.msra.mxu1 %v1000_v8  ;;  %448 = vmatpush.msra.mxu3 %v1065_v15  ;;  %v992_v34 = vunpack.c.l.bf16 %v1270_v18  ;;  %v1277_v35 = vld [vmem:[%s1807_s1 + $0xa0] sm:$0xff]   ;;  %v1024_v36 = vunpack.c.l.bf16 %v1278_v23  ;;  %v1057_v37 = vunpack.c.h.bf16 %v1286_v28  ;;  %v957_v38 = vunpack.c.h.bf16 %v1261_v29  ;;  %v1276_v47 = vld [vmem:[%s1807_s1 + $0x98] sm:$0xff]   ;;  %v1267_v54 = vld [vmem:[%s1807_s1 + $0x50] sm:$0xff]  }
  0x11   :  { %429 = vmatpush.msra.mxu2 %v1032_v14  ;;  %390 = vmatpush.msra.mxu0 %v965_v12  ;;  %v989_v39 = vunpack.c.h.bf16 %v1269_v30  ;;  %v1285_v40 = vld [vmem:[%s1807_s1 + $0xe0] sm:$0xff]   ;;  %v1021_v43 = vunpack.c.h.bf16 %v1277_v35  ;;  %v1056_v44 = vunpack.c.l.bf16 %v1286_v28  ;;  %v956_v45 = vunpack.c.l.bf16 %v1261_v29  ;;  %v1284_v52 = vld [vmem:[%s1807_s1 + $0xd8] sm:$0xff]   ;;  %v1275_v59 = vld [vmem:[%s1807_s1 + $0x90] sm:$0xff]  }
  0x12   :  { %410 = vmatpush.msra.mxu1 %v997_v13  ;;  %449 = vmatpush.msra.mxu3 %v1064_v20  ;;  %v988_v46 = vunpack.c.l.bf16 %v1269_v30  ;;  %v1020_v48 = vunpack.c.l.bf16 %v1277_v35  ;;  %v1053_v49 = vunpack.c.h.bf16 %v1285_v40  ;;  %v953_v50 = vunpack.c.h.bf16 %v1260_v41  ;;  %v1283_v0 = vld [vmem:[%s1807_s1 + $0xd0] sm:$0xff]   ;;  %v1258_v1 = vld [vmem:[%s1807_s1 + $0x8] sm:$0xff]   ;;  %v939_v13 = vld [vmem:[%s1807_s1] sm:$0xff]  }
  0x13   :  { %430 = vmatpush.msra.mxu2 %v1029_v19  ;;  %391 = vmatpush.msra.mxu0 %v964_v21  ;;  %v985_v51 = vunpack.c.h.bf16 %v1268_v42  ;;  %v1017_v55 = vunpack.c.h.bf16 %v1276_v47  ;;  %v1052_v56 = vunpack.c.l.bf16 %v1285_v40  ;;  %v952_v57 = vunpack.c.l.bf16 %v1260_v41  ;;  %v1266_v2 = vld [vmem:[%s1807_s1 + $0x48] sm:$0xff]   ;;  %v1265_v14 = vld [vmem:[%s1807_s1 + $0x40] sm:$0xff]   ;;  %v1320_v40 = vld [vmem:[%s1807_s1 + $0x1f8] sm:$0xff]  }
  0x14   :  { %411 = vmatpush.msra.mxu1 %v996_v22  ;;  %450 = vmatpush.msra.mxu3 %v1061_v25  ;;  %v984_v58 = vunpack.c.l.bf16 %v1268_v42  ;;  %v1016_v60 = vunpack.c.l.bf16 %v1276_v47  ;;  %v1049_v61 = vunpack.c.h.bf16 %v1284_v52  ;;  %v949_v62 = vunpack.c.h.bf16 %v1259_v53  ;;  %v1274_v7 = vld [vmem:[%s1807_s1 + $0x88] sm:$0xff]   ;;  %v1273_v19 = vld [vmem:[%s1807_s1 + $0x80] sm:$0xff]   ;;  %v1304_v25 = vld [vmem:[%s1807_s1 + $0x178] sm:$0xff]  }
  0x15   :  { %431 = vmatpush.msra.mxu2 %v1028_v24  ;;  %392 = vmatpush.msra.mxu0 %v961_v26  ;;  %v981_v63 = vunpack.c.h.bf16 %v1267_v54  ;;  %v1013_v3 = vunpack.c.h.bf16 %v1275_v59  ;;  %v1048_v4 = vunpack.c.l.bf16 %v1284_v52  ;;  %v948_v5 = vunpack.c.l.bf16 %v1259_v53  ;;  %v1282_v12 = vld [vmem:[%s1807_s1 + $0xc8] sm:$0xff]   ;;  %v1296_v24 = vld [vmem:[%s1807_s1 + $0x138] sm:$0xff]   ;;  %v1281_v28 = vld [vmem:[%s1807_s1 + $0xc0] sm:$0xff]  }
  0x16   :  { %412 = vmatpush.msra.mxu1 %v993_v27  ;;  %451 = vmatpush.msra.mxu3 %v1060_v32  ;;  %v980_v6 = vunpack.c.l.bf16 %v1267_v54  ;;  %v1012_v8 = vunpack.c.l.bf16 %v1275_v59  ;;  %v1045_v9 = vunpack.c.h.bf16 %v1283_v0  ;;  %v945_v10 = vunpack.c.h.bf16 %v1258_v1  ;;  %v1319_v52 = vld [vmem:[%s1807_s1 + $0x1f0] sm:$0xff]  }
  0x17   :  { %432 = vmatpush.msra.mxu2 %v1025_v31  ;;  %393 = vmatpush.msra.mxu0 %v960_v33  ;;  %v977_v11 = vunpack.c.h.bf16 %v1266_v2  ;;  %v1009_v15 = vunpack.c.h.bf16 %v1274_v7  ;;  %v1044_v16 = vunpack.c.l.bf16 %v1283_v0  ;;  %v944_v17 = vunpack.c.l.bf16 %v1258_v1  ;;  %v1312_v33 = vld [vmem:[%s1807_s1 + $0x1b8] sm:$0xff]   ;;  %v1318_v0 = vld [vmem:[%s1807_s1 + $0x1e8] sm:$0xff]  }
  0x18   :  { %413 = vmatpush.msra.mxu1 %v992_v34  ;;  %452 = vmatpush.msra.mxu3 %v1057_v37  ;;  %v976_v18 = vunpack.c.l.bf16 %v1266_v2  ;;  %v1008_v20 = vunpack.c.l.bf16 %v1274_v7  ;;  %v1041_v21 = vunpack.c.h.bf16 %v1282_v12  ;;  %v941_v22 = vunpack.c.h.bf16 %v939_v13  ;;  %v1295_v34 = vld [vmem:[%s1807_s1 + $0x130] sm:$0xff]  }
  0x19   :  { %433 = vmatpush.msra.mxu2 %v1024_v36  ;;  %394 = vmatpush.msra.mxu0 %v957_v38  ;;  %v973_v23 = vunpack.c.h.bf16 %v1265_v14  ;;  %v1005_v26 = vunpack.c.h.bf16 %v1273_v19  ;;  %v1040_v27 = vunpack.c.l.bf16 %v1282_v12  ;;  %v940_v29 = vunpack.c.l.bf16 %v939_v13  ;;  %v1303_v37 = vld [vmem:[%s1807_s1 + $0x170] sm:$0xff]   ;;  %v1317_v12 = vld [vmem:[%s1807_s1 + $0x1e0] sm:$0xff]  }
  0x1a   :  { %414 = vmatpush.msra.mxu1 %v989_v39  ;;  %453 = vmatpush.msra.mxu3 %v1056_v44  ;;  %v972_v30 = vunpack.c.l.bf16 %v1265_v14  ;;  %v1097_v31 = vunpack.c.h.bf16 %v1296_v24  ;;  %v1129_v32 = vunpack.c.h.bf16 %v1304_v25  ;;  %v1004_v35 = vunpack.c.l.bf16 %v1273_v19 }
  0x1b   :  { %434 = vmatpush.msra.mxu2 %v1021_v43  ;;  %395 = vmatpush.msra.mxu0 %v956_v45  ;;  %v1037_v36 = vunpack.c.h.bf16 %v1281_v28  ;;  %v1096_v38 = vunpack.c.l.bf16 %v1296_v24  ;;  %v1128_v39 = vunpack.c.l.bf16 %v1304_v25  ;;  %v1161_v41 = vunpack.c.h.bf16 %v1312_v33  ;;  %v1311_v45 = vld [vmem:[%s1807_s1 + $0x1b0] sm:$0xff]   ;;  %v1316_v24 = vld [vmem:[%s1807_s1 + $0x1d8] sm:$0xff]  }
  0x1c   :  { %415 = vmatpush.msra.mxu1 %v988_v46  ;;  %454 = vmatpush.msra.mxu3 %v1053_v49  ;;  %v1036_v42 = vunpack.c.l.bf16 %v1281_v28  ;;  %v1093_v43 = vunpack.c.h.bf16 %v1295_v34  ;;  %v1125_v44 = vunpack.c.h.bf16 %v1303_v37  ;;  %v1294_v46 = vld [vmem:[%s1807_s1 + $0x128] sm:$0xff]   ;;  %v1160_v47 = vunpack.c.l.bf16 %v1312_v33 }
  0x1d   :  { %435 = vmatpush.msra.mxu2 %v1020_v48  ;;  %396 = vmatpush.msra.mxu0 %v953_v50  ;;  %v1193_v48 = vunpack.c.h.bf16 %v1320_v40  ;;  %v1302_v49 = vld [vmem:[%s1807_s1 + $0x168] sm:$0xff]   ;;  %v1092_v50 = vunpack.c.l.bf16 %v1295_v34  ;;  %v1157_v53 = vunpack.c.h.bf16 %v1311_v45  ;;  %v1192_v54 = vunpack.c.l.bf16 %v1320_v40 }
  0x1e   :  { %416 = vmatpush.msra.mxu1 %v985_v51  ;;  %455 = vmatpush.msra.mxu3 %v1052_v56  ;;  %v1124_v51 = vunpack.c.l.bf16 %v1303_v37  ;;  %v1121_v56 = vunpack.c.h.bf16 %v1302_v49  ;;  %v1156_v59 = vunpack.c.l.bf16 %v1311_v45  ;;  %v1188_v2 = vunpack.c.l.bf16 %v1319_v52  ;;  %v1298_v33 = vld [vmem:[%s1807_s1 + $0x148] sm:$0xff]  }
  0x1f   :  { %436 = vmatpush.msra.mxu2 %v1017_v55  ;;  %397 = vmatpush.msra.mxu0 %v952_v57  ;;  %v1089_v55 = vunpack.c.h.bf16 %v1294_v46  ;;  %v1310_v57 = vld [vmem:[%s1807_s1 + $0x1a8] sm:$0xff]   ;;  %v1184_v14 = vunpack.c.l.bf16 %v1318_v0  ;;  %v1105_v40 = vunpack.c.h.bf16 %v1298_v33 }
  0x20   :  { %417 = vmatpush.msra.mxu1 %v984_v58  ;;  %456 = vmatpush.msra.mxu3 %v1049_v61  ;;  %v1293_v58 = vld [vmem:[%s1807_s1 + $0x120] sm:$0xff]   ;;  %v1153_v1 = vunpack.c.h.bf16 %v1310_v57  ;;  %v1152_v7 = vunpack.c.l.bf16 %v1310_v57  ;;  %v57_v57 = vld [vmem:[%s1806_s0 + $0x18] sm:$0xff] }
  0x21   :  { %437 = vmatpush.msra.mxu2 %v1016_v60  ;;  %398 = vmatpush.msra.mxu0 %v949_v62  ;;  %v1189_v60 = vunpack.c.h.bf16 %v1319_v52  ;;  %v1301_v61 = vld [vmem:[%s1807_s1 + $0x160] sm:$0xff]   ;;  %v1088_v62 = vunpack.c.l.bf16 %v1294_v46  ;;  %v1104_v46 = vunpack.c.l.bf16 %v1298_v33  ;;  %v1328_v52 = vld [vmem:[%s1807_s1 + $0x238] sm:$0xff]  }
  0x22   :  { %418 = vmatpush.msra.mxu1 %v981_v63  ;;  %457 = vmatpush.msra.mxu3 %v1048_v4  ;;  %v1120_v63 = vunpack.c.l.bf16 %v1302_v49  ;;  %v1117_v4 = vunpack.c.h.bf16 %v1301_v61  ;;  %v1332_v33 = vld [vmem:[%s1807_s1 + $0x258] sm:$0xff]  }
  0x23   :  { %438 = vmatpush.msra.mxu2 %v1013_v3  ;;  %399 = vmatpush.msra.mxu0 %v948_v5  ;;  %v1085_v3 = vunpack.c.h.bf16 %v1293_v58  ;;  %v1309_v5 = vld [vmem:[%s1807_s1 + $0x1a0] sm:$0xff]  }
  0x24   :  { %419 = vmatpush.msra.mxu1 %v980_v6  ;;  %458 = vmatpush.msra.mxu3 %v1045_v9  ;;  %v1292_v6 = vld [vmem:[%s1807_s1 + $0x118] sm:$0xff]   ;;  %v1149_v13 = vunpack.c.h.bf16 %v1309_v5  ;;  %v1148_v19 = vunpack.c.l.bf16 %v1309_v5  ;;  %v1313_v5 = vld [vmem:[%s1807_s1 + $0x1c0] sm:$0xff]  }
  0x25   :  { %439 = vmatpush.msra.mxu2 %v1012_v8  ;;  %400 = vmatpush.msra.mxu0 %v945_v10  ;;  %v1185_v8 = vunpack.c.h.bf16 %v1318_v0  ;;  %v1300_v9 = vld [vmem:[%s1807_s1 + $0x158] sm:$0xff]   ;;  %v1084_v10 = vunpack.c.l.bf16 %v1293_v58  ;;  %v1225_v58 = vunpack.c.h.bf16 %v1328_v52  ;;  %v1327_v0 = vld [vmem:[%s1807_s1 + $0x230] sm:$0xff]  }
  0x26   :  { %420 = vmatpush.msra.mxu1 %v977_v11  ;;  %459 = vmatpush.msra.mxu3 %v1044_v16  ;;  %v1116_v11 = vunpack.c.l.bf16 %v1301_v61  ;;  %v1113_v16 = vunpack.c.h.bf16 %v1300_v9  ;;  %v1305_v61 = vld [vmem:[%s1807_s1 + $0x180] sm:$0xff]  }
  0x27   :  { %440 = vmatpush.msra.mxu2 %v1009_v15  ;;  %401 = vmatpush.msra.mxu0 %v944_v17  ;;  %v1081_v15 = vunpack.c.h.bf16 %v1292_v6  ;;  %v1308_v17 = vld [vmem:[%s1807_s1 + $0x198] sm:$0xff]  }
  0x28   :  { %421 = vmatpush.msra.mxu1 %v976_v18  ;;  %460 = vmatpush.msra.mxu3 %v1041_v21  ;;  %v1291_v18 = vld [vmem:[%s1807_s1 + $0x110] sm:$0xff]   ;;  %v1145_v25 = vunpack.c.h.bf16 %v1308_v17 }
  0x29   :  { %441 = vmatpush.msra.mxu2 %v1008_v20  ;;  %402 = vmatpush.msra.mxu0 %v941_v22  ;;  %v1181_v20 = vunpack.c.h.bf16 %v1317_v12  ;;  %v1299_v21 = vld [vmem:[%s1807_s1 + $0x150] sm:$0xff]   ;;  %v1080_v22 = vunpack.c.l.bf16 %v1292_v6  ;;  %v1076_v34 = vunpack.c.l.bf16 %v1291_v18 }
  0x2a   :  { %422 = vmatpush.msra.mxu1 %v973_v23  ;;  %461 = vmatpush.msra.mxu3 %v1040_v27  ;;  %v1112_v23 = vunpack.c.l.bf16 %v1300_v9  ;;  %v1077_v27 = vunpack.c.h.bf16 %v1291_v18  ;;  %v1109_v28 = vunpack.c.h.bf16 %v1299_v21 }
  0x2b   :  { %442 = vmatpush.msra.mxu2 %v1005_v26  ;;  %403 = vmatpush.msra.mxu0 %v940_v29  ;;  %v1180_v26 = vunpack.c.l.bf16 %v1317_v12  ;;  %v1307_v29 = vld [vmem:[%s1807_s1 + $0x190] sm:$0xff]   ;;  %v1326_v12 = vld [vmem:[%s1807_s1 + $0x228] sm:$0xff]  }
  0x2c   :  { %423 = vmatpush.msra.mxu1 %v972_v30  ;;  %462 = vmatpush.msra.mxu3 %v1037_v36  ;;  %v1290_v30 = vld [vmem:[%s1807_s1 + $0x108] sm:$0xff]   ;;  %v1315_v36 = vld [vmem:[%s1807_s1 + $0x1d0] sm:$0xff]   ;;  %v1141_v37 = vunpack.c.h.bf16 %v1307_v29  ;;  %v1217_v18 = vunpack.c.h.bf16 %v1326_v12 }
  0x2d   :  { %468 = vmatpush.msrb.mxu0 %v1097_v31  ;;  %443 = vmatpush.msra.mxu2 %v1004_v35  ;;  %v1144_v31 = vunpack.c.l.bf16 %v1308_v17  ;;  %v1108_v35 = vunpack.c.l.bf16 %v1299_v21  ;;  %v1072_v45 = vunpack.c.l.bf16 %v1290_v30  ;;  %v58_v17 = vld [vmem:[%s1806_s0 + $0x20] sm:$0xff] }
  0x2e   :  { %488 = vmatpush.msrb.mxu1 %v1129_v32  ;;  %463 = vmatpush.msra.mxu3 %v1036_v42  ;;  %v1177_v32 = vunpack.c.h.bf16 %v1316_v24  ;;  %v1140_v42 = vunpack.c.l.bf16 %v1307_v29  ;;  %v1324_v29 = vld [vmem:[%s1807_s1 + $0x218] sm:$0xff]  }
  0x2f   :  { %469 = vmatpush.msrb.mxu0 %v1096_v38  ;;  %508 = vmatpush.msrb.mxu2 %v1161_v41  ;;  %v1176_v38 = vunpack.c.l.bf16 %v1316_v24  ;;  %v1289_v41 = vld [vmem:[%s1807_s1 + $0x100] sm:$0xff]   ;;  %v59_v24 = vld [vmem:[%s1806_s0 + $0x28] sm:$0xff] }
  0x30   :  { %489 = vmatpush.msrb.mxu1 %v1128_v39  ;;  %528 = vmatpush.msrb.mxu3 %v1193_v48  ;;  %v1073_v39 = vunpack.c.h.bf16 %v1290_v30  ;;  %v1172_v48 = vunpack.c.l.bf16 %v1315_v36  ;;  %v1069_v49 = vunpack.c.h.bf16 %v1289_v41 }
  0x31   :  { %470 = vmatpush.msrb.mxu0 %v1093_v43  ;;  %509 = vmatpush.msrb.mxu2 %v1160_v47  ;;  %v1173_v43 = vunpack.c.h.bf16 %v1315_v36  ;;  %v1306_v47 = vld [vmem:[%s1807_s1 + $0x188] sm:$0xff]   ;;  %v1208_v36 = vunpack.c.l.bf16 %v1324_v29 }
  0x32   :  { %490 = vmatpush.msrb.mxu1 %v1125_v44  ;;  %529 = vmatpush.msrb.mxu3 %v1192_v54  ;;  %v1297_v44 = vld [vmem:[%s1807_s1 + $0x140] sm:$0xff]   ;;  %v1314_v54 = vld [vmem:[%s1807_s1 + $0x1c8] sm:$0xff]  }
  0x33   :  { %471 = vmatpush.msrb.mxu0 %v1092_v50  ;;  %510 = vmatpush.msrb.mxu2 %v1157_v53  ;;  %v56_v50 = vld [vmem:[%s1806_s0 + $0x10] sm:$0xff]  ;;  %v1137_v53 = vunpack.c.h.bf16 %v1306_v47  ;;  %v1168_v6 = vunpack.c.l.bf16 %v1314_v54 }
  0x34   :  { %491 = vmatpush.msrb.mxu1 %v1124_v51  ;;  %530 = vmatpush.msrb.mxu3 %v1189_v60  ;;  %v1101_v51 = vunpack.c.h.bf16 %v1297_v44  ;;  %v1336_v60 = vld [vmem:[%s1807_s1 + $0x278] sm:$0xff]  }
  0x35   :  { %472 = vmatpush.msrb.mxu0 %v1089_v55  ;;  %511 = vmatpush.msrb.mxu2 %v1156_v59  ;;  %v1068_v55 = vunpack.c.l.bf16 %v1289_v41  ;;  %v1100_v59 = vunpack.c.l.bf16 %v1297_v44  ;;  %v1256_v9 = vunpack.c.l.bf16 %v1336_v60  ;;  %v1322_v41 = vld [vmem:[%s1807_s1 + $0x208] sm:$0xff]  }
  0x36   :  { %492 = vmatpush.msrb.mxu1 %v1121_v56  ;;  %531 = vmatpush.msrb.mxu3 %v1188_v2  ;;  %v54_v56 = vld [vmem:[%s1806_s0] sm:$0xff]  ;;  %v55_v2 = vld [vmem:[%s1806_s0 + $0x8] sm:$0xff]  ;;  %v1201_v44 = vunpack.c.h.bf16 %v1322_v41 }
  0x37   :  { %473 = vmatpush.msrb.mxu0 %v1088_v62  ;;  %512 = vmatpush.msrb.mxu2 %v1153_v1  ;;  %v1136_v62 = vunpack.c.l.bf16 %v1306_v47  ;;  %v1224_v1 = vunpack.c.l.bf16 %v1328_v52  ;;  %v1321_v47 = vld [vmem:[%s1807_s1 + $0x200] sm:$0xff]  }
  0x38   :  { %493 = vmatpush.msrb.mxu1 %v1120_v63  ;;  %532 = vmatpush.msrb.mxu3 %v1185_v8  ;;  %v1169_v63 = vunpack.c.h.bf16 %v1314_v54  ;;  %v1335_v8 = vld [vmem:[%s1807_s1 + $0x270] sm:$0xff]  }
  0x39   :  { %474 = vmatpush.msrb.mxu0 %v1085_v3  ;;  %513 = vmatpush.msrb.mxu2 %v1152_v7  ;;  %v1257_v3 = vunpack.c.h.bf16 %v1336_v60  ;;  %v1221_v7 = vunpack.c.h.bf16 %v1327_v0  ;;  %v1252_v21 = vunpack.c.l.bf16 %v1335_v8 }
  0x3a   :  { %494 = vmatpush.msrb.mxu1 %v1117_v4  ;;  %533 = vmatpush.msrb.mxu3 %v1184_v14  ;;  %v1133_v4 = vunpack.c.h.bf16 %v1305_v61  ;;  %v1220_v14 = vunpack.c.l.bf16 %v1327_v0 }
  0x3b   :  { %475 = vmatpush.msrb.mxu0 %v1084_v10  ;;  %514 = vmatpush.msrb.mxu2 %v1149_v13  ;;  %v1132_v10 = vunpack.c.l.bf16 %v1305_v61  ;;  %v60_v13 = vld [vmem:[%s1806_s0 + $0x30] sm:$0xff] }
  0x3c   :  { %495 = vmatpush.msrb.mxu1 %v1116_v11  ;;  %534 = vmatpush.msrb.mxu3 %v1181_v20  ;;  %v1165_v11 = vunpack.c.h.bf16 %v1313_v5  ;;  %v61_v20 = vld [vmem:[%s1806_s0 + $0x38] sm:$0xff] }
  0x3d   :  { %476 = vmatpush.msrb.mxu0 %v1081_v15  ;;  %515 = vmatpush.msrb.mxu2 %v1148_v19  ;;  %v1253_v15 = vunpack.c.h.bf16 %v1335_v8  ;;  %v1334_v19 = vld [vmem:[%s1807_s1 + $0x268] sm:$0xff]  }
  0x3e   :  { %496 = vmatpush.msrb.mxu1 %v1113_v16  ;;  %535 = vmatpush.msrb.mxu3 %v1180_v26  ;;  %v1164_v16 = vunpack.c.l.bf16 %v1313_v5  ;;  %v598_v8 = vld [vmem:[#allocation4] sm:$0xff] }
  0x3f   :  { %477 = vmatpush.msrb.mxu0 %v1080_v22  ;;  %516 = vmatpush.msrb.mxu2 %v1145_v25  ;;  %v1325_v22 = vld [vmem:[%s1807_s1 + $0x220] sm:$0xff]   ;;  %v1249_v25 = vunpack.c.h.bf16 %v1334_v19 }
  0x40   :  { %497 = vmatpush.msrb.mxu1 %v1112_v23  ;;  %536 = vmatpush.msrb.mxu3 %v1177_v32  ;;  %v1216_v23 = vunpack.c.l.bf16 %v1326_v12  ;;  %v1213_v26 = vunpack.c.h.bf16 %v1325_v22  ;;  %v1212_v30 = vunpack.c.l.bf16 %v1325_v22  ;;  %v1209_v32 = vunpack.c.h.bf16 %v1324_v29  ;;  %v600_v12 = vld [vmem:[#allocation4 + $0x10] sm:$0xf] }
  0x41   :  { %478 = vmatpush.msrb.mxu0 %v1077_v27  ;;  %517 = vmatpush.msrb.mxu2 %v1144_v31  ;;  %v1333_v27 = vld [vmem:[%s1807_s1 + $0x260] sm:$0xff]  }
  0x42   :  { %498 = vmatpush.msrb.mxu1 %v1109_v28  ;;  %537 = vmatpush.msrb.mxu3 %v1176_v38  ;;  %v1248_v28 = vunpack.c.l.bf16 %v1334_v19  ;;  %v1245_v31 = vunpack.c.h.bf16 %v1333_v27 }
  0x43   :  { %479 = vmatpush.msrb.mxu0 %v1076_v34  ;;  %518 = vmatpush.msrb.mxu2 %v1141_v37  ;;  %v1244_v34 = vunpack.c.l.bf16 %v1333_v27  ;;  %v1241_v37 = vunpack.c.h.bf16 %v1332_v33  ;;  %v599_v27 = vld [vmem:[#allocation4 + $0x8] sm:$0xff] }
  0x44   :  { %499 = vmatpush.msrb.mxu1 %v1108_v35  ;;  %538 = vmatpush.msrb.mxu3 %v1173_v43  ;;  %v1323_v35 = vld [vmem:[%s1807_s1 + $0x210] sm:$0xff]  }
  0x45   :  { %480 = vmatpush.msrb.mxu0 %v1073_v39  ;;  %519 = vmatpush.msrb.mxu2 %v1140_v42  ;;  %v1205_v38 = vunpack.c.h.bf16 %v1323_v35  ;;  %v1331_v39 = vld [vmem:[%s1807_s1 + $0x250] sm:$0xff]   ;;  %v1204_v42 = vunpack.c.l.bf16 %v1323_v35 }
  0x46   :  { %500 = vmatpush.msrb.mxu1 %v1105_v40  ;;  %444 = vmatmul.f32.vlgmr.msra.gmra.mxu2 %v56_v50  ;;  %v1240_v40 = vunpack.c.l.bf16 %v1332_v33  ;;  %v1237_v43 = vunpack.c.h.bf16 %v1331_v39  ;;  %v1197_v50 = vunpack.c.h.bf16 %v1321_v47 }
  0x47   :  { %481 = vmatpush.msrb.mxu0 %v1072_v45  ;;  %539 = vmatpush.msrb.mxu3 %v1172_v48  ;;  %v1330_v45 = vld [vmem:[%s1807_s1 + $0x248] sm:$0xff]   ;;  %v1200_v48 = vunpack.c.l.bf16 %v1322_v41 }
  0x48   :  { %501 = vmatpush.msrb.mxu1 %v1104_v46  ;;  %520 = vmatpush.msrb.mxu2 %v1137_v53  ;;  %v1236_v46 = vunpack.c.l.bf16 %v1331_v39  ;;  %v1232_v52 = vunpack.c.l.bf16 %v1330_v45  ;;  %v1196_v53 = vunpack.c.l.bf16 %v1321_v47  ;;  %v607_v41 = vld [vmem:[%s1811_s5 + $0x8] sm:$0x3] }
  0x49   :  { %482 = vmatpush.msrb.mxu0 %v1069_v49  ;;  %464 = vmatmul.f32.vlgmr.msra.gmra.mxu3 %v57_v57  ;;  %v1233_v49 = vunpack.c.h.bf16 %v1330_v45  ;;  %v63_v57 = vld [vmem:[%s1806_s0 + $0x48] sm:$0xff] }
  0x4a   :  { %502 = vmatpush.msrb.mxu1 %v1101_v51  ;;  %404 = vmatmul.f32.vlgmr.msra.gmra.mxu0 %v54_v56  ;;  %v1329_v51 = vld [vmem:[%s1807_s1 + $0x240] sm:$0xff]  }
  0x4b   :  { %483 = vmatpush.msrb.mxu0 %v1068_v55  ;;  %521 = vmatpush.msrb.mxu2 %v1136_v62  ;;  %v1229_v54 = vunpack.c.h.bf16 %v1329_v51  ;;  %v62_v55 = vld [vmem:[%s1806_s0 + $0x40] sm:$0xff]  ;;  %v1228_v56 = vunpack.c.l.bf16 %v1329_v51 }
  0x4c   :  { %503 = vmatpush.msrb.mxu1 %v1100_v59  ;;  %540 = vmatpush.msrb.mxu3 %v1169_v63 }
  0x4d   :  { %548 = vmatpush.msra.mxu0 %v1225_v58  ;;  %424 = vmatmul.f32.vlgmr.msra.gmra.mxu1 %v55_v2  ;;  %v1340_v58 = vld [vmem:[#allocation2] ss:$0 sm:$0xff] }
  0x4e   :  { %568 = vmatpush.msra.mxu1 %v1257_v3  ;;  %522 = vmatpush.msrb.mxu2 %v1133_v4 }
  0x4f   :  { %549 = vmatpush.msra.mxu0 %v1224_v1  ;;  %541 = vmatpush.msrb.mxu3 %v1168_v6 }
  0x50   :  { %569 = vmatpush.msra.mxu1 %v1256_v9  ;;  %523 = vmatpush.msrb.mxu2 %v1132_v10  ;;  %v601_v9 = vunpack.c.l.bf16 %v598_v8 }
  0x51   :  { %550 = vmatpush.msra.mxu0 %v1221_v7  ;;  %542 = vmatpush.msrb.mxu3 %v1165_v11 }
  0x52   :  { %524 = vmatmul.f32.vlgmr.msrb.gmra.mxu2 %v60_v13  ;;  %570 = vmatpush.msra.mxu1 %v1253_v15  ;;  %635 = vst [vmem:[#allocation1] ss:$2 sm:$0xff] %v601_v9  ;;  %v605_v15 = vunpack.c.l.bf16 %v600_v12 }
  0x53   :  { %551 = vmatpush.msra.mxu0 %v1220_v14  ;;  %543 = vmatpush.msrb.mxu3 %v1164_v16 }
  0x54   :  { %484 = vmatmul.f32.vlgmr.msrb.gmra.mxu0 %v58_v17  ;;  %544 = vmatmul.f32.vlgmr.msrb.gmra.mxu3 %v61_v20 }
  0x55   :  { %552 = vmatpush.msra.mxu0 %v1217_v18  ;;  %571 = vmatpush.msra.mxu1 %v1252_v21 }
  0x56   :  { %504 = vmatmul.f32.vlgmr.msrb.gmra.mxu1 %v59_v24  ;;  %v602_v24 = vunpack.c.h.bf16 %v598_v8 }
  0x57   :  { %553 = vmatpush.msra.mxu0 %v1216_v23  ;;  %572 = vmatpush.msra.mxu1 %v1249_v25 }
  0x58   :  { %637 = vst [vmem:[#allocation1 + $0x10] ss:$2 sm:$0xff] %v602_v24 }
  0x59   :  { %554 = vmatpush.msra.mxu0 %v1213_v26  ;;  %573 = vmatpush.msra.mxu1 %v1248_v28  ;;  %v642_v18 = vld.sshfl [vmem:[#allocation1] sm:$0xff pattern:$0x75316420]  ;;  %v643_v19 = vld.sshfl [vmem:[#allocation1 + $0x8] sm:$0xff pattern:$0x75316420] }
  0x5a   :  { %918 = vmatpush.msk.msra.mxu2 %vm657_vm0, %v642_v18  ;;  %650 = vst [vmem:[#allocation1] ss:$2 sm:$0xff] %v605_v15  ;;  %920 = vmatpush.msk.msra.mxu3 %vm657_vm0, %v643_v19 }
  0x5b   :  { %555 = vmatpush.msra.mxu0 %v1212_v30  ;;  %574 = vmatpush.msra.mxu1 %v1245_v31  ;;  %v603_v30 = vunpack.c.l.bf16 %v599_v27  ;;  %v604_v31 = vunpack.c.h.bf16 %v599_v27 }
  0x5d   :  { %556 = vmatpush.msra.mxu0 %v1209_v32  ;;  %575 = vmatpush.msra.mxu1 %v1244_v34  ;;  %639 = vst [vmem:[#allocation1 + $0x20] ss:$2 sm:$0xff] %v603_v30  ;;  %v591_v32 = vld [vmem:[%s1809_s3] sm:$0xff] }
  0x5e   :  { %641 = vst [vmem:[#allocation1 + $0x30] ss:$2 sm:$0xff] %v604_v31 }
  0x5f   :  { %557 = vmatpush.msra.mxu0 %v1208_v36  ;;  %576 = vmatpush.msra.mxu1 %v1241_v37  ;;  %v644_v28 = vld.sshfl [vmem:[#allocation1 + $0x10] sm:$0xff pattern:$0x75316420]  ;;  %v645_v29 = vld.sshfl [vmem:[#allocation1 + $0x18] sm:$0xff pattern:$0x75316420] }
  0x60   :  { %922 = vmatpush.msk.msrb.mxu2 %vm657_vm0, %v644_v28  ;;  %924 = vmatpush.msk.msrb.mxu3 %vm657_vm0, %v645_v29 }
  0x61   :  { %558 = vmatpush.msra.mxu0 %v1205_v38  ;;  %577 = vmatpush.msra.mxu1 %v1240_v40  ;;  %v651_v25 = vld.sshfl [vmem:[#allocation1] sm:$0xff pattern:$0x75316420]  ;;  %v652_v26 = vld.sshfl [vmem:[#allocation1 + $0x8] sm:$0xff pattern:$0x75316420] }
  0x63   :  { %559 = vmatpush.msra.mxu0 %v1204_v42  ;;  %578 = vmatpush.msra.mxu1 %v1237_v43  ;;  %v618_v42 = vperm.slane %v607_v41, 0  ;;  %v619_v43 = vperm.slane %v607_v41, 1 }
  0x64   :  { %v646_v36 = vld.sshfl [vmem:[#allocation1 + $0x20] sm:$0xff pattern:$0x75316420]  ;;  %v647_v37 = vld.sshfl [vmem:[#allocation1 + $0x28] sm:$0xff pattern:$0x75316420] }
  0x65   :  { %560 = vmatpush.msra.mxu0 %v1201_v44  ;;  %579 = vmatpush.msra.mxu1 %v1236_v46  ;;  %v648_v39 = vld.sshfl [vmem:[#allocation1 + $0x30] sm:$0xff pattern:$0x75316420]  ;;  %v649_v40 = vld.sshfl [vmem:[#allocation1 + $0x38] sm:$0xff pattern:$0x75316420] }
  0x66   :  { %v606_v44 = vld [vmem:[%s1811_s5] sm:$0xff] }
  0x67   :  { %561 = vmatpush.msra.mxu0 %v1200_v48  ;;  %580 = vmatpush.msra.mxu1 %v1233_v49  ;;  %v610_v49 = vperm.slane %v606_v44, 0  ;;  %v616_v9 = vperm.slane %v606_v44, 6 }
  0x69   :  { %562 = vmatpush.msra.mxu0 %v1197_v50  ;;  %581 = vmatpush.msra.mxu1 %v1232_v52  ;;  %v611_v50 = vperm.slane %v606_v44, 1 }
  0x6b   :  { %563 = vmatpush.msra.mxu0 %v1196_v53  ;;  %582 = vmatpush.msra.mxu1 %v1229_v54 }
  0x6c   :  { %564 = vmatmul.f32.vlgmr.msra.gmra.mxu0 %v62_v55 }
  0x6d   :  { %583 = vmatpush.msra.mxu1 %v1228_v56  ;;  %934 = vmatpush.msk.msrb.mxu0 %vm657_vm0, %v651_v25 }
  0x6e   :  { %584 = vmatmul.f32.vlgmr.msra.gmra.mxu1 %v63_v57  ;;  %v612_v57 = vperm.slane %v606_v44, 2 }
  0x6f   :  { %936 = vmatpush.msk.msrb.mxu1 %vm657_vm0, %v652_v26 }
  0xc7   :  { %v405_v59 = vpop.f32.mrf.mxu0 }
  0xc8   :  { %v406_v60 = vadd.f32 %v1340_v58, %v405_v59  ;;  %v613_v58 = vperm.slane %v606_v44, 3 }
  0xc9   :  { %v445_v63 = vpop.f32.mrf.mxu2 }
  0xca   :  { %v425_v61 = vpop.f32.mrf.mxu1 }
  0xcb   :  { %v426_v62 = vadd.f32 %v425_v61, %v406_v60 }
  0xcc   :  { %v465_v1 = vpop.f32.mrf.mxu3 }
  0xcd   :  { %v446_v0 = vadd.f32 %v445_v63, %v426_v62 }
  0xcf   :  { %v466_v2 = vadd.f32 %v465_v1, %v446_v0  ;;  %v614_v1 = vperm.slane %v606_v44, 4 }
  0xd1   :  { %v485_v3 = vpop.f32.mrf.mxu0 }
  0xd2   :  { %v486_v4 = vadd.f32 %v485_v3, %v466_v2  ;;  %v615_v2 = vperm.slane %v606_v44, 5 }
  0xd3   :  { %v505_v5 = vpop.f32.mrf.mxu1 }
  0xd4   :  { %v506_v6 = vadd.f32 %v505_v5, %v486_v4 }
  0xd5   :  { %v525_v7 = vpop.f32.mrf.mxu2 }
  0xd6   :  { %v526_v10 = vadd.f32 %v525_v7, %v506_v6 }
  0xd7   :  { %v545_v11 = vpop.f32.mrf.mxu3 }
  0xd8   :  { %v546_v13 = vadd.f32 %v545_v11, %v526_v10  ;;  %v617_v10 = vperm.slane %v606_v44, 7 }
  0xe9   :  { %v565_v14 = vpop.f32.mrf.mxu0 }
  0xea   :  { %v566_v16 = vadd.f32 %v565_v14, %v546_v13 }
  0xeb   :  { %v585_v17 = vpop.f32.mrf.mxu1 }
  0xec   :  { %v586_v20 = vadd.f32 %v585_v17, %v566_v16 }
  0xee   :  { %888 = vst.msk [vmem:[%s1812_s6] sm:$0xff] %vm653_vm1, %v586_v20  ;;  %v588_v21 = vmul.f32 0.5, %v586_v20 }
  0xf0   :  { %v589_v22 = vmul.f32 1.442695, %v588_v21 }
  0xf2   :  { %1341 = vpow2.f32 %v589_v22 }
  0xf8   :  { %v1342_v23 = vpop.eup %1341 }
  0xf9   :  { %593 = vrot.lane.b32.xlu0 %v1342_v23, %s1417_s25 }
 0x101   :  { %890 = vrot.lane.b32.xlu0 %v586_v20, %s1417_s25 }
 0x16b   :  { %v594_v33 = vpop.permute.xlu0 %593 }
 0x16c   :  { %v596_v34 = vmul.f32 %v594_v33, %v591_v32 }
 0x16e   :  { %v597_v35 = vadd.f32 %v596_v34, %v586_v20 }
 0x170   :  { %919 = vmatmul.msk.f32.vlgmr.msra.gmra.mxu2 %vm653_vm1, %v597_v35  ;;  %921 = vmatmul.msk.f32.vlgmr.msra.gmra.mxu3 %vm653_vm1, %v597_v35 }
 0x171   :  { %935 = vmatmul.msk.f32.vlgmr.msrb.gmra.mxu0 %vm653_vm1, %v597_v35  ;;  %937 = vmatmul.msk.f32.vlgmr.msrb.gmra.mxu1 %vm653_vm1, %v597_v35 }
 0x172   :  { %926 = vmatpush.msk.msra.mxu2 %vm657_vm0, %v646_v36  ;;  %928 = vmatpush.msk.msra.mxu3 %vm657_vm0, %v647_v37 }
 0x173   :  { %v891_v38 = vpop.permute.xlu0 %890 }
 0x174   :  { %893 = vst.msk [vmem:[%s1813_s7] sm:$0xff] %vm653_vm1, %v891_v38 }
 0x178   :  { %923 = vmatmul.msk.f32.vlgmr.msrb.gmra.mxu2 %vm653_vm1, %v597_v35  ;;  %925 = vmatmul.msk.f32.vlgmr.msrb.gmra.mxu3 %vm653_vm1, %v597_v35 }
 0x179   :  { %930 = vmatpush.msk.msrb.mxu2 %vm657_vm0, %v648_v39  ;;  %932 = vmatpush.msk.msrb.mxu3 %vm657_vm0, %v649_v40 }
 0x180   :  { %927 = vmatmul.msk.f32.vlgmr.msra.gmra.mxu2 %vm653_vm1, %v597_v35  ;;  %929 = vmatmul.msk.f32.vlgmr.msra.gmra.mxu3 %vm653_vm1, %v597_v35 }
 0x188   :  { %931 = vmatmul.msk.f32.vlgmr.msrb.gmra.mxu2 %vm653_vm1, %v597_v35  ;;  %933 = vmatmul.msk.f32.vlgmr.msrb.gmra.mxu3 %vm653_vm1, %v597_v35 }
 0x1ee   :  { %v855_v45 = vpop.f32.mrf.mxu0  ;;  %v875_v46 = vpop.f32.mrf.mxu1 }
 0x1ef   :  { %v856_v47 = vadd.f32 %v855_v45, %v618_v42  ;;  %v876_v48 = vadd.f32 %v875_v46, %v619_v43 }
 0x1f1   :  { %1343 = vtanh.f32 %v856_v47 }
 0x1f2   :  { %1345 = vtanh.f32 %v876_v48 }
 0x1f3   :  { %v695_v51 = vpop.f32.mrf.mxu2  ;;  %v715_v52 = vpop.f32.mrf.mxu3 }
 0x1f4   :  { %v696_v53 = vadd.f32 %v695_v51, %v610_v49  ;;  %v716_v54 = vadd.f32 %v715_v52, %v611_v50 }
 0x1f6   :  { %1347 = vtanh.f32 %v696_v53 }
 0x1f7   :  { %v1344_v55 = vpop.eup %1343  ;;  %1349 = vtanh.f32 %v716_v54 }
 0x1f8   :  { %v1346_v56 = vpop.eup %1345  ;;  %902 = vst [vmem:[%s1814_s8 + $0x40] sm:$0xff] %v1344_v55 }
 0x1f9   :  { %903 = vst [vmem:[%s1814_s8 + $0x48] sm:$0xff] %v1346_v56 }
 0x1fb   :  { %v735_v59 = vpop.f32.mrf.mxu2  ;;  %v755_v60 = vpop.f32.mrf.mxu3 }
 0x1fc   :  { %v1348_v61 = vpop.eup %1347  ;;  %v736_v62 = vadd.f32 %v735_v59, %v612_v57  ;;  %v756_v63 = vadd.f32 %v755_v60, %v613_v58 }
 0x1fd   :  { %v1350_v0 = vpop.eup %1349  ;;  %894 = vst [vmem:[%s1814_s8] sm:$0xff] %v1348_v61 }
 0x1fe   :  { %895 = vst [vmem:[%s1814_s8 + $0x8] sm:$0xff] %v1350_v0  ;;  %1351 = vtanh.f32 %v736_v62 }
 0x1ff   :  { %1353 = vtanh.f32 %v756_v63 }
 0x203   :  { %v775_v3 = vpop.f32.mrf.mxu2  ;;  %v795_v4 = vpop.f32.mrf.mxu3 }
 0x204   :  { %v1352_v5 = vpop.eup %1351  ;;  %v776_v6 = vadd.f32 %v775_v3, %v614_v1  ;;  %v796_v7 = vadd.f32 %v795_v4, %v615_v2 }
 0x205   :  { %v1354_v8 = vpop.eup %1353  ;;  %896 = vst [vmem:[%s1814_s8 + $0x10] sm:$0xff] %v1352_v5 }
 0x206   :  { %897 = vst [vmem:[%s1814_s8 + $0x18] sm:$0xff] %v1354_v8  ;;  %1355 = vtanh.f32 %v776_v6 }
 0x207   :  { %1357 = vtanh.f32 %v796_v7 }
 0x20b   :  { %v815_v11 = vpop.f32.mrf.mxu2  ;;  %v835_v12 = vpop.f32.mrf.mxu3 }
 0x20c   :  { %v1356_v13 = vpop.eup %1355  ;;  %v816_v14 = vadd.f32 %v815_v11, %v616_v9  ;;  %v836_v15 = vadd.f32 %v835_v12, %v617_v10 }
 0x20d   :  { %v1358_v16 = vpop.eup %1357  ;;  %898 = vst [vmem:[%s1814_s8 + $0x20] sm:$0xff] %v1356_v13 }
 0x20e   :  { %899 = vst [vmem:[%s1814_s8 + $0x28] sm:$0xff] %v1358_v16  ;;  %1359 = vtanh.f32 %v816_v14 }
 0x20f   :  { %1361 = vtanh.f32 %v836_v15 }
 0x214   :  { %v1360_v17 = vpop.eup %1359 }
 0x215   :  { %v1362_v18 = vpop.eup %1361  ;;  %900 = vst [vmem:[%s1814_s8 + $0x30] sm:$0xff] %v1360_v17 }
 0x216   :  { %901 = vst [vmem:[%s1814_s8 + $0x38] sm:$0xff] %v1362_v18 }
 0x217   :  { %916 = vsyncpa [#allocation3], 1 }
 0x218   :  { %917 = vsyncpa [#allocation5], 1 }

// kernel: dsprites_vae_forward.6
= control target key start
LH: loop header
LB: loop body
LE: loop exit
PB: predicated region body
PF: predicated region fallthrough
CT: control target
= control target key end

     0   :  { %8 = vsyncpa [#allocation4], 0  ;;  %s2864_s0 = inlined_call_operand.vmem [shape: f32[8,1280], index: 0, kind: input, shape index: {}]   ;;  %s2865_s1 = inlined_call_operand.hbm [shape: bf16[1280,1280], index: 1, kind: input, shape index: {}]   ;;  %s2866_s2 = inlined_call_operand.vmem [shape: f32[1,1280], index: 2, kind: input, shape index: {}]   ;;  %s2867_s3 = inlined_call_operand.vmem [shape: f32[8,1280], index: 3, kind: output, shape index: {}]  }
   0x1   :  { %10 = vsyncpa [#allocation4 + $0x1], 0  ;;  %s1790_s12 = smov 0   ;;  %s1792_s13 = smov 0  }
   0x2   :  { %s1794_s14 = smov 0   ;;  %s1796_s15 = smov 0  }
   0x3   :  { %s1798_s16 = smov 0   ;;  %s1800_s17 = smov 0  }
   0x4   :  { %s1802_s18 = smov 0   ;;  %s1804_s19 = smov 0  }
   0x5 LB: > { %s1562_s20 = sadd.s32 4294967295, %s1764_s19   ;;  %s25_s21 = sadd.s32 1, %s1756_s17  ;;  %s1764_s19 = sphi %s1804_s19, %s16_s19   ;;  %s1760_s18 = sphi %s1802_s18, %s2975_s18   ;;  %s1756_s17 = sphi %s1800_s17, %s2974_s17   ;;  %s1752_s16 = sphi %s1798_s16, %s2973_s16   ;;  %s1748_s15 = sphi %s1796_s15, %s2972_s15   ;;  %s1744_s14 = sphi %s1794_s14, %s2971_s14   ;;  %s1740_s13 = sphi %s1792_s13, %s2970_s13   ;;  %s1736_s12 = sphi %s1790_s12, %s2969_s12  }
   0x6   : > { %p26_p0 = scmp.ge.s32.totalorder %s25_s21, 2  ;;  %s28_s22 = sadd.s32 1, %s1760_s18 }
   0x7   : > { %s63_s23 = sadd.s32 1, %s1744_s14  ;;  %p70_p1 = scmp.ne.s32.totalorder %s1744_s14, %s1740_s13 }
   0x8   : > { %s2977_s21 = smov (%p26_p0, %s25_s21), 0  ;;  %s2979_s22 = smov (!%p26_p0, %s28_s22), %s1760_s18 }
   0x9   : > { %s58_s24 = ssub.s32 %s1756_s17, %s2977_s21  ;;  %p71_p2 = scmp.eq.s32.totalorder %s1764_s19, 0 }
   0xa   : > { %p30_p3 = scmp.ge.s32.totalorder %s2979_s22, 2  ;;  %p76_p4 = scmp.ne.s32.totalorder %s1740_s13, %s1736_s12 }
   0xb   : > { %p72_p5 = por %p71_p2, %p70_p1  ;;  %p77_p6 = scmp.eq.s32.totalorder %s1562_s20, 0 }
   0xc   : > { %s2981_s22 = smov (%p30_p3, %s2979_s22), 0  ;;  %p1583_p8 = scmp.lt.s32.totalorder %s1764_s19, 4 }
   0xd   : > { %2901 = sst [smem:[#allocation6_spill]] %s2981_s22  ;;  %p1843_p7 = por %p77_p6, %p76_p4 }
   0xe   : > { %s59_s26 = ssub.s32 %s1760_s18, %s2981_s22  ;;  %s161_s28 = sand.u32 1, %s1744_s14  }
   0xf   : > { %s60_s27 = sor.u32 %s59_s26, %s58_s24  ;;  %s1574_s29 = smul.u32 1600, %s161_s28 }
  0x10   : > { %p61_p9 = scmp.eq.s32.totalorder %s60_s27, 0  ;;  %p1851_p10 = pnand %p1583_p8, %p72_p5 }
  0x11   : > { %s167_s5 = smul.u32 5, %s1760_s18  ;;  %s165_s6 = scalar_lea.vmem [#allocation3], %s1574_s29 }
  0x12   : > { %s1856_s4 = scalar_select %p61_p9, %s1744_s14, %s63_s23  }
  0x13   : > { %s176_s7 = sshll.u32 %s165_s6, 4  ;;  %s1584_s8 = smul.u32 800, %s1756_s17  ;;  %s177_s7 = int_to_ptr.vmem [resolvable:$true] %s176_s7 }
  0x14   : > { %p1567_p11 = scmp.ge.s32.totalorder %s1764_s19, 1  ;;  %p192_p12 = scmp.lt.s32.totalorder %s1764_s19, 5 }
  0x15   : > { %s171_s9 = sadd.s32 %s1584_s8, %s167_s5  ;;  %s162_s26 = scalar_lea.sflag [#allocation4], %s161_s28 }
  0x16   : > { %s1566_s10 = sshll.u32 %s171_s9, 2  ;;  %s1766_s27 = smov 640  }
  0x17   : > { %s173_s20 = scalar_lea.hbm %s2865_s1, %s1566_s10  ;;  %s1767_s23 = smov 320  }
  0x18   : > { %s174_s24 = sshll.u32 %s173_s20, 4  ;;  %s1768_s22 = smov 20   ;;  %s175_s24 = int_to_ptr.hbm [resolvable:$true] %s174_s24 }
  0x19   : > { %1582 = dma.hbm_to_vmem [thread:$0]  (!%p1851_p10), %s175_s24, 25600, %s177_s7, %s162_s26, %s1766_s27, %s1767_s23, %s1768_s22  }
  0x1a   : > { %p193_p13 = pnand %p1567_p11, %p192_p12 }
  0x1c   : > { %196 = sbr.rel (%p193_p13) target bundleno = 427 (0x1ab), region = 32 }
  0x21   : > { %s198_s29 = sand.u32 1, %s1740_s13  }
  0x22   : > { %s1576_s5 = smul.u32 1600, %s198_s29  ;;  %s199_s6 = scalar_lea.sflag [#allocation4], %s198_s29 }
  0x24   : > { %s1868_s8 = scalar_lea.vmem [#allocation3], %s1576_s5 }
  0x25   : > { %1731 = dma.done.wait (%p1843_p7), %s199_s6, 25600  }
  0x26   : > { %1733 = vsyncadd (%p1843_p7), %s199_s6, 4294941696  ;;  %s235_s28 = smul.u32 5, %s1748_s15  ;;  %p1570_p2 = scmp.ne.s32.totalorder %s1748_s15, 0 }
  0x27   : > { %s243_s9 = smul.u32 5, %s1752_s16 }
  0x28   : > { %p236_p0 = scmp.lt.s32.totalorder %s235_s28, 9 }
  0x29   : > { %p244_p1 = scmp.lt.s32.totalorder %s243_s9, 9 }
  0x2a   : > { %s2983_s28 = smov (!%p236_p0, %s235_s28), 9  ;;  %257 = sbr.rel (%p1570_p2) target bundleno = 53 (0x35), region = 40 }
  0x2b   : > { %s2985_s9 = smov (!%p244_p1, %s243_s9), 9  ;;  %s1568_s22 = sshll.u32 %s2983_s28, 3 }
  0x2c   : > { %s1881_s10 = scalar_lea.vmem %s2864_s0, %s1568_s22  ;;  %s246_s12 = scalar_lea.vmem %s2866_s2, %s2985_s9 }
  0x2d   : > { %s1569_s20 = sshll.u32 %s2985_s9, 3 }
  0x2e   : > { %s1891_s26 = scalar_lea.vmem %s2867_s3, %s1569_s20 }
  0x2f   : > { %v1769_v0 = vmov 0.0  }
  0x30   : > { %258 = vst [vmem:[#allocation2 + $0x8] sm:$0xff] %v1769_v0 }
  0x31   : > { %259 = vst [vmem:[#allocation2] sm:$0xff] %v1769_v0 }
  0x32   : > { %260 = vst [vmem:[#allocation2 + $0x20] sm:$0xff] %v1769_v0 }
  0x33   : > { %261 = vst [vmem:[#allocation2 + $0x10] sm:$0xff] %v1769_v0 }
  0x34   : > { %262 = vst [vmem:[#allocation2 + $0x18] sm:$0xff] %v1769_v0 }
  0x35 PF: > { %v1895_v1 = vld [vmem:[%s1868_s8 + $0x12c] sm:$0xff]  ;;  %v1898_v2 = vld [vmem:[%s1868_s8 + $0x118] sm:$0xff]  ;;  %v1901_v3 = vld [vmem:[%s1868_s8 + $0x104] sm:$0xff]  ;;  %p1571_p3 = scmp.ne.s32.totalorder %s1748_s15, 1 }
  0x36   : > { %v588_v4 = vunpack.c.l.bf16 %v1895_v1  ;;  %v583_v5 = vunpack.c.l.bf16 %v1898_v2  ;;  %v1906_v6 = vld [vmem:[%s1868_s8 + $0xf0] sm:$0xff]  ;;  %v578_v7 = vunpack.c.l.bf16 %v1901_v3  ;;  %v1913_v9 = vld [vmem:[%s1868_s8 + $0xdc] sm:$0xff]  ;;  %v1929_v17 = vld [vmem:[%s1868_s8 + $0x384] sm:$0xff] }
  0x37   : > { %v1910_v8 = vld [vmem:[%s1868_s8 + $0x3ac] sm:$0xff]  ;;  %v1917_v11 = vld [vmem:[%s1868_s8 + $0x398] sm:$0xff]  ;;  %v573_v13 = vunpack.c.l.bf16 %v1906_v6  ;;  %v738_v21 = vunpack.c.l.bf16 %v1929_v17  ;;  %v568_v25 = vunpack.c.l.bf16 %v1913_v9  ;;  %v1949_v27 = vld [vmem:[%s1868_s8 + $0x4c4] sm:$0xff] }
  0x38   : > { %913 = vmatpush.msra.mxu0 %v588_v4  ;;  %v748_v10 = vunpack.c.l.bf16 %v1910_v8  ;;  %v1920_v12 = vld [vmem:[%s1868_s8 + $0x4ec] sm:$0xff]  ;;  %v743_v14 = vunpack.c.l.bf16 %v1917_v11  ;;  %v1932_v18 = vld [vmem:[%s1868_s8 + $0x4d8] sm:$0xff]  ;;  %v1952_v28 = vld [vmem:[%s1868_s8 + $0x244] sm:$0xff]  ;;  %v818_v31 = vunpack.c.l.bf16 %v1949_v27 }
  0x39   : > { %v828_v15 = vunpack.c.l.bf16 %v1920_v12  ;;  %v1926_v16 = vld [vmem:[%s1868_s8 + $0x26c] sm:$0xff]  ;;  %v823_v22 = vunpack.c.l.bf16 %v1932_v18  ;;  %v1941_v23 = vld [vmem:[%s1868_s8 + $0x258] sm:$0xff]  ;;  %v658_v32 = vunpack.c.l.bf16 %v1952_v28  ;;  %v1978_v40 = vld [vmem:[%s1868_s8 + $0xa0] sm:$0xff] }
  0x3a   : > { %914 = vmatpush.msra.mxu0 %v583_v5  ;;  %v1935_v19 = vld [vmem:[%s1868_s8 + $0xc8] sm:$0xff]  ;;  %953 = vmatpush.msra.mxu2 %v748_v10  ;;  %v668_v20 = vunpack.c.l.bf16 %v1926_v16  ;;  %v1944_v24 = vld [vmem:[%s1868_s8 + $0x370] sm:$0xff]  ;;  %v663_v26 = vunpack.c.l.bf16 %v1941_v23  ;;  %v1961_v33 = vld [vmem:[%s1868_s8 + $0x35c] sm:$0xff]  ;;  %v553_v53 = vunpack.c.l.bf16 %v1978_v40 }
  0x3b   : > { %973 = vmatpush.msra.mxu3 %v828_v15  ;;  %v1955_v29 = vld [vmem:[%s1868_s8 + $0xb4] sm:$0xff]  ;;  %v733_v30 = vunpack.c.l.bf16 %v1944_v24  ;;  %v563_v35 = vunpack.c.l.bf16 %v1935_v19  ;;  %v1972_v38 = vld [vmem:[%s1868_s8 + $0x348] sm:$0xff]  ;;  %v1975_v39 = vld [vmem:[%s1868_s8 + $0x49c] sm:$0xff]  ;;  %v728_v41 = vunpack.c.l.bf16 %v1961_v33 }
  0x3c   : > { %915 = vmatpush.msra.mxu0 %v578_v7  ;;  %954 = vmatpush.msra.mxu2 %v743_v14  ;;  %v1964_v34 = vld [vmem:[%s1868_s8 + $0x4b0] sm:$0xff]  ;;  %2905 = vst [vmem:[#allocation8_spill] sm:$0xff] %v1975_v39  ;;  %v1983_v43 = vld [vmem:[%s1868_s8 + $0x21c] sm:$0xff]  ;;  %v558_v44 = vunpack.c.l.bf16 %v1955_v29  ;;  %v808_v45 = vunpack.c.l.bf16 %v1975_v39  ;;  %v1991_v47 = vld [vmem:[%s1868_s8 + $0x488] sm:$0xff]  ;;  %v723_v50 = vunpack.c.l.bf16 %v1972_v38 }
  0x3d   : > { %933 = vmatpush.msra.mxu1 %v668_v20  ;;  %2904 = vst [vmem:[#allocation7_spill] sm:$0xff] %v1964_v34  ;;  %974 = vmatpush.msra.mxu3 %v823_v22  ;;  %v813_v36 = vunpack.c.l.bf16 %v1964_v34  ;;  %v1969_v37 = vld [vmem:[%s1868_s8 + $0x230] sm:$0xff]  ;;  %v1994_v48 = vld [vmem:[%s1868_s8 + $0x208] sm:$0xff]  ;;  %v648_v51 = vunpack.c.l.bf16 %v1983_v43  ;;  %v803_v54 = vunpack.c.l.bf16 %v1991_v47  ;;  %v2007_v55 = vld [vmem:[%s1868_s8 + $0x320] sm:$0xff] }
  0x3e   : > { %916 = vmatpush.msra.mxu0 %v573_v13  ;;  %955 = vmatpush.msra.mxu2 %v738_v21  ;;  %v653_v42 = vunpack.c.l.bf16 %v1969_v37  ;;  %v1988_v46 = vld [vmem:[%s1868_s8 + $0x334] sm:$0xff]  ;;  %2906 = vst [vmem:[#allocation9_spill] sm:$0xff] %v1991_v47  ;;  %v1997_v49 = vld [vmem:[%s1868_s8 + $0x8c] sm:$0xff]  ;;  %v643_v59 = vunpack.c.l.bf16 %v1994_v48  ;;  %v2018_v60 = vld [vmem:[%s1868_s8 + $0x460] sm:$0xff]  ;;  %v713_v5 = vunpack.c.l.bf16 %v2007_v55 }
  0x3f   : > { %934 = vmatpush.msra.mxu1 %v663_v26  ;;  %975 = vmatpush.msra.mxu3 %v818_v31  ;;  %v2002_v52 = vld [vmem:[%s1868_s8 + $0x474] sm:$0xff]  ;;  %v718_v58 = vunpack.c.l.bf16 %v1988_v46  ;;  %2908 = vst [vmem:[#allocation11_spill] sm:$0xff] %v2018_v60  ;;  %v548_v61 = vunpack.c.l.bf16 %v1997_v49  ;;  %v2023_v63 = vld [vmem:[%s1868_s8 + $0x30c] sm:$0xff]  ;;  %v2026_v0 = vld [vmem:[%s1868_s8 + $0x1e0] sm:$0xff]  ;;  %v793_v14 = vunpack.c.l.bf16 %v2018_v60 }
  0x40   : > { %917 = vmatpush.msra.mxu0 %v568_v25  ;;  %956 = vmatpush.msra.mxu2 %v733_v30  ;;  %2907 = vst [vmem:[#allocation10_spill] sm:$0xff] %v2002_v52  ;;  %v2010_v56 = vld [vmem:[%s1868_s8 + $0x1f4] sm:$0xff]  ;;  %v798_v62 = vunpack.c.l.bf16 %v2002_v52  ;;  %v2029_v4 = vld [vmem:[%s1868_s8 + $0x64] sm:$0xff]  ;;  %v2034_v10 = vld [vmem:[%s1868_s8 + $0x44c] sm:$0xff]  ;;  %v708_v22 = vunpack.c.l.bf16 %v2023_v63  ;;  %v633_v25 = vunpack.c.l.bf16 %v2026_v0 }
  0x41   : > { %935 = vmatpush.msra.mxu1 %v658_v32  ;;  %976 = vmatpush.msra.mxu3 %v813_v36  ;;  %v2013_v57 = vld [vmem:[%s1868_s8 + $0x78] sm:$0xff]  ;;  %v638_v7 = vunpack.c.l.bf16 %v2010_v56  ;;  %2909 = vst [vmem:[#allocation12_spill] sm:$0xff] %v2034_v10  ;;  %v2042_v20 = vld [vmem:[%s1868_s8 + $0x1cc] sm:$0xff]  ;;  %v538_v30 = vunpack.c.l.bf16 %v2029_v4  ;;  %v788_v31 = vunpack.c.l.bf16 %v2034_v10  ;;  %v2055_v32 = vld [vmem:[%s1868_s8 + $0x2e4] sm:$0xff] }
  0x42   : > { %918 = vmatpush.msra.mxu0 %v563_v35  ;;  %957 = vmatpush.msra.mxu2 %v728_v41  ;;  %v543_v13 = vunpack.c.l.bf16 %v2013_v57  ;;  %v2039_v15 = vld [vmem:[%s1868_s8 + $0x2f8] sm:$0xff]  ;;  %v2045_v21 = vld [vmem:[%s1868_s8 + $0x50] sm:$0xff]  ;;  %v2114_v60 = vld [vmem:[%s1868_s8 + $0x3e8] sm:$0xff] }
  0x43   : > { %936 = vmatpush.msra.mxu1 %v653_v42  ;;  %977 = vmatpush.msra.mxu3 %v808_v45  ;;  %v2050_v26 = vld [vmem:[%s1868_s8 + $0x438] sm:$0xff]  ;;  %v703_v41 = vunpack.c.l.bf16 %v2039_v15  ;;  %v628_v42 = vunpack.c.l.bf16 %v2042_v20  ;;  %v533_v45 = vunpack.c.l.bf16 %v2045_v21  ;;  %2917 = vst [vmem:[#allocation20_spill] sm:$0xff] %v2114_v60  ;;  %v2127_v39 = vld [vmem:[%s1868_s8 + $0x168] sm:$0xff] }
  0x44   : > { %919 = vmatpush.msra.mxu0 %v558_v44  ;;  %958 = vmatpush.msra.mxu2 %v723_v50  ;;  %2910 = vst [vmem:[#allocation13_spill] sm:$0xff] %v2050_v26  ;;  %v2058_v35 = vld [vmem:[%s1868_s8 + $0x1b8] sm:$0xff]  ;;  %v2066_v44 = vld [vmem:[%s1868_s8 + $0x424] sm:$0xff]  ;;  %v783_v50 = vunpack.c.l.bf16 %v2050_v26 }
  0x45   : > { %937 = vmatpush.msra.mxu1 %v648_v51  ;;  %978 = vmatpush.msra.mxu3 %v803_v54  ;;  %v2061_v36 = vld [vmem:[%s1868_s8 + $0x3c] sm:$0xff]  ;;  %2911 = vst [vmem:[#allocation14_spill] sm:$0xff] %v2066_v44  ;;  %v2071_v51 = vld [vmem:[%s1868_s8 + $0x2d0] sm:$0xff]  ;;  %v2077_v54 = vld [vmem:[%s1868_s8 + $0x28] sm:$0xff] }
  0x46   : > { %920 = vmatpush.msra.mxu0 %v553_v53  ;;  %959 = vmatpush.msra.mxu2 %v718_v58  ;;  %v2074_v53 = vld [vmem:[%s1868_s8 + $0x1a4] sm:$0xff]  ;;  %2912 = vst [vmem:[#allocation15_spill] sm:$0xff] %v2077_v54  ;;  %v698_v58 = vunpack.c.l.bf16 %v2055_v32  ;;  %v2106_v10 = vld [vmem:[%s1868_s8 + $0x17c] sm:$0xff]  ;;  %v2122_v47 = vld [vmem:[%s1868_s8 + $0x294] sm:$0xff] }
  0x47   : > { %938 = vmatpush.msra.mxu1 %v643_v59  ;;  %979 = vmatpush.msra.mxu3 %v798_v62  ;;  %v623_v59 = vunpack.c.l.bf16 %v2058_v35  ;;  %v528_v62 = vunpack.c.l.bf16 %v2061_v36  ;;  %v2103_v26 = vld [vmem:[%s1868_s8 + $0x2a8] sm:$0xff]  ;;  %2919 = vst [vmem:[#allocation22_spill] sm:$0xff] %v2122_v47  ;;  %v678_v34 = vunpack.c.l.bf16 %v2122_v47  ;;  %v2161_v47 = vld [vmem:[%s1868_s8 + $0x140] sm:$0xff] }
  0x48   : > { %921 = vmatpush.msra.mxu0 %v548_v61  ;;  %960 = vmatpush.msra.mxu2 %v713_v5  ;;  %v2082_v61 = vld [vmem:[%s1868_s8 + $0x410] sm:$0xff]  ;;  %v778_v5 = vunpack.c.l.bf16 %v2066_v44 }
  0x49   : > { %939 = vmatpush.msra.mxu1 %v638_v7  ;;  %980 = vmatpush.msra.mxu3 %v793_v14  ;;  %2913 = vst [vmem:[#allocation16_spill] sm:$0xff] %v2082_v61  ;;  %v2087_v7 = vld [vmem:[%s1868_s8 + $0x2bc] sm:$0xff]  ;;  %v2093_v14 = vld [vmem:[%s1868_s8 + $0x14] sm:$0xff]  ;;  %v773_v44 = vunpack.c.l.bf16 %v2082_v61  ;;  %v2118_v61 = vld [vmem:[%s1868_s8 + $0x62c] sm:$0xff] }
  0x4a   : > { %922 = vmatpush.msra.mxu0 %v543_v13  ;;  %961 = vmatpush.msra.mxu2 %v708_v22  ;;  %v2090_v13 = vld [vmem:[%s1868_s8 + $0x190] sm:$0xff]  ;;  %2914 = vst [vmem:[#allocation17_spill] sm:$0xff] %v2093_v14  ;;  %v693_v22 = vunpack.c.l.bf16 %v2071_v51 }
  0x4b   : > { %940 = vmatpush.msra.mxu1 %v633_v25  ;;  %981 = vmatpush.msra.mxu3 %v788_v31  ;;  %v618_v25 = vunpack.c.l.bf16 %v2074_v53  ;;  %v523_v31 = vunpack.c.l.bf16 %v2077_v54  ;;  %2918 = vst [vmem:[#allocation21_spill] sm:$0xff] %v2118_v61  ;;  %v2143_v54 = vld [vmem:[%s1868_s8 + $0x154] sm:$0xff] }
  0x4c   : > { %923 = vmatpush.msra.mxu0 %v538_v30  ;;  %962 = vmatpush.msra.mxu2 %v703_v41  ;;  %v2098_v30 = vld [vmem:[%s1868_s8 + $0x3fc] sm:$0xff] }
  0x4d   : > { %941 = vmatpush.msra.mxu1 %v628_v42  ;;  %2915 = vst [vmem:[#allocation18_spill] sm:$0xff] %v2098_v30  ;;  %982 = vmatpush.msra.mxu3 %v783_v50  ;;  %v2109_v41 = vld [vmem:[%s1868_s8] sm:$0xff]  ;;  %v688_v42 = vunpack.c.l.bf16 %v2087_v7  ;;  %v518_v50 = vunpack.c.l.bf16 %v2093_v14  ;;  %v768_v52 = vunpack.c.l.bf16 %v2098_v30  ;;  %v2134_v14 = vld [vmem:[%s1868_s8 + $0x618] sm:$0xff] }
  0x4e   : > { %924 = vmatpush.msra.mxu0 %v533_v45  ;;  %2916 = vst [vmem:[#allocation19_spill] sm:$0xff] %v2109_v41  ;;  %963 = vmatpush.msra.mxu2 %v698_v58  ;;  %v613_v45 = vunpack.c.l.bf16 %v2090_v13  ;;  %v683_v58 = vunpack.c.l.bf16 %v2103_v26  ;;  %v2138_v30 = vld [vmem:[%s1868_s8 + $0x280] sm:$0xff] }
  0x4f   : > { %942 = vmatpush.msra.mxu1 %v623_v59  ;;  %983 = vmatpush.msra.mxu3 %v778_v5  ;;  %v608_v59 = vunpack.c.l.bf16 %v2106_v10  ;;  %v513_v5 = vunpack.c.l.bf16 %v2109_v41  ;;  %2921 = vst [vmem:[#allocation24_spill] sm:$0xff] %v2134_v14  ;;  %v2151_v41 = vld [vmem:[%s1868_s8 + $0x3c0] sm:$0xff] }
  0x50   : > { %925 = vmatpush.msra.mxu0 %v528_v62  ;;  %964 = vmatpush.msra.mxu2 %v693_v22  ;;  %v2130_v62 = vld [vmem:[%s1868_s8 + $0x3d4] sm:$0xff]  ;;  %v763_v22 = vunpack.c.l.bf16 %v2114_v60 }
  0x51   : > { %943 = vmatpush.msra.mxu1 %v618_v25  ;;  %2920 = vst [vmem:[#allocation23_spill] sm:$0xff] %v2130_v62  ;;  %984 = vmatpush.msra.mxu3 %v773_v44  ;;  %v908_v25 = vunpack.c.l.bf16 %v2118_v61  ;;  %v603_v44 = vunpack.c.l.bf16 %v2127_v39  ;;  %v758_v60 = vunpack.c.l.bf16 %v2130_v62  ;;  %v903_v61 = vunpack.c.l.bf16 %v2134_v14  ;;  %v2173_v14 = vld [vmem:[%s1868_s8 + $0x5c8] sm:$0xff] }
  0x52   : > { %926 = vmatpush.msra.mxu0 %v523_v31  ;;  %965 = vmatpush.msra.mxu2 %v688_v42  ;;  %v2146_v31 = vld [vmem:[%s1868_s8 + $0x604] sm:$0xff]  ;;  %v673_v42 = vunpack.c.l.bf16 %v2138_v30 }
  0x53   : > { %944 = vmatpush.msra.mxu1 %v613_v45  ;;  %985 = vmatpush.msra.mxu3 %v768_v52  ;;  %v2156_v45 = vld [vmem:[%s1868_s8 + $0x5f0] sm:$0xff]  ;;  %v598_v52 = vunpack.c.l.bf16 %v2143_v54  ;;  %v898_v62 = vunpack.c.l.bf16 %v2146_v31 }
  0x54   : > { %927 = vmatpush.msra.mxu0 %v518_v50  ;;  %966 = vmatpush.msra.mxu2 %v683_v58  ;;  %v669_v50 = vunpack.c.h.bf16 %v1926_v16  ;;  %v753_v58 = vunpack.c.l.bf16 %v2151_v41  ;;  %v749_v16 = vunpack.c.h.bf16 %v1910_v8  ;;  %v744_v8 = vunpack.c.h.bf16 %v1917_v11 }
  0x55   : > { %945 = vmatpush.msra.mxu1 %v608_v59  ;;  %986 = vmatpush.msra.mxu3 %v763_v22  ;;  %v2166_v59 = vld [vmem:[%s1868_s8 + $0x5dc] sm:$0xff]  ;;  %v893_v22 = vunpack.c.l.bf16 %v2156_v45  ;;  %v579_v11 = vunpack.c.h.bf16 %v1901_v3 }
  0x56   : > { %928 = vmatpush.msra.mxu0 %v513_v5  ;;  %967 = vmatpush.msra.mxu2 %v678_v34  ;;  %v664_v5 = vunpack.c.h.bf16 %v1941_v23  ;;  %v589_v34 = vunpack.c.h.bf16 %v1895_v1  ;;  %v888_v23 = vunpack.c.l.bf16 %v2166_v59  ;;  %v883_v1 = vunpack.c.l.bf16 %v2173_v14  ;;  %v2201_v3 = vld [vmem:[%s1881_s10] sm:$0xff] }
  0x57   : > { %946 = vmatpush.msra.mxu1 %v603_v44  ;;  %987 = vmatpush.msra.mxu3 %v758_v60  ;;  %v659_v60 = vunpack.c.h.bf16 %v1952_v28  ;;  %v584_v44 = vunpack.c.h.bf16 %v1898_v2  ;;  %v739_v28 = vunpack.c.h.bf16 %v1929_v17  ;;  %v734_v17 = vunpack.c.h.bf16 %v1944_v24 }
  0x58   : > { %993 = vmatpush.msrb.mxu0 %v908_v25  ;;  %968 = vmatpush.msra.mxu2 %v673_v42  ;;  %v593_v25 = vunpack.c.l.bf16 %v2161_v47  ;;  %v654_v42 = vunpack.c.h.bf16 %v1969_v37  ;;  %v2192_v37 = vld [vmem:[%s1881_s10 + $0x10] sm:$0xff] }
  0x59   : > { %947 = vmatpush.msra.mxu1 %v598_v52  ;;  %988 = vmatpush.msra.mxu3 %v753_v58  ;;  %v2196_v52 = vld [vmem:[%s1868_s8 + $0x58c] sm:$0xff] }
  0x5a   : > { %994 = vmatpush.msrb.mxu0 %v903_v61  ;;  %1033 = vmatpush.msrb.mxu2 %v669_v50  ;;  %v2180_v61 = vld [vmem:[%s1868_s8 + $0x5b4] sm:$0xff]  ;;  %v649_v50 = vunpack.c.h.bf16 %v1983_v43  ;;  %v868_v24 = vunpack.c.l.bf16 %v2196_v52 }
  0x5b   : > { %1053 = vmatpush.msrb.mxu3 %v749_v16  ;;  %948 = vmatpush.msra.mxu1 %v593_v25  ;;  %v878_v2 = vunpack.c.l.bf16 %v2180_v61  ;;  %v2208_v43 = vld [vmem:[%s1881_s10 + $0x18] sm:$0xff]  ;;  %v574_v16 = vunpack.c.h.bf16 %v1906_v6  ;;  %v729_v25 = vunpack.c.h.bf16 %v1961_v33  ;;  %v2222_v6 = vld [vmem:[%s1881_s10 + $0x8] sm:$0xff]  ;;  %v724_v33 = vunpack.c.h.bf16 %v1972_v38 }
  0x5c   : > { %995 = vmatpush.msrb.mxu0 %v898_v62  ;;  %1034 = vmatpush.msrb.mxu2 %v664_v5  ;;  %v2187_v62 = vld [vmem:[%s1868_s8 + $0x5a0] sm:$0xff]  ;;  %v2204_v5 = vld [vmem:[%s1868_s8 + $0x578] sm:$0xff] }
  0x5d   : > { %1013 = vmatpush.msrb.mxu1 %v589_v34  ;;  %1054 = vmatpush.msrb.mxu3 %v744_v8  ;;  %v873_v58 = vunpack.c.l.bf16 %v2187_v62  ;;  %v2215_v34 = vld [vmem:[%s1868_s8 + $0x564] sm:$0xff]  ;;  %v2226_v8 = vld [vmem:[%s1868_s8 + $0x550] sm:$0xff] }
  0x5e   : > { %996 = vmatpush.msrb.mxu0 %v893_v22  ;;  %1035 = vmatpush.msrb.mxu2 %v659_v60  ;;  %v644_v22 = vunpack.c.h.bf16 %v1994_v48  ;;  %v639_v60 = vunpack.c.h.bf16 %v2010_v56  ;;  %v569_v48 = vunpack.c.h.bf16 %v1913_v9  ;;  %v858_v56 = vunpack.c.l.bf16 %v2215_v34 }
  0x5f   : > { %1014 = vmatpush.msrb.mxu1 %v584_v44  ;;  %1055 = vmatpush.msrb.mxu3 %v739_v28  ;;  %v634_v44 = vunpack.c.h.bf16 %v2026_v0  ;;  %v719_v9 = vunpack.c.h.bf16 %v1988_v46  ;;  %v629_v28 = vunpack.c.h.bf16 %v2042_v20  ;;  %v853_v38 = vunpack.c.l.bf16 %v2226_v8 }
  0x60   : > { %997 = vmatpush.msrb.mxu0 %v888_v23  ;;  %1036 = vmatpush.msrb.mxu2 %v654_v42  ;;  %v863_v23 = vunpack.c.l.bf16 %v2204_v5  ;;  %v564_v42 = vunpack.c.h.bf16 %v1935_v19  ;;  %v559_v0 = vunpack.c.h.bf16 %v1955_v29  ;;  %v714_v19 = vunpack.c.h.bf16 %v2007_v55 }
  0x61   : > { %969 = vmatmul.f32.vlgmr.msra.gmra.mxu2 %v2192_v37  ;;  %1015 = vmatpush.msrb.mxu1 %v579_v11  ;;  %v2241_v11 = vld [vmem:[%s1868_s8 + $0x528] sm:$0xff]  ;;  %v554_v20 = vunpack.c.h.bf16 %v1978_v40  ;;  %v709_v29 = vunpack.c.h.bf16 %v2023_v63  ;;  %v549_v55 = vunpack.c.h.bf16 %v1997_v49  ;;  %v704_v40 = vunpack.c.h.bf16 %v2039_v15 }
  0x62   : > { %998 = vmatpush.msrb.mxu0 %v883_v1  ;;  %1037 = vmatpush.msrb.mxu2 %v649_v50  ;;  %v2233_v1 = vld [vmem:[%s1868_s8 + $0x53c] sm:$0xff]  ;;  %v2248_v50 = vld [vmem:[%s1868_s8 + $0x514] sm:$0xff]  ;;  %v544_v63 = vunpack.c.h.bf16 %v2013_v57  ;;  %v609_v49 = vunpack.c.h.bf16 %v2106_v10  ;;  %v539_v15 = vunpack.c.h.bf16 %v2029_v4  ;;  %v534_v57 = vunpack.c.h.bf16 %v2045_v21 }
  0x63   : > { %1056 = vmatpush.msrb.mxu3 %v734_v17  ;;  %929 = vmatmul.f32.vlgmr.msra.gmra.mxu0 %v2201_v3  ;;  %v848_v46 = vunpack.c.l.bf16 %v2233_v1  ;;  %v619_v17 = vunpack.c.h.bf16 %v2074_v53  ;;  %v699_v53 = vunpack.c.h.bf16 %v2055_v32  ;;  %v824_v32 = vunpack.c.h.bf16 %v1932_v18  ;;  %v2270_v10 = vld [vmem:[%s1881_s10 + $0x20] sm:$0xff] }
  0x64   : > { %999 = vmatpush.msrb.mxu0 %v878_v2  ;;  %989 = vmatmul.f32.vlgmr.msra.gmra.mxu3 %v2208_v43  ;;  %v624_v2 = vunpack.c.h.bf16 %v2058_v35  ;;  %v2255_v35 = vld [vmem:[%s1868_s8 + $0x500] sm:$0xff]  ;;  %v529_v4 = vunpack.c.h.bf16 %v2061_v36  ;;  %v599_v18 = vunpack.c.h.bf16 %v2143_v54  ;;  %v2278_v21 = vld [vmem:[%s1868_s8 + $0x134] sm:$0xff] }
  0x65   : > { %1016 = vmatpush.msrb.mxu1 %v574_v16  ;;  %1038 = vmatpush.msrb.mxu2 %v644_v22  ;;  %v614_v16 = vunpack.c.h.bf16 %v2090_v13  ;;  %v838_v22 = vunpack.c.l.bf16 %v2248_v50  ;;  %v829_v13 = vunpack.c.h.bf16 %v1920_v12  ;;  %v689_v12 = vunpack.c.h.bf16 %v2087_v7  ;;  %v2923_v7 = vld [vmem:[#allocation7_spill] sm:$0xff]  ;;  %v2924_v54 = vld [vmem:[#allocation22_spill] sm:$0xff] }
  0x66   : > { %1000 = vmatpush.msrb.mxu0 %v873_v58  ;;  %1057 = vmatpush.msrb.mxu3 %v729_v25  ;;  %v843_v58 = vunpack.c.l.bf16 %v2241_v11  ;;  %v694_v25 = vunpack.c.h.bf16 %v2071_v51  ;;  %v819_v51 = vunpack.c.h.bf16 %v1949_v27  ;;  %v594_v27 = vunpack.c.h.bf16 %v2161_v47  ;;  %v2286_v36 = vld [vmem:[%s1868_s8 + $0x120] sm:$0xff] }
  0x67   : > { %949 = vmatmul.f32.vlgmr.msra.gmra.mxu1 %v2222_v6  ;;  %1039 = vmatpush.msrb.mxu2 %v639_v60  ;;  %v604_v60 = vunpack.c.h.bf16 %v2127_v39  ;;  %v684_v39 = vunpack.c.h.bf16 %v2103_v26  ;;  %v2291_v26 = vld [vmem:[%s1868_s8 + $0x274] sm:$0xff]  ;;  %v674_v47 = vunpack.c.h.bf16 %v2138_v30 }
  0x68   : > { %1001 = vmatpush.msrb.mxu0 %v868_v24  ;;  %1017 = vmatpush.msrb.mxu1 %v569_v48  ;;  %v833_v24 = vunpack.c.l.bf16 %v2255_v35 }
  0x69   : > { %1058 = vmatpush.msrb.mxu3 %v724_v33  ;;  %1040 = vmatpush.msrb.mxu2 %v634_v44  ;;  %v814_v33 = vunpack.c.h.bf16 %v2923_v7  ;;  %v679_v44 = vunpack.c.h.bf16 %v2924_v54  ;;  %v2336_v7 = vld [vmem:[%s1868_s8 + $0xbc] sm:$0xff]  ;;  %v894_v54 = vunpack.c.h.bf16 %v2156_v45 }
  0x6a   : > { %1002 = vmatpush.msrb.mxu0 %v863_v23  ;;  %1018 = vmatpush.msrb.mxu1 %v564_v42  ;;  %v2922_v23 = vld [vmem:[#allocation15_spill] sm:$0xff]  ;;  %v2925_v42 = vld [vmem:[#allocation8_spill] sm:$0xff] }
  0x6b   : > { %1059 = vmatpush.msrb.mxu3 %v719_v9  ;;  %1041 = vmatpush.msrb.mxu2 %v629_v28  ;;  %v524_v48 = vunpack.c.h.bf16 %v2922_v23  ;;  %v809_v9 = vunpack.c.h.bf16 %v2925_v42  ;;  %v2926_v28 = vld [vmem:[#allocation17_spill] sm:$0xff]  ;;  %v2346_v42 = vld [vmem:[%s1868_s8 + $0xa8] sm:$0xff] }
  0x6c   : > { %1003 = vmatpush.msrb.mxu0 %v858_v56  ;;  %1019 = vmatpush.msrb.mxu1 %v559_v0  ;;  %v590_v56 = vunpack.c.l.bf16 %v2278_v21  ;;  %v2296_v0 = vld [vmem:[%s1868_s8 + $0x10c] sm:$0xff] }
  0x6d   : > { %1060 = vmatpush.msrb.mxu3 %v714_v19  ;;  %1042 = vmatpush.msrb.mxu2 %v624_v2  ;;  %v585_v19 = vunpack.c.l.bf16 %v2286_v36  ;;  %v2927_v2 = vld [vmem:[#allocation9_spill] sm:$0xff]  ;;  %v580_v30 = vunpack.c.l.bf16 %v2296_v0 }
  0x6e   : > { %1004 = vmatpush.msrb.mxu0 %v853_v38  ;;  %1020 = vmatpush.msrb.mxu1 %v554_v20  ;;  %v519_v38 = vunpack.c.h.bf16 %v2926_v28  ;;  %v670_v20 = vunpack.c.l.bf16 %v2291_v26  ;;  %v560_v28 = vunpack.c.l.bf16 %v2336_v7 }
  0x6f   : > { %1061 = vmatpush.msrb.mxu3 %v709_v29  ;;  %1043 = vmatpush.msrb.mxu2 %v619_v17  ;;  %v2303_v29 = vld [vmem:[%s1868_s8 + $0x260] sm:$0xff]  ;;  %v2306_v17 = vld [vmem:[%s1868_s8 + $0xf8] sm:$0xff] }
  0x70   : > { %1005 = vmatpush.msrb.mxu0 %v848_v46  ;;  %1021 = vmatpush.msrb.mxu1 %v549_v55  ;;  %v804_v46 = vunpack.c.h.bf16 %v2927_v2  ;;  %v2356_v2 = vld [vmem:[%s1868_s8 + $0x94] sm:$0xff] }
  0x71   : > { %1062 = vmatpush.msrb.mxu3 %v704_v40  ;;  %1044 = vmatpush.msrb.mxu2 %v614_v16  ;;  %v2929_v40 = vld [vmem:[#allocation21_spill] sm:$0xff] }
  0x72   : > { %1006 = vmatpush.msrb.mxu0 %v843_v58  ;;  %1022 = vmatpush.msrb.mxu1 %v544_v63  ;;  %v2928_v58 = vld [vmem:[#allocation19_spill] sm:$0xff]  ;;  %v909_v16 = vunpack.c.h.bf16 %v2929_v40 }
  0x73   : > { %1063 = vmatpush.msrb.mxu3 %v699_v53  ;;  %1045 = vmatpush.msrb.mxu2 %v609_v49  ;;  %v514_v55 = vunpack.c.h.bf16 %v2928_v58  ;;  %v2313_v53 = vld [vmem:[%s1868_s8 + $0x24c] sm:$0xff]  ;;  %v2316_v49 = vld [vmem:[%s1868_s8 + $0xe4] sm:$0xff]  ;;  %v884_v58 = vunpack.c.h.bf16 %v2173_v14 }
  0x74   : > { %1007 = vmatpush.msrb.mxu0 %v838_v22  ;;  %1023 = vmatpush.msrb.mxu1 %v539_v15  ;;  %v2930_v22 = vld [vmem:[#allocation10_spill] sm:$0xff]  ;;  %v575_v15 = vunpack.c.l.bf16 %v2306_v17  ;;  %v2366_v40 = vld [vmem:[%s1868_s8 + $0x80] sm:$0xff] }
  0x75   : > { %1064 = vmatpush.msrb.mxu3 %v694_v25  ;;  %1046 = vmatpush.msrb.mxu2 %v604_v60  ;;  %v799_v63 = vunpack.c.h.bf16 %v2930_v22  ;;  %v2323_v60 = vld [vmem:[%s1868_s8 + $0x238] sm:$0xff]  ;;  %v550_v22 = vunpack.c.l.bf16 %v2356_v2 }
  0x76   : > { %1008 = vmatpush.msrb.mxu0 %v833_v24  ;;  %1024 = vmatpush.msrb.mxu1 %v534_v57  ;;  %v665_v24 = vunpack.c.l.bf16 %v2303_v29  ;;  %v2932_v57 = vld [vmem:[#allocation11_spill] sm:$0xff] }
  0x77   : > { %1009 = vmatmul.f32.vlgmr.msrb.gmra.mxu0 %v2270_v10  ;;  %1065 = vmatpush.msrb.mxu3 %v689_v12  ;;  %v2326_v12 = vld [vmem:[%s1868_s8 + $0xd0] sm:$0xff] }
  0x78   : > { %1073 = vmatpush.msra.mxu0 %v829_v13  ;;  %1025 = vmatpush.msrb.mxu1 %v529_v4  ;;  %v2931_v13 = vld [vmem:[#allocation24_spill] sm:$0xff]  ;;  %v660_v4 = vunpack.c.l.bf16 %v2313_v53 }
  0x79   : > { %1047 = vmatpush.msrb.mxu2 %v599_v18  ;;  %1066 = vmatpush.msrb.mxu3 %v684_v39  ;;  %v904_v25 = vunpack.c.h.bf16 %v2931_v13  ;;  %v899_v18 = vunpack.c.h.bf16 %v2146_v31  ;;  %v2933_v39 = vld [vmem:[#allocation12_spill] sm:$0xff] }
  0x7a   : > { %1074 = vmatpush.msra.mxu0 %v824_v32  ;;  %1026 = vmatpush.msrb.mxu1 %v524_v48  ;;  %v794_v32 = vunpack.c.h.bf16 %v2932_v57  ;;  %v789_v23 = vunpack.c.h.bf16 %v2933_v39  ;;  %v2333_v48 = vld [vmem:[%s1868_s8 + $0x224] sm:$0xff]  ;;  %v2376_v13 = vld [vmem:[%s1868_s8 + $0x6c] sm:$0xff]  ;;  %v545_v57 = vunpack.c.l.bf16 %v2366_v40 }
  0x7b   : > { %1048 = vmatpush.msrb.mxu2 %v594_v27  ;;  %1067 = vmatpush.msrb.mxu3 %v679_v44  ;;  %v565_v27 = vunpack.c.l.bf16 %v2326_v12  ;;  %v2934_v44 = vld [vmem:[#allocation13_spill] sm:$0xff] }
  0x7c   : > { %1075 = vmatpush.msra.mxu0 %v819_v51  ;;  %1027 = vmatpush.msrb.mxu1 %v519_v38  ;;  %v570_v51 = vunpack.c.l.bf16 %v2316_v49  ;;  %v784_v31 = vunpack.c.h.bf16 %v2934_v44  ;;  %v889_v38 = vunpack.c.h.bf16 %v2166_v59  ;;  %v2396_v44 = vld [vmem:[%s1868_s8 + $0x1ac] sm:$0xff] }
  0x7d   : > { %1113 = vmatpush.msra.mxu2 %v590_v56  ;;  %1068 = vmatpush.msrb.mxu3 %v674_v47  ;;  %v2343_v56 = vld [vmem:[%s1868_s8 + $0x210] sm:$0xff]  ;;  %v2935_v47 = vld [vmem:[#allocation14_spill] sm:$0xff] }
  0x7e   : > { %1076 = vmatpush.msra.mxu0 %v814_v33  ;;  %1028 = vmatpush.msrb.mxu1 %v514_v55  ;;  %v655_v33 = vunpack.c.l.bf16 %v2323_v60  ;;  %v779_v45 = vunpack.c.h.bf16 %v2935_v47  ;;  %v2936_v55 = vld [vmem:[#allocation16_spill] sm:$0xff]  ;;  %v2406_v47 = vld [vmem:[%s1868_s8 + $0x3a0] sm:$0xff] }
  0x7f   : > { %1114 = vmatpush.msra.mxu2 %v585_v19  ;;  %1133 = vmatpush.msra.mxu3 %v670_v20  ;;  %v2353_v19 = vld [vmem:[%s1868_s8 + $0x1fc] sm:$0xff]  ;;  %v555_v20 = vunpack.c.l.bf16 %v2346_v42  ;;  %v774_v59 = vunpack.c.h.bf16 %v2936_v55 }
  0x80   : > { %1077 = vmatpush.msra.mxu0 %v809_v9  ;;  %1093 = vmatpush.msra.mxu1 %v909_v16  ;;  %v650_v9 = vunpack.c.l.bf16 %v2333_v48  ;;  %v640_v16 = vunpack.c.l.bf16 %v2353_v19 }
  0x81   : > { %1115 = vmatpush.msra.mxu2 %v580_v30  ;;  %1134 = vmatpush.msra.mxu3 %v665_v24  ;;  %v2363_v30 = vld [vmem:[%s1868_s8 + $0x1e8] sm:$0xff]  ;;  %v2937_v24 = vld [vmem:[#allocation18_spill] sm:$0xff] }
  0x82   : > { %1078 = vmatpush.msra.mxu0 %v804_v46  ;;  %1094 = vmatpush.msra.mxu1 %v904_v25  ;;  %v645_v46 = vunpack.c.l.bf16 %v2343_v56  ;;  %v769_v14 = vunpack.c.h.bf16 %v2937_v24  ;;  %v635_v25 = vunpack.c.l.bf16 %v2363_v30  ;;  %v2431_v24 = vld [vmem:[%s1868_s8 + $0x378] sm:$0xff] }
  0x83   : > { %1116 = vmatpush.msra.mxu2 %v575_v15  ;;  %1135 = vmatpush.msra.mxu3 %v660_v4  ;;  %v2373_v15 = vld [vmem:[%s1868_s8 + $0x1d4] sm:$0xff]  ;;  %v2938_v4 = vld [vmem:[#allocation20_spill] sm:$0xff] }
  0x84   : > { %1079 = vmatpush.msra.mxu0 %v799_v63  ;;  %1095 = vmatpush.msra.mxu1 %v899_v18  ;;  %v879_v63 = vunpack.c.h.bf16 %v2180_v61  ;;  %v764_v61 = vunpack.c.h.bf16 %v2938_v4  ;;  %v2386_v18 = vld [vmem:[%s1868_s8 + $0x58] sm:$0xff]  ;;  %v630_v39 = vunpack.c.l.bf16 %v2373_v15  ;;  %v2440_v4 = vld [vmem:[%s1868_s8 + $0x8] sm:$0xff] }
  0x85   : > { %1117 = vmatpush.msra.mxu2 %v570_v51  ;;  %1136 = vmatpush.msra.mxu3 %v655_v33  ;;  %v2383_v51 = vld [vmem:[%s1868_s8 + $0x1c0] sm:$0xff]  ;;  %v869_v33 = vunpack.c.h.bf16 %v2196_v52  ;;  %v864_v52 = vunpack.c.h.bf16 %v2204_v5  ;;  %v859_v5 = vunpack.c.h.bf16 %v2215_v34  ;;  %v854_v34 = vunpack.c.h.bf16 %v2226_v8 }
  0x86   : > { %1080 = vmatpush.msra.mxu0 %v794_v32  ;;  %1096 = vmatpush.msra.mxu1 %v894_v54  ;;  %v874_v32 = vunpack.c.h.bf16 %v2187_v62  ;;  %v2393_v54 = vld [vmem:[%s1868_s8 + $0x3b4] sm:$0xff]  ;;  %v849_v8 = vunpack.c.h.bf16 %v2233_v1  ;;  %v515_v1 = vunpack.c.l.bf16 %v2440_v4 }
  0x87   : > { %1118 = vmatpush.msra.mxu2 %v565_v27  ;;  %1137 = vmatpush.msra.mxu3 %v650_v9  ;;  %v2939_v27 = vld [vmem:[#allocation23_spill] sm:$0xff]  ;;  %v535_v9 = vunpack.c.l.bf16 %v2386_v18 }
  0x88   : > { %1081 = vmatpush.msra.mxu0 %v789_v23  ;;  %1097 = vmatpush.msra.mxu1 %v889_v38  ;;  %v540_v23 = vunpack.c.l.bf16 %v2376_v13  ;;  %v759_v62 = vunpack.c.h.bf16 %v2939_v27  ;;  %v754_v38 = vunpack.c.h.bf16 %v2151_v41  ;;  %v2418_v41 = vld [vmem:[%s1868_s8 + $0x38c] sm:$0xff] }
  0x89   : > { %1119 = vmatpush.msra.mxu2 %v560_v28  ;;  %1138 = vmatpush.msra.mxu3 %v645_v46  ;;  %v2401_v28 = vld [vmem:[%s1868_s8 + $0x44] sm:$0xff]  ;;  %v750_v46 = vunpack.c.l.bf16 %v2393_v54 }
  0x8a   : > { %1082 = vmatpush.msra.mxu0 %v784_v31  ;;  %1098 = vmatpush.msra.mxu1 %v884_v58  ;;  %v625_v31 = vunpack.c.l.bf16 %v2383_v51  ;;  %v2414_v58 = vld [vmem:[%s1868_s8 + $0x30] sm:$0xff]  ;;  %v530_v55 = vunpack.c.l.bf16 %v2401_v28 }
  0x8b   : > { %1120 = vmatpush.msra.mxu2 %v555_v20  ;;  %1139 = vmatpush.msra.mxu3 %v640_v16  ;;  %v620_v20 = vunpack.c.l.bf16 %v2396_v44  ;;  %v745_v16 = vunpack.c.l.bf16 %v2406_v47 }
  0x8c   : > { %1083 = vmatpush.msra.mxu0 %v779_v45  ;;  %1099 = vmatpush.msra.mxu1 %v879_v63  ;;  %v2409_v45 = vld [vmem:[%s1868_s8 + $0x198] sm:$0xff] }
  0x8d   : > { %1121 = vmatpush.msra.mxu2 %v550_v22  ;;  %1140 = vmatpush.msra.mxu3 %v635_v25  ;;  %v615_v22 = vunpack.c.l.bf16 %v2409_v45  ;;  %v2427_v63 = vld [vmem:[%s1868_s8 + $0x1c] sm:$0xff]  ;;  %v2435_v25 = vld [vmem:[%s1868_s8 + $0x170] sm:$0xff] }
  0x8e   : > { %1084 = vmatpush.msra.mxu0 %v774_v59  ;;  %1100 = vmatpush.msra.mxu1 %v874_v32  ;;  %v2422_v59 = vld [vmem:[%s1868_s8 + $0x184] sm:$0xff]  ;;  %v605_v27 = vunpack.c.l.bf16 %v2435_v25 }
  0x8f   : > { %1122 = vmatpush.msra.mxu2 %v545_v57  ;;  %1141 = vmatpush.msra.mxu3 %v630_v39  ;;  %v740_v57 = vunpack.c.l.bf16 %v2418_v41  ;;  %v610_v32 = vunpack.c.l.bf16 %v2422_v59  ;;  %v520_v39 = vunpack.c.l.bf16 %v2427_v63 }
  0x90   : > { %1085 = vmatpush.msra.mxu0 %v769_v14  ;;  %1101 = vmatpush.msra.mxu1 %v869_v33  ;;  %v525_v14 = vunpack.c.l.bf16 %v2414_v58  ;;  %v735_v33 = vunpack.c.l.bf16 %v2431_v24 }
  0x91   : > { %1123 = vmatpush.msra.mxu2 %v540_v23  ;;  %1142 = vmatpush.msra.mxu3 %v625_v31  ;;  %v2448_v23 = vld [vmem:[%s1868_s8 + $0x15c] sm:$0xff]  ;;  %v2454_v31 = vld [vmem:[%s1868_s8 + $0x350] sm:$0xff] }
  0x92   : > { %1086 = vmatpush.msra.mxu0 %v764_v61  ;;  %1102 = vmatpush.msra.mxu1 %v864_v52  ;;  %v2444_v61 = vld [vmem:[%s1868_s8 + $0x364] sm:$0xff]  ;;  %2940 = vst [vmem:[#allocation15_spill] sm:$0xff] %v2454_v31 }
  0x93   : > { %1124 = vmatpush.msra.mxu2 %v535_v9  ;;  %1143 = vmatpush.msra.mxu3 %v620_v20  ;;  %v2458_v9 = vld [vmem:[%s1868_s8 + $0x634] sm:$0xff]  ;;  %v730_v52 = vunpack.c.l.bf16 %v2444_v61  ;;  %v2467_v20 = vld [vmem:[%s1868_s8 + $0x33c] sm:$0xff] }
  0x94   : > { %1087 = vmatpush.msra.mxu0 %v759_v62  ;;  %1103 = vmatpush.msra.mxu1 %v859_v5  ;;  %v844_v62 = vunpack.c.h.bf16 %v2241_v11  ;;  %v839_v11 = vunpack.c.h.bf16 %v2248_v50  ;;  %2941 = vst [vmem:[#allocation7_spill] sm:$0xff] %v2467_v20  ;;  %v725_v5 = vunpack.c.l.bf16 %v2454_v31 }
  0x95   : > { %1125 = vmatpush.msra.mxu2 %v530_v55  ;;  %1144 = vmatpush.msra.mxu3 %v615_v22  ;;  %v910_v55 = vunpack.c.l.bf16 %v2458_v9  ;;  %v834_v22 = vunpack.c.h.bf16 %v2255_v35 }
  0x96   : > { %1088 = vmatpush.msra.mxu0 %v754_v38  ;;  %1104 = vmatpush.msra.mxu1 %v854_v34  ;;  %v600_v38 = vunpack.c.l.bf16 %v2448_v23  ;;  %v2476_v34 = vld [vmem:[%s1868_s8 + $0x328] sm:$0xff] }
  0x97   : > { %1126 = vmatpush.msra.mxu2 %v525_v14  ;;  %1145 = vmatpush.msra.mxu3 %v610_v32  ;;  %2942 = vst [vmem:[#allocation22_spill] sm:$0xff] %v2476_v34  ;;  %v720_v14 = vunpack.c.l.bf16 %v2467_v20  ;;  %v2484_v32 = vld [vmem:[%s1868_s8 + $0x60c] sm:$0xff]  ;;  %v2535_v20 = vld [vmem:[%s1868_s8 + $0x2c4] sm:$0xff] }
  0x98   : > { %1153 = vmatpush.msrb.mxu0 %v750_v46  ;;  %v2463_v46 = vld [vmem:[%s1868_s8 + $0x148] sm:$0xff]  ;;  %1105 = vmatpush.msra.mxu1 %v849_v8  ;;  %v2487_v8 = vld [vmem:[%s1868_s8 + $0x314] sm:$0xff]  ;;  %2948 = vst [vmem:[#allocation10_spill] sm:$0xff] %v2535_v20 }
  0x99   : > { %1127 = vmatpush.msra.mxu2 %v520_v39  ;;  %1146 = vmatpush.msra.mxu3 %v605_v27  ;;  %v595_v50 = vunpack.c.l.bf16 %v2463_v46  ;;  %2943 = vst [vmem:[#allocation8_spill] sm:$0xff] %v2487_v8  ;;  %v591_v39 = vunpack.c.h.bf16 %v2278_v21  ;;  %v2494_v27 = vld [vmem:[%s1868_s8 + $0x4e0] sm:$0xff]  ;;  %v710_v21 = vunpack.c.l.bf16 %v2487_v8 }
  0x9a   : > { %1154 = vmatpush.msrb.mxu0 %v745_v16  ;;  %v2472_v16 = vld [vmem:[%s1868_s8 + $0x620] sm:$0xff]  ;;  %1106 = vmatpush.msra.mxu1 %v844_v62  ;;  %v2497_v62 = vld [vmem:[%s1868_s8 + $0x5f8] sm:$0xff] }
  0x9b   : > { %1128 = vmatpush.msra.mxu2 %v515_v1  ;;  %1147 = vmatpush.msra.mxu3 %v600_v38  ;;  %v905_v35 = vunpack.c.l.bf16 %v2472_v16  ;;  %v2500_v1 = vld [vmem:[%s1868_s8 + $0x300] sm:$0xff]  ;;  %v900_v38 = vunpack.c.l.bf16 %v2484_v32 }
  0x9c   : > { %1155 = vmatpush.msrb.mxu0 %v740_v57  ;;  %v2481_v57 = vld [vmem:[%s1868_s8 + $0x4f4] sm:$0xff]  ;;  %1049 = vmatmul.f32.vlgmr.msrb.gmra.mxu2 %v2222_v6  ;;  %2944 = vst [vmem:[#allocation17_spill] sm:$0xff] %v2500_v1  ;;  %v705_v8 = vunpack.c.l.bf16 %v2500_v1 }
  0x9d   : > { %1107 = vmatpush.msra.mxu1 %v839_v11  ;;  %1193 = vmatpush.msrb.mxu2 %v910_v55  ;;  %v586_v11 = vunpack.c.h.bf16 %v2286_v36  ;;  %v2511_v55 = vld [vmem:[%s1868_s8 + $0x5e4] sm:$0xff]  ;;  %v2522_v36 = vld [vmem:[%s1868_s8 + $0x4b8] sm:$0xff] }
  0x9e   : > { %1156 = vmatpush.msrb.mxu0 %v735_v33  ;;  %v715_v33 = vunpack.c.l.bf16 %v2476_v34  ;;  %1148 = vmatpush.msra.mxu3 %v595_v50  ;;  %v2514_v50 = vld [vmem:[%s1868_s8 + $0x2ec] sm:$0xff]  ;;  %v2525_v34 = vld [vmem:[%s1868_s8 + $0x2d8] sm:$0xff] }
  0x9f   : > { %1108 = vmatpush.msra.mxu1 %v834_v22  ;;  %1069 = vmatmul.f32.vlgmr.msrb.gmra.mxu3 %v2192_v37  ;;  %2945 = vst [vmem:[#allocation9_spill] sm:$0xff] %v2514_v50  ;;  %v825_v22 = vunpack.c.l.bf16 %v2494_v27  ;;  %v581_v37 = vunpack.c.h.bf16 %v2296_v0  ;;  %v700_v1 = vunpack.c.l.bf16 %v2514_v50  ;;  %v576_v0 = vunpack.c.h.bf16 %v2306_v17  ;;  %v2547_v17 = vld [vmem:[%s1868_s8 + $0x2b0] sm:$0xff]  ;;  %v2559_v50 = vld [vmem:[%s1868_s8 + $0x29c] sm:$0xff] }
  0xa0   : > { %1157 = vmatpush.msrb.mxu0 %v730_v52  ;;  %v830_v52 = vunpack.c.l.bf16 %v2481_v57  ;;  %1194 = vmatpush.msrb.mxu2 %v905_v35  ;;  %2946 = vst [vmem:[#allocation19_spill] sm:$0xff] %v2525_v34  ;;  %v695_v31 = vunpack.c.l.bf16 %v2525_v34  ;;  %v2556_v34 = vld [vmem:[%s1868_s8 + $0x5a8] sm:$0xff] }
  0xa1   : > { %1213 = vmatpush.msrb.mxu3 %v591_v39  ;;  %1029 = vmatmul.f32.vlgmr.msrb.gmra.mxu1 %v2201_v3  ;;  %v890_v39 = vunpack.c.l.bf16 %v2511_v55  ;;  %2950 = vst [vmem:[#allocation11_spill] sm:$0xff] %v2547_v17 }
  0xa2   : > { %1158 = vmatpush.msrb.mxu0 %v725_v5  ;;  %v2508_v5 = vld [vmem:[%s1868_s8 + $0x4cc] sm:$0xff]  ;;  %1173 = vmatpush.msrb.mxu1 %v830_v52  ;;  %v815_v52 = vunpack.c.l.bf16 %v2522_v36  ;;  %2951 = vst [vmem:[#allocation12_spill] sm:$0xff] %v2556_v34 }
  0xa3   : > { %1195 = vmatpush.msrb.mxu2 %v900_v38  ;;  %v820_v35 = vunpack.c.l.bf16 %v2508_v5  ;;  %1214 = vmatpush.msrb.mxu3 %v586_v11  ;;  %v2539_v38 = vld [vmem:[%s1868_s8 + $0x4a4] sm:$0xff]  ;;  %v2544_v11 = vld [vmem:[%s1868_s8 + $0x5bc] sm:$0xff]  ;;  %2952 = vst [vmem:[#allocation13_spill] sm:$0xff] %v2559_v50 }
  0xa4   : > { %1159 = vmatpush.msrb.mxu0 %v720_v14  ;;  %v895_v14 = vunpack.c.l.bf16 %v2497_v62  ;;  %1174 = vmatpush.msrb.mxu1 %v825_v22  ;;  %2949 = vst [vmem:[#allocation24_spill] sm:$0xff] %v2544_v11  ;;  %v571_v22 = vunpack.c.h.bf16 %v2316_v49  ;;  %v880_v49 = vunpack.c.l.bf16 %v2544_v11  ;;  %v671_v11 = vunpack.c.h.bf16 %v2291_v26 }
  0xa5   : > { %1215 = vmatpush.msrb.mxu3 %v581_v37  ;;  %v810_v37 = vunpack.c.l.bf16 %v2539_v38  ;;  %1089 = vmatmul.f32.vlgmr.msra.gmra.mxu0 %v2208_v43  ;;  %v875_v43 = vunpack.c.l.bf16 %v2556_v34  ;;  %v556_v34 = vunpack.c.h.bf16 %v2346_v42  ;;  %v2599_v42 = vld [vmem:[%s1868_s8 + $0x440] sm:$0xff] }
  0xa6   : > { %1160 = vmatpush.msrb.mxu0 %v715_v33  ;;  %v2530_v33 = vld [vmem:[%s1868_s8 + $0x5d0] sm:$0xff]  ;;  %1196 = vmatpush.msrb.mxu2 %v895_v14 }
  0xa7   : > { %2947 = vst [vmem:[#allocation21_spill] sm:$0xff] %v2530_v33  ;;  %1175 = vmatpush.msrb.mxu1 %v820_v35  ;;  %v2551_v14 = vld [vmem:[%s1868_s8 + $0x490] sm:$0xff]  ;;  %1216 = vmatpush.msrb.mxu3 %v576_v0  ;;  %v566_v35 = vunpack.c.h.bf16 %v2326_v12  ;;  %v561_v12 = vunpack.c.h.bf16 %v2336_v7 }
  0xa8   : > { %1161 = vmatpush.msrb.mxu0 %v710_v21  ;;  %v885_v21 = vunpack.c.l.bf16 %v2530_v33  ;;  %1197 = vmatpush.msrb.mxu2 %v890_v39  ;;  %v2565_v39 = vld [vmem:[%s1868_s8 + $0x47c] sm:$0xff]  ;;  %v805_v0 = vunpack.c.l.bf16 %v2551_v14  ;;  %v2573_v33 = vld [vmem:[%s1868_s8 + $0x288] sm:$0xff]  ;;  %v2589_v7 = vld [vmem:[%s1868_s8 + $0x454] sm:$0xff] }
  0xa9   : > { %1176 = vmatpush.msrb.mxu1 %v815_v52  ;;  %1217 = vmatpush.msrb.mxu3 %v571_v22  ;;  %2953 = vst [vmem:[#allocation14_spill] sm:$0xff] %v2573_v33  ;;  %v2579_v52 = vld [vmem:[%s1868_s8 + $0x468] sm:$0xff] }
  0xaa   : > { %1162 = vmatpush.msrb.mxu0 %v705_v8  ;;  %v690_v8 = vunpack.c.l.bf16 %v2535_v20  ;;  %1198 = vmatpush.msrb.mxu2 %v885_v21  ;;  %v2570_v20 = vld [vmem:[%s1868_s8 + $0x594] sm:$0xff]  ;;  %v800_v21 = vunpack.c.l.bf16 %v2565_v39 }
  0xab   : > { %1109 = vmatmul.f32.vlgmr.msra.gmra.mxu1 %v2270_v10  ;;  %1218 = vmatpush.msrb.mxu3 %v566_v35  ;;  %v870_v22 = vunpack.c.l.bf16 %v2570_v20  ;;  %v551_v35 = vunpack.c.h.bf16 %v2356_v2  ;;  %v785_v2 = vunpack.c.l.bf16 %v2599_v42 }
  0xac   : > { %1163 = vmatpush.msrb.mxu0 %v700_v1  ;;  %v685_v1 = vunpack.c.l.bf16 %v2547_v17  ;;  %1177 = vmatpush.msrb.mxu1 %v810_v37  ;;  %v2584_v17 = vld [vmem:[%s1868_s8 + $0x580] sm:$0xff]  ;;  %v795_v37 = vunpack.c.l.bf16 %v2579_v52 }
  0xad   : > { %1199 = vmatpush.msrb.mxu2 %v880_v49  ;;  %1219 = vmatpush.msrb.mxu3 %v561_v12  ;;  %v865_v49 = vunpack.c.l.bf16 %v2584_v17  ;;  %v546_v12 = vunpack.c.h.bf16 %v2366_v40 }
  0xae   : > { %1164 = vmatpush.msrb.mxu0 %v695_v31  ;;  %v680_v31 = vunpack.c.l.bf16 %v2559_v50  ;;  %1178 = vmatpush.msrb.mxu1 %v805_v0  ;;  %v2594_v50 = vld [vmem:[%s1868_s8 + $0x56c] sm:$0xff]  ;;  %v2604_v0 = vld [vmem:[%s1868_s8 + $0x558] sm:$0xff] }
  0xaf   : > { %1200 = vmatpush.msrb.mxu2 %v875_v43  ;;  %1220 = vmatpush.msrb.mxu3 %v556_v34  ;;  %v860_v26 = vunpack.c.l.bf16 %v2594_v50  ;;  %v2609_v43 = vld [vmem:[%s1868_s8 + $0x42c] sm:$0xff]  ;;  %v2619_v34 = vld [vmem:[%s1868_s8 + $0x418] sm:$0xff] }
  0xb0   : > { %1165 = vmatpush.msrb.mxu0 %v690_v8  ;;  %v675_v8 = vunpack.c.l.bf16 %v2573_v33  ;;  %1179 = vmatpush.msrb.mxu1 %v800_v21  ;;  %v666_v33 = vunpack.c.h.bf16 %v2303_v29  ;;  %v661_v21 = vunpack.c.h.bf16 %v2313_v53  ;;  %v855_v29 = vunpack.c.l.bf16 %v2604_v0 }
  0xb1   : > { %1201 = vmatpush.msrb.mxu2 %v870_v22  ;;  %1221 = vmatpush.msrb.mxu3 %v551_v35  ;;  %v541_v22 = vunpack.c.h.bf16 %v2376_v13  ;;  %v780_v40 = vunpack.c.l.bf16 %v2609_v43  ;;  %v775_v13 = vunpack.c.l.bf16 %v2619_v34  ;;  %v2634_v35 = vld [vmem:[%s1868_s8 + $0x51c] sm:$0xff] }
  0xb2   : > { %1166 = vmatpush.msrb.mxu0 %v685_v1  ;;  %v790_v1 = vunpack.c.l.bf16 %v2589_v7  ;;  %1180 = vmatpush.msrb.mxu1 %v795_v37  ;;  %v2629_v37 = vld [vmem:[%s1868_s8 + $0x404] sm:$0xff] }
  0xb3   : > { %1202 = vmatpush.msrb.mxu2 %v865_v49  ;;  %1222 = vmatpush.msrb.mxu3 %v546_v12  ;;  %v536_v49 = vunpack.c.h.bf16 %v2386_v18  ;;  %v770_v12 = vunpack.c.l.bf16 %v2629_v37  ;;  %v2644_v18 = vld [vmem:[%s1868_s8 + $0x508] sm:$0xff] }
  0xb4   : > { %1167 = vmatpush.msrb.mxu0 %v680_v31  ;;  %v2614_v31 = vld [vmem:[%s1868_s8 + $0x544] sm:$0xff]  ;;  %1181 = vmatpush.msrb.mxu1 %v790_v1  ;;  %v651_v1 = vunpack.c.h.bf16 %v2333_v48  ;;  %v840_v48 = vunpack.c.l.bf16 %v2634_v35 }
  0xb5   : > { %1203 = vmatpush.msrb.mxu2 %v860_v26  ;;  %v850_v53 = vunpack.c.l.bf16 %v2614_v31  ;;  %1223 = vmatpush.msrb.mxu3 %v541_v22  ;;  %v531_v26 = vunpack.c.h.bf16 %v2401_v28  ;;  %v641_v28 = vunpack.c.h.bf16 %v2353_v19  ;;  %v835_v22 = vunpack.c.l.bf16 %v2644_v18 }
  0xb6   : > { %1168 = vmatpush.msrb.mxu0 %v675_v8  ;;  %v2624_v8 = vld [vmem:[%s1868_s8 + $0x530] sm:$0xff]  ;;  %1182 = vmatpush.msrb.mxu1 %v785_v2  ;;  %v646_v2 = vunpack.c.h.bf16 %v2343_v56  ;;  %v521_v56 = vunpack.c.h.bf16 %v2427_v63  ;;  %v516_v19 = vunpack.c.h.bf16 %v2440_v4  ;;  %v911_v63 = vunpack.c.h.bf16 %v2458_v9 }
  0xb7   : > { %1204 = vmatpush.msrb.mxu2 %v855_v29  ;;  %1224 = vmatpush.msrb.mxu3 %v536_v49  ;;  %v2661_v49 = vld [vmem:[%s1868_s8 + $0x3c8] sm:$0xff]  ;;  %v751_v4 = vunpack.c.h.bf16 %v2393_v54  ;;  %v816_v9 = vunpack.c.h.bf16 %v2522_v36  ;;  %v901_v54 = vunpack.c.h.bf16 %v2484_v32  ;;  %v736_v32 = vunpack.c.h.bf16 %v2431_v24  ;;  %v320_v36 = vld [vmem:[%s1868_s8 + $0x13c] sm:$0xf] }
  0xb8   : > { %1233 = vmatpush.msra.mxu0 %v671_v11  ;;  %v656_v11 = vunpack.c.h.bf16 %v2323_v60  ;;  %v845_v60 = vunpack.c.l.bf16 %v2624_v8  ;;  %1183 = vmatpush.msrb.mxu1 %v780_v40  ;;  %v2653_v40 = vld [vmem:[%s1868_s8 + $0x3dc] sm:$0xff]  ;;  %v731_v24 = vunpack.c.h.bf16 %v2444_v61  ;;  %v796_v61 = vunpack.c.h.bf16 %v2579_v52 }
  0xb9   : > { %1205 = vmatpush.msrb.mxu2 %v850_v53  ;;  %1225 = vmatpush.msrb.mxu3 %v531_v26  ;;  %v760_v53 = vunpack.c.l.bf16 %v2653_v40  ;;  %v2955_v26 = vld [vmem:[#allocation15_spill] sm:$0xff] }
  0xba   : > { %1234 = vmatpush.msra.mxu0 %v666_v33  ;;  %v2639_v33 = vld [vmem:[%s1868_s8 + $0x3f0] sm:$0xff]  ;;  %1184 = vmatpush.msrb.mxu1 %v775_v13  ;;  %v631_v13 = vunpack.c.h.bf16 %v2373_v15  ;;  %v821_v15 = vunpack.c.h.bf16 %v2508_v5  ;;  %v601_v5 = vunpack.c.h.bf16 %v2448_v23  ;;  %v592_v23 = vunpack.c.l.bf16 %v320_v36 }
  0xbb   : > { %v765_v29 = vunpack.c.l.bf16 %v2639_v33  ;;  %1206 = vmatpush.msrb.mxu2 %v845_v60  ;;  %v621_v60 = vunpack.c.h.bf16 %v2396_v44  ;;  %1149 = vmatmul.f32.vlgmr.msra.gmra.mxu3 %v2222_v6  ;;  %v741_v44 = vunpack.c.h.bf16 %v2418_v41  ;;  %v611_v6 = vunpack.c.h.bf16 %v2422_v59 }
  0xbc   : > { %1235 = vmatpush.msra.mxu0 %v661_v21  ;;  %v526_v21 = vunpack.c.h.bf16 %v2414_v58  ;;  %1185 = vmatpush.msrb.mxu1 %v770_v12  ;;  %v831_v58 = vunpack.c.h.bf16 %v2481_v57  ;;  %v626_v57 = vunpack.c.h.bf16 %v2383_v51  ;;  %v746_v51 = vunpack.c.h.bf16 %v2406_v47 }
  0xbd   : > { %1207 = vmatpush.msrb.mxu2 %v840_v48  ;;  %v896_v47 = vunpack.c.h.bf16 %v2497_v62  ;;  %v806_v41 = vunpack.c.h.bf16 %v2551_v14  ;;  %v891_v59 = vunpack.c.h.bf16 %v2511_v55  ;;  %v2690_v62 = vld [vmem:[%s1881_s10 + $0x10] sm:$0xff]  ;;  %v2954_v55 = vld [vmem:[#allocation21_spill] sm:$0xff]  ;;  %v726_v12 = vunpack.c.h.bf16 %v2955_v26  ;;  %v464_v26 = vld [vmem:[%s1868_s8 + $0x4fc] sm:$0xf] }
  0xbe   : > { %1236 = vmatpush.msra.mxu0 %v656_v11  ;;  %v636_v11 = vunpack.c.h.bf16 %v2363_v30  ;;  %1226 = vmatpush.msrb.mxu3 %v526_v21  ;;  %v826_v30 = vunpack.c.h.bf16 %v2494_v27  ;;  %v616_v27 = vunpack.c.h.bf16 %v2409_v45  ;;  %v606_v45 = vunpack.c.h.bf16 %v2435_v25  ;;  %v317_v14 = vld [vmem:[%s1868_s8 + $0x128] sm:$0xf]  ;;  %v314_v21 = vld [vmem:[%s1868_s8 + $0x114] sm:$0xf] }
  0xbf   : > { %1186 = vmatpush.msrb.mxu1 %v765_v29  ;;  %1208 = vmatpush.msrb.mxu2 %v835_v22  ;;  %v596_v25 = vunpack.c.h.bf16 %v2463_v46  ;;  %v587_v46 = vunpack.c.l.bf16 %v317_v14  ;;  %v2957_v29 = vld [vmem:[#allocation7_spill] sm:$0xff]  ;;  %v791_v22 = vunpack.c.h.bf16 %v2589_v7  ;;  %v582_v52 = vunpack.c.l.bf16 %v314_v21  ;;  %v410_v21 = vld [vmem:[%s1868_s8 + $0x394] sm:$0xf] }
  0xc0   : > { %1237 = vmatpush.msra.mxu0 %v651_v1  ;;  %1227 = vmatpush.msrb.mxu3 %v521_v56  ;;  %v755_v1 = vunpack.c.l.bf16 %v2661_v49  ;;  %v2958_v56 = vld [vmem:[#allocation12_spill] sm:$0xff]  ;;  %v846_v36 = vunpack.c.h.bf16 %v2624_v8 }
  0xc1   : > { %1129 = vmatmul.f32.vlgmr.msra.gmra.mxu2 %v2201_v3  ;;  %1187 = vmatpush.msrb.mxu1 %v760_v53  ;;  %v906_v3 = vunpack.c.h.bf16 %v2472_v16  ;;  %v811_v16 = vunpack.c.h.bf16 %v2539_v38  ;;  %v886_v38 = vunpack.c.h.bf16 %v2954_v55  ;;  %v2959_v53 = vld [vmem:[#allocation22_spill] sm:$0xff]  ;;  %v756_v55 = vunpack.c.h.bf16 %v2661_v49  ;;  %v287_v49 = vld [vmem:[%s1868_s8 + $0x60] sm:$0xf] }
  0xc2   : > { %1238 = vmatpush.msra.mxu0 %v646_v2  ;;  %1273 = vmatpush.msra.mxu2 %v831_v58  ;;  %v2700_v2 = vld [vmem:[%s1881_s10 + $0x18] sm:$0xff]  ;;  %v311_v58 = vld [vmem:[%s1868_s8 + $0x100] sm:$0xf] }
  0xc3   : > { %1228 = vmatpush.msrb.mxu3 %v516_v19  ;;  %1188 = vmatpush.msrb.mxu1 %v755_v1  ;;  %v716_v19 = vunpack.c.h.bf16 %v2959_v53  ;;  %v577_v7 = vunpack.c.l.bf16 %v311_v58  ;;  %v365_v58 = vld [vmem:[%s1868_s8 + $0x268] sm:$0xf] }
  0xc4   : > { %1239 = vmatpush.msra.mxu0 %v641_v28  ;;  %1274 = vmatpush.msra.mxu2 %v826_v30  ;;  %v721_v28 = vunpack.c.h.bf16 %v2957_v29  ;;  %v871_v30 = vunpack.c.h.bf16 %v2570_v20  ;;  %v832_v29 = vunpack.c.l.bf16 %v464_v26 }
  0xc5   : > { %1293 = vmatpush.msra.mxu3 %v911_v63  ;;  %1253 = vmatpush.msra.mxu1 %v751_v4  ;;  %v308_v63 = vld [vmem:[%s1868_s8 + $0xec] sm:$0xf]  ;;  %v781_v4 = vunpack.c.h.bf16 %v2609_v43 }
  0xc6   : > { %1240 = vmatpush.msra.mxu0 %v636_v11  ;;  %1275 = vmatpush.msra.mxu2 %v821_v15  ;;  %v876_v11 = vunpack.c.h.bf16 %v2958_v56  ;;  %v866_v15 = vunpack.c.h.bf16 %v2584_v17 }
  0xc7   : > { %1294 = vmatpush.msra.mxu3 %v906_v3  ;;  %1254 = vmatpush.msra.mxu1 %v746_v51  ;;  %v2961_v3 = vld [vmem:[#allocation17_spill] sm:$0xff]  ;;  %v776_v51 = vunpack.c.h.bf16 %v2619_v34 }
  0xc8   : > { %1241 = vmatpush.msra.mxu0 %v631_v13  ;;  %1276 = vmatpush.msra.mxu2 %v816_v9  ;;  %v786_v13 = vunpack.c.h.bf16 %v2599_v42  ;;  %v572_v42 = vunpack.c.l.bf16 %v308_v63  ;;  %v706_v20 = vunpack.c.h.bf16 %v2961_v3  ;;  %v861_v9 = vunpack.c.h.bf16 %v2594_v50  ;;  %v455_v3 = vld [vmem:[%s1868_s8 + $0x4c0] sm:$0xf] }
  0xc9   : > { %1295 = vmatpush.msra.mxu3 %v901_v54  ;;  %1209 = vmatmul.f32.vlgmr.msrb.gmra.mxu2 %v2270_v10  ;;  %v801_v10 = vunpack.c.h.bf16 %v2565_v39  ;;  %v2956_v39 = vld [vmem:[#allocation24_spill] sm:$0xff]  ;;  %v2962_v54 = vld [vmem:[#allocation9_spill] sm:$0xff] }
  0xca   : > { %1242 = vmatpush.msra.mxu0 %v626_v57  ;;  %1255 = vmatpush.msra.mxu1 %v741_v44  ;;  %v881_v48 = vunpack.c.h.bf16 %v2956_v39  ;;  %v2960_v57 = vld [vmem:[#allocation8_spill] sm:$0xff]  ;;  %v701_v17 = vunpack.c.h.bf16 %v2962_v54  ;;  %v771_v44 = vunpack.c.h.bf16 %v2629_v37  ;;  %v836_v39 = vunpack.c.h.bf16 %v2644_v18  ;;  %v2967_v18 = vld [vmem:[#allocation14_spill] sm:$0xff] }
  0xcb   : > { %1277 = vmatpush.msra.mxu2 %v811_v16  ;;  %1296 = vmatpush.msra.mxu3 %v896_v47  ;;  %v711_v1 = vunpack.c.h.bf16 %v2960_v57  ;;  %v299_v16 = vld [vmem:[%s1868_s8 + $0xb0] sm:$0xf]  ;;  %v2963_v47 = vld [vmem:[#allocation19_spill] sm:$0xff]  ;;  %v676_v56 = vunpack.c.h.bf16 %v2967_v18  ;;  %v389_v18 = vld [vmem:[%s1868_s8 + $0x308] sm:$0xf] }
  0xcc   : > { %1243 = vmatpush.msra.mxu0 %v621_v60  ;;  %1256 = vmatpush.msra.mxu1 %v736_v32  ;;  %v305_v60 = vld [vmem:[%s1868_s8 + $0xd8] sm:$0xf]  ;;  %v696_v50 = vunpack.c.h.bf16 %v2963_v47  ;;  %v851_v32 = vunpack.c.h.bf16 %v2614_v31  ;;  %v557_v37 = vunpack.c.l.bf16 %v299_v16  ;;  %v817_v16 = vunpack.c.l.bf16 %v455_v3  ;;  %v452_v47 = vld [vmem:[%s1868_s8 + $0x4ac] sm:$0xf] }
  0xcd   : > { %1169 = vmatmul.f32.vlgmr.msrb.gmra.mxu0 %v2690_v62  ;;  %1278 = vmatpush.msra.mxu2 %v806_v41  ;;  %v567_v43 = vunpack.c.l.bf16 %v305_v60  ;;  %v296_v41 = vld [vmem:[%s1868_s8 + $0x9c] sm:$0xf] }
  0xce   : > { %1244 = vmatpush.msra.mxu0 %v616_v27  ;;  %1297 = vmatpush.msra.mxu3 %v891_v59  ;;  %v302_v27 = vld [vmem:[%s1868_s8 + $0xc4] sm:$0xf]  ;;  %v2964_v59 = vld [vmem:[#allocation10_spill] sm:$0xff]  ;;  %v552_v31 = vunpack.c.l.bf16 %v296_v41  ;;  %v356_v41 = vld [vmem:[%s1868_s8 + $0x22c] sm:$0xf] }
  0xcf   : > { %1189 = vmatmul.f32.vlgmr.msrb.gmra.mxu1 %v2700_v2  ;;  %1279 = vmatpush.msra.mxu2 %v801_v10  ;;  %v562_v34 = vunpack.c.l.bf16 %v302_v27  ;;  %v416_v10 = vld [vmem:[%s1868_s8 + $0x3bc] sm:$0xf]  ;;  %v278_v27 = vld [vmem:[%s1868_s8 + $0x24] sm:$0xf] }
  0xd0   : > { %1245 = vmatpush.msra.mxu0 %v611_v6  ;;  %1257 = vmatpush.msra.mxu1 %v731_v24  ;;  %v856_v6 = vunpack.c.h.bf16 %v2604_v0  ;;  %v691_v0 = vunpack.c.h.bf16 %v2964_v59  ;;  %v293_v24 = vld [vmem:[%s1868_s8 + $0x88] sm:$0xf]  ;;  %v752_v14 = vunpack.c.l.bf16 %v416_v10 }
  0xd1   : > { %1298 = vmatpush.msra.mxu3 %v886_v38  ;;  %1280 = vmatpush.msra.mxu2 %v796_v61  ;;  %v841_v38 = vunpack.c.h.bf16 %v2634_v35  ;;  %v547_v8 = vunpack.c.l.bf16 %v293_v24  ;;  %v512_v24 = vld [vmem:[%s1868_s8 + $0x63c] sm:$0xf] }
  0xd2   : > { %1246 = vmatpush.msra.mxu0 %v606_v45  ;;  %1258 = vmatpush.msra.mxu1 %v726_v12  ;;  %v766_v45 = vunpack.c.h.bf16 %v2639_v33  ;;  %v2965_v33 = vld [vmem:[#allocation11_spill] sm:$0xff]  ;;  %v2966_v12 = vld [vmem:[#allocation13_spill] sm:$0xff] }
  0xd3   : > { %1299 = vmatpush.msra.mxu3 %v881_v48  ;;  %1281 = vmatpush.msra.mxu2 %v791_v22  ;;  %v681_v61 = vunpack.c.h.bf16 %v2966_v12  ;;  %v368_v48 = vld [vmem:[%s1868_s8 + $0x27c] sm:$0xf]  ;;  %v284_v22 = vld [vmem:[%s1868_s8 + $0x4c] sm:$0xf]  ;;  %v912_v12 = vunpack.c.l.bf16 %v512_v24 }
  0xd4   : > { %1247 = vmatpush.msra.mxu0 %v601_v5  ;;  %1259 = vmatpush.msra.mxu1 %v721_v28  ;;  %v761_v5 = vunpack.c.h.bf16 %v2653_v40  ;;  %v290_v40 = vld [vmem:[%s1868_s8 + $0x74] sm:$0xf]  ;;  %v461_v28 = vld [vmem:[%s1868_s8 + $0x4e8] sm:$0xf]  ;;  %v672_v53 = vunpack.c.l.bf16 %v368_v48 }
  0xd5   : > { %1300 = vmatpush.msra.mxu3 %v876_v11  ;;  %1282 = vmatpush.msra.mxu2 %v786_v13  ;;  %v542_v35 = vunpack.c.l.bf16 %v290_v40  ;;  %v537_v11 = vunpack.c.l.bf16 %v287_v49  ;;  %v458_v13 = vld [vmem:[%s1868_s8 + $0x4d4] sm:$0xf]  ;;  %v827_v57 = vunpack.c.l.bf16 %v461_v28 }
  0xd6   : > { %1248 = vmatpush.msra.mxu0 %v596_v25  ;;  %1260 = vmatpush.msra.mxu1 %v716_v19  ;;  %v686_v25 = vunpack.c.h.bf16 %v2965_v33  ;;  %v742_v19 = vunpack.c.l.bf16 %v410_v21  ;;  %v353_v33 = vld [vmem:[%s1868_s8 + $0x218] sm:$0xf]  ;;  %v443_v21 = vld [vmem:[%s1868_s8 + $0x470] sm:$0xf] }
  0xd7   : > { %1301 = vmatpush.msra.mxu3 %v871_v30  ;;  %1283 = vmatpush.msra.mxu2 %v781_v4  ;;  %v281_v30 = vld [vmem:[%s1868_s8 + $0x38] sm:$0xf]  ;;  %v362_v4 = vld [vmem:[%s1868_s8 + $0x254] sm:$0xf] }
  0xd8   : > { %1313 = vmatpush.msrb.mxu0 %v592_v23  ;;  %1261 = vmatpush.msra.mxu1 %v711_v1  ;;  %v413_v23 = vld [vmem:[%s1868_s8 + $0x3a8] sm:$0xf]  ;;  %v532_v1 = vunpack.c.l.bf16 %v284_v22  ;;  %v662_v54 = vunpack.c.l.bf16 %v362_v4  ;;  %v347_v22 = vld [vmem:[%s1868_s8 + $0x1f0] sm:$0xf] }
  0xd9   : > { %1302 = vmatpush.msra.mxu3 %v866_v15  ;;  %1284 = vmatpush.msra.mxu2 %v776_v51  ;;  %v667_v15 = vunpack.c.l.bf16 %v365_v58  ;;  %v822_v51 = vunpack.c.l.bf16 %v458_v13  ;;  %v440_v58 = vld [vmem:[%s1868_s8 + $0x45c] sm:$0xf]  ;;  %v797_v13 = vunpack.c.l.bf16 %v443_v21  ;;  %v637_v4 = vunpack.c.l.bf16 %v347_v22 }
  0xda   : > { %1314 = vmatpush.msrb.mxu0 %v587_v46  ;;  %1262 = vmatpush.msra.mxu1 %v706_v20  ;;  %v747_v46 = vunpack.c.l.bf16 %v413_v23  ;;  %v2779_v23 = vld [vmem:[%s1881_s10 + $0x8] sm:$0xff]  ;;  %v792_v3 = vunpack.c.l.bf16 %v440_v58  ;;  %v419_v58 = vld [vmem:[%s1868_s8 + $0x3d0] sm:$0xf] }
  0xdb   : > { %1303 = vmatpush.msra.mxu3 %v861_v9  ;;  %1285 = vmatpush.msra.mxu2 %v771_v44  ;;  %v527_v9 = vunpack.c.l.bf16 %v281_v30 }
  0xdc   : > { %1315 = vmatpush.msrb.mxu0 %v582_v52  ;;  %1263 = vmatpush.msra.mxu1 %v701_v17  ;;  %v407_v52 = vld [vmem:[%s1868_s8 + $0x380] sm:$0xf] }
  0xdd   : > { %1304 = vmatpush.msra.mxu3 %v856_v6  ;;  %1286 = vmatpush.msra.mxu2 %v766_v45  ;;  %v737_v60 = vunpack.c.l.bf16 %v407_v52  ;;  %v359_v17 = vld [vmem:[%s1868_s8 + $0x240] sm:$0xf]  ;;  %v275_v45 = vld [vmem:[%s1868_s8 + $0x10] sm:$0xf] }
  0xde   : > { %1316 = vmatpush.msrb.mxu0 %v577_v7  ;;  %1264 = vmatpush.msra.mxu1 %v696_v50  ;;  %v2754_v7 = vld [vmem:[%s1881_s10] sm:$0xff]  ;;  %v522_v50 = vunpack.c.l.bf16 %v278_v27  ;;  %v503_v52 = vld [vmem:[%s1868_s8 + $0x600] sm:$0xf] }
  0xdf   : > { %1305 = vmatpush.msra.mxu3 %v851_v32  ;;  %1287 = vmatpush.msra.mxu2 %v761_v5  ;;  %v657_v32 = vunpack.c.l.bf16 %v359_v17  ;;  %v812_v5 = vunpack.c.l.bf16 %v452_v47  ;;  %v383_v27 = vld [vmem:[%s1868_s8 + $0x2e0] sm:$0xf]  ;;  %v434_v17 = vld [vmem:[%s1868_s8 + $0x434] sm:$0xf]  ;;  %v380_v47 = vld [vmem:[%s1868_s8 + $0x2cc] sm:$0xf] }
  0xe0   : > { %1317 = vmatpush.msrb.mxu0 %v572_v42  ;;  %1265 = vmatpush.msra.mxu1 %v691_v0  ;;  %v404_v42 = vld [vmem:[%s1868_s8 + $0x36c] sm:$0xf]  ;;  %v930_v20 = vpop.f32.mrf.mxu0  ;;  %v692_v24 = vunpack.c.l.bf16 %v380_v47 }
  0xe1   : > { %1306 = vmatpush.msra.mxu3 %v846_v36  ;;  %1288 = vmatpush.msra.mxu2 %v756_v55  ;;  %v732_v6 = vunpack.c.l.bf16 %v404_v42  ;;  %v449_v36 = vld [vmem:[%s1868_s8 + $0x498] sm:$0xf]  ;;  %v500_v42 = vld [vmem:[%s1868_s8 + $0x5ec] sm:$0xf] }
  0xe2   : > { %1318 = vmatpush.msrb.mxu0 %v567_v43  ;;  %1266 = vmatpush.msra.mxu1 %v686_v25  ;;  %v395_v25 = vld [vmem:[%s1868_s8 + $0x330] sm:$0xf]  ;;  %v2773_v55 = vld [vmem:[%s1881_s10 + $0x20] sm:$0xff]  ;;  %v807_v26 = vunpack.c.l.bf16 %v449_v36 }
  0xe3   : > { %1307 = vmatpush.msra.mxu3 %v841_v38  ;;  %1353 = vmatpush.msrb.mxu2 %v752_v14  ;;  %v652_v38 = vunpack.c.l.bf16 %v356_v41  ;;  %v509_v14 = vld [vmem:[%s1868_s8 + $0x628] sm:$0xf]  ;;  %v717_v48 = vunpack.c.l.bf16 %v395_v25  ;;  %v494_v41 = vld [vmem:[%s1868_s8 + $0x5c4] sm:$0xf] }
  0xe4   : > { %1319 = vmatpush.msrb.mxu0 %v562_v34  ;;  %1267 = vmatpush.msra.mxu1 %v681_v61  ;;  %v950_v63 = vpop.f32.mrf.mxu1  ;;  %v970_v44 = vpop.f32.mrf.mxu2  ;;  %v401_v34 = vld [vmem:[%s1868_s8 + $0x358] sm:$0xf]  ;;  %v350_v61 = vld [vmem:[%s1868_s8 + $0x204] sm:$0xf]  ;;  %v907_v28 = vunpack.c.l.bf16 %v509_v14  ;;  %v882_v25 = vunpack.c.l.bf16 %v494_v41 }
  0xe5   : > { %1308 = vmatpush.msra.mxu3 %v836_v39  ;;  %1354 = vmatpush.msrb.mxu2 %v747_v46  ;;  %v951_v43 = vadd.f32 %v950_v63, %v930_v20  ;;  %v727_v0 = vunpack.c.l.bf16 %v401_v34  ;;  %v392_v39 = vld [vmem:[%s1868_s8 + $0x31c] sm:$0xf]  ;;  %v506_v46 = vld [vmem:[%s1868_s8 + $0x614] sm:$0xf]  ;;  %v897_v20 = vunpack.c.l.bf16 %v503_v52 }
  0xe6   : > { %1320 = vmatpush.msrb.mxu0 %v557_v37  ;;  %1229 = vmatmul.f32.vlgmr.msrb.gmra.mxu3 %v2754_v7  ;;  %v398_v37 = vld [vmem:[%s1868_s8 + $0x344] sm:$0xf]  ;;  %v902_v30 = vunpack.c.l.bf16 %v506_v46  ;;  %v338_v34 = vld [vmem:[%s1868_s8 + $0x1b4] sm:$0xf] }
  0xe7   : > { %1373 = vmatpush.msrb.mxu3 %v832_v29  ;;  %1268 = vmatpush.msra.mxu1 %v676_v56  ;;  %v971_v59 = vadd.f32 %v970_v44, %v951_v43  ;;  %v990_v10 = vpop.f32.mrf.mxu3  ;;  %v722_v40 = vunpack.c.l.bf16 %v398_v37  ;;  %v642_v56 = vunpack.c.l.bf16 %v350_v61  ;;  %v497_v44 = vld [vmem:[%s1868_s8 + $0x5d8] sm:$0xf]  ;;  %v782_v37 = vunpack.c.l.bf16 %v434_v17  ;;  %v422_v46 = vld [vmem:[%s1868_s8 + $0x3e4] sm:$0xf]  ;;  %v482_v52 = vld [vmem:[%s1868_s8 + $0x574] sm:$0xf] }
  0xe8   : > { %1321 = vmatpush.msrb.mxu0 %v552_v31  ;;  %1355 = vmatpush.msrb.mxu2 %v742_v19  ;;  %v517_v31 = vunpack.c.l.bf16 %v275_v45  ;;  %v697_v45 = vunpack.c.l.bf16 %v383_v27  ;;  %v622_v36 = vunpack.c.l.bf16 %v338_v34 }
  0xe9   : > { %1333 = vmatpush.msrb.mxu1 %v672_v53  ;;  %1374 = vmatpush.msrb.mxu3 %v827_v57  ;;  %v991_v49 = vadd.f32 %v990_v10, %v971_v59  ;;  %v263_v53 = vld [vmem:[#allocation2 + $0x8] sm:$0xff]  ;;  %v344_v57 = vld [vmem:[%s1868_s8 + $0x1dc] sm:$0xf]  ;;  %v887_v59 = vunpack.c.l.bf16 %v497_v44  ;;  %v428_v10 = vld [vmem:[%s1868_s8 + $0x40c] sm:$0xf] }
  0xea   : > { %1322 = vmatpush.msrb.mxu0 %v547_v8  ;;  %1356 = vmatpush.msrb.mxu2 %v737_v60  ;;  %v446_v8 = vld [vmem:[%s1868_s8 + $0x484] sm:$0xf]  ;;  %v437_v60 = vld [vmem:[%s1868_s8 + $0x448] sm:$0xf]  ;;  %v632_v43 = vunpack.c.l.bf16 %v344_v57  ;;  %v772_v61 = vunpack.c.l.bf16 %v428_v10  ;;  %v757_v57 = vunpack.c.l.bf16 %v419_v58 }
  0xeb   : > { %1334 = vmatpush.msrb.mxu1 %v667_v15  ;;  %1375 = vmatpush.msrb.mxu3 %v822_v51  ;;  %v802_v29 = vunpack.c.l.bf16 %v446_v8  ;;  %v707_v15 = vunpack.c.l.bf16 %v389_v18  ;;  %v326_v18 = vld [vmem:[%s1868_s8 + $0x164] sm:$0xf] }
  0xec   : > { %1323 = vmatpush.msrb.mxu0 %v542_v35  ;;  %1289 = vmatmul.f32.vlgmr.msra.gmra.mxu2 %v2700_v2  ;;  %v647_v35 = vunpack.c.l.bf16 %v353_v33 }
  0xed   : > { %1335 = vmatpush.msrb.mxu1 %v662_v54  ;;  %1357 = vmatpush.msrb.mxu2 %v732_v6  ;;  %v787_v6 = vunpack.c.l.bf16 %v437_v60 }
  0xee   : > { %1324 = vmatpush.msrb.mxu0 %v537_v11  ;;  %1376 = vmatpush.msrb.mxu3 %v817_v16  ;;  %v712_v11 = vunpack.c.l.bf16 %v392_v39  ;;  %v892_v16 = vunpack.c.l.bf16 %v500_v42  ;;  %v473_v42 = vld [vmem:[%s1868_s8 + $0x538] sm:$0xf] }
  0xef   : > { %1309 = vmatmul.f32.vlgmr.msra.gmra.mxu3 %v2773_v55  ;;  %1249 = vmatmul.f32.vlgmr.msra.gmra.mxu0 %v2779_v23 }
  0xf0   : > { %1325 = vmatpush.msrb.mxu0 %v532_v1  ;;  %1336 = vmatpush.msrb.mxu1 %v657_v32  ;;  %v386_v1 = vld [vmem:[%s1868_s8 + $0x2f4] sm:$0xf]  ;;  %v431_v32 = vld [vmem:[%s1868_s8 + $0x420] sm:$0xf] }
  0xf1   : > { %1358 = vmatpush.msrb.mxu2 %v727_v0  ;;  %1377 = vmatpush.msrb.mxu3 %v812_v5  ;;  %v702_v54 = vunpack.c.l.bf16 %v386_v1  ;;  %v335_v0 = vld [vmem:[%s1868_s8 + $0x1a0] sm:$0xf]  ;;  %v377_v5 = vld [vmem:[%s1868_s8 + $0x2b8] sm:$0xf]  ;;  %v777_v33 = vunpack.c.l.bf16 %v431_v32  ;;  %v862_v1 = vunpack.c.l.bf16 %v482_v52 }
  0xf2   : > { %1326 = vmatpush.msrb.mxu0 %v527_v9  ;;  %1269 = vmatmul.f32.vlgmr.msra.gmra.mxu1 %v2690_v62  ;;  %v341_v9 = vld [vmem:[%s1868_s8 + $0x1c8] sm:$0xf]  ;;  %v617_v8 = vunpack.c.l.bf16 %v335_v0  ;;  %v687_v14 = vunpack.c.l.bf16 %v377_v5  ;;  %v265_v5 = vld [vmem:[#allocation2 + $0x20] sm:$0xff] }
  0xf3   : > { %1337 = vmatpush.msrb.mxu1 %v652_v38  ;;  %1359 = vmatpush.msrb.mxu2 %v722_v40  ;;  %v332_v38 = vld [vmem:[%s1868_s8 + $0x18c] sm:$0xf]  ;;  %v374_v40 = vld [vmem:[%s1868_s8 + $0x2a4] sm:$0xf] }
  0xf4   : > { %1327 = vmatpush.msrb.mxu0 %v522_v50  ;;  %v1010_v19 = vpop.f32.mrf.mxu0  ;;  %1378 = vmatpush.msrb.mxu3 %v807_v26  ;;  %v627_v50 = vunpack.c.l.bf16 %v341_v9  ;;  %v425_v26 = vld [vmem:[%s1868_s8 + $0x3f8] sm:$0xf]  ;;  %v682_v21 = vunpack.c.l.bf16 %v374_v40  ;;  %v467_v9 = vld [vmem:[%s1868_s8 + $0x510] sm:$0xf] }
  0xf5   : > { %v1011_v63 = vadd.f32 %v1010_v19, %v991_v49  ;;  %1338 = vmatpush.msrb.mxu1 %v647_v35  ;;  %1360 = vmatpush.msrb.mxu2 %v717_v48  ;;  %v329_v49 = vld [vmem:[%s1868_s8 + $0x178] sm:$0xf]  ;;  %v371_v35 = vld [vmem:[%s1868_s8 + $0x290] sm:$0xf]  ;;  %v612_v48 = vunpack.c.l.bf16 %v332_v38 }
  0xf6   : > { %1328 = vmatpush.msrb.mxu0 %v517_v31  ;;  %1379 = vmatpush.msrb.mxu3 %v802_v29  ;;  %v491_v31 = vld [vmem:[%s1868_s8 + $0x5b0] sm:$0xf]  ;;  %v485_v29 = vld [vmem:[%s1868_s8 + $0x588] sm:$0xf] }
  0xf7   : > { %v1413_v51 = vadd.f32 %v1011_v63, %v263_v53  ;;  %1339 = vmatpush.msrb.mxu1 %v642_v56  ;;  %1361 = vmatpush.msrb.mxu2 %v712_v11  ;;  %v877_v39 = vunpack.c.l.bf16 %v491_v31  ;;  %v607_v56 = vunpack.c.l.bf16 %v329_v49  ;;  %v677_v11 = vunpack.c.l.bf16 %v371_v35  ;;  %v479_v63 = vld [vmem:[%s1868_s8 + $0x560] sm:$0xf] }
  0xf8   : > { %1393 = vmatpush.msra.mxu0 %v912_v12  ;;  %1380 = vmatpush.msrb.mxu3 %v797_v13  ;;  %v488_v12 = vld [vmem:[%s1868_s8 + $0x59c] sm:$0xf]  ;;  %v762_v53 = vunpack.c.l.bf16 %v422_v46  ;;  %v867_v19 = vunpack.c.l.bf16 %v485_v29  ;;  %v323_v13 = vld [vmem:[%s1868_s8 + $0x150] sm:$0xf]  ;;  %v857_v60 = vunpack.c.l.bf16 %v479_v63 }
  0xf9   : > { %1418 = vst [vmem:[#allocation2 + $0x8] sm:$0xff] %v1413_v51  ;;  %1340 = vmatpush.msrb.mxu1 %v637_v4  ;;  %1362 = vmatpush.msrb.mxu2 %v707_v15  ;;  %v872_v22 = vunpack.c.l.bf16 %v488_v12  ;;  %v597_v4 = vunpack.c.l.bf16 %v323_v13  ;;  %v476_v15 = vld [vmem:[%s1868_s8 + $0x54c] sm:$0xf]  ;;  %v847_v51 = vunpack.c.l.bf16 %v473_v42 }
  0xfa   : > { %1394 = vmatpush.msra.mxu0 %v907_v28  ;;  %1381 = vmatpush.msrb.mxu3 %v792_v3  ;;  %v767_v28 = vunpack.c.l.bf16 %v425_v26  ;;  %v852_v3 = vunpack.c.l.bf16 %v476_v15  ;;  %v266_v26 = vld [vmem:[#allocation2 + $0x10] sm:$0xff] }
  0xfb   : > { %1341 = vmatpush.msrb.mxu1 %v632_v43  ;;  %1363 = vmatpush.msrb.mxu2 %v702_v54 }
  0xfc   : > { %1395 = vmatpush.msra.mxu0 %v902_v30  ;;  %1382 = vmatpush.msrb.mxu3 %v787_v6  ;;  %v602_v30 = vunpack.c.l.bf16 %v326_v18 }
  0xfd   : > { %1342 = vmatpush.msrb.mxu1 %v627_v50  ;;  %1364 = vmatpush.msrb.mxu2 %v697_v45 }
  0xfe   : > { %1396 = vmatpush.msra.mxu0 %v897_v20  ;;  %1383 = vmatpush.msrb.mxu3 %v782_v37  ;;  %v470_v20 = vld [vmem:[%s1868_s8 + $0x524] sm:$0xf] }
  0xff   : > { %1343 = vmatpush.msrb.mxu1 %v622_v36  ;;  %1365 = vmatpush.msrb.mxu2 %v692_v24  ;;  %v842_v27 = vunpack.c.l.bf16 %v470_v20 }
 0x100   : > { %1397 = vmatpush.msra.mxu0 %v892_v16  ;;  %1384 = vmatpush.msrb.mxu3 %v777_v33 }
 0x101   : > { %1344 = vmatpush.msrb.mxu1 %v617_v8  ;;  %1366 = vmatpush.msrb.mxu2 %v687_v14 }
 0x102   : > { %1398 = vmatpush.msra.mxu0 %v887_v59  ;;  %1385 = vmatpush.msrb.mxu3 %v772_v61 }
 0x103   : > { %1345 = vmatpush.msrb.mxu1 %v612_v48  ;;  %1367 = vmatpush.msrb.mxu2 %v682_v21 }
 0x104   : > { %1399 = vmatpush.msra.mxu0 %v882_v25  ;;  %1386 = vmatpush.msrb.mxu3 %v767_v28  ;;  %v267_v28 = vld [vmem:[#allocation2 + $0x18] sm:$0xff] }
 0x105   : > { %1346 = vmatpush.msrb.mxu1 %v607_v56  ;;  %1368 = vmatpush.msrb.mxu2 %v677_v11 }
 0x106   : > { %1400 = vmatpush.msra.mxu0 %v877_v39  ;;  %1387 = vmatpush.msrb.mxu3 %v762_v53 }
 0x107   : > { %1369 = vmatmul.f32.vlgmr.msrb.gmra.mxu2 %v2690_v62  ;;  %1347 = vmatpush.msrb.mxu1 %v602_v30  ;;  %v837_v62 = vunpack.c.l.bf16 %v467_v9 }
 0x108   : > { %1401 = vmatpush.msra.mxu0 %v872_v22  ;;  %1388 = vmatpush.msrb.mxu3 %v757_v57 }
 0x109   : > { %1389 = vmatmul.f32.vlgmr.msrb.gmra.mxu3 %v2700_v2  ;;  %1348 = vmatpush.msrb.mxu1 %v597_v4 }
 0x10a   : > { %1402 = vmatpush.msra.mxu0 %v867_v19  ;;  %1349 = vmatmul.f32.vlgmr.msrb.gmra.mxu1 %v2779_v23  ;;  %v264_v23 = vld [vmem:[#allocation2] sm:$0xff] }
 0x10b   : > { %1329 = vmatmul.f32.vlgmr.msrb.gmra.mxu0 %v2754_v7 }
 0x10c   : > { %1403 = vmatpush.msra.mxu0 %v862_v1 }
 0x10e   : > { %1404 = vmatpush.msra.mxu0 %v857_v60 }
 0x110   : > { %1405 = vmatpush.msra.mxu0 %v852_v3 }
 0x112   : > { %1406 = vmatpush.msra.mxu0 %v847_v51 }
 0x114   : > { %1407 = vmatpush.msra.mxu0 %v842_v27 }
 0x116   : > { %1408 = vmatpush.msra.mxu0 %v837_v62 }
 0x117   : > { %1409 = vmatmul.f32.vlgmr.msra.gmra.mxu0 %v2773_v55 }
 0x11e   : > { %v1030_v43 = vpop.f32.mrf.mxu1 }
 0x11f   : > { %v1050_v54 = vpop.f32.mrf.mxu2 }
 0x120   : > { %v1051_v2 = vadd.f32 %v1050_v54, %v1030_v43 }
 0x122   : > { %v1070_v17 = vpop.f32.mrf.mxu3  ;;  %v1090_v6 = vpop.f32.mrf.mxu0 }
 0x123   : > { %v1071_v44 = vadd.f32 %v1070_v17, %v1051_v2 }
 0x125   : > { %v1091_v16 = vadd.f32 %v1090_v6, %v1071_v44 }
 0x128   : > { %v1110_v34 = vpop.f32.mrf.mxu1 }
 0x129   : > { %v1111_v47 = vadd.f32 %v1110_v34, %v1091_v16 }
 0x12b   : > { %v1414_v7 = vadd.f32 %v1111_v47, %v264_v23 }
 0x12d   : > { %1419 = vst [vmem:[#allocation2] sm:$0xff] %v1414_v7 }
 0x13e   : > { %v1150_v45 = vpop.f32.mrf.mxu3 }
 0x144   : > { %v1130_v50 = vpop.f32.mrf.mxu2 }
 0x145   : > { %v1151_v32 = vadd.f32 %v1150_v45, %v1130_v50 }
 0x14a   : > { %v1170_v41 = vpop.f32.mrf.mxu0 }
 0x14b   : > { %v1171_v37 = vadd.f32 %v1170_v41, %v1151_v32 }
 0x14c   : > { %v1190_v59 = vpop.f32.mrf.mxu1  ;;  %v1210_v55 = vpop.f32.mrf.mxu2 }
 0x14d   : > { %v1191_v0 = vadd.f32 %v1190_v59, %v1171_v37 }
 0x14f   : > { %v1211_v36 = vadd.f32 %v1210_v55, %v1191_v0 }
 0x151   : > { %v1415_v24 = vadd.f32 %v1211_v36, %v265_v5 }
 0x153   : > { %1420 = vst [vmem:[#allocation2 + $0x20] sm:$0xff] %v1415_v24 }
 0x169   : > { %v1230_v10 = vpop.f32.mrf.mxu3 }
 0x16c   : > { %v1250_v31 = vpop.f32.mrf.mxu0 }
 0x16d   : > { %v1251_v33 = vadd.f32 %v1250_v31, %v1230_v10 }
 0x16f   : > { %v1270_v25 = vpop.f32.mrf.mxu1  ;;  %v1290_v40 = vpop.f32.mrf.mxu2 }
 0x170   : > { %v1271_v38 = vadd.f32 %v1270_v25, %v1251_v33 }
 0x172   : > { %v1291_v8 = vadd.f32 %v1290_v40, %v1271_v38  ;;  %v1310_v14 = vpop.f32.mrf.mxu3 }
 0x174   : > { %v1311_v12 = vadd.f32 %v1310_v14, %v1291_v8 }
 0x176   : > { %v1416_v61 = vadd.f32 %v1311_v12, %v266_v26 }
 0x178   : > { %1421 = vst [vmem:[#allocation2 + $0x10] sm:$0xff] %v1416_v61 }
 0x187   : > { %v1350_v39 = vpop.f32.mrf.mxu1 }
 0x188   : > { %v1330_v49 = vpop.f32.mrf.mxu0 }
 0x189   : > { %v1351_v35 = vadd.f32 %v1350_v39, %v1330_v49 }
 0x18a   : > { %v1370_v48 = vpop.f32.mrf.mxu2 }
 0x18b   : > { %v1371_v21 = vadd.f32 %v1370_v48, %v1351_v35 }
 0x18c   : > { %v1390_v46 = vpop.f32.mrf.mxu3 }
 0x18d   : > { %v1391_v29 = vadd.f32 %v1390_v46, %v1371_v21 }
 0x194   : > { %v1410_v22 = vpop.f32.mrf.mxu0 }
 0x195   : > { %v1411_v18 = vadd.f32 %v1410_v22, %v1391_v29  ;;  %1426 = sbr.rel (%p1571_p3) target bundleno = 427 (0x1ab), region = 44 }
 0x197   : > { %v1417_v56 = vadd.f32 %v1411_v18, %v267_v28 }
 0x199   : > { %1422 = vst [vmem:[#allocation2 + $0x18] sm:$0xff] %v1417_v56 }
 0x19a   : > { %v1427_v11 = vld [vmem:[#allocation2 + $0x8] sm:$0xff]  ;;  %v1432_v58 = vld [vmem:[%s246_s12] sm:$0x1f]  ;;  %v1430_v63 = vld [vmem:[#allocation2 + $0x10] sm:$0xff] }
 0x19b   : > { %v1428_v52 = vld [vmem:[#allocation2] sm:$0xff]  ;;  %v1434_v53 = vperm.slane %v1432_v58, 0  ;;  %v1435_v19 = vperm.slane %v1432_v58, 1  ;;  %v1436_v30 = vperm.slane %v1432_v58, 2  ;;  %v1437_v57 = vperm.slane %v1432_v58, 3 }
 0x19c   : > { %v1429_v13 = vld [vmem:[#allocation2 + $0x20] sm:$0xff]  ;;  %v1438_v4 = vperm.slane %v1432_v58, 4 }
 0x19d   : > { %v1444_v15 = vadd.f32 %v1434_v53, %v1427_v11  ;;  %v1445_v60 = vadd.f32 %v1435_v19, %v1428_v52  ;;  %v1446_v42 = vadd.f32 %v1436_v30, %v1429_v13  ;;  %v1447_v3 = vadd.f32 %v1437_v57, %v1430_v63 }
 0x19f   : > { %1658 = vtanh.f32 %v1444_v15 }
 0x1a0   : > { %v1431_v1 = vld [vmem:[#allocation2 + $0x18] sm:$0xff]  ;;  %1660 = vtanh.f32 %v1445_v60 }
 0x1a1   : > { %v1448_v20 = vadd.f32 %v1438_v4, %v1431_v1  ;;  %1662 = vtanh.f32 %v1446_v42 }
 0x1a2   : > { %1664 = vtanh.f32 %v1447_v3 }
 0x1a3   : > { %1666 = vtanh.f32 %v1448_v20 }
 0x1a5   : > { %v1659_v51 = vpop.eup %1658 }
 0x1a6   : > { %v1661_v9 = vpop.eup %1660  ;;  %1454 = vst [vmem:[%s1891_s26] sm:$0xff] %v1659_v51 }
 0x1a7   : > { %v1663_v27 = vpop.eup %1662  ;;  %1455 = vst [vmem:[%s1891_s26 + $0x8] sm:$0xff] %v1661_v9 }
 0x1a8   : > { %v1665_v62 = vpop.eup %1664  ;;  %1456 = vst [vmem:[%s1891_s26 + $0x10] sm:$0xff] %v1663_v27 }
 0x1a9   : > { %v1667_v43 = vpop.eup %1666  ;;  %1457 = vst [vmem:[%s1891_s26 + $0x18] sm:$0xff] %v1665_v62 }
 0x1aa   : > { %1458 = vst [vmem:[%s1891_s26 + $0x20] sm:$0xff] %v1667_v43 }
 0x1ab PF: > { %s16_s19 = sadd.s32 1, %s1764_s19   ;;  %s2968_s29 = sld [smem:[#allocation6_spill]] }
 0x1ac   : > { %p13_p4 = scmp.ge.s32.totalorder %s16_s19, 6   ;;  %s2969_s12 = smov %s1740_s13 }
 0x1ad   : > { %s2970_s13 = smov %s1744_s14  ;;  %s2971_s14 = smov %s1856_s4 }
 0x1ae   : > { %s2972_s15 = smov %s1756_s17  ;;  %s2973_s16 = smov %s1760_s18 }
 0x1af   : > { %s2974_s17 = smov %s2977_s21  ;;  %15 = sbr.rel (!%p13_p4) target bundleno = 5 (0x5), region = 86 }
 0x1b1   : > { %s2975_s18 = smov %s2968_s29 }
 0x1b4   :  { %1481 = vsyncpa [#allocation4], 1 }
 0x1b5   :  { %1483 = vsyncpa [#allocation4 + $0x1], 1 }

// kernel: dsprites_vae_forward.4
= control target key start
LH: loop header
LB: loop body
LE: loop exit
PB: predicated region body
PF: predicated region fallthrough
CT: control target
= control target key end

     0   :  { %s4299_s0 = inlined_call_operand.hbm [shape: f32[8,4096], index: 0, kind: input, shape index: {}]   ;;  %s4300_s1 = inlined_call_operand.hbm [shape: bf16[4096,1280], index: 1, kind: input, shape index: {}]   ;;  %s4301_s2 = inlined_call_operand.vmem [shape: f32[1,1280], index: 2, kind: input, shape index: {}]   ;;  %s4302_s3 = inlined_call_operand.vmem [shape: f32[8,1280], index: 3, kind: output, shape index: {}]  }
   0x1   :  { %4465 = sst [smem:[#allocation95_spill]] %s4299_s0 }
   0x2   :  { %8 = vsyncpa [#allocation4], 0 }
   0x3   :  { %10 = vsyncpa [#allocation4 + $0x1], 0 }
   0x4   :  { %11 = vsyncpa [#allocation6], 0 }
   0x5   :  { %13 = vsyncpa [#allocation6 + $0x1], 0  ;;  %s2600_s12 = smov 0   ;;  %s2602_s13 = smov 0  }
   0x6   :  { %s2604_s14 = smov 0   ;;  %s2606_s15 = smov 0  }
   0x7   :  { %s2608_s16 = smov 0   ;;  %s2610_s17 = smov 0  }
   0x8   :  { %s2612_s18 = smov 0   ;;  %s2614_s19 = smov 0  }
   0x9   :  { %s2616_s20 = smov 0   ;;  %s2618_s21 = smov 0  }
   0xa   :  { %s2620_s22 = smov 0  }
   0xb LB: > { %4466 = sst [smem:[#allocation9_spill]] %s2554_s17  ;;  %s2279_s23 = sadd.s32 4294967295, %s2574_s22   ;;  %s2574_s22 = sphi %s2620_s22, %s19_s22   ;;  %s2570_s21 = sphi %s2618_s21, %s4806_s21   ;;  %s2566_s20 = sphi %s2616_s20, %s4797_s20   ;;  %s2562_s19 = sphi %s2614_s19, %s4805_s19   ;;  %s2558_s18 = sphi %s2612_s18, %s4804_s18   ;;  %s2554_s17 = sphi %s2610_s17, %s4795_s17   ;;  %s2550_s16 = sphi %s2608_s16, %s4803_s16   ;;  %s2546_s15 = sphi %s2606_s15, %s4802_s15   ;;  %s2542_s14 = sphi %s2604_s14, %s4801_s14   ;;  %s2538_s13 = sphi %s2602_s13, %s4800_s13   ;;  %s2534_s12 = sphi %s2600_s12, %s4799_s12  }
   0xc   : > { %4467 = sst [smem:[#allocation10_spill]] %s2566_s20  ;;  %s28_s24 = sadd.s32 1, %s2566_s20 }
   0xd   : > { %p29_p0 = scmp.ge.s32.totalorder %s28_s24, 4  ;;  %s31_s25 = sadd.s32 1, %s2570_s21 }
   0xe   : > { %s38_s26 = sadd.s32 1, %s2554_s17  ;;  %p45_p1 = scmp.ne.s32.totalorder %s2554_s17, %s2550_s16 }
   0xf   : > { %s4808_s24 = smov (%p29_p0, %s28_s24), 0  ;;  %s4810_s25 = smov (!%p29_p0, %s31_s25), %s2570_s21 }
  0x10   : > { %4468 = sst [smem:[#allocation11_spill]] %s4808_s24  ;;  %s35_s27 = ssub.s32 %s2566_s20, %s4808_s24 }
  0x11   : > { %p46_p2 = scmp.eq.s32.totalorder %s2574_s22, 0  ;;  %p33_p3 = scmp.ge.s32.totalorder %s4810_s25, 2 }
  0x12   : > { %p36_p4 = scmp.eq.s32.totalorder %s35_s27, 0  ;;  %p51_p6 = scmp.ne.s32.totalorder %s2550_s16, %s2546_s15 }
  0x13   : > { %p2667_p5 = por %p46_p2, %p45_p1  ;;  %s4812_s25 = smov (%p33_p3, %s4810_s25), 0 }
  0x14   : > { %4470 = sst [smem:[#allocation12_spill]] %s4812_s25  ;;  %p52_p7 = scmp.eq.s32.totalorder %s2279_s23, 0 }
  0x15   : > { %s2675_s29 = scalar_select %p36_p4, %s2554_s17, %s38_s26  }
  0x16   : > { %s62_s30 = ssub.s32 %s2570_s21, %s4812_s25  ;;  %s66_s5 = sadd.s32 1, %s2542_s14 }
  0x17   : > { %4471 = sst [smem:[#allocation13_spill]] %s2675_s29  ;;  %s63_s4 = sor.u32 %s62_s30, %s35_s27 }
  0x18   : > { %p2680_p8 = por %p52_p7, %p51_p6  ;;  %p64_p9 = scmp.eq.s32.totalorder %s63_s4, 0 }
  0x19   : > { %p73_p10 = scmp.ne.s32.totalorder %s2542_s14, %s2538_s13  ;;  %p79_p11 = scmp.ne.s32.totalorder %s2538_s13, %s2534_s12 }
  0x1a   : > { %s2689_s7 = scalar_select %p64_p9, %s2542_s14, %s66_s5  }
  0x1b   : > { %p2693_p12 = por %p73_p10, %p46_p2  ;;  %p2697_p13 = por %p79_p11, %p52_p7 }
  0x1c   : > { %p2311_p0 = scmp.lt.s32.totalorder %s2574_s22, 8  ;;  %s155_s10 = sand.u32 1, %s2554_s17  }
  0x1d   : > { %s2296_s11 = sshll.u32 %s2566_s20, 6  ;;  %s2283_s15 = sshll.u32 %s155_s10, 6 }
  0x1e   : > { %s4475_s0 = sld [smem:[#allocation95_spill]]  ;;  %s159_s30 = scalar_lea.vmem [#allocation3], %s2283_s15 }
  0x1f   : > { %s168_s4 = sshll.u32 %s159_s30, 4  ;;  %p2305_p1 = pnand %p2311_p0, %p2667_p5  ;;  %s169_s4 = int_to_ptr.vmem [resolvable:$true] %s168_s4 }
  0x20   : > { %s2298_s5 = smul.u32 1280, %s2566_s20  ;;  %p2712_p2 = pnand %p2311_p0, %p2693_p12 }
  0x21   : > { %p2289_p3 = scmp.ge.s32.totalorder %s2574_s22, 1  ;;  %p206_p4 = scmp.lt.s32.totalorder %s2574_s22, 9 }
  0x22   : > { %s156_s24 = scalar_lea.sflag [#allocation4], %s155_s10  ;;  %s181_s15 = smul.u32 5, %s2570_s21 }
  0x23   : > { %p2718_p6 = pnand %p2289_p3, %p206_p4  ;;  %s2576_s10 = smov 640  }
  0x24   : > { %s164_s26 = scalar_lea.hbm %s4475_s0, %s2296_s11  ;;  %s175_s11 = sand.u32 1, %s2542_s14  }
  0x25   : > { %s166_s27 = sshll.u32 %s164_s26, 4  ;;  %s2297_s23 = smul.u32 2560, %s175_s11  ;;  %s167_s27 = int_to_ptr.hbm [resolvable:$true] %s166_s27 }
  0x26   : > { %2307 = dma.hbm_to_vmem [thread:$0]  (!%p2305_p1), %s167_s27, 1024, %s169_s4, %s156_s24  }
  0x27   : > { %s185_s28 = sadd.s32 %s2298_s5, %s181_s15  ;;  %s179_s20 = scalar_lea.vmem [#allocation5], %s2297_s23 }
  0x28   : > { %s2288_s26 = sshll.u32 %s185_s28, 2  ;;  %s190_s29 = sshll.u32 %s179_s20, 4  ;;  %s191_s29 = int_to_ptr.vmem [resolvable:$true] %s190_s29 }
  0x29   : > { %s187_s0 = scalar_lea.hbm %s4300_s1, %s2288_s26  ;;  %s176_s24 = scalar_lea.sflag [#allocation6], %s175_s11 }
  0x2a   : > { %s188_s17 = sshll.u32 %s187_s0, 4  ;;  %s2577_s27 = smov 320   ;;  %s189_s17 = int_to_ptr.hbm [resolvable:$true] %s188_s17 }
  0x2b   : > { %s2578_s4 = smov 20   ;;  %210 = sbr.rel (%p2718_p6) target bundleno = 611 (0x263), region = 32 }
  0x2c   : > { %2310 = dma.hbm_to_vmem [thread:$0]  (!%p2712_p2), %s189_s17, 40960, %s191_s29, %s176_s24, %s2576_s10, %s2577_s27, %s2578_s4  }
  0x30   : > { %s212_s5 = sand.u32 1, %s2550_s16  }
  0x31   : > { %s2290_s15 = sshll.u32 %s212_s5, 6  ;;  %s213_s28 = scalar_lea.sflag [#allocation4], %s212_s5 }
  0x32   : > { %s2732_s26 = scalar_lea.vmem [#allocation3], %s2290_s15 }
  0x33   : > { %2525 = dma.done.wait (%p2680_p8), %s213_s28, 1024  }
  0x34   : > { %2527 = vsyncadd (%p2680_p8), %s213_s28, 4294966272  ;;  %s222_s0 = sand.u32 1, %s2538_s13  }
  0x35   : > { %s2299_s20 = smul.u32 2560, %s222_s0  ;;  %s223_s17 = scalar_lea.sflag [#allocation6], %s222_s0 }
  0x37   : > { %s2739_s25 = scalar_lea.vmem [#allocation5], %s2299_s20 }
  0x38   : > { %2529 = dma.done.wait (%p2697_p13), %s223_s17, 40960  }
  0x39   : > { %2531 = vsyncadd (%p2697_p13), %s223_s17, 4294926336  ;;  %s262_s29 = smul.u32 5, %s2562_s19  ;;  %p2292_p7 = scmp.ne.s32.totalorder %s2558_s18, 0 }
  0x3b   : > { %p263_p5 = scmp.lt.s32.totalorder %s262_s29, 9  ;;  %276 = sbr.rel (%p2292_p7) target bundleno = 70 (0x46), region = 44 }
  0x3d   : > { %s4814_s29 = smov (!%p263_p5, %s262_s29), 9 }
  0x3e   : > { %s265_s11 = scalar_lea.vmem %s4301_s2, %s4814_s29  ;;  %s2291_s23 = sshll.u32 %s4814_s29, 3 }
  0x3f   : > { %s2756_s24 = scalar_lea.vmem %s4302_s3, %s2291_s23 }
  0x40   : > { %v2579_v0 = vmov 0.0  }
  0x41   : > { %277 = vst [vmem:[#allocation2 + $0x8] sm:$0xff] %v2579_v0 }
  0x42   : > { %278 = vst [vmem:[#allocation2] sm:$0xff] %v2579_v0 }
  0x43   : > { %279 = vst [vmem:[#allocation2 + $0x20] sm:$0xff] %v2579_v0 }
  0x44   : > { %280 = vst [vmem:[#allocation2 + $0x10] sm:$0xff] %v2579_v0 }
  0x45   : > { %281 = vst [vmem:[#allocation2 + $0x18] sm:$0xff] %v2579_v0 }
  0x46 PF: > { %v2760_v1 = vld [vmem:[%s2739_s25 + $0x12c] sm:$0xff]  ;;  %v2766_v3 = vld [vmem:[%s2739_s25 + $0x118] sm:$0xff]  ;;  %v2782_v11 = vld [vmem:[%s2739_s25 + $0x104] sm:$0xff]  ;;  %p2293_p8 = scmp.ne.s32.totalorder %s2558_s18, 3 }
  0x47   : > { %v2763_v2 = vld [vmem:[%s2739_s25 + $0x3ac] sm:$0xff]  ;;  %v754_v4 = vunpack.c.l.bf16 %v2760_v1  ;;  %v2774_v7 = vld [vmem:[%s2739_s25 + $0x398] sm:$0xff]  ;;  %v749_v9 = vunpack.c.l.bf16 %v2766_v3  ;;  %v2788_v13 = vld [vmem:[%s2739_s25 + $0x384] sm:$0xff]  ;;  %v744_v19 = vunpack.c.l.bf16 %v2782_v11 }
  0x48   : > { %v914_v5 = vunpack.c.l.bf16 %v2763_v2  ;;  %v2771_v6 = vld [vmem:[%s2739_s25 + $0x26c] sm:$0xff]  ;;  %v2785_v12 = vld [vmem:[%s2739_s25 + $0x258] sm:$0xff]  ;;  %v909_v14 = vunpack.c.l.bf16 %v2774_v7  ;;  %v2799_v18 = vld [vmem:[%s2739_s25 + $0x244] sm:$0xff]  ;;  %v904_v23 = vunpack.c.l.bf16 %v2788_v13 }
  0x49   : > { %v2777_v8 = vld [vmem:[%s2739_s25 + $0x4ec] sm:$0xff]  ;;  %v834_v10 = vunpack.c.l.bf16 %v2771_v6  ;;  %1319 = vmatpush.msra.mxu0 %v754_v4  ;;  %v2793_v16 = vld [vmem:[%s2739_s25 + $0x4d8] sm:$0xff]  ;;  %v829_v20 = vunpack.c.l.bf16 %v2785_v12  ;;  %v2807_v22 = vld [vmem:[%s2739_s25 + $0x4c4] sm:$0xff]  ;;  %v824_v28 = vunpack.c.l.bf16 %v2799_v18 }
  0x4a   : > { %1359 = vmatpush.msra.mxu2 %v914_v5  ;;  %v994_v15 = vunpack.c.l.bf16 %v2777_v8  ;;  %v2796_v17 = vld [vmem:[%s2739_s25 + $0xf0] sm:$0xff]  ;;  %v989_v24 = vunpack.c.l.bf16 %v2793_v16  ;;  %v2812_v25 = vld [vmem:[%s2739_s25 + $0xdc] sm:$0xff]  ;;  %v984_v32 = vunpack.c.l.bf16 %v2807_v22  ;;  %v2828_v33 = vld [vmem:[%s2739_s25 + $0xc8] sm:$0xff] }
  0x4b   : > { %1339 = vmatpush.msra.mxu1 %v834_v10  ;;  %v2804_v21 = vld [vmem:[%s2739_s25 + $0x370] sm:$0xff]  ;;  %1320 = vmatpush.msra.mxu0 %v749_v9  ;;  %v739_v27 = vunpack.c.l.bf16 %v2796_v17  ;;  %v2820_v29 = vld [vmem:[%s2739_s25 + $0x35c] sm:$0xff]  ;;  %v734_v35 = vunpack.c.l.bf16 %v2812_v25  ;;  %v2836_v37 = vld [vmem:[%s2739_s25 + $0x348] sm:$0xff]  ;;  %v729_v43 = vunpack.c.l.bf16 %v2828_v33 }
  0x4c   : > { %1360 = vmatpush.msra.mxu2 %v909_v14  ;;  %v2815_v26 = vld [vmem:[%s2739_s25 + $0x230] sm:$0xff]  ;;  %1379 = vmatpush.msra.mxu3 %v994_v15  ;;  %v899_v31 = vunpack.c.l.bf16 %v2804_v21  ;;  %v2831_v34 = vld [vmem:[%s2739_s25 + $0x21c] sm:$0xff]  ;;  %v894_v39 = vunpack.c.l.bf16 %v2820_v29  ;;  %v2847_v42 = vld [vmem:[%s2739_s25 + $0x208] sm:$0xff]  ;;  %v889_v47 = vunpack.c.l.bf16 %v2836_v37 }
  0x4d   : > { %1340 = vmatpush.msra.mxu1 %v829_v20  ;;  %v2823_v30 = vld [vmem:[%s2739_s25 + $0x4b0] sm:$0xff]  ;;  %1321 = vmatpush.msra.mxu0 %v744_v19  ;;  %v819_v36 = vunpack.c.l.bf16 %v2815_v26  ;;  %v2839_v38 = vld [vmem:[%s2739_s25 + $0x49c] sm:$0xff]  ;;  %v814_v44 = vunpack.c.l.bf16 %v2831_v34  ;;  %v2855_v46 = vld [vmem:[%s2739_s25 + $0x488] sm:$0xff]  ;;  %v809_v52 = vunpack.c.l.bf16 %v2847_v42 }
  0x4e   : > { %1361 = vmatpush.msra.mxu2 %v904_v23  ;;  %1380 = vmatpush.msra.mxu3 %v989_v24  ;;  %v979_v40 = vunpack.c.l.bf16 %v2823_v30  ;;  %v2844_v41 = vld [vmem:[%s2739_s25 + $0xb4] sm:$0xff]  ;;  %v974_v48 = vunpack.c.l.bf16 %v2839_v38  ;;  %v2860_v49 = vld [vmem:[%s2739_s25 + $0xa0] sm:$0xff]  ;;  %v969_v56 = vunpack.c.l.bf16 %v2855_v46  ;;  %v2876_v57 = vld [vmem:[%s2739_s25 + $0x8c] sm:$0xff] }
  0x4f   : > { %1341 = vmatpush.msra.mxu1 %v824_v28  ;;  %1322 = vmatpush.msra.mxu0 %v739_v27  ;;  %v2852_v45 = vld [vmem:[%s2739_s25 + $0x334] sm:$0xff]  ;;  %v724_v51 = vunpack.c.l.bf16 %v2844_v41  ;;  %v2868_v53 = vld [vmem:[%s2739_s25 + $0x320] sm:$0xff]  ;;  %v719_v59 = vunpack.c.l.bf16 %v2860_v49  ;;  %v2884_v61 = vld [vmem:[%s2739_s25 + $0x30c] sm:$0xff]  ;;  %v714_v9 = vunpack.c.l.bf16 %v2876_v57 }
  0x50   : > { %1362 = vmatpush.msra.mxu2 %v899_v31  ;;  %1381 = vmatpush.msra.mxu3 %v984_v32  ;;  %v2863_v50 = vld [vmem:[%s2739_s25 + $0x1f4] sm:$0xff]  ;;  %v884_v55 = vunpack.c.l.bf16 %v2852_v45  ;;  %v2879_v58 = vld [vmem:[%s2739_s25 + $0x1e0] sm:$0xff]  ;;  %v879_v63 = vunpack.c.l.bf16 %v2868_v53  ;;  %v2895_v5 = vld [vmem:[%s2739_s25 + $0x1cc] sm:$0xff]  ;;  %v874_v19 = vunpack.c.l.bf16 %v2884_v61 }
  0x51   : > { %1342 = vmatpush.msra.mxu1 %v819_v36  ;;  %1323 = vmatpush.msra.mxu0 %v734_v35  ;;  %v2871_v54 = vld [vmem:[%s2739_s25 + $0x474] sm:$0xff]  ;;  %v804_v60 = vunpack.c.l.bf16 %v2863_v50  ;;  %v2887_v62 = vld [vmem:[%s2739_s25 + $0x460] sm:$0xff]  ;;  %v799_v10 = vunpack.c.l.bf16 %v2879_v58  ;;  %v2903_v15 = vld [vmem:[%s2739_s25 + $0x44c] sm:$0xff]  ;;  %v794_v28 = vunpack.c.l.bf16 %v2895_v5 }
  0x52   : > { %1363 = vmatpush.msra.mxu2 %v894_v39  ;;  %1382 = vmatpush.msra.mxu3 %v979_v40  ;;  %v964_v0 = vunpack.c.l.bf16 %v2871_v54  ;;  %v2892_v4 = vld [vmem:[%s2739_s25 + $0x78] sm:$0xff]  ;;  %v959_v20 = vunpack.c.l.bf16 %v2887_v62  ;;  %v2908_v23 = vld [vmem:[%s2739_s25 + $0x64] sm:$0xff]  ;;  %v954_v36 = vunpack.c.l.bf16 %v2903_v15  ;;  %v2924_v39 = vld [vmem:[%s2739_s25 + $0x50] sm:$0xff] }
  0x53   : > { %1343 = vmatpush.msra.mxu1 %v814_v44  ;;  %1324 = vmatpush.msra.mxu0 %v729_v43  ;;  %v2900_v14 = vld [vmem:[%s2739_s25 + $0x2f8] sm:$0xff]  ;;  %v709_v27 = vunpack.c.l.bf16 %v2892_v4  ;;  %v2916_v31 = vld [vmem:[%s2739_s25 + $0x2e4] sm:$0xff]  ;;  %v704_v43 = vunpack.c.l.bf16 %v2908_v23 }
  0x54   : > { %1364 = vmatpush.msra.mxu2 %v889_v47  ;;  %1383 = vmatpush.msra.mxu3 %v974_v48  ;;  %v2911_v24 = vld [vmem:[%s2739_s25 + $0x1b8] sm:$0xff]  ;;  %v869_v35 = vunpack.c.l.bf16 %v2900_v14  ;;  %v2927_v40 = vld [vmem:[%s2739_s25 + $0x1a4] sm:$0xff]  ;;  %v2932_v47 = vld [vmem:[%s2739_s25 + $0x2d0] sm:$0xff] }
  0x55   : > { %1344 = vmatpush.msra.mxu1 %v809_v52  ;;  %1325 = vmatpush.msra.mxu0 %v724_v51  ;;  %v2919_v32 = vld [vmem:[%s2739_s25 + $0x438] sm:$0xff]  ;;  %v789_v44 = vunpack.c.l.bf16 %v2911_v24  ;;  %v2935_v48 = vld [vmem:[%s2739_s25 + $0x424] sm:$0xff]  ;;  %v864_v51 = vunpack.c.l.bf16 %v2916_v31 }
  0x56   : > { %1365 = vmatpush.msra.mxu2 %v884_v55  ;;  %1384 = vmatpush.msra.mxu3 %v969_v56  ;;  %v949_v52 = vunpack.c.l.bf16 %v2919_v32  ;;  %v2940_v55 = vld [vmem:[%s2739_s25 + $0x3c] sm:$0xff]  ;;  %v2943_v56 = vld [vmem:[%s2739_s25 + $0x190] sm:$0xff] }
  0x57   : > { %1345 = vmatpush.msra.mxu1 %v804_v60  ;;  %1326 = vmatpush.msra.mxu0 %v719_v59  ;;  %4478 = vst [vmem:[#allocation14_spill] sm:$0xff] %v2940_v55  ;;  %v699_v59 = vunpack.c.l.bf16 %v2924_v39  ;;  %v784_v60 = vunpack.c.l.bf16 %v2927_v40 }
  0x58   : > { %1366 = vmatpush.msra.mxu2 %v879_v63  ;;  %1385 = vmatpush.msra.mxu3 %v964_v0  ;;  %4479 = vst [vmem:[#allocation15_spill] sm:$0xff] %v2943_v56  ;;  %v2948_v63 = vld [vmem:[%s2739_s25 + $0x2bc] sm:$0xff]  ;;  %v2951_v0 = vld [vmem:[%s2739_s25 + $0x410] sm:$0xff] }
  0x59   : > { %1346 = vmatpush.msra.mxu1 %v799_v10  ;;  %1327 = vmatpush.msra.mxu0 %v714_v9  ;;  %4480 = vst [vmem:[#allocation16_spill] sm:$0xff] %v2948_v63  ;;  %v859_v9 = vunpack.c.l.bf16 %v2932_v47  ;;  %v944_v10 = vunpack.c.l.bf16 %v2935_v48 }
  0x5a   : > { %1367 = vmatpush.msra.mxu2 %v874_v19  ;;  %1386 = vmatpush.msra.mxu3 %v959_v20  ;;  %4481 = vst [vmem:[#allocation17_spill] sm:$0xff] %v2951_v0  ;;  %v2956_v19 = vld [vmem:[%s2739_s25 + $0x28] sm:$0xff]  ;;  %v2959_v20 = vld [vmem:[%s2739_s25 + $0x17c] sm:$0xff] }
  0x5b   : > { %1347 = vmatpush.msra.mxu1 %v794_v28  ;;  %1328 = vmatpush.msra.mxu0 %v709_v27  ;;  %4482 = vst [vmem:[#allocation18_spill] sm:$0xff] %v2956_v19  ;;  %v694_v27 = vunpack.c.l.bf16 %v2940_v55  ;;  %v779_v28 = vunpack.c.l.bf16 %v2943_v56  ;;  %v774_v56 = vunpack.c.l.bf16 %v2959_v20  ;;  %v3244_v55 = vld [vmem:[%s2739_s25 + $0x500] sm:$0xff] }
  0x5c   : > { %1368 = vmatpush.msra.mxu2 %v869_v35  ;;  %1387 = vmatpush.msra.mxu3 %v954_v36  ;;  %4483 = vst [vmem:[#allocation19_spill] sm:$0xff] %v2959_v20  ;;  %v2964_v35 = vld [vmem:[%s2739_s25 + $0x2a8] sm:$0xff]  ;;  %v2967_v36 = vld [vmem:[%s2739_s25 + $0x3fc] sm:$0xff] }
  0x5d   : > { %1348 = vmatpush.msra.mxu1 %v789_v44  ;;  %1329 = vmatpush.msra.mxu0 %v704_v43  ;;  %4484 = vst [vmem:[#allocation20_spill] sm:$0xff] %v2964_v35  ;;  %v854_v43 = vunpack.c.l.bf16 %v2948_v63  ;;  %v939_v44 = vunpack.c.l.bf16 %v2951_v0  ;;  %v849_v0 = vunpack.c.l.bf16 %v2964_v35  ;;  %v934_v63 = vunpack.c.l.bf16 %v2967_v36 }
  0x5e   : > { %1369 = vmatpush.msra.mxu2 %v864_v51  ;;  %1388 = vmatpush.msra.mxu3 %v949_v52  ;;  %4485 = vst [vmem:[#allocation21_spill] sm:$0xff] %v2967_v36  ;;  %v2972_v51 = vld [vmem:[%s2739_s25 + $0x14] sm:$0xff]  ;;  %v2975_v52 = vld [vmem:[%s2739_s25 + $0x168] sm:$0xff] }
  0x5f   : > { %1349 = vmatpush.msra.mxu1 %v784_v60  ;;  %1330 = vmatpush.msra.mxu0 %v699_v59  ;;  %4486 = vst [vmem:[#allocation22_spill] sm:$0xff] %v2972_v51  ;;  %v689_v60 = vunpack.c.l.bf16 %v2956_v19  ;;  %v2980_v59 = vld [vmem:[%s2739_s25 + $0x294] sm:$0xff]  ;;  %v684_v20 = vunpack.c.l.bf16 %v2972_v51  ;;  %v769_v19 = vunpack.c.l.bf16 %v2975_v52 }
  0x60   : > { %1370 = vmatpush.msra.mxu2 %v859_v9  ;;  %4487 = vst [vmem:[#allocation23_spill] sm:$0xff] %v2975_v52  ;;  %1389 = vmatpush.msra.mxu3 %v944_v10  ;;  %v2983_v9 = vld [vmem:[%s2739_s25 + $0x3e8] sm:$0xff]  ;;  %v2988_v10 = vld [vmem:[%s2739_s25] sm:$0xff]  ;;  %v844_v36 = vunpack.c.l.bf16 %v2980_v59 }
  0x61   : > { %1350 = vmatpush.msra.mxu1 %v779_v28  ;;  %4488 = vst [vmem:[#allocation24_spill] sm:$0xff] %v2980_v59  ;;  %1331 = vmatpush.msra.mxu0 %v694_v27  ;;  %v2991_v28 = vld [vmem:[%s2739_s25 + $0x154] sm:$0xff]  ;;  %v2996_v27 = vld [vmem:[%s2739_s25 + $0x280] sm:$0xff]  ;;  %v929_v35 = vunpack.c.l.bf16 %v2983_v9  ;;  %v679_v52 = vunpack.c.l.bf16 %v2988_v10 }
  0x62   : > { %4489 = vst [vmem:[#allocation25_spill] sm:$0xff] %v2983_v9  ;;  %1371 = vmatpush.msra.mxu2 %v854_v43  ;;  %1390 = vmatpush.msra.mxu3 %v939_v44  ;;  %v2999_v43 = vld [vmem:[%s2739_s25 + $0x3d4] sm:$0xff]  ;;  %v3004_v44 = vld [vmem:[%s2739_s25 + $0x62c] sm:$0xff]  ;;  %v764_v51 = vunpack.c.l.bf16 %v2991_v28  ;;  %v839_v9 = vunpack.c.l.bf16 %v2996_v27 }
  0x63   : > { %4490 = vst [vmem:[#allocation26_spill] sm:$0xff] %v2988_v10  ;;  %1351 = vmatpush.msra.mxu1 %v774_v56  ;;  %1332 = vmatpush.msra.mxu0 %v689_v60  ;;  %v3007_v56 = vld [vmem:[%s2739_s25 + $0x8ac] sm:$0xff]  ;;  %v3012_v60 = vld [vmem:[%s2739_s25 + $0x140] sm:$0xff]  ;;  %v924_v59 = vunpack.c.l.bf16 %v2999_v43 }
  0x64   : > { %4491 = vst [vmem:[#allocation27_spill] sm:$0xff] %v2991_v28  ;;  %1372 = vmatpush.msra.mxu2 %v849_v0  ;;  %1391 = vmatpush.msra.mxu3 %v934_v63  ;;  %v3015_v0 = vld [vmem:[%s2739_s25 + $0x3c0] sm:$0xff]  ;;  %v3020_v63 = vld [vmem:[%s2739_s25 + $0x618] sm:$0xff]  ;;  %v1074_v28 = vunpack.c.l.bf16 %v3004_v44  ;;  %v1234_v10 = vunpack.c.l.bf16 %v3007_v56 }
  0x65   : > { %4492 = vst [vmem:[#allocation28_spill] sm:$0xff] %v2996_v27  ;;  %1352 = vmatpush.msra.mxu1 %v769_v19  ;;  %1333 = vmatpush.msra.mxu0 %v684_v20  ;;  %v3023_v19 = vld [vmem:[%s2739_s25 + $0x76c] sm:$0xff]  ;;  %v3028_v20 = vld [vmem:[%s2739_s25 + $0x898] sm:$0xff]  ;;  %v919_v27 = vunpack.c.l.bf16 %v3015_v0 }
  0x66   : > { %4493 = vst [vmem:[#allocation29_spill] sm:$0xff] %v2999_v43  ;;  %1373 = vmatpush.msra.mxu2 %v844_v36  ;;  %1392 = vmatpush.msra.mxu3 %v929_v35  ;;  %v3031_v36 = vld [vmem:[%s2739_s25 + $0x9ec] sm:$0xff]  ;;  %v759_v43 = vunpack.c.l.bf16 %v3012_v60  ;;  %v3036_v35 = vld [vmem:[%s2739_s25 + $0x604] sm:$0xff] }
  0x67   : > { %4494 = vst [vmem:[#allocation30_spill] sm:$0xff] %v3004_v44  ;;  %1353 = vmatpush.msra.mxu1 %v764_v51  ;;  %1334 = vmatpush.msra.mxu0 %v679_v52  ;;  %v3039_v51 = vld [vmem:[%s2739_s25 + $0x758] sm:$0xff]  ;;  %v1154_v44 = vunpack.c.l.bf16 %v3023_v19  ;;  %v3044_v52 = vld [vmem:[%s2739_s25 + $0x884] sm:$0xff] }
  0x68   : > { %4495 = vst [vmem:[#allocation31_spill] sm:$0xff] %v3007_v56  ;;  %1374 = vmatpush.msra.mxu2 %v839_v9  ;;  %1393 = vmatpush.msra.mxu3 %v924_v59  ;;  %v1069_v56 = vunpack.c.l.bf16 %v3020_v63  ;;  %v3047_v9 = vld [vmem:[%s2739_s25 + $0x9d8] sm:$0xff]  ;;  %v3052_v59 = vld [vmem:[%s2739_s25 + $0x5f0] sm:$0xff] }
  0x69   : > { %4496 = vst [vmem:[#allocation32_spill] sm:$0xff] %v3012_v60  ;;  %1399 = vmatpush.msrb.mxu0 %v1074_v28  ;;  %1354 = vmatpush.msra.mxu1 %v759_v43  ;;  %v1314_v60 = vunpack.c.l.bf16 %v3031_v36  ;;  %v3055_v28 = vld [vmem:[%s2739_s25 + $0x744] sm:$0xff] }
  0x6a   : > { %4497 = vst [vmem:[#allocation33_spill] sm:$0xff] %v3015_v0  ;;  %1439 = vmatpush.msrb.mxu2 %v1234_v10  ;;  %v1229_v0 = vunpack.c.l.bf16 %v3028_v20  ;;  %1394 = vmatpush.msra.mxu3 %v919_v27  ;;  %v3060_v10 = vld [vmem:[%s2739_s25 + $0x870] sm:$0xff]  ;;  %v3063_v43 = vld [vmem:[%s2739_s25 + $0x9c4] sm:$0xff]  ;;  %v3068_v27 = vld [vmem:[%s2739_s25 + $0x5dc] sm:$0xff] }
  0x6b   : > { %4498 = vst [vmem:[#allocation34_spill] sm:$0xff] %v3020_v63  ;;  %1400 = vmatpush.msrb.mxu0 %v1069_v56  ;;  %v1149_v63 = vunpack.c.l.bf16 %v3039_v51  ;;  %1419 = vmatpush.msrb.mxu1 %v1154_v44  ;;  %v3071_v56 = vld [vmem:[%s2739_s25 + $0x730] sm:$0xff]  ;;  %v3076_v44 = vld [vmem:[%s2739_s25 + $0x85c] sm:$0xff] }
  0x6c   : > { %4499 = vst [vmem:[#allocation35_spill] sm:$0xff] %v3023_v19  ;;  %v1064_v19 = vunpack.c.l.bf16 %v3036_v35  ;;  %1440 = vmatpush.msrb.mxu2 %v1229_v0  ;;  %1459 = vmatpush.msrb.mxu3 %v1314_v60  ;;  %v3079_v0 = vld [vmem:[%s2739_s25 + $0x9b0] sm:$0xff]  ;;  %v3084_v60 = vld [vmem:[%s2739_s25 + $0x5c8] sm:$0xff] }
  0x6d   : > { %4500 = vst [vmem:[#allocation36_spill] sm:$0xff] %v3028_v20  ;;  %v1309_v20 = vunpack.c.l.bf16 %v3047_v9  ;;  %1420 = vmatpush.msrb.mxu1 %v1149_v63  ;;  %v3092_v63 = vld [vmem:[%s2739_s25 + $0x848] sm:$0xff] }
  0x6e   : > { %4501 = vst [vmem:[#allocation37_spill] sm:$0xff] %v3031_v36  ;;  %v1224_v36 = vunpack.c.l.bf16 %v3044_v52  ;;  %1401 = vmatpush.msrb.mxu0 %v1064_v19  ;;  %v3087_v19 = vld [vmem:[%s2739_s25 + $0x71c] sm:$0xff] }
  0x6f   : > { %4502 = vst [vmem:[#allocation38_spill] sm:$0xff] %v3036_v35  ;;  %v1144_v35 = vunpack.c.l.bf16 %v3055_v28  ;;  %1460 = vmatpush.msrb.mxu3 %v1309_v20  ;;  %v3100_v20 = vld [vmem:[%s2739_s25 + $0x5b4] sm:$0xff] }
  0x70   : > { %4503 = vst [vmem:[#allocation39_spill] sm:$0xff] %v3039_v51  ;;  %v1059_v51 = vunpack.c.l.bf16 %v3052_v59  ;;  %1441 = vmatpush.msrb.mxu2 %v1224_v36  ;;  %v3095_v36 = vld [vmem:[%s2739_s25 + $0x99c] sm:$0xff] }
  0x71   : > { %4504 = vst [vmem:[#allocation40_spill] sm:$0xff] %v3044_v52  ;;  %v1304_v52 = vunpack.c.l.bf16 %v3063_v43  ;;  %1421 = vmatpush.msrb.mxu1 %v1144_v35  ;;  %v3108_v35 = vld [vmem:[%s2739_s25 + $0x834] sm:$0xff] }
  0x72   : > { %4505 = vst [vmem:[#allocation41_spill] sm:$0xff] %v3047_v9  ;;  %v1219_v9 = vunpack.c.l.bf16 %v3060_v10  ;;  %1402 = vmatpush.msrb.mxu0 %v1059_v51  ;;  %v3103_v51 = vld [vmem:[%s2739_s25 + $0x708] sm:$0xff] }
  0x73   : > { %4506 = vst [vmem:[#allocation42_spill] sm:$0xff] %v3052_v59  ;;  %v1139_v59 = vunpack.c.l.bf16 %v3071_v56  ;;  %1461 = vmatpush.msrb.mxu3 %v1304_v52  ;;  %v3116_v52 = vld [vmem:[%s2739_s25 + $0x5a0] sm:$0xff] }
  0x74   : > { %4507 = vst [vmem:[#allocation43_spill] sm:$0xff] %v3055_v28  ;;  %v1054_v28 = vunpack.c.l.bf16 %v3068_v27  ;;  %1442 = vmatpush.msrb.mxu2 %v1219_v9  ;;  %v3111_v9 = vld [vmem:[%s2739_s25 + $0x988] sm:$0xff] }
  0x75   : > { %4508 = vst [vmem:[#allocation44_spill] sm:$0xff] %v3060_v10  ;;  %v1299_v10 = vunpack.c.l.bf16 %v3079_v0  ;;  %1422 = vmatpush.msrb.mxu1 %v1139_v59  ;;  %v3124_v59 = vld [vmem:[%s2739_s25 + $0x820] sm:$0xff] }
  0x76   : > { %4509 = vst [vmem:[#allocation45_spill] sm:$0xff] %v3063_v43  ;;  %v1214_v43 = vunpack.c.l.bf16 %v3076_v44  ;;  %1403 = vmatpush.msrb.mxu0 %v1054_v28  ;;  %v3119_v28 = vld [vmem:[%s2739_s25 + $0x6f4] sm:$0xff] }
  0x77   : > { %4510 = vst [vmem:[#allocation46_spill] sm:$0xff] %v3068_v27  ;;  %v1134_v27 = vunpack.c.l.bf16 %v3087_v19  ;;  %1462 = vmatpush.msrb.mxu3 %v1299_v10  ;;  %v3132_v10 = vld [vmem:[%s2739_s25 + $0x58c] sm:$0xff] }
  0x78   : > { %4511 = vst [vmem:[#allocation47_spill] sm:$0xff] %v3071_v56  ;;  %v1049_v56 = vunpack.c.l.bf16 %v3084_v60  ;;  %1443 = vmatpush.msrb.mxu2 %v1214_v43  ;;  %v3127_v43 = vld [vmem:[%s2739_s25 + $0x974] sm:$0xff] }
  0x79   : > { %4512 = vst [vmem:[#allocation48_spill] sm:$0xff] %v3076_v44  ;;  %v1294_v44 = vunpack.c.l.bf16 %v3095_v36  ;;  %1423 = vmatpush.msrb.mxu1 %v1134_v27  ;;  %v3140_v27 = vld [vmem:[%s2739_s25 + $0x80c] sm:$0xff] }
  0x7a   : > { %4513 = vst [vmem:[#allocation49_spill] sm:$0xff] %v3079_v0  ;;  %v1209_v0 = vunpack.c.l.bf16 %v3092_v63  ;;  %1404 = vmatpush.msrb.mxu0 %v1049_v56  ;;  %v3135_v56 = vld [vmem:[%s2739_s25 + $0x6e0] sm:$0xff] }
  0x7b   : > { %4514 = vst [vmem:[#allocation50_spill] sm:$0xff] %v3084_v60  ;;  %v1129_v60 = vunpack.c.l.bf16 %v3103_v51  ;;  %1463 = vmatpush.msrb.mxu3 %v1294_v44  ;;  %v3148_v44 = vld [vmem:[%s2739_s25 + $0x578] sm:$0xff] }
  0x7c   : > { %4515 = vst [vmem:[#allocation51_spill] sm:$0xff] %v3087_v19  ;;  %v1044_v19 = vunpack.c.l.bf16 %v3100_v20  ;;  %1444 = vmatpush.msrb.mxu2 %v1209_v0  ;;  %v3143_v0 = vld [vmem:[%s2739_s25 + $0x960] sm:$0xff] }
  0x7d   : > { %4516 = vst [vmem:[#allocation52_spill] sm:$0xff] %v3092_v63  ;;  %v1289_v63 = vunpack.c.l.bf16 %v3111_v9  ;;  %1424 = vmatpush.msrb.mxu1 %v1129_v60  ;;  %v3156_v60 = vld [vmem:[%s2739_s25 + $0x7f8] sm:$0xff] }
  0x7e   : > { %4517 = vst [vmem:[#allocation53_spill] sm:$0xff] %v3095_v36  ;;  %v1204_v36 = vunpack.c.l.bf16 %v3108_v35  ;;  %1405 = vmatpush.msrb.mxu0 %v1044_v19  ;;  %v3151_v19 = vld [vmem:[%s2739_s25 + $0x6cc] sm:$0xff] }
  0x7f   : > { %4518 = vst [vmem:[#allocation54_spill] sm:$0xff] %v3100_v20  ;;  %v1124_v20 = vunpack.c.l.bf16 %v3119_v28  ;;  %1464 = vmatpush.msrb.mxu3 %v1289_v63  ;;  %v3164_v63 = vld [vmem:[%s2739_s25 + $0x564] sm:$0xff] }
  0x80   : > { %4519 = vst [vmem:[#allocation55_spill] sm:$0xff] %v3103_v51  ;;  %v1039_v51 = vunpack.c.l.bf16 %v3116_v52  ;;  %1445 = vmatpush.msrb.mxu2 %v1204_v36  ;;  %v3159_v36 = vld [vmem:[%s2739_s25 + $0x94c] sm:$0xff] }
  0x81   : > { %4520 = vst [vmem:[#allocation56_spill] sm:$0xff] %v3108_v35  ;;  %v1284_v35 = vunpack.c.l.bf16 %v3127_v43  ;;  %1425 = vmatpush.msrb.mxu1 %v1124_v20  ;;  %v3172_v20 = vld [vmem:[%s2739_s25 + $0x7e4] sm:$0xff] }
  0x82   : > { %4521 = vst [vmem:[#allocation57_spill] sm:$0xff] %v3111_v9  ;;  %v1199_v9 = vunpack.c.l.bf16 %v3124_v59  ;;  %1406 = vmatpush.msrb.mxu0 %v1039_v51  ;;  %v3167_v51 = vld [vmem:[%s2739_s25 + $0x6b8] sm:$0xff] }
  0x83   : > { %4522 = vst [vmem:[#allocation58_spill] sm:$0xff] %v3116_v52  ;;  %v1119_v52 = vunpack.c.l.bf16 %v3135_v56  ;;  %1465 = vmatpush.msrb.mxu3 %v1284_v35  ;;  %v3180_v35 = vld [vmem:[%s2739_s25 + $0x550] sm:$0xff] }
  0x84   : > { %4523 = vst [vmem:[#allocation59_spill] sm:$0xff] %v3119_v28  ;;  %v1034_v28 = vunpack.c.l.bf16 %v3132_v10  ;;  %1446 = vmatpush.msrb.mxu2 %v1199_v9  ;;  %v3175_v9 = vld [vmem:[%s2739_s25 + $0x938] sm:$0xff] }
  0x85   : > { %4524 = vst [vmem:[#allocation60_spill] sm:$0xff] %v3124_v59  ;;  %v1279_v59 = vunpack.c.l.bf16 %v3143_v0  ;;  %1426 = vmatpush.msrb.mxu1 %v1119_v52  ;;  %v3188_v52 = vld [vmem:[%s2739_s25 + $0x7d0] sm:$0xff] }
  0x86   : > { %4525 = vst [vmem:[#allocation61_spill] sm:$0xff] %v3127_v43  ;;  %v1194_v43 = vunpack.c.l.bf16 %v3140_v27  ;;  %1407 = vmatpush.msrb.mxu0 %v1034_v28  ;;  %v3183_v28 = vld [vmem:[%s2739_s25 + $0x6a4] sm:$0xff] }
  0x87   : > { %4526 = vst [vmem:[#allocation62_spill] sm:$0xff] %v3132_v10  ;;  %v1114_v10 = vunpack.c.l.bf16 %v3151_v19  ;;  %1466 = vmatpush.msrb.mxu3 %v1279_v59  ;;  %v3196_v59 = vld [vmem:[%s2739_s25 + $0x53c] sm:$0xff] }
  0x88   : > { %4527 = vst [vmem:[#allocation63_spill] sm:$0xff] %v3135_v56  ;;  %v1029_v56 = vunpack.c.l.bf16 %v3148_v44  ;;  %1447 = vmatpush.msrb.mxu2 %v1194_v43  ;;  %v3191_v43 = vld [vmem:[%s2739_s25 + $0x924] sm:$0xff] }
  0x89   : > { %4528 = vst [vmem:[#allocation64_spill] sm:$0xff] %v3140_v27  ;;  %v1274_v27 = vunpack.c.l.bf16 %v3159_v36  ;;  %1427 = vmatpush.msrb.mxu1 %v1114_v10  ;;  %v3204_v10 = vld [vmem:[%s2739_s25 + $0x7bc] sm:$0xff] }
  0x8a   : > { %4529 = vst [vmem:[#allocation65_spill] sm:$0xff] %v3143_v0  ;;  %v1189_v0 = vunpack.c.l.bf16 %v3156_v60  ;;  %1408 = vmatpush.msrb.mxu0 %v1029_v56  ;;  %v3199_v56 = vld [vmem:[%s2739_s25 + $0x690] sm:$0xff] }
  0x8b   : > { %4530 = vst [vmem:[#allocation66_spill] sm:$0xff] %v3148_v44  ;;  %v1109_v44 = vunpack.c.l.bf16 %v3167_v51  ;;  %1467 = vmatpush.msrb.mxu3 %v1274_v27  ;;  %v3212_v27 = vld [vmem:[%s2739_s25 + $0x528] sm:$0xff] }
  0x8c   : > { %4531 = vst [vmem:[#allocation67_spill] sm:$0xff] %v3151_v19  ;;  %v1024_v19 = vunpack.c.l.bf16 %v3164_v63  ;;  %1448 = vmatpush.msrb.mxu2 %v1189_v0  ;;  %v3207_v0 = vld [vmem:[%s2739_s25 + $0x910] sm:$0xff] }
  0x8d   : > { %4532 = vst [vmem:[#allocation68_spill] sm:$0xff] %v3156_v60  ;;  %v1269_v60 = vunpack.c.l.bf16 %v3175_v9  ;;  %1428 = vmatpush.msrb.mxu1 %v1109_v44  ;;  %v3220_v44 = vld [vmem:[%s2739_s25 + $0x7a8] sm:$0xff] }
  0x8e   : > { %4533 = vst [vmem:[#allocation69_spill] sm:$0xff] %v3159_v36  ;;  %v1184_v36 = vunpack.c.l.bf16 %v3172_v20  ;;  %1409 = vmatpush.msrb.mxu0 %v1024_v19  ;;  %v3215_v19 = vld [vmem:[%s2739_s25 + $0x67c] sm:$0xff] }
  0x8f   : > { %4534 = vst [vmem:[#allocation70_spill] sm:$0xff] %v3164_v63  ;;  %v1104_v63 = vunpack.c.l.bf16 %v3183_v28  ;;  %1468 = vmatpush.msrb.mxu3 %v1269_v60  ;;  %v3228_v60 = vld [vmem:[%s2739_s25 + $0x514] sm:$0xff] }
  0x90   : > { %4535 = vst [vmem:[#allocation71_spill] sm:$0xff] %v3167_v51  ;;  %v1019_v51 = vunpack.c.l.bf16 %v3180_v35  ;;  %1449 = vmatpush.msrb.mxu2 %v1184_v36  ;;  %v3223_v36 = vld [vmem:[%s2739_s25 + $0x8fc] sm:$0xff] }
  0x91   : > { %4536 = vst [vmem:[#allocation72_spill] sm:$0xff] %v3172_v20  ;;  %v1264_v20 = vunpack.c.l.bf16 %v3191_v43  ;;  %1429 = vmatpush.msrb.mxu1 %v1104_v63  ;;  %v3236_v63 = vld [vmem:[%s2739_s25 + $0x794] sm:$0xff] }
  0x92   : > { %4537 = vst [vmem:[#allocation73_spill] sm:$0xff] %v3175_v9  ;;  %v1179_v9 = vunpack.c.l.bf16 %v3188_v52  ;;  %1410 = vmatpush.msrb.mxu0 %v1019_v51  ;;  %v3231_v51 = vld [vmem:[%s2739_s25 + $0x668] sm:$0xff] }
  0x93   : > { %4538 = vst [vmem:[#allocation74_spill] sm:$0xff] %v3180_v35  ;;  %v1099_v35 = vunpack.c.l.bf16 %v3199_v56  ;;  %1469 = vmatpush.msrb.mxu3 %v1264_v20  ;;  %v3247_v20 = vld [vmem:[%s2739_s25 + $0x654] sm:$0xff] }
  0x94   : > { %4539 = vst [vmem:[#allocation75_spill] sm:$0xff] %v3183_v28  ;;  %v1014_v28 = vunpack.c.l.bf16 %v3196_v59  ;;  %1450 = vmatpush.msrb.mxu2 %v1179_v9  ;;  %v3239_v9 = vld [vmem:[%s2739_s25 + $0x8e8] sm:$0xff] }
  0x95   : > { %4540 = vst [vmem:[#allocation76_spill] sm:$0xff] %v3188_v52  ;;  %v1259_v52 = vunpack.c.l.bf16 %v3207_v0  ;;  %1430 = vmatpush.msrb.mxu1 %v1099_v35  ;;  %v3255_v35 = vld [vmem:[%s2739_s25 + $0x8d4] sm:$0xff] }
  0x96   : > { %4541 = vst [vmem:[#allocation77_spill] sm:$0xff] %v3191_v43  ;;  %v1174_v43 = vunpack.c.l.bf16 %v3204_v10  ;;  %1411 = vmatpush.msrb.mxu0 %v1014_v28  ;;  %v1004_v28 = vunpack.c.l.bf16 %v3228_v60 }
  0x97   : > { %4542 = vst [vmem:[#allocation78_spill] sm:$0xff] %v3196_v59  ;;  %v1094_v59 = vunpack.c.l.bf16 %v3215_v19  ;;  %1470 = vmatpush.msrb.mxu3 %v1259_v52  ;;  %v999_v52 = vunpack.c.l.bf16 %v3244_v55 }
  0x98   : > { %4543 = vst [vmem:[#allocation79_spill] sm:$0xff] %v3199_v56  ;;  %v1009_v56 = vunpack.c.l.bf16 %v3212_v27  ;;  %1451 = vmatpush.msrb.mxu2 %v1174_v43  ;;  %v1164_v43 = vunpack.c.l.bf16 %v3236_v63 }
  0x99   : > { %4544 = vst [vmem:[#allocation80_spill] sm:$0xff] %v3204_v10  ;;  %v1254_v10 = vunpack.c.l.bf16 %v3223_v36  ;;  %1431 = vmatpush.msrb.mxu1 %v1094_v59 }
  0x9a   : > { %4545 = vst [vmem:[#allocation81_spill] sm:$0xff] %v3207_v0  ;;  %v1169_v0 = vunpack.c.l.bf16 %v3220_v44  ;;  %1412 = vmatpush.msrb.mxu0 %v1009_v56  ;;  %v1084_v56 = vunpack.c.l.bf16 %v3247_v20 }
  0x9b   : > { %4546 = vst [vmem:[#allocation82_spill] sm:$0xff] %v3212_v27  ;;  %v3252_v27 = vld [vmem:[%s2739_s25 + $0x780] sm:$0xff]  ;;  %1471 = vmatpush.msrb.mxu3 %v1254_v10 }
  0x9c   : > { %4547 = vst [vmem:[#allocation83_spill] sm:$0xff] %v3215_v19  ;;  %v1089_v19 = vunpack.c.l.bf16 %v3231_v51  ;;  %1452 = vmatpush.msrb.mxu2 %v1169_v0  ;;  %1413 = vmatpush.msrb.mxu0 %v1004_v28  ;;  %v1159_v59 = vunpack.c.l.bf16 %v3252_v27  ;;  %v1244_v0 = vunpack.c.l.bf16 %v3255_v35  ;;  %v3276_v10 = vld [vmem:[%s2732_s26] sm:$0xff]  ;;  %v3279_v28 = vld [vmem:[%s2732_s26 + $0x18] sm:$0xff] }
  0x9d   : > { %4548 = vst [vmem:[#allocation84_spill] sm:$0xff] %v3220_v44  ;;  %v3260_v44 = vld [vmem:[%s2732_s26 + $0x10] sm:$0xff]  ;;  %1335 = vmatmul.f32.vlgmr.msra.gmra.mxu0 %v3276_v10  ;;  %1395 = vmatmul.f32.vlgmr.msra.gmra.mxu3 %v3279_v28 }
  0x9e   : > { %4549 = vst [vmem:[#allocation85_spill] sm:$0xff] %v3223_v36  ;;  %v1249_v36 = vunpack.c.l.bf16 %v3239_v9  ;;  %1432 = vmatpush.msrb.mxu1 %v1089_v19  ;;  %1453 = vmatpush.msrb.mxu2 %v1164_v43 }
  0x9f   : > { %4550 = vst [vmem:[#allocation86_spill] sm:$0xff] %v3228_v60  ;;  %v3268_v60 = vld [vmem:[%s2739_s25 + $0x8c0] sm:$0xff]  ;;  %1375 = vmatmul.f32.vlgmr.msra.gmra.mxu2 %v3260_v44  ;;  %1414 = vmatpush.msrb.mxu0 %v999_v52  ;;  %v995_v52 = vunpack.c.h.bf16 %v2777_v8  ;;  %v825_v8 = vunpack.c.h.bf16 %v2799_v18  ;;  %v3311_v18 = vld [vmem:[%s2732_s26 + $0x38] sm:$0xff] }
  0xa0   : > { %4551 = vst [vmem:[#allocation87_spill] sm:$0xff] %v3231_v51  ;;  %v3265_v51 = vld [vmem:[%s2739_s25 + $0x640] sm:$0xff]  ;;  %1472 = vmatpush.msrb.mxu3 %v1249_v36  ;;  %1433 = vmatpush.msrb.mxu1 %v1084_v56  ;;  %v1239_v43 = vunpack.c.l.bf16 %v3268_v60  ;;  %v3289_v36 = vld [vmem:[%s2732_s26 + $0x8] sm:$0xff]  ;;  %v745_v56 = vunpack.c.h.bf16 %v2782_v11  ;;  %v3300_v11 = vld [vmem:[%s2732_s26 + $0x30] sm:$0xff] }
  0xa1   : > { %4552 = vst [vmem:[#allocation88_spill] sm:$0xff] %v3236_v63  ;;  %v915_v63 = vunpack.c.h.bf16 %v2763_v2  ;;  %v1079_v19 = vunpack.c.l.bf16 %v3265_v51  ;;  %1454 = vmatpush.msrb.mxu2 %v1159_v59  ;;  %v910_v2 = vunpack.c.h.bf16 %v2774_v7  ;;  %v905_v59 = vunpack.c.h.bf16 %v2788_v13  ;;  %1355 = vmatmul.f32.vlgmr.msra.gmra.mxu1 %v3289_v36 }
  0xa2   : > { %4553 = vst [vmem:[#allocation89_spill] sm:$0xff] %v3239_v9  ;;  %v755_v9 = vunpack.c.h.bf16 %v2760_v1  ;;  %1473 = vmatpush.msrb.mxu3 %v1244_v0  ;;  %v835_v1 = vunpack.c.h.bf16 %v2771_v6  ;;  %v990_v6 = vunpack.c.h.bf16 %v2793_v16  ;;  %v740_v7 = vunpack.c.h.bf16 %v2796_v17  ;;  %v3308_v17 = vld [vmem:[%s2732_s26 + $0x20] sm:$0xff] }
  0xa3   : > { %4554 = vst [vmem:[#allocation90_spill] sm:$0xff] %v3255_v35  ;;  %v750_v35 = vunpack.c.h.bf16 %v2766_v3  ;;  %1519 = vmatpush.msra.mxu2 %v915_v63  ;;  %v830_v3 = vunpack.c.h.bf16 %v2785_v12  ;;  %1434 = vmatpush.msrb.mxu1 %v1079_v19  ;;  %v900_v12 = vunpack.c.h.bf16 %v2804_v21  ;;  %v985_v13 = vunpack.c.h.bf16 %v2807_v22 }
  0xa4   : > { %1479 = vmatpush.msra.mxu0 %v755_v9  ;;  %1474 = vmatpush.msrb.mxu3 %v1239_v43  ;;  %v735_v16 = vunpack.c.h.bf16 %v2812_v25  ;;  %v820_v63 = vunpack.c.h.bf16 %v2815_v26  ;;  %v895_v21 = vunpack.c.h.bf16 %v2820_v29  ;;  %v980_v22 = vunpack.c.h.bf16 %v2823_v30  ;;  %v4555_v43 = vld [vmem:[#allocation14_spill] sm:$0xff] }
  0xa5   : > { %1499 = vmatpush.msra.mxu1 %v835_v1  ;;  %1520 = vmatpush.msra.mxu2 %v910_v2  ;;  %v730_v9 = vunpack.c.h.bf16 %v2828_v33  ;;  %v815_v25 = vunpack.c.h.bf16 %v2831_v34  ;;  %v890_v26 = vunpack.c.h.bf16 %v2836_v37  ;;  %v975_v29 = vunpack.c.h.bf16 %v2839_v38  ;;  %v4557_v2 = vld [vmem:[#allocation16_spill] sm:$0xff] }
  0xa6   : > { %1480 = vmatpush.msra.mxu0 %v750_v35  ;;  %1539 = vmatpush.msra.mxu3 %v995_v52  ;;  %v3321_v35 = vld [vmem:[%s2732_s26 + $0x28] sm:$0xff]  ;;  %v725_v30 = vunpack.c.h.bf16 %v2844_v41  ;;  %v810_v33 = vunpack.c.h.bf16 %v2847_v42  ;;  %v885_v0 = vunpack.c.h.bf16 %v2852_v45  ;;  %v970_v34 = vunpack.c.h.bf16 %v2855_v46 }
  0xa7   : > { %1500 = vmatpush.msra.mxu1 %v830_v3  ;;  %1521 = vmatpush.msra.mxu2 %v905_v59  ;;  %v720_v37 = vunpack.c.h.bf16 %v2860_v49  ;;  %v805_v19 = vunpack.c.h.bf16 %v2863_v50  ;;  %v880_v38 = vunpack.c.h.bf16 %v2868_v53  ;;  %v965_v41 = vunpack.c.h.bf16 %v2871_v54  ;;  %v4561_v59 = vld [vmem:[#allocation20_spill] sm:$0xff] }
  0xa8   : > { %1481 = vmatpush.msra.mxu0 %v745_v56  ;;  %1540 = vmatpush.msra.mxu3 %v990_v6  ;;  %v715_v42 = vunpack.c.h.bf16 %v2876_v57  ;;  %v800_v45 = vunpack.c.h.bf16 %v2879_v58  ;;  %v875_v46 = vunpack.c.h.bf16 %v2884_v61  ;;  %v960_v49 = vunpack.c.h.bf16 %v2887_v62  ;;  %v4559_v56 = vld [vmem:[#allocation18_spill] sm:$0xff]  ;;  %v4562_v6 = vld [vmem:[#allocation21_spill] sm:$0xff] }
  0xa9   : > { %1455 = vmatmul.f32.vlgmr.msrb.gmra.mxu2 %v3300_v11  ;;  %1501 = vmatpush.msra.mxu1 %v825_v8  ;;  %v710_v50 = vunpack.c.h.bf16 %v2892_v4  ;;  %v795_v53 = vunpack.c.h.bf16 %v2895_v5  ;;  %v870_v54 = vunpack.c.h.bf16 %v2900_v14  ;;  %v955_v57 = vunpack.c.h.bf16 %v2903_v15  ;;  %v4563_v8 = vld [vmem:[#allocation22_spill] sm:$0xff] }
  0xaa   : > { %1482 = vmatpush.msra.mxu0 %v740_v7  ;;  %1522 = vmatpush.msra.mxu2 %v900_v12  ;;  %v705_v58 = vunpack.c.h.bf16 %v2908_v23  ;;  %v790_v61 = vunpack.c.h.bf16 %v2911_v24  ;;  %v865_v62 = vunpack.c.h.bf16 %v2916_v31  ;;  %v950_v4 = vunpack.c.h.bf16 %v2919_v32  ;;  %v4556_v31 = vld [vmem:[#allocation15_spill] sm:$0xff] }
  0xab   : > { %1541 = vmatpush.msra.mxu3 %v985_v13  ;;  %1415 = vmatmul.f32.vlgmr.msrb.gmra.mxu0 %v3308_v17  ;;  %v700_v5 = vunpack.c.h.bf16 %v2924_v39  ;;  %v785_v14 = vunpack.c.h.bf16 %v2927_v40  ;;  %v860_v15 = vunpack.c.h.bf16 %v2932_v47  ;;  %v945_v23 = vunpack.c.h.bf16 %v2935_v48  ;;  %v4558_v39 = vld [vmem:[#allocation17_spill] sm:$0xff]  ;;  %v4560_v47 = vld [vmem:[#allocation19_spill] sm:$0xff] }
  0xac   : > { %1475 = vmatmul.f32.vlgmr.msrb.gmra.mxu3 %v3311_v18  ;;  %1483 = vmatpush.msra.mxu0 %v735_v16  ;;  %v695_v24 = vunpack.c.h.bf16 %v4555_v43  ;;  %v780_v1 = vunpack.c.h.bf16 %v4556_v31  ;;  %v855_v32 = vunpack.c.h.bf16 %v4557_v2  ;;  %v940_v52 = vunpack.c.h.bf16 %v4558_v39  ;;  %v4564_v13 = vld [vmem:[#allocation23_spill] sm:$0xff] }
  0xad   : > { %1502 = vmatpush.msra.mxu1 %v820_v63  ;;  %1523 = vmatpush.msra.mxu2 %v895_v21  ;;  %v690_v40 = vunpack.c.h.bf16 %v4559_v56  ;;  %v775_v3 = vunpack.c.h.bf16 %v4560_v47  ;;  %v850_v48 = vunpack.c.h.bf16 %v4561_v59  ;;  %v935_v7 = vunpack.c.h.bf16 %v4562_v6  ;;  %v4565_v63 = vld [vmem:[#allocation24_spill] sm:$0xff] }
  0xae   : > { %1542 = vmatpush.msra.mxu3 %v980_v22  ;;  %1435 = vmatmul.f32.vlgmr.msrb.gmra.mxu1 %v3321_v35  ;;  %v685_v12 = vunpack.c.h.bf16 %v4563_v8  ;;  %v770_v16 = vunpack.c.h.bf16 %v4564_v13  ;;  %v845_v21 = vunpack.c.h.bf16 %v4565_v63  ;;  %v4566_v22 = vld [vmem:[#allocation25_spill] sm:$0xff] }
  0xaf   : > { %1484 = vmatpush.msra.mxu0 %v730_v9  ;;  %1503 = vmatpush.msra.mxu1 %v815_v25  ;;  %v930_v9 = vunpack.c.h.bf16 %v4566_v22  ;;  %v4567_v25 = vld [vmem:[#allocation26_spill] sm:$0xff] }
  0xb0   : > { %1524 = vmatpush.msra.mxu2 %v890_v26  ;;  %1543 = vmatpush.msra.mxu3 %v975_v29  ;;  %v680_v26 = vunpack.c.h.bf16 %v4567_v25  ;;  %v4568_v29 = vld [vmem:[#allocation27_spill] sm:$0xff] }
  0xb1   : > { %1485 = vmatpush.msra.mxu0 %v725_v30  ;;  %1504 = vmatpush.msra.mxu1 %v810_v33  ;;  %v765_v30 = vunpack.c.h.bf16 %v4568_v29  ;;  %v4569_v33 = vld [vmem:[#allocation28_spill] sm:$0xff] }
  0xb2   : > { %1525 = vmatpush.msra.mxu2 %v885_v0  ;;  %1544 = vmatpush.msra.mxu3 %v970_v34  ;;  %v840_v0 = vunpack.c.h.bf16 %v4569_v33  ;;  %v4570_v34 = vld [vmem:[#allocation29_spill] sm:$0xff] }
  0xb3   : > { %1486 = vmatpush.msra.mxu0 %v720_v37  ;;  %1505 = vmatpush.msra.mxu1 %v805_v19  ;;  %v925_v37 = vunpack.c.h.bf16 %v4570_v34  ;;  %v4571_v19 = vld [vmem:[#allocation30_spill] sm:$0xff] }
  0xb4   : > { %1526 = vmatpush.msra.mxu2 %v880_v38  ;;  %1545 = vmatpush.msra.mxu3 %v965_v41  ;;  %v1075_v38 = vunpack.c.h.bf16 %v4571_v19  ;;  %v4572_v41 = vld [vmem:[#allocation31_spill] sm:$0xff] }
  0xb5   : > { %1487 = vmatpush.msra.mxu0 %v715_v42  ;;  %1506 = vmatpush.msra.mxu1 %v800_v45  ;;  %v1235_v42 = vunpack.c.h.bf16 %v4572_v41  ;;  %v4573_v45 = vld [vmem:[#allocation32_spill] sm:$0xff] }
  0xb6   : > { %1527 = vmatpush.msra.mxu2 %v875_v46  ;;  %1546 = vmatpush.msra.mxu3 %v960_v49  ;;  %v760_v46 = vunpack.c.h.bf16 %v4573_v45  ;;  %v4574_v49 = vld [vmem:[#allocation33_spill] sm:$0xff] }
  0xb7   : > { %1488 = vmatpush.msra.mxu0 %v710_v50  ;;  %1507 = vmatpush.msra.mxu1 %v795_v53  ;;  %v920_v50 = vunpack.c.h.bf16 %v4574_v49  ;;  %v4575_v53 = vld [vmem:[#allocation34_spill] sm:$0xff] }
  0xb8   : > { %1528 = vmatpush.msra.mxu2 %v870_v54  ;;  %1547 = vmatpush.msra.mxu3 %v955_v57  ;;  %v1070_v54 = vunpack.c.h.bf16 %v4575_v53  ;;  %v4576_v57 = vld [vmem:[#allocation35_spill] sm:$0xff] }
  0xb9   : > { %1489 = vmatpush.msra.mxu0 %v705_v58  ;;  %1508 = vmatpush.msra.mxu1 %v790_v61  ;;  %v1155_v58 = vunpack.c.h.bf16 %v4576_v57  ;;  %v4577_v61 = vld [vmem:[#allocation36_spill] sm:$0xff] }
  0xba   : > { %1529 = vmatpush.msra.mxu2 %v865_v62  ;;  %1548 = vmatpush.msra.mxu3 %v950_v4  ;;  %v1230_v62 = vunpack.c.h.bf16 %v4577_v61  ;;  %v4578_v4 = vld [vmem:[#allocation37_spill] sm:$0xff] }
  0xbb   : > { %1490 = vmatpush.msra.mxu0 %v700_v5  ;;  %1509 = vmatpush.msra.mxu1 %v785_v14  ;;  %v1315_v5 = vunpack.c.h.bf16 %v4578_v4  ;;  %v4579_v14 = vld [vmem:[#allocation38_spill] sm:$0xff] }
  0xbc   : > { %1530 = vmatpush.msra.mxu2 %v860_v15  ;;  %1549 = vmatpush.msra.mxu3 %v945_v23  ;;  %v1065_v15 = vunpack.c.h.bf16 %v4579_v14  ;;  %v4580_v23 = vld [vmem:[#allocation39_spill] sm:$0xff] }
  0xbd   : > { %1491 = vmatpush.msra.mxu0 %v695_v24  ;;  %1510 = vmatpush.msra.mxu1 %v780_v1  ;;  %v1150_v43 = vunpack.c.h.bf16 %v4580_v23  ;;  %v4581_v24 = vld [vmem:[#allocation40_spill] sm:$0xff]  ;;  %v4582_v1 = vld [vmem:[#allocation41_spill] sm:$0xff] }
  0xbe   : > { %1531 = vmatpush.msra.mxu2 %v855_v32  ;;  %1550 = vmatpush.msra.mxu3 %v940_v52  ;;  %v1225_v31 = vunpack.c.h.bf16 %v4581_v24  ;;  %v1310_v2 = vunpack.c.h.bf16 %v4582_v1  ;;  %v4583_v32 = vld [vmem:[#allocation42_spill] sm:$0xff]  ;;  %v4584_v52 = vld [vmem:[#allocation43_spill] sm:$0xff] }
  0xbf   : > { %1492 = vmatpush.msra.mxu0 %v690_v40  ;;  %1511 = vmatpush.msra.mxu1 %v775_v3  ;;  %v1060_v39 = vunpack.c.h.bf16 %v4583_v32  ;;  %v1145_v56 = vunpack.c.h.bf16 %v4584_v52  ;;  %v4585_v40 = vld [vmem:[#allocation44_spill] sm:$0xff]  ;;  %v4586_v3 = vld [vmem:[#allocation45_spill] sm:$0xff] }
  0xc0   : > { %1532 = vmatpush.msra.mxu2 %v850_v48  ;;  %1551 = vmatpush.msra.mxu3 %v935_v7  ;;  %v1220_v47 = vunpack.c.h.bf16 %v4585_v40  ;;  %v1305_v59 = vunpack.c.h.bf16 %v4586_v3  ;;  %v4587_v48 = vld [vmem:[#allocation46_spill] sm:$0xff]  ;;  %v4588_v7 = vld [vmem:[#allocation47_spill] sm:$0xff] }
  0xc1   : > { %1493 = vmatpush.msra.mxu0 %v685_v12  ;;  %1512 = vmatpush.msra.mxu1 %v770_v16  ;;  %v1055_v6 = vunpack.c.h.bf16 %v4587_v48  ;;  %v1140_v8 = vunpack.c.h.bf16 %v4588_v7  ;;  %v4589_v12 = vld [vmem:[#allocation48_spill] sm:$0xff]  ;;  %v4590_v16 = vld [vmem:[#allocation49_spill] sm:$0xff] }
  0xc2   : > { %1533 = vmatpush.msra.mxu2 %v845_v21  ;;  %1552 = vmatpush.msra.mxu3 %v930_v9  ;;  %v1215_v13 = vunpack.c.h.bf16 %v4589_v12  ;;  %v1300_v63 = vunpack.c.h.bf16 %v4590_v16  ;;  %v4591_v21 = vld [vmem:[#allocation50_spill] sm:$0xff]  ;;  %v4592_v9 = vld [vmem:[#allocation51_spill] sm:$0xff] }
  0xc3   : > { %1494 = vmatpush.msra.mxu0 %v680_v26  ;;  %1513 = vmatpush.msra.mxu1 %v765_v30  ;;  %v1050_v22 = vunpack.c.h.bf16 %v4591_v21  ;;  %v1135_v25 = vunpack.c.h.bf16 %v4592_v9  ;;  %v4593_v26 = vld [vmem:[#allocation52_spill] sm:$0xff]  ;;  %v4594_v30 = vld [vmem:[#allocation53_spill] sm:$0xff] }
  0xc4   : > { %1534 = vmatpush.msra.mxu2 %v840_v0  ;;  %1553 = vmatpush.msra.mxu3 %v925_v37  ;;  %v1210_v29 = vunpack.c.h.bf16 %v4593_v26  ;;  %v1295_v33 = vunpack.c.h.bf16 %v4594_v30  ;;  %v4595_v0 = vld [vmem:[#allocation54_spill] sm:$0xff]  ;;  %v4596_v37 = vld [vmem:[#allocation55_spill] sm:$0xff] }
  0xc5   : > { %1559 = vmatpush.msrb.mxu0 %v1075_v38  ;;  %1514 = vmatpush.msra.mxu1 %v760_v46  ;;  %v1045_v34 = vunpack.c.h.bf16 %v4595_v0  ;;  %v1130_v19 = vunpack.c.h.bf16 %v4596_v37  ;;  %v4597_v38 = vld [vmem:[#allocation56_spill] sm:$0xff]  ;;  %v4599_v46 = vld [vmem:[#allocation58_spill] sm:$0xff] }
  0xc6   : > { %1599 = vmatpush.msrb.mxu2 %v1235_v42  ;;  %1554 = vmatpush.msra.mxu3 %v920_v50  ;;  %v1205_v41 = vunpack.c.h.bf16 %v4597_v38  ;;  %v4598_v42 = vld [vmem:[#allocation57_spill] sm:$0xff]  ;;  %v1040_v49 = vunpack.c.h.bf16 %v4599_v46  ;;  %v4600_v50 = vld [vmem:[#allocation59_spill] sm:$0xff] }
  0xc7   : > { %1560 = vmatpush.msrb.mxu0 %v1070_v54  ;;  %1579 = vmatpush.msrb.mxu1 %v1155_v58  ;;  %v1290_v45 = vunpack.c.h.bf16 %v4598_v42  ;;  %v1125_v53 = vunpack.c.h.bf16 %v4600_v50  ;;  %v4601_v54 = vld [vmem:[#allocation60_spill] sm:$0xff]  ;;  %v4602_v58 = vld [vmem:[#allocation61_spill] sm:$0xff] }
  0xc8   : > { %1600 = vmatpush.msrb.mxu2 %v1230_v62  ;;  %1619 = vmatpush.msrb.mxu3 %v1315_v5  ;;  %v1200_v57 = vunpack.c.h.bf16 %v4601_v54  ;;  %v1285_v61 = vunpack.c.h.bf16 %v4602_v58  ;;  %v4603_v62 = vld [vmem:[#allocation62_spill] sm:$0xff]  ;;  %v4604_v5 = vld [vmem:[#allocation63_spill] sm:$0xff] }
  0xc9   : > { %1561 = vmatpush.msrb.mxu0 %v1065_v15  ;;  %1580 = vmatpush.msrb.mxu1 %v1150_v43  ;;  %v1035_v4 = vunpack.c.h.bf16 %v4603_v62  ;;  %v1120_v14 = vunpack.c.h.bf16 %v4604_v5  ;;  %v4605_v15 = vld [vmem:[#allocation64_spill] sm:$0xff]  ;;  %v4606_v43 = vld [vmem:[#allocation65_spill] sm:$0xff] }
  0xca   : > { %1601 = vmatpush.msrb.mxu2 %v1225_v31  ;;  %1620 = vmatpush.msrb.mxu3 %v1310_v2  ;;  %v1195_v23 = vunpack.c.h.bf16 %v4605_v15  ;;  %v1280_v24 = vunpack.c.h.bf16 %v4606_v43  ;;  %v4607_v31 = vld [vmem:[#allocation66_spill] sm:$0xff]  ;;  %v4608_v2 = vld [vmem:[#allocation67_spill] sm:$0xff]  ;;  %v1085_v43 = vunpack.c.h.bf16 %v3247_v20 }
  0xcb   : > { %1562 = vmatpush.msrb.mxu0 %v1060_v39  ;;  %1581 = vmatpush.msrb.mxu1 %v1145_v56  ;;  %v1030_v1 = vunpack.c.h.bf16 %v4607_v31  ;;  %v1115_v32 = vunpack.c.h.bf16 %v4608_v2  ;;  %v4609_v39 = vld [vmem:[#allocation68_spill] sm:$0xff]  ;;  %v4610_v56 = vld [vmem:[#allocation69_spill] sm:$0xff]  ;;  %v4631_v2 = vld [vmem:[#allocation90_spill] sm:$0xff] }
  0xcc   : > { %1602 = vmatpush.msrb.mxu2 %v1220_v47  ;;  %1621 = vmatpush.msrb.mxu3 %v1305_v59  ;;  %v1190_v52 = vunpack.c.h.bf16 %v4609_v39  ;;  %v1275_v40 = vunpack.c.h.bf16 %v4610_v56  ;;  %v4611_v47 = vld [vmem:[#allocation70_spill] sm:$0xff]  ;;  %v4612_v59 = vld [vmem:[#allocation71_spill] sm:$0xff]  ;;  %v3431_v31 = vld [vmem:[%s2739_s25 + $0x3b4] sm:$0xff]  ;;  %v1080_v56 = vunpack.c.h.bf16 %v3265_v51 }
  0xcd   : > { %1563 = vmatpush.msrb.mxu0 %v1055_v6  ;;  %1582 = vmatpush.msrb.mxu1 %v1140_v8  ;;  %v1025_v3 = vunpack.c.h.bf16 %v4611_v47  ;;  %v1110_v48 = vunpack.c.h.bf16 %v4612_v59  ;;  %v4613_v6 = vld [vmem:[#allocation72_spill] sm:$0xff]  ;;  %v4614_v8 = vld [vmem:[#allocation73_spill] sm:$0xff]  ;;  %v916_v39 = vunpack.c.l.bf16 %v3431_v31  ;;  %v3457_v59 = vld [vmem:[%s2739_s25 + $0x260] sm:$0xff] }
  0xce   : > { %1603 = vmatpush.msrb.mxu2 %v1215_v13  ;;  %1622 = vmatpush.msrb.mxu3 %v1300_v63  ;;  %v1185_v7 = vunpack.c.h.bf16 %v4613_v6  ;;  %v1270_v12 = vunpack.c.h.bf16 %v4614_v8  ;;  %v4615_v13 = vld [vmem:[#allocation74_spill] sm:$0xff]  ;;  %v4616_v63 = vld [vmem:[#allocation75_spill] sm:$0xff]  ;;  %v3450_v47 = vld [vmem:[%s2739_s25 + $0x4f4] sm:$0xff] }
  0xcf   : > { %1564 = vmatpush.msrb.mxu0 %v1050_v22  ;;  %1583 = vmatpush.msrb.mxu1 %v1135_v25  ;;  %v1020_v16 = vunpack.c.h.bf16 %v4615_v13  ;;  %v1105_v21 = vunpack.c.h.bf16 %v4616_v63  ;;  %v4617_v22 = vld [vmem:[#allocation76_spill] sm:$0xff]  ;;  %v4618_v25 = vld [vmem:[#allocation77_spill] sm:$0xff]  ;;  %v3467_v6 = vld [vmem:[%s2739_s25 + $0x4e0] sm:$0xff] }
  0xd0   : > { %1604 = vmatpush.msrb.mxu2 %v1210_v29  ;;  %1623 = vmatpush.msrb.mxu3 %v1295_v33  ;;  %v1180_v9 = vunpack.c.h.bf16 %v4617_v22  ;;  %v1265_v26 = vunpack.c.h.bf16 %v4618_v25  ;;  %v4619_v29 = vld [vmem:[#allocation78_spill] sm:$0xff]  ;;  %v4620_v33 = vld [vmem:[#allocation79_spill] sm:$0xff] }
  0xd1   : > { %1565 = vmatpush.msrb.mxu0 %v1045_v34  ;;  %1584 = vmatpush.msrb.mxu1 %v1130_v19  ;;  %v1015_v30 = vunpack.c.h.bf16 %v4619_v29  ;;  %v1100_v0 = vunpack.c.h.bf16 %v4620_v33  ;;  %v4621_v34 = vld [vmem:[#allocation80_spill] sm:$0xff]  ;;  %v4622_v19 = vld [vmem:[#allocation81_spill] sm:$0xff]  ;;  %v3490_v25 = vld [vmem:[%s2739_s25 + $0xe4] sm:$0xff] }
  0xd2   : > { %1605 = vmatpush.msrb.mxu2 %v1205_v41  ;;  %1624 = vmatpush.msrb.mxu3 %v1290_v45  ;;  %v1175_v37 = vunpack.c.h.bf16 %v4621_v34  ;;  %v1260_v38 = vunpack.c.h.bf16 %v4622_v19  ;;  %v4623_v41 = vld [vmem:[#allocation82_spill] sm:$0xff]  ;;  %v4624_v45 = vld [vmem:[#allocation83_spill] sm:$0xff]  ;;  %v3501_v33 = vld [vmem:[%s2739_s25 + $0x4b8] sm:$0xff]  ;;  %v736_v34 = vunpack.c.l.bf16 %v3490_v25 }
  0xd3   : > { %1566 = vmatpush.msrb.mxu0 %v1040_v49  ;;  %1585 = vmatpush.msrb.mxu1 %v1125_v53  ;;  %v1010_v42 = vunpack.c.h.bf16 %v4623_v41  ;;  %v1095_v46 = vunpack.c.h.bf16 %v4624_v45  ;;  %v4625_v49 = vld [vmem:[#allocation84_spill] sm:$0xff]  ;;  %v4626_v53 = vld [vmem:[#allocation85_spill] sm:$0xff]  ;;  %v3510_v19 = vld [vmem:[%s2739_s25 + $0x224] sm:$0xff] }
  0xd4   : > { %1606 = vmatpush.msrb.mxu2 %v1200_v57  ;;  %1625 = vmatpush.msrb.mxu3 %v1285_v61  ;;  %v1170_v50 = vunpack.c.h.bf16 %v4625_v49  ;;  %v1255_v54 = vunpack.c.h.bf16 %v4626_v53  ;;  %v4627_v57 = vld [vmem:[#allocation86_spill] sm:$0xff]  ;;  %v4628_v61 = vld [vmem:[#allocation87_spill] sm:$0xff]  ;;  %v3525_v49 = vld [vmem:[%s2739_s25 + $0x210] sm:$0xff]  ;;  %v816_v53 = vunpack.c.l.bf16 %v3510_v19 }
  0xd5   : > { %1567 = vmatpush.msrb.mxu0 %v1035_v4  ;;  %1586 = vmatpush.msrb.mxu1 %v1120_v14  ;;  %v1005_v58 = vunpack.c.h.bf16 %v4627_v57  ;;  %v1090_v62 = vunpack.c.h.bf16 %v4628_v61  ;;  %v4629_v4 = vld [vmem:[#allocation88_spill] sm:$0xff]  ;;  %v4630_v14 = vld [vmem:[#allocation89_spill] sm:$0xff]  ;;  %v3518_v45 = vld [vmem:[%s2739_s25 + $0x4a4] sm:$0xff] }
  0xd6   : > { %1607 = vmatpush.msrb.mxu2 %v1195_v23  ;;  %1626 = vmatpush.msrb.mxu3 %v1280_v24  ;;  %v1165_v5 = vunpack.c.h.bf16 %v4629_v4  ;;  %v1250_v15 = vunpack.c.h.bf16 %v4630_v14  ;;  %v1000_v23 = vunpack.c.h.bf16 %v3244_v55  ;;  %v3428_v24 = vld [vmem:[%s2739_s25 + $0x134] sm:$0xff]  ;;  %v3436_v55 = vld [vmem:[%s2739_s25 + $0x120] sm:$0xff]  ;;  %v3483_v63 = vld [vmem:[%s2739_s25 + $0x4cc] sm:$0xff]  ;;  %v976_v61 = vunpack.c.l.bf16 %v3518_v45 }
  0xd7   : > { %1568 = vmatpush.msrb.mxu0 %v1030_v1  ;;  %1587 = vmatpush.msrb.mxu1 %v1115_v32  ;;  %v1160_v1 = vunpack.c.h.bf16 %v3252_v27  ;;  %v1245_v32 = vunpack.c.h.bf16 %v4631_v2  ;;  %v756_v20 = vunpack.c.l.bf16 %v3428_v24  ;;  %v3442_v27 = vld [vmem:[%s2739_s25 + $0x274] sm:$0xff]  ;;  %v986_v29 = vunpack.c.l.bf16 %v3483_v63  ;;  %v3551_v14 = vld [vmem:[%s2739_s25 + $0x47c] sm:$0xff] }
  0xd8   : > { %1608 = vmatpush.msrb.mxu2 %v1190_v52  ;;  %1627 = vmatpush.msrb.mxu3 %v1275_v40  ;;  %v3445_v52 = vld [vmem:[%s2739_s25 + $0x3a0] sm:$0xff]  ;;  %v1240_v40 = vunpack.c.h.bf16 %v3268_v60  ;;  %v836_v60 = vunpack.c.l.bf16 %v3442_v27  ;;  %v3535_v57 = vld [vmem:[%s2739_s25 + $0x490] sm:$0xff]  ;;  %v811_v4 = vunpack.c.l.bf16 %v3525_v49 }
  0xd9   : > { %1569 = vmatpush.msrb.mxu0 %v1025_v3  ;;  %1588 = vmatpush.msrb.mxu1 %v1110_v48  ;;  %v3453_v3 = vld [vmem:[%s2739_s25 + $0x10c] sm:$0xff]  ;;  %v911_v51 = vunpack.c.l.bf16 %v3445_v52  ;;  %v3563_v2 = vld [vmem:[%s2739_s25 + $0x314] sm:$0xff] }
  0xda   : > { %1609 = vmatpush.msrb.mxu2 %v1185_v7  ;;  %1628 = vmatpush.msrb.mxu3 %v1270_v12  ;;  %v3460_v48 = vld [vmem:[%s2739_s25 + $0x38c] sm:$0xff]  ;;  %v996_v7 = vunpack.c.l.bf16 %v3450_v47  ;;  %v746_v8 = vunpack.c.l.bf16 %v3453_v3  ;;  %v3472_v12 = vld [vmem:[%s2739_s25 + $0xf8] sm:$0xff] }
  0xdb   : > { %1570 = vmatpush.msrb.mxu0 %v1020_v16  ;;  %1589 = vmatpush.msrb.mxu1 %v1105_v21  ;;  %v906_v13 = vunpack.c.l.bf16 %v3460_v48  ;;  %v3480_v16 = vld [vmem:[%s2739_s25 + $0x378] sm:$0xff]  ;;  %v991_v21 = vunpack.c.l.bf16 %v3467_v6  ;;  %v741_v22 = vunpack.c.l.bf16 %v3472_v12 }
  0xdc   : > { %1610 = vmatpush.msrb.mxu2 %v1180_v9  ;;  %1629 = vmatpush.msrb.mxu3 %v1265_v26  ;;  %v3493_v26 = vld [vmem:[%s2739_s25 + $0x238] sm:$0xff] }
  0xdd   : > { %1571 = vmatpush.msrb.mxu0 %v1015_v30  ;;  %1590 = vmatpush.msrb.mxu1 %v1100_v0  ;;  %v3498_v30 = vld [vmem:[%s2739_s25 + $0x364] sm:$0xff]  ;;  %v3504_v0 = vld [vmem:[%s2739_s25 + $0xd0] sm:$0xff] }
  0xde   : > { %1611 = vmatpush.msrb.mxu2 %v1175_v37  ;;  %1630 = vmatpush.msrb.mxu3 %v1260_v38  ;;  %v821_v37 = vunpack.c.l.bf16 %v3493_v26  ;;  %v3513_v38 = vld [vmem:[%s2739_s25 + $0x350] sm:$0xff]  ;;  %v896_v41 = vunpack.c.l.bf16 %v3498_v30 }
  0xdf   : > { %1572 = vmatpush.msrb.mxu0 %v1010_v42  ;;  %1591 = vmatpush.msrb.mxu1 %v1095_v46  ;;  %v981_v42 = vunpack.c.l.bf16 %v3501_v33  ;;  %v3521_v46 = vld [vmem:[%s2739_s25 + $0xbc] sm:$0xff] }
  0xe0   : > { %1612 = vmatpush.msrb.mxu2 %v1170_v50  ;;  %1631 = vmatpush.msrb.mxu3 %v1255_v54  ;;  %v3528_v50 = vld [vmem:[%s2739_s25 + $0x33c] sm:$0xff]  ;;  %v891_v54 = vunpack.c.l.bf16 %v3513_v38 }
  0xe1   : > { %1573 = vmatpush.msrb.mxu0 %v1005_v58  ;;  %1592 = vmatpush.msrb.mxu1 %v1090_v62  ;;  %v3538_v58 = vld [vmem:[%s2739_s25 + $0xa8] sm:$0xff]  ;;  %v3543_v62 = vld [vmem:[%s2739_s25 + $0x1fc] sm:$0xff] }
  0xe2   : > { %1613 = vmatpush.msrb.mxu2 %v1165_v5  ;;  %1632 = vmatpush.msrb.mxu3 %v1250_v15  ;;  %v886_v5 = vunpack.c.l.bf16 %v3528_v50  ;;  %v3554_v15 = vld [vmem:[%s2739_s25 + $0x94] sm:$0xff] }
  0xe3   : > { %1535 = vmatmul.f32.vlgmr.msra.gmra.mxu2 %v3260_v44  ;;  %1574 = vmatpush.msrb.mxu0 %v1000_v23  ;;  %v751_v44 = vunpack.c.l.bf16 %v3436_v55  ;;  %v971_v23 = vunpack.c.l.bf16 %v3535_v57 }
  0xe4   : > { %1593 = vmatpush.msrb.mxu1 %v1085_v43  ;;  %1614 = vmatpush.msrb.mxu2 %v1160_v1  ;;  %v721_v43 = vunpack.c.l.bf16 %v3538_v58  ;;  %v3560_v1 = vld [vmem:[%s2739_s25 + $0x1e8] sm:$0xff] }
  0xe5   : > { %1633 = vmatpush.msrb.mxu3 %v1245_v32  ;;  %1495 = vmatmul.f32.vlgmr.msra.gmra.mxu0 %v3276_v10  ;;  %v3475_v10 = vld [vmem:[%s2739_s25 + $0x24c] sm:$0xff]  ;;  %v806_v32 = vunpack.c.l.bf16 %v3543_v62 }
  0xe6   : > { %1555 = vmatmul.f32.vlgmr.msra.gmra.mxu3 %v3279_v28  ;;  %1639 = vmatpush.msra.mxu0 %v756_v20  ;;  %v831_v28 = vunpack.c.l.bf16 %v3457_v59  ;;  %v826_v9 = vunpack.c.l.bf16 %v3475_v10 }
  0xe7   : > { %1679 = vmatpush.msra.mxu2 %v916_v39  ;;  %1594 = vmatpush.msrb.mxu1 %v1080_v56  ;;  %v3571_v39 = vld [vmem:[%s2739_s25 + $0x80] sm:$0xff]  ;;  %v966_v56 = vunpack.c.l.bf16 %v3551_v14 }
  0xe8   : > { %1634 = vmatpush.msrb.mxu3 %v1240_v40  ;;  %1515 = vmatmul.f32.vlgmr.msra.gmra.mxu1 %v3289_v36  ;;  %v901_v36 = vunpack.c.l.bf16 %v3480_v16  ;;  %v716_v40 = vunpack.c.l.bf16 %v3554_v15 }
  0xe9   : > { %1640 = vmatpush.msra.mxu0 %v751_v44  ;;  %1659 = vmatpush.msra.mxu1 %v836_v60  ;;  %v3576_v44 = vld [vmem:[%s2739_s25 + $0x1d4] sm:$0xff]  ;;  %v3579_v60 = vld [vmem:[%s2739_s25 + $0x300] sm:$0xff] }
  0xea   : > { %1680 = vmatpush.msra.mxu2 %v911_v51  ;;  %1699 = vmatpush.msra.mxu3 %v996_v7  ;;  %v801_v51 = vunpack.c.l.bf16 %v3560_v1  ;;  %v876_v7 = vunpack.c.l.bf16 %v3563_v2 }
  0xeb   : > { %1641 = vmatpush.msra.mxu0 %v746_v8  ;;  %1660 = vmatpush.msra.mxu1 %v831_v28  ;;  %v3584_v8 = vld [vmem:[%s2739_s25 + $0x454] sm:$0xff]  ;;  %v3587_v28 = vld [vmem:[%s2739_s25 + $0x6c] sm:$0xff] }
  0xec   : > { %1681 = vmatpush.msra.mxu2 %v906_v13  ;;  %1700 = vmatpush.msra.mxu3 %v991_v21  ;;  %v711_v21 = vunpack.c.l.bf16 %v3571_v39 }
  0xed   : > { %1615 = vmatmul.f32.vlgmr.msrb.gmra.mxu2 %v3300_v11  ;;  %1642 = vmatpush.msra.mxu0 %v741_v22  ;;  %v731_v11 = vunpack.c.l.bf16 %v3504_v0  ;;  %v3592_v22 = vld [vmem:[%s2739_s25 + $0x1c0] sm:$0xff] }
  0xee   : > { %1661 = vmatpush.msra.mxu1 %v826_v9  ;;  %1682 = vmatpush.msra.mxu2 %v901_v36  ;;  %v3595_v9 = vld [vmem:[%s2739_s25 + $0x2ec] sm:$0xff]  ;;  %v796_v36 = vunpack.c.l.bf16 %v3576_v44 }
  0xef   : > { %1701 = vmatpush.msra.mxu3 %v986_v29  ;;  %1575 = vmatmul.f32.vlgmr.msrb.gmra.mxu0 %v3308_v17  ;;  %v726_v17 = vunpack.c.l.bf16 %v3521_v46  ;;  %v871_v29 = vunpack.c.l.bf16 %v3579_v60 }
  0xf0   : > { %1635 = vmatmul.f32.vlgmr.msrb.gmra.mxu3 %v3311_v18  ;;  %1643 = vmatpush.msra.mxu0 %v736_v34  ;;  %v3546_v18 = vld [vmem:[%s2739_s25 + $0x328] sm:$0xff]  ;;  %v3600_v34 = vld [vmem:[%s2739_s25 + $0x440] sm:$0xff] }
  0xf1   : > { %1662 = vmatpush.msra.mxu1 %v821_v37  ;;  %1683 = vmatpush.msra.mxu2 %v896_v41  ;;  %v881_v20 = vunpack.c.l.bf16 %v3546_v18  ;;  %4632 = vst [vmem:[#allocation14_spill] sm:$0xff] %v3600_v34  ;;  %v3603_v37 = vld [vmem:[%s2739_s25 + $0x58] sm:$0xff]  ;;  %v956_v41 = vunpack.c.l.bf16 %v3584_v8 }
  0xf2   : > { %1702 = vmatpush.msra.mxu3 %v981_v42  ;;  %1595 = vmatmul.f32.vlgmr.msrb.gmra.mxu1 %v3321_v35  ;;  %v3568_v35 = vld [vmem:[%s2739_s25 + $0x468] sm:$0xff]  ;;  %4633 = vst [vmem:[#allocation15_spill] sm:$0xff] %v3603_v37  ;;  %v706_v42 = vunpack.c.l.bf16 %v3587_v28 }
  0xf3   : > { %1644 = vmatpush.msra.mxu0 %v731_v11  ;;  %1663 = vmatpush.msra.mxu1 %v816_v53  ;;  %v961_v13 = vunpack.c.l.bf16 %v3568_v35  ;;  %v3608_v11 = vld [vmem:[%s2739_s25 + $0x1ac] sm:$0xff]  ;;  %v3611_v53 = vld [vmem:[%s2739_s25 + $0x2d8] sm:$0xff] }
  0xf4   : > { %1684 = vmatpush.msra.mxu2 %v891_v54  ;;  %1703 = vmatpush.msra.mxu3 %v976_v61  ;;  %4634 = vst [vmem:[#allocation16_spill] sm:$0xff] %v3608_v11  ;;  %v791_v54 = vunpack.c.l.bf16 %v3592_v22  ;;  %v866_v61 = vunpack.c.l.bf16 %v3595_v9 }
  0xf5   : > { %1645 = vmatpush.msra.mxu0 %v726_v17  ;;  %1664 = vmatpush.msra.mxu1 %v811_v4  ;;  %4635 = vst [vmem:[#allocation17_spill] sm:$0xff] %v3611_v53  ;;  %v3616_v17 = vld [vmem:[%s2739_s25 + $0x42c] sm:$0xff]  ;;  %v3619_v4 = vld [vmem:[%s2739_s25 + $0x44] sm:$0xff] }
  0xf6   : > { %1685 = vmatpush.msra.mxu2 %v886_v5  ;;  %1704 = vmatpush.msra.mxu3 %v971_v23  ;;  %4636 = vst [vmem:[#allocation18_spill] sm:$0xff] %v3616_v17  ;;  %v951_v5 = vunpack.c.l.bf16 %v3600_v34  ;;  %v701_v23 = vunpack.c.l.bf16 %v3603_v37  ;;  %v3928_v37 = vld [vmem:[%s2739_s25 + $0x65c] sm:$0xff]  ;;  %v3944_v34 = vld [vmem:[%s2739_s25 + $0x648] sm:$0xff] }
  0xf7   : > { %1646 = vmatpush.msra.mxu0 %v721_v43  ;;  %1665 = vmatpush.msra.mxu1 %v806_v32  ;;  %4637 = vst [vmem:[#allocation19_spill] sm:$0xff] %v3619_v4  ;;  %v3624_v43 = vld [vmem:[%s2739_s25 + $0x198] sm:$0xff]  ;;  %v3627_v32 = vld [vmem:[%s2739_s25 + $0x2c4] sm:$0xff] }
  0xf8   : > { %1686 = vmatpush.msra.mxu2 %v881_v20  ;;  %1705 = vmatpush.msra.mxu3 %v966_v56  ;;  %4638 = vst [vmem:[#allocation20_spill] sm:$0xff] %v3624_v43  ;;  %v786_v20 = vunpack.c.l.bf16 %v3608_v11  ;;  %v861_v56 = vunpack.c.l.bf16 %v3611_v53  ;;  %v856_v53 = vunpack.c.l.bf16 %v3627_v32  ;;  %v3904_v11 = vld [vmem:[%s2739_s25 + $0x904] sm:$0xff] }
  0xf9   : > { %1647 = vmatpush.msra.mxu0 %v716_v40  ;;  %1666 = vmatpush.msra.mxu1 %v801_v51  ;;  %4639 = vst [vmem:[#allocation21_spill] sm:$0xff] %v3627_v32  ;;  %v3632_v40 = vld [vmem:[%s2739_s25 + $0x418] sm:$0xff]  ;;  %v3635_v51 = vld [vmem:[%s2739_s25 + $0x30] sm:$0xff] }
  0xfa   : > { %1687 = vmatpush.msra.mxu2 %v876_v7  ;;  %1706 = vmatpush.msra.mxu3 %v961_v13  ;;  %4640 = vst [vmem:[#allocation22_spill] sm:$0xff] %v3632_v40  ;;  %v946_v7 = vunpack.c.l.bf16 %v3616_v17  ;;  %v696_v13 = vunpack.c.l.bf16 %v3619_v4  ;;  %v941_v4 = vunpack.c.l.bf16 %v3632_v40  ;;  %v691_v17 = vunpack.c.l.bf16 %v3635_v51 }
  0xfb   : > { %1648 = vmatpush.msra.mxu0 %v711_v21  ;;  %1667 = vmatpush.msra.mxu1 %v796_v36  ;;  %4641 = vst [vmem:[#allocation23_spill] sm:$0xff] %v3635_v51  ;;  %v3640_v21 = vld [vmem:[%s2739_s25 + $0x184] sm:$0xff]  ;;  %v3643_v36 = vld [vmem:[%s2739_s25 + $0x2b0] sm:$0xff] }
  0xfc   : > { %1688 = vmatpush.msra.mxu2 %v871_v29  ;;  %1707 = vmatpush.msra.mxu3 %v956_v41  ;;  %4642 = vst [vmem:[#allocation24_spill] sm:$0xff] %v3640_v21  ;;  %v781_v29 = vunpack.c.l.bf16 %v3624_v43  ;;  %v3648_v41 = vld [vmem:[%s2739_s25 + $0x404] sm:$0xff]  ;;  %v776_v32 = vunpack.c.l.bf16 %v3640_v21  ;;  %v851_v43 = vunpack.c.l.bf16 %v3643_v36 }
  0xfd   : > { %1649 = vmatpush.msra.mxu0 %v706_v42  ;;  %4643 = vst [vmem:[#allocation25_spill] sm:$0xff] %v3643_v36  ;;  %1668 = vmatpush.msra.mxu1 %v791_v54  ;;  %v3651_v42 = vld [vmem:[%s2739_s25 + $0x1c] sm:$0xff]  ;;  %v3656_v54 = vld [vmem:[%s2739_s25 + $0x170] sm:$0xff]  ;;  %v936_v51 = vunpack.c.l.bf16 %v3648_v41 }
  0xfe   : > { %1689 = vmatpush.msra.mxu2 %v866_v61  ;;  %4644 = vst [vmem:[#allocation26_spill] sm:$0xff] %v3648_v41  ;;  %1708 = vmatpush.msra.mxu3 %v951_v5  ;;  %v3659_v61 = vld [vmem:[%s2739_s25 + $0x29c] sm:$0xff]  ;;  %v3664_v5 = vld [vmem:[%s2739_s25 + $0x3f0] sm:$0xff]  ;;  %v686_v40 = vunpack.c.l.bf16 %v3651_v42  ;;  %v771_v36 = vunpack.c.l.bf16 %v3656_v54 }
  0xff   : > { %4645 = vst [vmem:[#allocation27_spill] sm:$0xff] %v3651_v42  ;;  %1650 = vmatpush.msra.mxu0 %v701_v23  ;;  %1669 = vmatpush.msra.mxu1 %v786_v20  ;;  %v3667_v23 = vld [vmem:[%s2739_s25 + $0x8] sm:$0xff]  ;;  %v3672_v20 = vld [vmem:[%s2739_s25 + $0x15c] sm:$0xff]  ;;  %v846_v21 = vunpack.c.l.bf16 %v3659_v61  ;;  %v931_v42 = vunpack.c.l.bf16 %v3664_v5 }
 0x100   : > { %4646 = vst [vmem:[#allocation28_spill] sm:$0xff] %v3656_v54  ;;  %1690 = vmatpush.msra.mxu2 %v861_v56  ;;  %1709 = vmatpush.msra.mxu3 %v946_v7  ;;  %v3675_v56 = vld [vmem:[%s2739_s25 + $0x288] sm:$0xff]  ;;  %v3680_v7 = vld [vmem:[%s2739_s25 + $0x3dc] sm:$0xff]  ;;  %v681_v41 = vunpack.c.l.bf16 %v3667_v23 }
 0x101   : > { %4647 = vst [vmem:[#allocation29_spill] sm:$0xff] %v3659_v61  ;;  %1651 = vmatpush.msra.mxu0 %v696_v13  ;;  %1670 = vmatpush.msra.mxu1 %v781_v29  ;;  %v3683_v13 = vld [vmem:[%s2739_s25 + $0x634] sm:$0xff]  ;;  %v766_v61 = vunpack.c.l.bf16 %v3672_v20  ;;  %v841_v54 = vunpack.c.l.bf16 %v3675_v56 }
 0x102   : > { %4648 = vst [vmem:[#allocation30_spill] sm:$0xff] %v3664_v5  ;;  %1691 = vmatpush.msra.mxu2 %v856_v53  ;;  %1710 = vmatpush.msra.mxu3 %v941_v4  ;;  %v3688_v29 = vld [vmem:[%s2739_s25 + $0x8b4] sm:$0xff]  ;;  %v3691_v53 = vld [vmem:[%s2739_s25 + $0x148] sm:$0xff]  ;;  %v1076_v5 = vunpack.c.l.bf16 %v3683_v13 }
 0x103   : > { %4649 = vst [vmem:[#allocation31_spill] sm:$0xff] %v3667_v23  ;;  %1652 = vmatpush.msra.mxu0 %v691_v17  ;;  %1671 = vmatpush.msra.mxu1 %v776_v32  ;;  %v3696_v4 = vld [vmem:[%s2739_s25 + $0x3c8] sm:$0xff]  ;;  %v3699_v17 = vld [vmem:[%s2739_s25 + $0x620] sm:$0xff]  ;;  %v926_v23 = vunpack.c.l.bf16 %v3680_v7  ;;  %v3704_v32 = vld [vmem:[%s2739_s25 + $0x774] sm:$0xff] }
 0x104   : > { %4650 = vst [vmem:[#allocation32_spill] sm:$0xff] %v3672_v20  ;;  %1692 = vmatpush.msra.mxu2 %v851_v43  ;;  %1711 = vmatpush.msra.mxu3 %v936_v51  ;;  %v3707_v43 = vld [vmem:[%s2739_s25 + $0x8a0] sm:$0xff]  ;;  %v761_v20 = vunpack.c.l.bf16 %v3691_v53  ;;  %v3712_v51 = vld [vmem:[%s2739_s25 + $0x9f4] sm:$0xff] }
 0x105   : > { %4651 = vst [vmem:[#allocation33_spill] sm:$0xff] %v3675_v56  ;;  %1653 = vmatpush.msra.mxu0 %v686_v40  ;;  %1672 = vmatpush.msra.mxu1 %v771_v36  ;;  %v1236_v56 = vunpack.c.l.bf16 %v3688_v29  ;;  %v3715_v40 = vld [vmem:[%s2739_s25 + $0x60c] sm:$0xff]  ;;  %v3720_v36 = vld [vmem:[%s2739_s25 + $0x760] sm:$0xff] }
 0x106   : > { %4652 = vst [vmem:[#allocation34_spill] sm:$0xff] %v3680_v7  ;;  %1693 = vmatpush.msra.mxu2 %v846_v21  ;;  %1712 = vmatpush.msra.mxu3 %v931_v42  ;;  %v1071_v7 = vunpack.c.l.bf16 %v3699_v17  ;;  %v3723_v21 = vld [vmem:[%s2739_s25 + $0x88c] sm:$0xff]  ;;  %v3728_v42 = vld [vmem:[%s2739_s25 + $0x9e0] sm:$0xff] }
 0x107   : > { %4653 = vst [vmem:[#allocation35_spill] sm:$0xff] %v3683_v13  ;;  %1654 = vmatpush.msra.mxu0 %v681_v41  ;;  %v921_v13 = vunpack.c.l.bf16 %v3696_v4  ;;  %1673 = vmatpush.msra.mxu1 %v766_v61  ;;  %v3731_v41 = vld [vmem:[%s2739_s25 + $0x5f8] sm:$0xff]  ;;  %v3736_v61 = vld [vmem:[%s2739_s25 + $0x74c] sm:$0xff] }
 0x108   : > { %4654 = vst [vmem:[#allocation36_spill] sm:$0xff] %v3688_v29  ;;  %1694 = vmatpush.msra.mxu2 %v841_v54  ;;  %v1231_v29 = vunpack.c.l.bf16 %v3707_v43  ;;  %1713 = vmatpush.msra.mxu3 %v926_v23  ;;  %v3739_v54 = vld [vmem:[%s2739_s25 + $0x878] sm:$0xff]  ;;  %v3744_v23 = vld [vmem:[%s2739_s25 + $0x9cc] sm:$0xff] }
 0x109   : > { %4655 = vst [vmem:[#allocation37_spill] sm:$0xff] %v3691_v53  ;;  %v1156_v53 = vunpack.c.l.bf16 %v3704_v32  ;;  %1719 = vmatpush.msrb.mxu0 %v1076_v5  ;;  %1674 = vmatpush.msra.mxu1 %v761_v20  ;;  %v3747_v5 = vld [vmem:[%s2739_s25 + $0x5e4] sm:$0xff] }
 0x10a   : > { %4656 = vst [vmem:[#allocation38_spill] sm:$0xff] %v3696_v4  ;;  %v1066_v4 = vunpack.c.l.bf16 %v3715_v40  ;;  %1759 = vmatpush.msrb.mxu2 %v1236_v56  ;;  %1714 = vmatpush.msra.mxu3 %v921_v13  ;;  %v3752_v56 = vld [vmem:[%s2739_s25 + $0x738] sm:$0xff]  ;;  %v3755_v20 = vld [vmem:[%s2739_s25 + $0x864] sm:$0xff] }
 0x10b   : > { %4657 = vst [vmem:[#allocation39_spill] sm:$0xff] %v3699_v17  ;;  %v1316_v17 = vunpack.c.l.bf16 %v3712_v51  ;;  %1720 = vmatpush.msrb.mxu0 %v1071_v7  ;;  %1739 = vmatpush.msrb.mxu1 %v1156_v53  ;;  %v3760_v13 = vld [vmem:[%s2739_s25 + $0x9b8] sm:$0xff]  ;;  %v3763_v7 = vld [vmem:[%s2739_s25 + $0x5d0] sm:$0xff]  ;;  %v3768_v53 = vld [vmem:[%s2739_s25 + $0x724] sm:$0xff] }
 0x10c   : > { %4658 = vst [vmem:[#allocation40_spill] sm:$0xff] %v3704_v32  ;;  %v1226_v32 = vunpack.c.l.bf16 %v3723_v21  ;;  %1760 = vmatpush.msrb.mxu2 %v1231_v29  ;;  %v3771_v29 = vld [vmem:[%s2739_s25 + $0x850] sm:$0xff] }
 0x10d   : > { %4659 = vst [vmem:[#allocation41_spill] sm:$0xff] %v3707_v43  ;;  %v1151_v43 = vunpack.c.l.bf16 %v3720_v36  ;;  %1779 = vmatpush.msrb.mxu3 %v1316_v17  ;;  %1721 = vmatpush.msrb.mxu0 %v1066_v4  ;;  %v3776_v17 = vld [vmem:[%s2739_s25 + $0x9a4] sm:$0xff]  ;;  %v3779_v4 = vld [vmem:[%s2739_s25 + $0x5bc] sm:$0xff] }
 0x10e   : > { %4660 = vst [vmem:[#allocation42_spill] sm:$0xff] %v3712_v51  ;;  %v1061_v51 = vunpack.c.l.bf16 %v3731_v41  ;;  %1761 = vmatpush.msrb.mxu2 %v1226_v32  ;;  %v3787_v32 = vld [vmem:[%s2739_s25 + $0x83c] sm:$0xff] }
 0x10f   : > { %4661 = vst [vmem:[#allocation43_spill] sm:$0xff] %v3715_v40  ;;  %v1311_v40 = vunpack.c.l.bf16 %v3728_v42  ;;  %1740 = vmatpush.msrb.mxu1 %v1151_v43  ;;  %v3784_v43 = vld [vmem:[%s2739_s25 + $0x710] sm:$0xff] }
 0x110   : > { %4662 = vst [vmem:[#allocation44_spill] sm:$0xff] %v3720_v36  ;;  %v1221_v36 = vunpack.c.l.bf16 %v3739_v54  ;;  %1722 = vmatpush.msrb.mxu0 %v1061_v51  ;;  %v3795_v51 = vld [vmem:[%s2739_s25 + $0x5a8] sm:$0xff] }
 0x111   : > { %4663 = vst [vmem:[#allocation45_spill] sm:$0xff] %v3723_v21  ;;  %v1146_v21 = vunpack.c.l.bf16 %v3736_v61  ;;  %1780 = vmatpush.msrb.mxu3 %v1311_v40  ;;  %v3792_v40 = vld [vmem:[%s2739_s25 + $0x990] sm:$0xff] }
 0x112   : > { %4664 = vst [vmem:[#allocation46_spill] sm:$0xff] %v3728_v42  ;;  %v1056_v42 = vunpack.c.l.bf16 %v3747_v5  ;;  %1762 = vmatpush.msrb.mxu2 %v1221_v36  ;;  %v3803_v36 = vld [vmem:[%s2739_s25 + $0x828] sm:$0xff] }
 0x113   : > { %4665 = vst [vmem:[#allocation47_spill] sm:$0xff] %v3731_v41  ;;  %v1306_v41 = vunpack.c.l.bf16 %v3744_v23  ;;  %1741 = vmatpush.msrb.mxu1 %v1146_v21  ;;  %v3800_v21 = vld [vmem:[%s2739_s25 + $0x6fc] sm:$0xff] }
 0x114   : > { %4666 = vst [vmem:[#allocation48_spill] sm:$0xff] %v3736_v61  ;;  %v1216_v61 = vunpack.c.l.bf16 %v3755_v20  ;;  %1723 = vmatpush.msrb.mxu0 %v1056_v42  ;;  %v3811_v42 = vld [vmem:[%s2739_s25 + $0x594] sm:$0xff] }
 0x115   : > { %4667 = vst [vmem:[#allocation49_spill] sm:$0xff] %v3739_v54  ;;  %v1141_v54 = vunpack.c.l.bf16 %v3752_v56  ;;  %1781 = vmatpush.msrb.mxu3 %v1306_v41  ;;  %v3808_v41 = vld [vmem:[%s2739_s25 + $0x97c] sm:$0xff] }
 0x116   : > { %4668 = vst [vmem:[#allocation50_spill] sm:$0xff] %v3744_v23  ;;  %v1051_v23 = vunpack.c.l.bf16 %v3763_v7  ;;  %1763 = vmatpush.msrb.mxu2 %v1216_v61  ;;  %v3819_v61 = vld [vmem:[%s2739_s25 + $0x814] sm:$0xff] }
 0x117   : > { %4669 = vst [vmem:[#allocation51_spill] sm:$0xff] %v3747_v5  ;;  %v1301_v5 = vunpack.c.l.bf16 %v3760_v13  ;;  %1742 = vmatpush.msrb.mxu1 %v1141_v54  ;;  %v3816_v54 = vld [vmem:[%s2739_s25 + $0x6e8] sm:$0xff] }
 0x118   : > { %4670 = vst [vmem:[#allocation52_spill] sm:$0xff] %v3752_v56  ;;  %v1211_v56 = vunpack.c.l.bf16 %v3771_v29  ;;  %1724 = vmatpush.msrb.mxu0 %v1051_v23  ;;  %v3827_v23 = vld [vmem:[%s2739_s25 + $0x580] sm:$0xff] }
 0x119   : > { %4671 = vst [vmem:[#allocation53_spill] sm:$0xff] %v3755_v20  ;;  %v1136_v20 = vunpack.c.l.bf16 %v3768_v53  ;;  %1782 = vmatpush.msrb.mxu3 %v1301_v5  ;;  %v3824_v5 = vld [vmem:[%s2739_s25 + $0x968] sm:$0xff] }
 0x11a   : > { %4672 = vst [vmem:[#allocation54_spill] sm:$0xff] %v3760_v13  ;;  %v1046_v13 = vunpack.c.l.bf16 %v3779_v4  ;;  %1764 = vmatpush.msrb.mxu2 %v1211_v56  ;;  %v3835_v56 = vld [vmem:[%s2739_s25 + $0x800] sm:$0xff] }
 0x11b   : > { %4673 = vst [vmem:[#allocation55_spill] sm:$0xff] %v3763_v7  ;;  %v1296_v7 = vunpack.c.l.bf16 %v3776_v17  ;;  %1743 = vmatpush.msrb.mxu1 %v1136_v20  ;;  %v3832_v20 = vld [vmem:[%s2739_s25 + $0x6d4] sm:$0xff] }
 0x11c   : > { %4674 = vst [vmem:[#allocation56_spill] sm:$0xff] %v3768_v53  ;;  %v1206_v53 = vunpack.c.l.bf16 %v3787_v32  ;;  %1725 = vmatpush.msrb.mxu0 %v1046_v13  ;;  %v3843_v13 = vld [vmem:[%s2739_s25 + $0x56c] sm:$0xff] }
 0x11d   : > { %4675 = vst [vmem:[#allocation57_spill] sm:$0xff] %v3771_v29  ;;  %v1131_v29 = vunpack.c.l.bf16 %v3784_v43  ;;  %1783 = vmatpush.msrb.mxu3 %v1296_v7  ;;  %v3840_v7 = vld [vmem:[%s2739_s25 + $0x954] sm:$0xff] }
 0x11e   : > { %4676 = vst [vmem:[#allocation58_spill] sm:$0xff] %v3776_v17  ;;  %v1041_v17 = vunpack.c.l.bf16 %v3795_v51  ;;  %1765 = vmatpush.msrb.mxu2 %v1206_v53  ;;  %v3851_v53 = vld [vmem:[%s2739_s25 + $0x7ec] sm:$0xff] }
 0x11f   : > { %4677 = vst [vmem:[#allocation59_spill] sm:$0xff] %v3779_v4  ;;  %v1291_v4 = vunpack.c.l.bf16 %v3792_v40  ;;  %1744 = vmatpush.msrb.mxu1 %v1131_v29  ;;  %v3848_v29 = vld [vmem:[%s2739_s25 + $0x6c0] sm:$0xff] }
 0x120   : > { %4678 = vst [vmem:[#allocation60_spill] sm:$0xff] %v3784_v43  ;;  %v1201_v43 = vunpack.c.l.bf16 %v3803_v36  ;;  %1726 = vmatpush.msrb.mxu0 %v1041_v17  ;;  %v3859_v17 = vld [vmem:[%s2739_s25 + $0x558] sm:$0xff] }
 0x121   : > { %4679 = vst [vmem:[#allocation61_spill] sm:$0xff] %v3787_v32  ;;  %v1126_v32 = vunpack.c.l.bf16 %v3800_v21  ;;  %1784 = vmatpush.msrb.mxu3 %v1291_v4  ;;  %v3856_v4 = vld [vmem:[%s2739_s25 + $0x940] sm:$0xff] }
 0x122   : > { %4680 = vst [vmem:[#allocation62_spill] sm:$0xff] %v3792_v40  ;;  %v1036_v40 = vunpack.c.l.bf16 %v3811_v42  ;;  %1766 = vmatpush.msrb.mxu2 %v1201_v43  ;;  %v3867_v43 = vld [vmem:[%s2739_s25 + $0x7d8] sm:$0xff] }
 0x123   : > { %4681 = vst [vmem:[#allocation63_spill] sm:$0xff] %v3795_v51  ;;  %v1286_v51 = vunpack.c.l.bf16 %v3808_v41  ;;  %1745 = vmatpush.msrb.mxu1 %v1126_v32  ;;  %v3864_v32 = vld [vmem:[%s2739_s25 + $0x6ac] sm:$0xff] }
 0x124   : > { %4682 = vst [vmem:[#allocation64_spill] sm:$0xff] %v3800_v21  ;;  %v1196_v21 = vunpack.c.l.bf16 %v3819_v61  ;;  %1727 = vmatpush.msrb.mxu0 %v1036_v40  ;;  %v3875_v40 = vld [vmem:[%s2739_s25 + $0x544] sm:$0xff] }
 0x125   : > { %4683 = vst [vmem:[#allocation65_spill] sm:$0xff] %v3803_v36  ;;  %v1121_v36 = vunpack.c.l.bf16 %v3816_v54  ;;  %1785 = vmatpush.msrb.mxu3 %v1286_v51  ;;  %v3872_v51 = vld [vmem:[%s2739_s25 + $0x92c] sm:$0xff] }
 0x126   : > { %4684 = vst [vmem:[#allocation66_spill] sm:$0xff] %v3808_v41  ;;  %v1031_v41 = vunpack.c.l.bf16 %v3827_v23  ;;  %1767 = vmatpush.msrb.mxu2 %v1196_v21  ;;  %v3883_v21 = vld [vmem:[%s2739_s25 + $0x7c4] sm:$0xff] }
 0x127   : > { %4685 = vst [vmem:[#allocation67_spill] sm:$0xff] %v3811_v42  ;;  %v1281_v42 = vunpack.c.l.bf16 %v3824_v5  ;;  %1746 = vmatpush.msrb.mxu1 %v1121_v36  ;;  %v3880_v36 = vld [vmem:[%s2739_s25 + $0x698] sm:$0xff] }
 0x128   : > { %4686 = vst [vmem:[#allocation68_spill] sm:$0xff] %v3816_v54  ;;  %v1191_v54 = vunpack.c.l.bf16 %v3835_v56  ;;  %1728 = vmatpush.msrb.mxu0 %v1031_v41  ;;  %v3891_v41 = vld [vmem:[%s2739_s25 + $0x530] sm:$0xff] }
 0x129   : > { %4687 = vst [vmem:[#allocation69_spill] sm:$0xff] %v3819_v61  ;;  %v1116_v61 = vunpack.c.l.bf16 %v3832_v20  ;;  %1786 = vmatpush.msrb.mxu3 %v1281_v42  ;;  %v3888_v42 = vld [vmem:[%s2739_s25 + $0x918] sm:$0xff] }
 0x12a   : > { %4688 = vst [vmem:[#allocation70_spill] sm:$0xff] %v3824_v5  ;;  %v1026_v5 = vunpack.c.l.bf16 %v3843_v13  ;;  %1768 = vmatpush.msrb.mxu2 %v1191_v54  ;;  %v3899_v54 = vld [vmem:[%s2739_s25 + $0x7b0] sm:$0xff] }
 0x12b   : > { %4689 = vst [vmem:[#allocation71_spill] sm:$0xff] %v3827_v23  ;;  %v1276_v23 = vunpack.c.l.bf16 %v3840_v7  ;;  %1747 = vmatpush.msrb.mxu1 %v1116_v61  ;;  %v3896_v61 = vld [vmem:[%s2739_s25 + $0x684] sm:$0xff] }
 0x12c   : > { %4690 = vst [vmem:[#allocation72_spill] sm:$0xff] %v3832_v20  ;;  %v1186_v20 = vunpack.c.l.bf16 %v3851_v53  ;;  %1729 = vmatpush.msrb.mxu0 %v1026_v5  ;;  %v1261_v5 = vunpack.c.l.bf16 %v3888_v42 }
 0x12d   : > { %4691 = vst [vmem:[#allocation73_spill] sm:$0xff] %v3835_v56  ;;  %v1111_v56 = vunpack.c.l.bf16 %v3848_v29  ;;  %1787 = vmatpush.msrb.mxu3 %v1276_v23  ;;  %v3907_v23 = vld [vmem:[%s2739_s25 + $0x51c] sm:$0xff] }
 0x12e   : > { %4692 = vst [vmem:[#allocation74_spill] sm:$0xff] %v3840_v7  ;;  %v1021_v7 = vunpack.c.l.bf16 %v3859_v17  ;;  %1769 = vmatpush.msrb.mxu2 %v1186_v20  ;;  %v3915_v20 = vld [vmem:[%s2739_s25 + $0x79c] sm:$0xff] }
 0x12f   : > { %4693 = vst [vmem:[#allocation75_spill] sm:$0xff] %v3843_v13  ;;  %v1271_v13 = vunpack.c.l.bf16 %v3856_v4  ;;  %1748 = vmatpush.msrb.mxu1 %v1111_v56  ;;  %v1336_v56 = vpop.f32.mrf.mxu0 }
 0x130   : > { %4694 = vst [vmem:[#allocation76_spill] sm:$0xff] %v3848_v29  ;;  %v1181_v29 = vunpack.c.l.bf16 %v3867_v43  ;;  %1730 = vmatpush.msrb.mxu0 %v1021_v7  ;;  %v1256_v7 = vunpack.c.l.bf16 %v3904_v11 }
 0x131   : > { %4695 = vst [vmem:[#allocation77_spill] sm:$0xff] %v3851_v53  ;;  %v1106_v53 = vunpack.c.l.bf16 %v3864_v32  ;;  %1788 = vmatpush.msrb.mxu3 %v1271_v13  ;;  %v1171_v13 = vunpack.c.l.bf16 %v3899_v54 }
 0x132   : > { %4696 = vst [vmem:[#allocation78_spill] sm:$0xff] %v3856_v4  ;;  %v1016_v4 = vunpack.c.l.bf16 %v3875_v40  ;;  %1770 = vmatpush.msrb.mxu2 %v1181_v29 }
 0x133   : > { %4697 = vst [vmem:[#allocation79_spill] sm:$0xff] %v3859_v17  ;;  %v1266_v17 = vunpack.c.l.bf16 %v3872_v51  ;;  %1749 = vmatpush.msrb.mxu1 %v1106_v53  ;;  %v1166_v53 = vunpack.c.l.bf16 %v3915_v20 }
 0x134   : > { %4698 = vst [vmem:[#allocation80_spill] sm:$0xff] %v3864_v32  ;;  %v1176_v32 = vunpack.c.l.bf16 %v3883_v21  ;;  %1731 = vmatpush.msrb.mxu0 %v1016_v4  ;;  %v1356_v4 = vpop.f32.mrf.mxu1 }
 0x135   : > { %4699 = vst [vmem:[#allocation81_spill] sm:$0xff] %v3867_v43  ;;  %v1101_v43 = vunpack.c.l.bf16 %v3880_v36  ;;  %1789 = vmatpush.msrb.mxu3 %v1266_v17  ;;  %v1376_v17 = vpop.f32.mrf.mxu2 }
 0x136   : > { %4700 = vst [vmem:[#allocation82_spill] sm:$0xff] %v3872_v51  ;;  %v3912_v51 = vld [vmem:[%s2739_s25 + $0x670] sm:$0xff]  ;;  %1771 = vmatpush.msrb.mxu2 %v1176_v32 }
 0x137   : > { %4701 = vst [vmem:[#allocation83_spill] sm:$0xff] %v3875_v40  ;;  %v1011_v40 = vunpack.c.l.bf16 %v3891_v41  ;;  %1750 = vmatpush.msrb.mxu1 %v1101_v43  ;;  %v1091_v29 = vunpack.c.l.bf16 %v3912_v51  ;;  %1790 = vmatpush.msrb.mxu3 %v1261_v5  ;;  %v1086_v43 = vunpack.c.l.bf16 %v3928_v37  ;;  %v3947_v5 = vld [vmem:[%s2739_s25 + $0x8c8] sm:$0xff] }
 0x138   : > { %4702 = vst [vmem:[#allocation84_spill] sm:$0xff] %v3880_v36  ;;  %v3920_v36 = vld [vmem:[%s2739_s25 + $0x8f0] sm:$0xff]  ;;  %1772 = vmatpush.msrb.mxu2 %v1171_v13 }
 0x139   : > { %4703 = vst [vmem:[#allocation85_spill] sm:$0xff] %v3883_v21  ;;  %v1096_v21 = vunpack.c.l.bf16 %v3896_v61  ;;  %1732 = vmatpush.msrb.mxu0 %v1011_v40  ;;  %1791 = vmatpush.msrb.mxu3 %v1256_v7  ;;  %v1081_v7 = vunpack.c.l.bf16 %v3944_v34 }
 0x13a   : > { %4704 = vst [vmem:[#allocation86_spill] sm:$0xff] %v3888_v42  ;;  %v3925_v42 = vld [vmem:[%s2739_s25 + $0x508] sm:$0xff]  ;;  %1773 = vmatpush.msrb.mxu2 %v1166_v53  ;;  %v3959_v53 = vld [vmem:[%s2732_s26] sm:$0xff] }
 0x13b   : > { %4705 = vst [vmem:[#allocation87_spill] sm:$0xff] %v3891_v41  ;;  %v1006_v41 = vunpack.c.l.bf16 %v3907_v23  ;;  %1751 = vmatpush.msrb.mxu1 %v1096_v21  ;;  %v1001_v32 = vunpack.c.l.bf16 %v3925_v42  ;;  %v3950_v21 = vld [vmem:[%s2732_s26 + $0x10] sm:$0xff]  ;;  %1655 = vmatmul.f32.vlgmr.msra.gmra.mxu0 %v3959_v53 }
 0x13c   : > { %4706 = vst [vmem:[#allocation88_spill] sm:$0xff] %v3896_v61  ;;  %v3933_v61 = vld [vmem:[%s2739_s25 + $0x788] sm:$0xff]  ;;  %1695 = vmatmul.f32.vlgmr.msra.gmra.mxu2 %v3950_v21 }
 0x13d   : > { %4707 = vst [vmem:[#allocation89_spill] sm:$0xff] %v3899_v54  ;;  %v3936_v54 = vld [vmem:[%s2739_s25 + $0x8dc] sm:$0xff]  ;;  %1733 = vmatpush.msrb.mxu0 %v1006_v41  ;;  %1752 = vmatpush.msrb.mxu1 %v1091_v29  ;;  %v757_v41 = vunpack.c.h.bf16 %v3428_v24  ;;  %v1416_v29 = vpop.f32.mrf.mxu0 }
 0x13e   : > { %4708 = vst [vmem:[#allocation90_spill] sm:$0xff] %v3904_v11  ;;  %v1357_v11 = vadd.f32 %v1356_v4, %v1336_v56  ;;  %v917_v56 = vunpack.c.h.bf16 %v3431_v31  ;;  %v3963_v24 = vld [vmem:[%s2732_s26 + $0x18] sm:$0xff]  ;;  %v837_v31 = vunpack.c.h.bf16 %v3442_v27  ;;  %v992_v27 = vunpack.c.h.bf16 %v3467_v6  ;;  %v282_v6 = vld [vmem:[#allocation2 + $0x8] sm:$0xff] }
 0x13f   : > { %4709 = vst [vmem:[#allocation91_spill] sm:$0xff] %v3907_v23  ;;  %v1251_v23 = vunpack.c.l.bf16 %v3920_v36  ;;  %1734 = vmatpush.msrb.mxu0 %v1001_v32  ;;  %1753 = vmatpush.msrb.mxu1 %v1086_v43  ;;  %v1436_v32 = vpop.f32.mrf.mxu1  ;;  %v1456_v43 = vpop.f32.mrf.mxu2 }
 0x140   : > { %4710 = vst [vmem:[#allocation92_spill] sm:$0xff] %v3912_v51  ;;  %v1246_v51 = vunpack.c.l.bf16 %v3936_v54  ;;  %v1377_v40 = vadd.f32 %v1376_v17, %v1357_v11  ;;  %v1241_v11 = vunpack.c.l.bf16 %v3947_v5  ;;  %1715 = vmatmul.f32.vlgmr.msra.gmra.mxu3 %v3963_v24  ;;  %v907_v17 = vunpack.c.h.bf16 %v3460_v48 }
 0x141   : > { %4711 = vst [vmem:[#allocation93_spill] sm:$0xff] %v3915_v20  ;;  %v1161_v20 = vunpack.c.l.bf16 %v3933_v61  ;;  %1792 = vmatpush.msrb.mxu3 %v1251_v23  ;;  %v752_v23 = vunpack.c.h.bf16 %v3436_v55  ;;  %1799 = vmatpush.msra.mxu0 %v757_v41  ;;  %v747_v55 = vunpack.c.h.bf16 %v3453_v3  ;;  %v827_v3 = vunpack.c.h.bf16 %v3475_v10 }
 0x142   : > { %4712 = vst [vmem:[#allocation94_spill] sm:$0xff] %v3920_v36  ;;  %v1396_v36 = vpop.f32.mrf.mxu3  ;;  %1754 = vmatpush.msrb.mxu1 %v1081_v7  ;;  %v987_v48 = vunpack.c.h.bf16 %v3483_v63  ;;  %v822_v10 = vunpack.c.h.bf16 %v3493_v26  ;;  %v982_v63 = vunpack.c.h.bf16 %v3501_v33  ;;  %v817_v26 = vunpack.c.h.bf16 %v3510_v19 }
 0x143   : > { %v1397_v13 = vadd.f32 %v1396_v36, %v1377_v40  ;;  %1774 = vmatpush.msrb.mxu2 %v1161_v20  ;;  %1793 = vmatpush.msrb.mxu3 %v1246_v51  ;;  %v912_v36 = vunpack.c.h.bf16 %v3445_v52  ;;  %v997_v51 = vunpack.c.h.bf16 %v3450_v47  ;;  %v832_v20 = vunpack.c.h.bf16 %v3457_v59  ;;  %v3973_v40 = vld [vmem:[%s2732_s26 + $0x8] sm:$0xff] }
 0x144   : > { %1675 = vmatmul.f32.vlgmr.msra.gmra.mxu1 %v3973_v40  ;;  %1800 = vmatpush.msra.mxu0 %v752_v23  ;;  %v742_v47 = vunpack.c.h.bf16 %v3472_v12  ;;  %v902_v59 = vunpack.c.h.bf16 %v3480_v16  ;;  %v737_v12 = vunpack.c.h.bf16 %v3490_v25  ;;  %v897_v16 = vunpack.c.h.bf16 %v3498_v30  ;;  %v3995_v25 = vld [vmem:[%s2732_s26 + $0x38] sm:$0xff] }
 0x145   : > { %v1417_v4 = vadd.f32 %v1416_v29, %v1397_v13  ;;  %1839 = vmatpush.msra.mxu2 %v917_v56  ;;  %1794 = vmatpush.msrb.mxu3 %v1241_v11  ;;  %v3982_v13 = vld [vmem:[%s2732_s26 + $0x30] sm:$0xff]  ;;  %v732_v11 = vunpack.c.h.bf16 %v3504_v0  ;;  %v3991_v29 = vld [vmem:[%s2732_s26 + $0x20] sm:$0xff]  ;;  %v892_v30 = vunpack.c.h.bf16 %v3513_v38  ;;  %v977_v33 = vunpack.c.h.bf16 %v3518_v45 }
 0x146   : > { %1819 = vmatpush.msra.mxu1 %v837_v31  ;;  %1801 = vmatpush.msra.mxu0 %v747_v55  ;;  %v727_v0 = vunpack.c.h.bf16 %v3521_v46  ;;  %v812_v31 = vunpack.c.h.bf16 %v3525_v49  ;;  %v972_v19 = vunpack.c.h.bf16 %v3535_v57  ;;  %v722_v38 = vunpack.c.h.bf16 %v3538_v58 }
 0x147   : > { %v1437_v52 = vadd.f32 %v1436_v32, %v1417_v4  ;;  %1840 = vmatpush.msra.mxu2 %v912_v36  ;;  %1859 = vmatpush.msra.mxu3 %v997_v51  ;;  %v887_v36 = vunpack.c.h.bf16 %v3528_v50  ;;  %v4005_v4 = vld [vmem:[%s2732_s26 + $0x28] sm:$0xff]  ;;  %v807_v45 = vunpack.c.h.bf16 %v3543_v62  ;;  %v882_v46 = vunpack.c.h.bf16 %v3546_v18  ;;  %v4716_v32 = vld [vmem:[#allocation17_spill] sm:$0xff] }
 0x148   : > { %1820 = vmatpush.msra.mxu1 %v832_v20  ;;  %1775 = vmatmul.f32.vlgmr.msrb.gmra.mxu2 %v3982_v13  ;;  %v967_v49 = vunpack.c.h.bf16 %v3551_v14  ;;  %v717_v50 = vunpack.c.h.bf16 %v3554_v15  ;;  %v802_v51 = vunpack.c.h.bf16 %v3560_v1  ;;  %v877_v57 = vunpack.c.h.bf16 %v3563_v2  ;;  %v4714_v20 = vld [vmem:[#allocation15_spill] sm:$0xff] }
 0x149   : > { %v1457_v41 = vadd.f32 %v1456_v43, %v1437_v52  ;;  %1841 = vmatpush.msra.mxu2 %v907_v17  ;;  %1860 = vmatpush.msra.mxu3 %v992_v27  ;;  %v962_v58 = vunpack.c.h.bf16 %v3568_v35  ;;  %v712_v62 = vunpack.c.h.bf16 %v3571_v39  ;;  %v797_v18 = vunpack.c.h.bf16 %v3576_v44  ;;  %v4713_v39 = vld [vmem:[#allocation14_spill] sm:$0xff]  ;;  %v4718_v27 = vld [vmem:[#allocation19_spill] sm:$0xff] }
 0x14a   : > { %v1476_v56 = vpop.f32.mrf.mxu3  ;;  %1802 = vmatpush.msra.mxu0 %v742_v47  ;;  %1821 = vmatpush.msra.mxu1 %v827_v3  ;;  %v872_v14 = vunpack.c.h.bf16 %v3579_v60  ;;  %v957_v15 = vunpack.c.h.bf16 %v3584_v8  ;;  %v707_v1 = vunpack.c.h.bf16 %v3587_v28  ;;  %v792_v2 = vunpack.c.h.bf16 %v3592_v22  ;;  %v4715_v60 = vld [vmem:[#allocation16_spill] sm:$0xff]  ;;  %v4717_v28 = vld [vmem:[#allocation18_spill] sm:$0xff]  ;;  %v4720_v47 = vld [vmem:[#allocation21_spill] sm:$0xff] }
 0x14b   : > { %v1477_v7 = vadd.f32 %v1476_v56, %v1457_v41  ;;  %1842 = vmatpush.msra.mxu2 %v902_v59  ;;  %1861 = vmatpush.msra.mxu3 %v987_v48  ;;  %v867_v35 = vunpack.c.h.bf16 %v3595_v9  ;;  %v952_v55 = vunpack.c.h.bf16 %v4713_v39  ;;  %v702_v44 = vunpack.c.h.bf16 %v4714_v20  ;;  %v4719_v9 = vld [vmem:[#allocation20_spill] sm:$0xff]  ;;  %v4721_v59 = vld [vmem:[#allocation22_spill] sm:$0xff]  ;;  %v4722_v41 = vld [vmem:[#allocation23_spill] sm:$0xff] }
 0x14c   : > { %1735 = vmatmul.f32.vlgmr.msrb.gmra.mxu0 %v3991_v29  ;;  %1795 = vmatmul.f32.vlgmr.msrb.gmra.mxu3 %v3995_v25  ;;  %v787_v17 = vunpack.c.h.bf16 %v4715_v60  ;;  %v862_v8 = vunpack.c.h.bf16 %v4716_v32  ;;  %v947_v43 = vunpack.c.h.bf16 %v4717_v28  ;;  %v697_v22 = vunpack.c.h.bf16 %v4718_v27  ;;  %v4738_v39 = vld [vmem:[#allocation39_spill] sm:$0xff]  ;;  %v4739_v20 = vld [vmem:[#allocation40_spill] sm:$0xff]  ;;  %v4740_v60 = vld [vmem:[#allocation41_spill] sm:$0xff] }
 0x14d   : > { %v2119_v23 = vadd.f32 %v1477_v7, %v282_v6  ;;  %1803 = vmatpush.msra.mxu0 %v737_v12  ;;  %1822 = vmatpush.msra.mxu1 %v822_v10  ;;  %v782_v52 = vunpack.c.h.bf16 %v4719_v9  ;;  %v857_v3 = vunpack.c.h.bf16 %v4720_v47  ;;  %v942_v48 = vunpack.c.h.bf16 %v4721_v59  ;;  %v4723_v6 = vld [vmem:[#allocation24_spill] sm:$0xff]  ;;  %v4724_v10 = vld [vmem:[#allocation25_spill] sm:$0xff]  ;;  %v4741_v32 = vld [vmem:[#allocation42_spill] sm:$0xff] }
 0x14e   : > { %1843 = vmatpush.msra.mxu2 %v897_v16  ;;  %1862 = vmatpush.msra.mxu3 %v982_v63  ;;  %v692_v56 = vunpack.c.h.bf16 %v4722_v41  ;;  %v777_v12 = vunpack.c.h.bf16 %v4723_v6  ;;  %v852_v7 = vunpack.c.h.bf16 %v4724_v10  ;;  %v4725_v16 = vld [vmem:[#allocation26_spill] sm:$0xff]  ;;  %v4742_v28 = vld [vmem:[#allocation43_spill] sm:$0xff]  ;;  %v4743_v27 = vld [vmem:[#allocation44_spill] sm:$0xff] }
 0x14f   : > { %2124 = vst [vmem:[#allocation2 + $0x8] sm:$0xff] %v2119_v23  ;;  %1755 = vmatmul.f32.vlgmr.msrb.gmra.mxu1 %v4005_v4  ;;  %1804 = vmatpush.msra.mxu0 %v732_v11  ;;  %v937_v63 = vunpack.c.h.bf16 %v4725_v16  ;;  %v4726_v11 = vld [vmem:[#allocation27_spill] sm:$0xff]  ;;  %v4744_v9 = vld [vmem:[#allocation45_spill] sm:$0xff]  ;;  %v4745_v47 = vld [vmem:[#allocation46_spill] sm:$0xff] }
 0x150   : > { %1823 = vmatpush.msra.mxu1 %v817_v26  ;;  %1844 = vmatpush.msra.mxu2 %v892_v30  ;;  %v687_v23 = vunpack.c.h.bf16 %v4726_v11  ;;  %v4727_v26 = vld [vmem:[#allocation28_spill] sm:$0xff]  ;;  %v4746_v59 = vld [vmem:[#allocation47_spill] sm:$0xff]  ;;  %v4748_v6 = vld [vmem:[#allocation49_spill] sm:$0xff] }
 0x151   : > { %1863 = vmatpush.msra.mxu3 %v977_v33  ;;  %1805 = vmatpush.msra.mxu0 %v727_v0  ;;  %v772_v30 = vunpack.c.h.bf16 %v4727_v26  ;;  %v4728_v33 = vld [vmem:[#allocation29_spill] sm:$0xff]  ;;  %v4747_v41 = vld [vmem:[#allocation48_spill] sm:$0xff]  ;;  %v4749_v10 = vld [vmem:[#allocation50_spill] sm:$0xff] }
 0x152   : > { %1824 = vmatpush.msra.mxu1 %v812_v31  ;;  %1845 = vmatpush.msra.mxu2 %v887_v36  ;;  %v847_v0 = vunpack.c.h.bf16 %v4728_v33  ;;  %v4729_v31 = vld [vmem:[#allocation30_spill] sm:$0xff]  ;;  %v4750_v16 = vld [vmem:[#allocation51_spill] sm:$0xff]  ;;  %v4751_v11 = vld [vmem:[#allocation52_spill] sm:$0xff] }
 0x153   : > { %1864 = vmatpush.msra.mxu3 %v972_v19  ;;  %1806 = vmatpush.msra.mxu0 %v722_v38  ;;  %v932_v36 = vunpack.c.h.bf16 %v4729_v31  ;;  %v4730_v19 = vld [vmem:[#allocation31_spill] sm:$0xff]  ;;  %v4752_v26 = vld [vmem:[#allocation53_spill] sm:$0xff]  ;;  %v4753_v33 = vld [vmem:[#allocation54_spill] sm:$0xff] }
 0x154   : > { %1825 = vmatpush.msra.mxu1 %v807_v45  ;;  %1846 = vmatpush.msra.mxu2 %v882_v46  ;;  %v682_v38 = vunpack.c.h.bf16 %v4730_v19  ;;  %v4731_v45 = vld [vmem:[#allocation32_spill] sm:$0xff]  ;;  %v4754_v31 = vld [vmem:[#allocation55_spill] sm:$0xff] }
 0x155   : > { %1865 = vmatpush.msra.mxu3 %v967_v49  ;;  %1807 = vmatpush.msra.mxu0 %v717_v50  ;;  %v767_v46 = vunpack.c.h.bf16 %v4731_v45  ;;  %v4732_v49 = vld [vmem:[#allocation33_spill] sm:$0xff]  ;;  %v4755_v19 = vld [vmem:[#allocation56_spill] sm:$0xff] }
 0x156   : > { %1826 = vmatpush.msra.mxu1 %v802_v51  ;;  %1847 = vmatpush.msra.mxu2 %v877_v57  ;;  %v842_v50 = vunpack.c.h.bf16 %v4732_v49  ;;  %v4733_v51 = vld [vmem:[#allocation34_spill] sm:$0xff]  ;;  %v4756_v45 = vld [vmem:[#allocation57_spill] sm:$0xff] }
 0x157   : > { %1866 = vmatpush.msra.mxu3 %v962_v58  ;;  %1808 = vmatpush.msra.mxu0 %v712_v62  ;;  %v927_v57 = vunpack.c.h.bf16 %v4733_v51  ;;  %v4734_v58 = vld [vmem:[#allocation35_spill] sm:$0xff]  ;;  %v4757_v49 = vld [vmem:[#allocation58_spill] sm:$0xff] }
 0x158   : > { %1827 = vmatpush.msra.mxu1 %v797_v18  ;;  %1848 = vmatpush.msra.mxu2 %v872_v14  ;;  %v1077_v62 = vunpack.c.h.bf16 %v4734_v58  ;;  %v4735_v18 = vld [vmem:[#allocation36_spill] sm:$0xff]  ;;  %v4758_v51 = vld [vmem:[#allocation59_spill] sm:$0xff] }
 0x159   : > { %1867 = vmatpush.msra.mxu3 %v957_v15  ;;  %1809 = vmatpush.msra.mxu0 %v707_v1  ;;  %v1237_v14 = vunpack.c.h.bf16 %v4735_v18  ;;  %v4736_v15 = vld [vmem:[#allocation37_spill] sm:$0xff]  ;;  %v4759_v58 = vld [vmem:[#allocation60_spill] sm:$0xff] }
 0x15a   : > { %1828 = vmatpush.msra.mxu1 %v792_v2  ;;  %1849 = vmatpush.msra.mxu2 %v867_v35  ;;  %v762_v1 = vunpack.c.h.bf16 %v4736_v15  ;;  %v4737_v2 = vld [vmem:[#allocation38_spill] sm:$0xff]  ;;  %v4760_v18 = vld [vmem:[#allocation61_spill] sm:$0xff] }
 0x15b   : > { %1868 = vmatpush.msra.mxu3 %v952_v55  ;;  %1810 = vmatpush.msra.mxu0 %v702_v44  ;;  %v922_v35 = vunpack.c.h.bf16 %v4737_v2  ;;  %v1072_v55 = vunpack.c.h.bf16 %v4738_v39  ;;  %v1157_v44 = vunpack.c.h.bf16 %v4739_v20  ;;  %v4761_v15 = vld [vmem:[#allocation62_spill] sm:$0xff]  ;;  %v4762_v2 = vld [vmem:[#allocation63_spill] sm:$0xff]  ;;  %v4763_v39 = vld [vmem:[#allocation64_spill] sm:$0xff] }
 0x15c   : > { %1829 = vmatpush.msra.mxu1 %v787_v17  ;;  %1850 = vmatpush.msra.mxu2 %v862_v8  ;;  %v1232_v17 = vunpack.c.h.bf16 %v4740_v60  ;;  %v1317_v8 = vunpack.c.h.bf16 %v4741_v32  ;;  %v4764_v20 = vld [vmem:[#allocation65_spill] sm:$0xff]  ;;  %v4765_v60 = vld [vmem:[#allocation66_spill] sm:$0xff]  ;;  %v4766_v32 = vld [vmem:[#allocation67_spill] sm:$0xff] }
 0x15d   : > { %1869 = vmatpush.msra.mxu3 %v947_v43  ;;  %1811 = vmatpush.msra.mxu0 %v697_v22  ;;  %v1067_v43 = vunpack.c.h.bf16 %v4742_v28  ;;  %v1152_v22 = vunpack.c.h.bf16 %v4743_v27  ;;  %v4767_v28 = vld [vmem:[#allocation68_spill] sm:$0xff]  ;;  %v4768_v27 = vld [vmem:[#allocation69_spill] sm:$0xff] }
 0x15e   : > { %1830 = vmatpush.msra.mxu1 %v782_v52  ;;  %1851 = vmatpush.msra.mxu2 %v857_v3  ;;  %v1227_v52 = vunpack.c.h.bf16 %v4744_v9  ;;  %v1312_v3 = vunpack.c.h.bf16 %v4745_v47  ;;  %v4769_v9 = vld [vmem:[#allocation70_spill] sm:$0xff]  ;;  %v4770_v47 = vld [vmem:[#allocation71_spill] sm:$0xff] }
 0x15f   : > { %1870 = vmatpush.msra.mxu3 %v942_v48  ;;  %1812 = vmatpush.msra.mxu0 %v692_v56  ;;  %v1062_v48 = vunpack.c.h.bf16 %v4746_v59  ;;  %v1147_v56 = vunpack.c.h.bf16 %v4747_v41  ;;  %v4771_v59 = vld [vmem:[#allocation72_spill] sm:$0xff]  ;;  %v4772_v41 = vld [vmem:[#allocation73_spill] sm:$0xff] }
 0x160   : > { %1831 = vmatpush.msra.mxu1 %v777_v12  ;;  %1852 = vmatpush.msra.mxu2 %v852_v7  ;;  %v1222_v12 = vunpack.c.h.bf16 %v4748_v6  ;;  %v1307_v7 = vunpack.c.h.bf16 %v4749_v10  ;;  %v4773_v6 = vld [vmem:[#allocation74_spill] sm:$0xff]  ;;  %v4774_v10 = vld [vmem:[#allocation75_spill] sm:$0xff] }
 0x161   : > { %1871 = vmatpush.msra.mxu3 %v937_v63  ;;  %1813 = vmatpush.msra.mxu0 %v687_v23  ;;  %v1057_v63 = vunpack.c.h.bf16 %v4750_v16  ;;  %v1142_v23 = vunpack.c.h.bf16 %v4751_v11  ;;  %v4775_v16 = vld [vmem:[#allocation76_spill] sm:$0xff]  ;;  %v4776_v11 = vld [vmem:[#allocation77_spill] sm:$0xff] }
 0x162   : > { %1832 = vmatpush.msra.mxu1 %v772_v30  ;;  %1853 = vmatpush.msra.mxu2 %v847_v0  ;;  %v1217_v30 = vunpack.c.h.bf16 %v4752_v26  ;;  %v1302_v0 = vunpack.c.h.bf16 %v4753_v33  ;;  %v4777_v26 = vld [vmem:[#allocation78_spill] sm:$0xff]  ;;  %v4778_v33 = vld [vmem:[#allocation79_spill] sm:$0xff] }
 0x163   : > { %1872 = vmatpush.msra.mxu3 %v932_v36  ;;  %1814 = vmatpush.msra.mxu0 %v682_v38  ;;  %v1052_v36 = vunpack.c.h.bf16 %v4754_v31  ;;  %v1137_v38 = vunpack.c.h.bf16 %v4755_v19  ;;  %v4779_v31 = vld [vmem:[#allocation80_spill] sm:$0xff]  ;;  %v4780_v19 = vld [vmem:[#allocation81_spill] sm:$0xff] }
 0x164   : > { %1833 = vmatpush.msra.mxu1 %v767_v46  ;;  %1854 = vmatpush.msra.mxu2 %v842_v50  ;;  %v1212_v46 = vunpack.c.h.bf16 %v4756_v45  ;;  %v1297_v50 = vunpack.c.h.bf16 %v4757_v49  ;;  %v4781_v45 = vld [vmem:[#allocation82_spill] sm:$0xff]  ;;  %v4782_v49 = vld [vmem:[#allocation83_spill] sm:$0xff] }
 0x165   : > { %1873 = vmatpush.msra.mxu3 %v927_v57  ;;  %1879 = vmatpush.msrb.mxu0 %v1077_v62  ;;  %v1047_v57 = vunpack.c.h.bf16 %v4758_v51  ;;  %v1132_v62 = vunpack.c.h.bf16 %v4759_v58  ;;  %v4783_v51 = vld [vmem:[#allocation84_spill] sm:$0xff]  ;;  %v4784_v58 = vld [vmem:[#allocation85_spill] sm:$0xff] }
 0x166   : > { %1919 = vmatpush.msrb.mxu2 %v1237_v14  ;;  %1834 = vmatpush.msra.mxu1 %v762_v1  ;;  %v1207_v14 = vunpack.c.h.bf16 %v4760_v18  ;;  %v1292_v1 = vunpack.c.h.bf16 %v4761_v15  ;;  %v4785_v18 = vld [vmem:[#allocation86_spill] sm:$0xff]  ;;  %v4786_v15 = vld [vmem:[#allocation87_spill] sm:$0xff] }
 0x167   : > { %1874 = vmatpush.msra.mxu3 %v922_v35  ;;  %1880 = vmatpush.msrb.mxu0 %v1072_v55  ;;  %v1042_v35 = vunpack.c.h.bf16 %v4762_v2  ;;  %v1127_v55 = vunpack.c.h.bf16 %v4763_v39  ;;  %v1496_v2 = vpop.f32.mrf.mxu0 }
 0x168   : > { %1899 = vmatpush.msrb.mxu1 %v1157_v44  ;;  %1920 = vmatpush.msrb.mxu2 %v1232_v17  ;;  %v1202_v44 = vunpack.c.h.bf16 %v4764_v20  ;;  %v1287_v17 = vunpack.c.h.bf16 %v4765_v60 }
 0x169   : > { %1939 = vmatpush.msrb.mxu3 %v1317_v8  ;;  %1881 = vmatpush.msrb.mxu0 %v1067_v43  ;;  %v1037_v8 = vunpack.c.h.bf16 %v4766_v32  ;;  %v1122_v43 = vunpack.c.h.bf16 %v4767_v28 }
 0x16a   : > { %1900 = vmatpush.msrb.mxu1 %v1152_v22  ;;  %1921 = vmatpush.msrb.mxu2 %v1227_v52  ;;  %v1197_v22 = vunpack.c.h.bf16 %v4768_v27  ;;  %v1282_v52 = vunpack.c.h.bf16 %v4769_v9  ;;  %v1536_v9 = vpop.f32.mrf.mxu2 }
 0x16b   : > { %1940 = vmatpush.msrb.mxu3 %v1312_v3  ;;  %1882 = vmatpush.msrb.mxu0 %v1062_v48  ;;  %v1032_v3 = vunpack.c.h.bf16 %v4770_v47  ;;  %v1117_v48 = vunpack.c.h.bf16 %v4771_v59  ;;  %v1002_v59 = vunpack.c.h.bf16 %v3925_v42 }
 0x16c   : > { %1901 = vmatpush.msrb.mxu1 %v1147_v56  ;;  %1922 = vmatpush.msrb.mxu2 %v1222_v12  ;;  %v1192_v56 = vunpack.c.h.bf16 %v4772_v41  ;;  %v1277_v12 = vunpack.c.h.bf16 %v4773_v6  ;;  %v342_v41 = vld [vmem:[%s2739_s25 + $0x13c] sm:$0xf]  ;;  %v1162_v6 = vunpack.c.h.bf16 %v3933_v61  ;;  %v1082_v61 = vunpack.c.h.bf16 %v3944_v34 }
 0x16d   : > { %1941 = vmatpush.msrb.mxu3 %v1307_v7  ;;  %1883 = vmatpush.msrb.mxu0 %v1057_v63  ;;  %v1027_v7 = vunpack.c.h.bf16 %v4774_v10  ;;  %v1112_v63 = vunpack.c.h.bf16 %v4775_v16  ;;  %v339_v16 = vld [vmem:[%s2739_s25 + $0x128] sm:$0xf] }
 0x16e   : > { %1902 = vmatpush.msrb.mxu1 %v1142_v23  ;;  %1923 = vmatpush.msrb.mxu2 %v1217_v30  ;;  %v1187_v23 = vunpack.c.h.bf16 %v4776_v11  ;;  %v1272_v30 = vunpack.c.h.bf16 %v4777_v26  ;;  %v435_v11 = vld [vmem:[%s2739_s25 + $0x3a8] sm:$0xf]  ;;  %v486_v26 = vld [vmem:[%s2739_s25 + $0x4fc] sm:$0xf] }
 0x16f   : > { %1942 = vmatpush.msrb.mxu3 %v1302_v0  ;;  %1884 = vmatpush.msrb.mxu0 %v1052_v36  ;;  %v1022_v0 = vunpack.c.h.bf16 %v4778_v33  ;;  %v1107_v36 = vunpack.c.h.bf16 %v4779_v31  ;;  %v387_v33 = vld [vmem:[%s2739_s25 + $0x268] sm:$0xf]  ;;  %v1576_v31 = vpop.f32.mrf.mxu0  ;;  %v913_v34 = vunpack.c.l.bf16 %v435_v11 }
 0x170   : > { %1903 = vmatpush.msrb.mxu1 %v1137_v38  ;;  %1924 = vmatpush.msrb.mxu2 %v1212_v46  ;;  %v1182_v38 = vunpack.c.h.bf16 %v4780_v19  ;;  %v1267_v46 = vunpack.c.h.bf16 %v4781_v45  ;;  %v483_v19 = vld [vmem:[%s2739_s25 + $0x4e8] sm:$0xf] }
 0x171   : > { %1943 = vmatpush.msrb.mxu3 %v1297_v50  ;;  %1885 = vmatpush.msrb.mxu0 %v1047_v57  ;;  %v1017_v50 = vunpack.c.h.bf16 %v4782_v49  ;;  %v1102_v57 = vunpack.c.h.bf16 %v4783_v51  ;;  %v384_v49 = vld [vmem:[%s2739_s25 + $0x254] sm:$0xf]  ;;  %v429_v51 = vld [vmem:[%s2739_s25 + $0x380] sm:$0xf] }
 0x172   : > { %1904 = vmatpush.msrb.mxu1 %v1132_v62  ;;  %1925 = vmatpush.msrb.mxu2 %v1207_v14  ;;  %v1177_v62 = vunpack.c.h.bf16 %v4784_v58  ;;  %v1262_v14 = vunpack.c.h.bf16 %v4785_v18  ;;  %v1616_v58 = vpop.f32.mrf.mxu2 }
 0x173   : > { %1944 = vmatpush.msrb.mxu3 %v1292_v1  ;;  %1886 = vmatpush.msrb.mxu0 %v1042_v35  ;;  %v1012_v1 = vunpack.c.h.bf16 %v4786_v15  ;;  %v4787_v35 = vld [vmem:[#allocation88_spill] sm:$0xff]  ;;  %v828_v15 = vunpack.c.l.bf16 %v384_v49  ;;  %v363_v49 = vld [vmem:[%s2739_s25 + $0x1c8] sm:$0xf] }
 0x174   : > { %1905 = vmatpush.msrb.mxu1 %v1127_v55  ;;  %1926 = vmatpush.msrb.mxu2 %v1202_v44  ;;  %v1097_v39 = vunpack.c.h.bf16 %v4787_v35  ;;  %v4788_v55 = vld [vmem:[#allocation89_spill] sm:$0xff]  ;;  %v4789_v44 = vld [vmem:[#allocation90_spill] sm:$0xff]  ;;  %v903_v35 = vunpack.c.l.bf16 %v429_v51 }
 0x175   : > { %1945 = vmatpush.msrb.mxu3 %v1287_v17  ;;  %1887 = vmatpush.msrb.mxu0 %v1037_v8  ;;  %v1172_v20 = vunpack.c.h.bf16 %v4788_v55  ;;  %v1257_v60 = vunpack.c.h.bf16 %v4789_v44  ;;  %v4790_v17 = vld [vmem:[#allocation91_spill] sm:$0xff]  ;;  %v4791_v8 = vld [vmem:[#allocation92_spill] sm:$0xff] }
 0x176   : > { %1906 = vmatpush.msrb.mxu1 %v1122_v43  ;;  %1927 = vmatpush.msrb.mxu2 %v1197_v22  ;;  %v1007_v32 = vunpack.c.h.bf16 %v4790_v17  ;;  %v1092_v28 = vunpack.c.h.bf16 %v4791_v8  ;;  %v4792_v43 = vld [vmem:[#allocation93_spill] sm:$0xff]  ;;  %v1516_v22 = vpop.f32.mrf.mxu1  ;;  %v426_v55 = vld [vmem:[%s2739_s25 + $0x36c] sm:$0xf] }
 0x177   : > { %1946 = vmatpush.msrb.mxu3 %v1282_v52  ;;  %1888 = vmatpush.msrb.mxu0 %v1032_v3  ;;  %v1167_v27 = vunpack.c.h.bf16 %v4792_v43  ;;  %v4793_v52 = vld [vmem:[#allocation94_spill] sm:$0xff]  ;;  %v1517_v3 = vadd.f32 %v1516_v22, %v1496_v2  ;;  %v283_v17 = vld [vmem:[#allocation2] sm:$0xff]  ;;  %v898_v22 = vunpack.c.l.bf16 %v426_v55 }
 0x178   : > { %1907 = vmatpush.msrb.mxu1 %v1117_v48  ;;  %1928 = vmatpush.msrb.mxu2 %v1192_v56  ;;  %v1252_v47 = vunpack.c.h.bf16 %v4793_v52  ;;  %v1087_v48 = vunpack.c.h.bf16 %v3928_v37  ;;  %v438_v56 = vld [vmem:[%s2739_s25 + $0x3bc] sm:$0xf]  ;;  %v758_v37 = vunpack.c.l.bf16 %v342_v41  ;;  %v381_v2 = vld [vmem:[%s2739_s25 + $0x240] sm:$0xf]  ;;  %v423_v43 = vld [vmem:[%s2739_s25 + $0x358] sm:$0xf] }
 0x179   : > { %1947 = vmatpush.msrb.mxu3 %v1277_v12  ;;  %1889 = vmatpush.msrb.mxu0 %v1027_v7  ;;  %v1247_v12 = vunpack.c.h.bf16 %v3936_v54  ;;  %v1537_v10 = vadd.f32 %v1536_v9, %v1517_v3  ;;  %v1556_v7 = vpop.f32.mrf.mxu3  ;;  %v918_v42 = vunpack.c.l.bf16 %v438_v56  ;;  %v1242_v54 = vunpack.c.h.bf16 %v3947_v5  ;;  %v474_v52 = vld [vmem:[%s2739_s25 + $0x4ac] sm:$0xf] }
 0x17a   : > { %1908 = vmatpush.msrb.mxu1 %v1112_v63  ;;  %1929 = vmatpush.msrb.mxu2 %v1187_v23  ;;  %v390_v63 = vld [vmem:[%s2739_s25 + $0x27c] sm:$0xf]  ;;  %v823_v8 = vunpack.c.l.bf16 %v381_v2  ;;  %v893_v56 = vunpack.c.l.bf16 %v423_v43  ;;  %v456_v2 = vld [vmem:[%s2739_s25 + $0x434] sm:$0xf]  ;;  %v354_v43 = vld [vmem:[%s2739_s25 + $0x18c] sm:$0xf] }
 0x17b   : > { %1948 = vmatpush.msrb.mxu3 %v1272_v30  ;;  %1890 = vmatpush.msrb.mxu0 %v1022_v0  ;;  %v1557_v23 = vadd.f32 %v1556_v7, %v1537_v10  ;;  %v336_v30 = vld [vmem:[%s2739_s25 + $0x114] sm:$0xf]  ;;  %v978_v10 = vunpack.c.l.bf16 %v474_v52  ;;  %v450_v52 = vld [vmem:[%s2739_s25 + $0x40c] sm:$0xf] }
 0x17c   : > { %1909 = vmatpush.msrb.mxu1 %v1107_v36  ;;  %1930 = vmatpush.msrb.mxu2 %v1182_v38  ;;  %v432_v0 = vld [vmem:[%s2739_s25 + $0x394] sm:$0xf]  ;;  %v838_v36 = vunpack.c.l.bf16 %v390_v63  ;;  %v998_v38 = vunpack.c.l.bf16 %v486_v26  ;;  %v748_v45 = vunpack.c.l.bf16 %v336_v30  ;;  %v318_v63 = vld [vmem:[%s2739_s25 + $0x9c] sm:$0xf] }
 0x17d   : > { %1949 = vmatpush.msrb.mxu3 %v1267_v46  ;;  %1891 = vmatpush.msrb.mxu0 %v1017_v50  ;;  %v1577_v5 = vadd.f32 %v1576_v31, %v1557_v23  ;;  %v333_v46 = vld [vmem:[%s2739_s25 + $0x100] sm:$0xf]  ;;  %v833_v50 = vunpack.c.l.bf16 %v387_v33  ;;  %v315_v33 = vld [vmem:[%s2739_s25 + $0x88] sm:$0xf]  ;;  %v366_v31 = vld [vmem:[%s2739_s25 + $0x1dc] sm:$0xf] }
 0x17e   : > { %1910 = vmatpush.msrb.mxu1 %v1102_v57  ;;  %1931 = vmatpush.msrb.mxu2 %v1177_v62  ;;  %v480_v57 = vld [vmem:[%s2739_s25 + $0x4d4] sm:$0xf]  ;;  %v993_v62 = vunpack.c.l.bf16 %v483_v19 }
 0x17f   : > { %1950 = vmatpush.msrb.mxu3 %v1262_v14  ;;  %1892 = vmatpush.msrb.mxu0 %v1012_v1  ;;  %v743_v14 = vunpack.c.l.bf16 %v333_v46  ;;  %v330_v1 = vld [vmem:[%s2739_s25 + $0xec] sm:$0xf]  ;;  %v713_v46 = vunpack.c.l.bf16 %v315_v33  ;;  %v531_v33 = vld [vmem:[%s2739_s25 + $0x628] sm:$0xf] }
 0x180   : > { %1911 = vmatpush.msrb.mxu1 %v1097_v39  ;;  %1932 = vmatpush.msrb.mxu2 %v1172_v20  ;;  %v988_v39 = vunpack.c.l.bf16 %v480_v57  ;;  %v477_v20 = vld [vmem:[%s2739_s25 + $0x4c0] sm:$0xf]  ;;  %v459_v57 = vld [vmem:[%s2739_s25 + $0x448] sm:$0xf] }
 0x181   : > { %1951 = vmatpush.msrb.mxu3 %v1257_v60  ;;  %1893 = vmatpush.msrb.mxu0 %v1007_v32  ;;  %v327_v60 = vld [vmem:[%s2739_s25 + $0xd8] sm:$0xf]  ;;  %v738_v32 = vunpack.c.l.bf16 %v330_v1  ;;  %v983_v9 = vunpack.c.l.bf16 %v477_v20  ;;  %v357_v20 = vld [vmem:[%s2739_s25 + $0x1a0] sm:$0xf] }
 0x182   : > { %1912 = vmatpush.msrb.mxu1 %v1092_v28  ;;  %1933 = vmatpush.msrb.mxu2 %v1167_v27  ;;  %v378_v28 = vld [vmem:[%s2739_s25 + $0x22c] sm:$0xf]  ;;  %v733_v3 = vunpack.c.l.bf16 %v327_v60 }
 0x183   : > { %1952 = vmatpush.msrb.mxu3 %v1252_v47  ;;  %1855 = vmatmul.f32.vlgmr.msra.gmra.mxu2 %v3950_v21  ;;  %v753_v21 = vunpack.c.l.bf16 %v339_v16  ;;  %v324_v47 = vld [vmem:[%s2739_s25 + $0xc4] sm:$0xf]  ;;  %v818_v41 = vunpack.c.l.bf16 %v378_v28 }
 0x184   : > { %1894 = vmatpush.msrb.mxu0 %v1002_v59  ;;  %1913 = vmatpush.msrb.mxu1 %v1087_v48  ;;  %v420_v59 = vld [vmem:[%s2739_s25 + $0x344] sm:$0xf]  ;;  %v728_v7 = vunpack.c.l.bf16 %v324_v47 }
 0x185   : > { %1934 = vmatpush.msrb.mxu2 %v1162_v6  ;;  %1953 = vmatpush.msrb.mxu3 %v1247_v12  ;;  %v471_v6 = vld [vmem:[%s2739_s25 + $0x498] sm:$0xf]  ;;  %v321_v12 = vld [vmem:[%s2739_s25 + $0xb0] sm:$0xf]  ;;  %v372_v16 = vld [vmem:[%s2739_s25 + $0x204] sm:$0xf] }
 0x186   : > { %1815 = vmatmul.f32.vlgmr.msra.gmra.mxu0 %v3959_v53  ;;  %1875 = vmatmul.f32.vlgmr.msra.gmra.mxu3 %v3963_v24  ;;  %v908_v53 = vunpack.c.l.bf16 %v432_v0  ;;  %v1596_v24 = vpop.f32.mrf.mxu1  ;;  %v973_v11 = vunpack.c.l.bf16 %v471_v6  ;;  %v723_v23 = vunpack.c.l.bf16 %v321_v12  ;;  %v808_v26 = vunpack.c.l.bf16 %v372_v16  ;;  %v300_v47 = vld [vmem:[%s2739_s25 + $0x24] sm:$0xf]  ;;  %v447_v6 = vld [vmem:[%s2739_s25 + $0x3f8] sm:$0xf]  ;;  %v297_v12 = vld [vmem:[%s2739_s25 + $0x10] sm:$0xf] }
 0x187   : > { %1959 = vmatpush.msra.mxu0 %v758_v37  ;;  %1999 = vmatpush.msra.mxu2 %v918_v42  ;;  %v1597_v18 = vadd.f32 %v1596_v24, %v1577_v5  ;;  %v417_v37 = vld [vmem:[%s2739_s25 + $0x330] sm:$0xf]  ;;  %v468_v42 = vld [vmem:[%s2739_s25 + $0x484] sm:$0xf]  ;;  %v718_v0 = vunpack.c.l.bf16 %v318_v63  ;;  %v462_v5 = vld [vmem:[%s2739_s25 + $0x45c] sm:$0xf] }
 0x188   : > { %1914 = vmatpush.msrb.mxu1 %v1082_v61  ;;  %1954 = vmatpush.msrb.mxu3 %v1242_v54  ;;  %v369_v61 = vld [vmem:[%s2739_s25 + $0x1f0] sm:$0xf]  ;;  %v414_v54 = vld [vmem:[%s2739_s25 + $0x31c] sm:$0xf]  ;;  %v883_v30 = vunpack.c.l.bf16 %v417_v37  ;;  %v309_v24 = vld [vmem:[%s2739_s25 + $0x60] sm:$0xf] }
 0x189   : > { %1835 = vmatmul.f32.vlgmr.msra.gmra.mxu1 %v3973_v40  ;;  %1960 = vmatpush.msra.mxu0 %v753_v21  ;;  %v1617_v44 = vadd.f32 %v1616_v58, %v1597_v18  ;;  %v1636_v40 = vpop.f32.mrf.mxu3  ;;  %v465_v21 = vld [vmem:[%s2739_s25 + $0x470] sm:$0xf]  ;;  %v878_v19 = vunpack.c.l.bf16 %v414_v54  ;;  %v958_v58 = vunpack.c.l.bf16 %v462_v5  ;;  %v360_v18 = vld [vmem:[%s2739_s25 + $0x1b4] sm:$0xf]  ;;  %v703_v55 = vunpack.c.l.bf16 %v309_v24  ;;  %v348_v16 = vld [vmem:[%s2739_s25 + $0x164] sm:$0xf] }
 0x18a   : > { %1979 = vmatpush.msra.mxu1 %v838_v36  ;;  %2000 = vmatpush.msra.mxu2 %v913_v34  ;;  %v411_v36 = vld [vmem:[%s2739_s25 + $0x308] sm:$0xf]  ;;  %v803_v34 = vunpack.c.l.bf16 %v369_v61  ;;  %v393_v37 = vld [vmem:[%s2739_s25 + $0x290] sm:$0xf]  ;;  %v534_v63 = vld [vmem:[%s2739_s25 + $0x63c] sm:$0xf] }
 0x18b   : > { %2019 = vmatpush.msra.mxu3 %v998_v38  ;;  %1961 = vmatpush.msra.mxu0 %v748_v45  ;;  %v1637_v27 = vadd.f32 %v1636_v40, %v1617_v44  ;;  %v312_v38 = vld [vmem:[%s2739_s25 + $0x74] sm:$0xf]  ;;  %v963_v45 = vunpack.c.l.bf16 %v465_v21  ;;  %v873_v51 = vunpack.c.l.bf16 %v411_v36  ;;  %v402_v44 = vld [vmem:[%s2739_s25 + $0x2cc] sm:$0xf]  ;;  %v788_v40 = vunpack.c.l.bf16 %v360_v18  ;;  %v630_v61 = vld [vmem:[%s2739_s25 + $0x8bc] sm:$0xf] }
 0x18c   : > { %1980 = vmatpush.msra.mxu1 %v833_v50  ;;  %2001 = vmatpush.msra.mxu2 %v908_v53  ;;  %v408_v50 = vld [vmem:[%s2739_s25 + $0x2f4] sm:$0xf]  ;;  %v798_v53 = vunpack.c.l.bf16 %v366_v31  ;;  %v345_v54 = vld [vmem:[%s2739_s25 + $0x150] sm:$0xf]  ;;  %v582_v31 = vld [vmem:[%s2739_s25 + $0x77c] sm:$0xf] }
 0x18d   : > { %2020 = vmatpush.msra.mxu3 %v993_v62  ;;  %1935 = vmatmul.f32.vlgmr.msrb.gmra.mxu2 %v3982_v13  ;;  %v375_v13 = vld [vmem:[%s2739_s25 + $0x218] sm:$0xf]  ;;  %v2120_v48 = vadd.f32 %v1637_v27, %v283_v17  ;;  %v708_v62 = vunpack.c.l.bf16 %v312_v38  ;;  %v868_v1 = vunpack.c.l.bf16 %v408_v50  ;;  %v453_v17 = vld [vmem:[%s2739_s25 + $0x420] sm:$0xf]  ;;  %v441_v21 = vld [vmem:[%s2739_s25 + $0x3d0] sm:$0xf] }
 0x18e   : > { %1962 = vmatpush.msra.mxu0 %v743_v14  ;;  %1981 = vmatpush.msra.mxu1 %v828_v15  ;;  %v405_v14 = vld [vmem:[%s2739_s25 + $0x2e0] sm:$0xf]  ;;  %v793_v15 = vunpack.c.l.bf16 %v363_v49  ;;  %v399_v27 = vld [vmem:[%s2739_s25 + $0x2b8] sm:$0xf]  ;;  %v627_v36 = vld [vmem:[%s2739_s25 + $0x8a8] sm:$0xf] }
 0x18f   : > { %2002 = vmatpush.msra.mxu2 %v903_v35  ;;  %2021 = vmatpush.msra.mxu3 %v988_v39  ;;  %2125 = vst [vmem:[#allocation2] sm:$0xff] %v2120_v48  ;;  %v306_v35 = vld [vmem:[%s2739_s25 + $0x4c] sm:$0xf]  ;;  %v953_v39 = vunpack.c.l.bf16 %v459_v57  ;;  %v863_v60 = vunpack.c.l.bf16 %v405_v14  ;;  %v396_v48 = vld [vmem:[%s2739_s25 + $0x2a4] sm:$0xf] }
 0x190   : > { %1895 = vmatmul.f32.vlgmr.msrb.gmra.mxu0 %v3991_v29  ;;  %1955 = vmatmul.f32.vlgmr.msrb.gmra.mxu3 %v3995_v25  ;;  %v813_v29 = vunpack.c.l.bf16 %v375_v13  ;;  %v888_v25 = vunpack.c.l.bf16 %v420_v59  ;;  %v698_v28 = vunpack.c.l.bf16 %v306_v35  ;;  %v351_v59 = vld [vmem:[%s2739_s25 + $0x178] sm:$0xf]  ;;  %v678_v5 = vld [vmem:[%s2739_s25 + $0x9fc] sm:$0xf]  ;;  %v528_v38 = vld [vmem:[%s2739_s25 + $0x614] sm:$0xf] }
 0x191   : > { %1963 = vmatpush.msra.mxu0 %v738_v32  ;;  %1982 = vmatpush.msra.mxu1 %v823_v8  ;;  %v303_v32 = vld [vmem:[%s2739_s25 + $0x38] sm:$0xf]  ;;  %v948_v8 = vunpack.c.l.bf16 %v456_v2  ;;  %v579_v49 = vld [vmem:[%s2739_s25 + $0x768] sm:$0xf]  ;;  %v624_v50 = vld [vmem:[%s2739_s25 + $0x894] sm:$0xf] }
 0x192   : > { %2003 = vmatpush.msra.mxu2 %v898_v22  ;;  %2022 = vmatpush.msra.mxu3 %v983_v9  ;;  %v783_v22 = vunpack.c.l.bf16 %v357_v20  ;;  %v858_v9 = vunpack.c.l.bf16 %v402_v44  ;;  %v693_v13 = vunpack.c.l.bf16 %v303_v32  ;;  %v675_v57 = vld [vmem:[%s2739_s25 + $0x9e8] sm:$0xf]  ;;  %v525_v24 = vld [vmem:[%s2739_s25 + $0x600] sm:$0xf]  ;;  %v576_v18 = vld [vmem:[%s2739_s25 + $0x754] sm:$0xf] }
 0x193   : > { %1915 = vmatmul.f32.vlgmr.msrb.gmra.mxu1 %v4005_v4  ;;  %1964 = vmatpush.msra.mxu0 %v733_v3  ;;  %v968_v4 = vunpack.c.l.bf16 %v468_v42  ;;  %v943_v3 = vunpack.c.l.bf16 %v453_v17  ;;  %v444_v42 = vld [vmem:[%s2739_s25 + $0x3e4] sm:$0xf]  ;;  %v621_v14 = vld [vmem:[%s2739_s25 + $0x880] sm:$0xf]  ;;  %v672_v2 = vld [vmem:[%s2739_s25 + $0x9d4] sm:$0xf] }
 0x194   : > { %1983 = vmatpush.msra.mxu1 %v818_v41  ;;  %2004 = vmatpush.msra.mxu2 %v893_v56  ;;  %v778_v41 = vunpack.c.l.bf16 %v354_v43  ;;  %v853_v56 = vunpack.c.l.bf16 %v399_v27  ;;  %v522_v35 = vld [vmem:[%s2739_s25 + $0x5ec] sm:$0xf]  ;;  %v573_v20 = vld [vmem:[%s2739_s25 + $0x740] sm:$0xf]  ;;  %v519_v32 = vld [vmem:[%s2739_s25 + $0x5d8] sm:$0xf] }
 0x195   : > { %2023 = vmatpush.msra.mxu3 %v978_v10  ;;  %1965 = vmatpush.msra.mxu0 %v728_v7  ;;  %v938_v10 = vunpack.c.l.bf16 %v450_v52  ;;  %v688_v7 = vunpack.c.l.bf16 %v300_v47  ;;  %v618_v44 = vld [vmem:[%s2739_s25 + $0x86c] sm:$0xf]  ;;  %v669_v17 = vld [vmem:[%s2739_s25 + $0x9c0] sm:$0xf]  ;;  %v615_v27 = vld [vmem:[%s2739_s25 + $0x858] sm:$0xf] }
 0x196   : > { %1984 = vmatpush.msra.mxu1 %v813_v29  ;;  %2005 = vmatpush.msra.mxu2 %v888_v25  ;;  %v773_v29 = vunpack.c.l.bf16 %v351_v59  ;;  %v848_v25 = vunpack.c.l.bf16 %v396_v48  ;;  %v570_v43 = vld [vmem:[%s2739_s25 + $0x72c] sm:$0xf]  ;;  %v516_v47 = vld [vmem:[%s2739_s25 + $0x5c4] sm:$0xf]  ;;  %v567_v59 = vld [vmem:[%s2739_s25 + $0x718] sm:$0xf] }
 0x197   : > { %2024 = vmatpush.msra.mxu3 %v973_v11  ;;  %1966 = vmatpush.msra.mxu0 %v723_v23  ;;  %v933_v11 = vunpack.c.l.bf16 %v447_v6  ;;  %v683_v23 = vunpack.c.l.bf16 %v297_v12  ;;  %v666_v52 = vld [vmem:[%s2739_s25 + $0x9ac] sm:$0xf]  ;;  %v612_v48 = vld [vmem:[%s2739_s25 + $0x844] sm:$0xf]  ;;  %v663_v6 = vld [vmem:[%s2739_s25 + $0x998] sm:$0xf] }
 0x198   : > { %1985 = vmatpush.msra.mxu1 %v808_v26  ;;  %2006 = vmatpush.msra.mxu2 %v883_v30  ;;  %v768_v26 = vunpack.c.l.bf16 %v348_v16  ;;  %v843_v30 = vunpack.c.l.bf16 %v393_v37  ;;  %v513_v12 = vld [vmem:[%s2739_s25 + $0x5b0] sm:$0xf]  ;;  %v564_v16 = vld [vmem:[%s2739_s25 + $0x704] sm:$0xf] }
 0x199   : > { %2025 = vmatpush.msra.mxu3 %v968_v4  ;;  %1967 = vmatpush.msra.mxu0 %v718_v0  ;;  %v928_v4 = vunpack.c.l.bf16 %v444_v42  ;;  %v1078_v0 = vunpack.c.l.bf16 %v534_v63  ;;  %v609_v37 = vld [vmem:[%s2739_s25 + $0x830] sm:$0xf]  ;;  %v660_v42 = vld [vmem:[%s2739_s25 + $0x984] sm:$0xf]  ;;  %v510_v63 = vld [vmem:[%s2739_s25 + $0x59c] sm:$0xf] }
 0x19a   : > { %1986 = vmatpush.msra.mxu1 %v803_v34  ;;  %2007 = vmatpush.msra.mxu2 %v878_v19  ;;  %v1238_v34 = vunpack.c.l.bf16 %v630_v61  ;;  %v763_v19 = vunpack.c.l.bf16 %v345_v54  ;;  %v561_v61 = vld [vmem:[%s2739_s25 + $0x6f0] sm:$0xf]  ;;  %v606_v54 = vld [vmem:[%s2739_s25 + $0x81c] sm:$0xf] }
 0x19b   : > { %2026 = vmatpush.msra.mxu3 %v963_v45  ;;  %1968 = vmatpush.msra.mxu0 %v713_v46  ;;  %v923_v45 = vunpack.c.l.bf16 %v441_v21  ;;  %v1073_v46 = vunpack.c.l.bf16 %v531_v33  ;;  %v657_v21 = vld [vmem:[%s2739_s25 + $0x970] sm:$0xf]  ;;  %v507_v33 = vld [vmem:[%s2739_s25 + $0x588] sm:$0xf] }
 0x19c   : > { %1987 = vmatpush.msra.mxu1 %v798_v53  ;;  %2008 = vmatpush.msra.mxu2 %v873_v51  ;;  %v1158_v53 = vunpack.c.l.bf16 %v582_v31  ;;  %v1233_v51 = vunpack.c.l.bf16 %v627_v36  ;;  %v558_v31 = vld [vmem:[%s2739_s25 + $0x6dc] sm:$0xf]  ;;  %v603_v36 = vld [vmem:[%s2739_s25 + $0x808] sm:$0xf] }
 0x19d   : > { %2027 = vmatpush.msra.mxu3 %v958_v58  ;;  %1969 = vmatpush.msra.mxu0 %v708_v62  ;;  %v1318_v58 = vunpack.c.l.bf16 %v678_v5  ;;  %v1068_v62 = vunpack.c.l.bf16 %v528_v38  ;;  %v654_v5 = vld [vmem:[%s2739_s25 + $0x95c] sm:$0xf]  ;;  %v504_v38 = vld [vmem:[%s2739_s25 + $0x574] sm:$0xf] }
 0x19e   : > { %1988 = vmatpush.msra.mxu1 %v793_v15  ;;  %2009 = vmatpush.msra.mxu2 %v868_v1  ;;  %v1153_v15 = vunpack.c.l.bf16 %v579_v49  ;;  %v1228_v1 = vunpack.c.l.bf16 %v624_v50  ;;  %v555_v49 = vld [vmem:[%s2739_s25 + $0x6c8] sm:$0xf]  ;;  %v600_v50 = vld [vmem:[%s2739_s25 + $0x7f4] sm:$0xf] }
 0x19f   : > { %2028 = vmatpush.msra.mxu3 %v953_v39  ;;  %1970 = vmatpush.msra.mxu0 %v703_v55  ;;  %v1313_v39 = vunpack.c.l.bf16 %v675_v57  ;;  %v1063_v55 = vunpack.c.l.bf16 %v525_v24  ;;  %v651_v57 = vld [vmem:[%s2739_s25 + $0x948] sm:$0xf]  ;;  %v1278_v24 = vunpack.c.l.bf16 %v654_v5  ;;  %v633_v5 = vld [vmem:[%s2739_s25 + $0x8d0] sm:$0xf] }
 0x1a0   : > { %1989 = vmatpush.msra.mxu1 %v788_v40  ;;  %2010 = vmatpush.msra.mxu2 %v863_v60  ;;  %v1148_v40 = vunpack.c.l.bf16 %v576_v18  ;;  %v1223_v60 = vunpack.c.l.bf16 %v621_v14  ;;  %v552_v18 = vld [vmem:[%s2739_s25 + $0x6b4] sm:$0xf]  ;;  %v1113_v14 = vunpack.c.l.bf16 %v555_v49  ;;  %v1243_v49 = vunpack.c.l.bf16 %v633_v5 }
 0x1a1   : > { %2029 = vmatpush.msra.mxu3 %v948_v8  ;;  %1971 = vmatpush.msra.mxu0 %v698_v28  ;;  %v1308_v8 = vunpack.c.l.bf16 %v672_v2  ;;  %v1058_v28 = vunpack.c.l.bf16 %v522_v35  ;;  %v648_v2 = vld [vmem:[%s2739_s25 + $0x934] sm:$0xf]  ;;  %v1273_v35 = vunpack.c.l.bf16 %v651_v57 }
 0x1a2   : > { %1990 = vmatpush.msra.mxu1 %v783_v22  ;;  %2011 = vmatpush.msra.mxu2 %v858_v9  ;;  %v1143_v22 = vunpack.c.l.bf16 %v573_v20  ;;  %v1218_v9 = vunpack.c.l.bf16 %v618_v44  ;;  %v498_v20 = vld [vmem:[%s2739_s25 + $0x54c] sm:$0xf]  ;;  %v549_v44 = vld [vmem:[%s2739_s25 + $0x6a0] sm:$0xf]  ;;  %v2417_v57 = vld [vmem:[%s2732_s26 + $0x30] sm:$0xff] }
 0x1a3   : > { %2030 = vmatpush.msra.mxu3 %v943_v3  ;;  %1972 = vmatpush.msra.mxu0 %v693_v13  ;;  %v1303_v3 = vunpack.c.l.bf16 %v669_v17  ;;  %v1053_v13 = vunpack.c.l.bf16 %v519_v32  ;;  %v594_v17 = vld [vmem:[%s2739_s25 + $0x7cc] sm:$0xf]  ;;  %v645_v32 = vld [vmem:[%s2739_s25 + $0x920] sm:$0xf] }
 0x1a4   : > { %1991 = vmatpush.msra.mxu1 %v778_v41  ;;  %2012 = vmatpush.msra.mxu2 %v853_v56  ;;  %v1138_v41 = vunpack.c.l.bf16 %v570_v43  ;;  %v1213_v56 = vunpack.c.l.bf16 %v615_v27  ;;  %v1018_v43 = vunpack.c.l.bf16 %v498_v20  ;;  %v1103_v27 = vunpack.c.l.bf16 %v549_v44 }
 0x1a5   : > { %2031 = vmatpush.msra.mxu3 %v938_v10  ;;  %1973 = vmatpush.msra.mxu0 %v688_v7  ;;  %v1298_v10 = vunpack.c.l.bf16 %v666_v52  ;;  %v1048_v7 = vunpack.c.l.bf16 %v516_v47  ;;  %v1178_v47 = vunpack.c.l.bf16 %v594_v17 }
 0x1a6   : > { %1992 = vmatpush.msra.mxu1 %v773_v29  ;;  %2013 = vmatpush.msra.mxu2 %v848_v25  ;;  %v1133_v29 = vunpack.c.l.bf16 %v567_v59  ;;  %v1208_v25 = vunpack.c.l.bf16 %v612_v48  ;;  %v492_v59 = vld [vmem:[%s2739_s25 + $0x524] sm:$0xf] }
 0x1a7   : > { %2032 = vmatpush.msra.mxu3 %v933_v11  ;;  %1974 = vmatpush.msra.mxu0 %v683_v23  ;;  %v1293_v11 = vunpack.c.l.bf16 %v663_v6  ;;  %v1043_v23 = vunpack.c.l.bf16 %v513_v12  ;;  %v2413_v6 = vld [vmem:[%s2732_s26] sm:$0xff]  ;;  %v2414_v12 = vld [vmem:[%s2732_s26 + $0x18] sm:$0xff] }
 0x1a8   : > { %1993 = vmatpush.msra.mxu1 %v768_v26  ;;  %2014 = vmatpush.msra.mxu2 %v843_v30  ;;  %v1128_v26 = vunpack.c.l.bf16 %v564_v16  ;;  %v1203_v30 = vunpack.c.l.bf16 %v609_v37  ;;  %v639_v16 = vld [vmem:[%s2739_s25 + $0x8f8] sm:$0xf]  ;;  %v489_v37 = vld [vmem:[%s2739_s25 + $0x510] sm:$0xf] }
 0x1a9   : > { %2033 = vmatpush.msra.mxu3 %v928_v4  ;;  %2039 = vmatpush.msrb.mxu0 %v1078_v0  ;;  %v1288_v4 = vunpack.c.l.bf16 %v660_v42  ;;  %v1038_v0 = vunpack.c.l.bf16 %v510_v63  ;;  %v1008_v63 = vunpack.c.l.bf16 %v492_v59 }
 0x1aa   : > { %2079 = vmatpush.msrb.mxu2 %v1238_v34  ;;  %1994 = vmatpush.msra.mxu1 %v763_v19  ;;  %v1123_v34 = vunpack.c.l.bf16 %v561_v61  ;;  %v1198_v19 = vunpack.c.l.bf16 %v606_v54 }
 0x1ab   : > { %2034 = vmatpush.msra.mxu3 %v923_v45  ;;  %2040 = vmatpush.msrb.mxu0 %v1073_v46  ;;  %v1283_v45 = vunpack.c.l.bf16 %v657_v21  ;;  %v1033_v46 = vunpack.c.l.bf16 %v507_v33  ;;  %v2415_v21 = vld [vmem:[%s2732_s26 + $0x8] sm:$0xff]  ;;  %v1253_v33 = vunpack.c.l.bf16 %v639_v16 }
 0x1ac   : > { %2059 = vmatpush.msrb.mxu1 %v1158_v53  ;;  %2080 = vmatpush.msrb.mxu2 %v1233_v51  ;;  %v1118_v53 = vunpack.c.l.bf16 %v558_v31  ;;  %v1193_v51 = vunpack.c.l.bf16 %v603_v36 }
 0x1ad   : > { %2099 = vmatpush.msrb.mxu3 %v1318_v58  ;;  %2041 = vmatpush.msrb.mxu0 %v1068_v62  ;;  %v1028_v58 = vunpack.c.l.bf16 %v504_v38  ;;  %v501_v62 = vld [vmem:[%s2739_s25 + $0x560] sm:$0xf] }
 0x1ae   : > { %2060 = vmatpush.msrb.mxu1 %v1153_v15  ;;  %2081 = vmatpush.msrb.mxu2 %v1228_v1  ;;  %v1188_v15 = vunpack.c.l.bf16 %v600_v50  ;;  %v597_v1 = vld [vmem:[%s2739_s25 + $0x7e0] sm:$0xf] }
 0x1af   : > { %2100 = vmatpush.msrb.mxu3 %v1313_v39  ;;  %2042 = vmatpush.msrb.mxu0 %v1063_v55  ;;  %v1023_v39 = vunpack.c.l.bf16 %v501_v62  ;;  %v1108_v55 = vunpack.c.l.bf16 %v552_v18  ;;  %v2418_v62 = vld [vmem:[%s2732_s26 + $0x28] sm:$0xff] }
 0x1b0   : > { %2061 = vmatpush.msrb.mxu1 %v1148_v40  ;;  %2082 = vmatpush.msrb.mxu2 %v1223_v60  ;;  %v1183_v40 = vunpack.c.l.bf16 %v597_v1  ;;  %v1268_v60 = vunpack.c.l.bf16 %v648_v2  ;;  %v284_v2 = vld [vmem:[#allocation2 + $0x20] sm:$0xff] }
 0x1b1   : > { %2101 = vmatpush.msrb.mxu3 %v1308_v8  ;;  %2043 = vmatpush.msrb.mxu0 %v1058_v28  ;;  %v495_v8 = vld [vmem:[%s2739_s25 + $0x538] sm:$0xf]  ;;  %v2412_v28 = vld [vmem:[%s2732_s26 + $0x10] sm:$0xff] }
 0x1b2   : > { %2062 = vmatpush.msrb.mxu1 %v1143_v22  ;;  %2083 = vmatpush.msrb.mxu2 %v1218_v9  ;;  %v546_v22 = vld [vmem:[%s2739_s25 + $0x68c] sm:$0xf]  ;;  %v591_v9 = vld [vmem:[%s2739_s25 + $0x7b8] sm:$0xf]  ;;  %v1013_v48 = vunpack.c.l.bf16 %v495_v8 }
 0x1b3   : > { %2102 = vmatpush.msrb.mxu3 %v1303_v3  ;;  %2044 = vmatpush.msrb.mxu0 %v1053_v13  ;;  %v1263_v3 = vunpack.c.l.bf16 %v645_v32  ;;  %v642_v13 = vld [vmem:[%s2739_s25 + $0x90c] sm:$0xf] }
 0x1b4   : > { %2063 = vmatpush.msrb.mxu1 %v1138_v41  ;;  %2084 = vmatpush.msrb.mxu2 %v1213_v56  ;;  %v543_v41 = vld [vmem:[%s2739_s25 + $0x678] sm:$0xf]  ;;  %v588_v56 = vld [vmem:[%s2739_s25 + $0x7a4] sm:$0xf]  ;;  %v1258_v42 = vunpack.c.l.bf16 %v642_v13 }
 0x1b5   : > { %2103 = vmatpush.msrb.mxu3 %v1298_v10  ;;  %2045 = vmatpush.msrb.mxu0 %v1048_v7  ;;  %v1098_v10 = vunpack.c.l.bf16 %v546_v22  ;;  %v1173_v7 = vunpack.c.l.bf16 %v591_v9  ;;  %v1093_v54 = vunpack.c.l.bf16 %v543_v41 }
 0x1b6   : > { %2064 = vmatpush.msrb.mxu1 %v1133_v29  ;;  %2085 = vmatpush.msrb.mxu2 %v1208_v25 }
 0x1b7   : > { %2104 = vmatpush.msrb.mxu3 %v1293_v11  ;;  %2046 = vmatpush.msrb.mxu0 %v1043_v23  ;;  %v540_v11 = vld [vmem:[%s2739_s25 + $0x664] sm:$0xf]  ;;  %v585_v23 = vld [vmem:[%s2739_s25 + $0x790] sm:$0xf] }
 0x1b8   : > { %2065 = vmatpush.msrb.mxu1 %v1128_v26  ;;  %2086 = vmatpush.msrb.mxu2 %v1203_v30  ;;  %v1656_v52 = vpop.f32.mrf.mxu0  ;;  %v1168_v26 = vunpack.c.l.bf16 %v588_v56  ;;  %v636_v30 = vld [vmem:[%s2739_s25 + $0x8e4] sm:$0xf] }
 0x1b9   : > { %2105 = vmatpush.msrb.mxu3 %v1288_v4  ;;  %2047 = vmatpush.msrb.mxu0 %v1038_v0  ;;  %v1003_v4 = vunpack.c.l.bf16 %v489_v37  ;;  %v537_v0 = vld [vmem:[%s2739_s25 + $0x650] sm:$0xf]  ;;  %v1248_v38 = vunpack.c.l.bf16 %v636_v30 }
 0x1ba   : > { %2066 = vmatpush.msrb.mxu1 %v1123_v34  ;;  %2087 = vmatpush.msrb.mxu2 %v1198_v19  ;;  %v1088_v34 = vunpack.c.l.bf16 %v540_v11  ;;  %v1163_v19 = vunpack.c.l.bf16 %v585_v23 }
 0x1bb   : > { %2106 = vmatpush.msrb.mxu3 %v1283_v45  ;;  %2048 = vmatpush.msrb.mxu0 %v1033_v46  ;;  %v1083_v46 = vunpack.c.l.bf16 %v537_v0 }
 0x1bc   : > { %2067 = vmatpush.msrb.mxu1 %v1118_v53  ;;  %2088 = vmatpush.msrb.mxu2 %v1193_v51  ;;  %v2416_v51 = vld [vmem:[%s2732_s26 + $0x20] sm:$0xff] }
 0x1bd   : > { %2107 = vmatpush.msrb.mxu3 %v1278_v24  ;;  %2049 = vmatpush.msrb.mxu0 %v1028_v58 }
 0x1be   : > { %2068 = vmatpush.msrb.mxu1 %v1113_v14  ;;  %2089 = vmatpush.msrb.mxu2 %v1188_v15  ;;  %v2419_v14 = vld [vmem:[%s2732_s26 + $0x38] sm:$0xff] }
 0x1bf   : > { %2108 = vmatpush.msrb.mxu3 %v1273_v35  ;;  %2015 = vmatmul.f32.vlgmr.msra.gmra.mxu2 %v2412_v28  ;;  %v1696_v25 = vpop.f32.mrf.mxu2 }
 0x1c0   : > { %2050 = vmatpush.msrb.mxu0 %v1023_v39  ;;  %2069 = vmatpush.msrb.mxu1 %v1108_v55 }
 0x1c1   : > { %2090 = vmatpush.msrb.mxu2 %v1183_v40  ;;  %2109 = vmatpush.msrb.mxu3 %v1268_v60  ;;  %v1676_v29 = vpop.f32.mrf.mxu1 }
 0x1c2   : > { %1975 = vmatmul.f32.vlgmr.msra.gmra.mxu0 %v2413_v6  ;;  %2035 = vmatmul.f32.vlgmr.msra.gmra.mxu3 %v2414_v12  ;;  %v1677_v61 = vadd.f32 %v1676_v29, %v1656_v52 }
 0x1c3   : > { %2051 = vmatpush.msrb.mxu0 %v1018_v43  ;;  %2070 = vmatpush.msrb.mxu1 %v1103_v27  ;;  %v1716_v36 = vpop.f32.mrf.mxu3 }
 0x1c4   : > { %2091 = vmatpush.msrb.mxu2 %v1178_v47  ;;  %2110 = vmatpush.msrb.mxu3 %v1263_v3  ;;  %v1697_v31 = vadd.f32 %v1696_v25, %v1677_v61  ;;  %v285_v47 = vld [vmem:[#allocation2 + $0x10] sm:$0xff] }
 0x1c5   : > { %1995 = vmatmul.f32.vlgmr.msra.gmra.mxu1 %v2415_v21  ;;  %2052 = vmatpush.msrb.mxu0 %v1013_v48 }
 0x1c6   : > { %2071 = vmatpush.msrb.mxu1 %v1098_v10  ;;  %2092 = vmatpush.msrb.mxu2 %v1173_v7  ;;  %v1717_v45 = vadd.f32 %v1716_v36, %v1697_v31 }
 0x1c7   : > { %2111 = vmatpush.msrb.mxu3 %v1258_v42  ;;  %2053 = vmatpush.msrb.mxu0 %v1008_v63  ;;  %v286_v63 = vld [vmem:[#allocation2 + $0x18] sm:$0xff] }
 0x1c8   : > { %2072 = vmatpush.msrb.mxu1 %v1093_v54  ;;  %2093 = vmatpush.msrb.mxu2 %v1168_v26 }
 0x1c9   : > { %2112 = vmatpush.msrb.mxu3 %v1253_v33  ;;  %2054 = vmatpush.msrb.mxu0 %v1003_v4  ;;  %v1736_v50 = vpop.f32.mrf.mxu0 }
 0x1ca   : > { %2073 = vmatpush.msrb.mxu1 %v1088_v34  ;;  %2094 = vmatpush.msrb.mxu2 %v1163_v19  ;;  %v1737_v53 = vadd.f32 %v1736_v50, %v1717_v45 }
 0x1cb   : > { %2113 = vmatpush.msrb.mxu3 %v1248_v38  ;;  %2055 = vmatmul.f32.vlgmr.msrb.gmra.mxu0 %v2416_v51  ;;  %v1776_v58 = vpop.f32.mrf.mxu2 }
 0x1cc   : > { %2095 = vmatmul.f32.vlgmr.msrb.gmra.mxu2 %v2417_v57  ;;  %2074 = vmatpush.msrb.mxu1 %v1083_v46  ;;  %v1756_v24 = vpop.f32.mrf.mxu1 }
 0x1cd   : > { %2114 = vmatpush.msrb.mxu3 %v1243_v49  ;;  %2075 = vmatmul.f32.vlgmr.msrb.gmra.mxu1 %v2418_v62  ;;  %v1757_v18 = vadd.f32 %v1756_v24, %v1737_v53 }
 0x1ce   : > { %2115 = vmatmul.f32.vlgmr.msrb.gmra.mxu3 %v2419_v14 }
 0x1cf   : > { %v1777_v15 = vadd.f32 %v1776_v58, %v1757_v18  ;;  %v1796_v1 = vpop.f32.mrf.mxu3 }
 0x1d1   : > { %v1797_v35 = vadd.f32 %v1796_v1, %v1777_v15 }
 0x1d3   : > { %v2121_v39 = vadd.f32 %v1797_v35, %v284_v2 }
 0x1d5   : > { %2126 = vst [vmem:[#allocation2 + $0x20] sm:$0xff] %v2121_v39 }
 0x203   : > { %v1816_v55 = vpop.f32.mrf.mxu0 }
 0x206   : > { %v1836_v20 = vpop.f32.mrf.mxu1  ;;  %v1856_v44 = vpop.f32.mrf.mxu2 }
 0x207   : > { %v1837_v40 = vadd.f32 %v1836_v20, %v1816_v55 }
 0x209   : > { %v1857_v60 = vadd.f32 %v1856_v44, %v1837_v40  ;;  %v1876_v17 = vpop.f32.mrf.mxu3 }
 0x20b   : > { %v1877_v32 = vadd.f32 %v1876_v17, %v1857_v60 }
 0x20d   : > { %v1896_v8 = vpop.f32.mrf.mxu0 }
 0x20e   : > { %v1897_v28 = vadd.f32 %v1896_v8, %v1877_v32 }
 0x210   : > { %v1916_v43 = vpop.f32.mrf.mxu1  ;;  %v1936_v27 = vpop.f32.mrf.mxu2 }
 0x211   : > { %v1917_v22 = vadd.f32 %v1916_v43, %v1897_v28 }
 0x213   : > { %v1937_v9 = vadd.f32 %v1936_v27, %v1917_v22  ;;  %v1956_v52 = vpop.f32.mrf.mxu3 }
 0x215   : > { %v1957_v3 = vadd.f32 %v1956_v52, %v1937_v9 }
 0x217   : > { %v2122_v13 = vadd.f32 %v1957_v3, %v285_v47 }
 0x219   : > { %2127 = vst [vmem:[#allocation2 + $0x10] sm:$0xff] %v2122_v13 }
 0x23f   : > { %v1976_v59 = vpop.f32.mrf.mxu0 }
 0x242   : > { %v1996_v48 = vpop.f32.mrf.mxu1  ;;  %v2016_v41 = vpop.f32.mrf.mxu2 }
 0x243   : > { %v1997_v56 = vadd.f32 %v1996_v48, %v1976_v59 }
 0x245   : > { %v2017_v6 = vadd.f32 %v2016_v41, %v1997_v56  ;;  %v2036_v12 = vpop.f32.mrf.mxu3 }
 0x247   : > { %v2037_v10 = vadd.f32 %v2036_v12, %v2017_v6 }
 0x248   : > { %v2056_v7 = vpop.f32.mrf.mxu0 }
 0x249   : > { %v2057_v16 = vadd.f32 %v2056_v7, %v2037_v10 }
 0x24a   : > { %v2076_v37 = vpop.f32.mrf.mxu1 }
 0x24b   : > { %v2077_v29 = vadd.f32 %v2076_v37, %v2057_v16 }
 0x24f   : > { %v2096_v25 = vpop.f32.mrf.mxu2 }
 0x250   : > { %v2097_v42 = vadd.f32 %v2096_v25, %v2077_v29 }
 0x251   : > { %v2116_v11 = vpop.f32.mrf.mxu3 }
 0x252   : > { %v2117_v23 = vadd.f32 %v2116_v11, %v2097_v42  ;;  %2132 = sbr.rel (%p2293_p8) target bundleno = 611 (0x263), region = 48 }
 0x254   : > { %v2123_v61 = vadd.f32 %v2117_v23, %v286_v63 }
 0x256   : > { %2128 = vst [vmem:[#allocation2 + $0x18] sm:$0xff] %v2123_v61 }
 0x257   : > { %v2133_v54 = vld [vmem:[#allocation2 + $0x8] sm:$0xff]  ;;  %v2138_v26 = vld [vmem:[%s265_s11] sm:$0x1f]  ;;  %v2136_v31 = vld [vmem:[#allocation2 + $0x10] sm:$0xff] }
 0x258   : > { %v2134_v30 = vld [vmem:[#allocation2] sm:$0xff]  ;;  %v2140_v21 = vperm.slane %v2138_v26, 0  ;;  %v2141_v33 = vperm.slane %v2138_v26, 1  ;;  %v2142_v0 = vperm.slane %v2138_v26, 2  ;;  %v2143_v36 = vperm.slane %v2138_v26, 3 }
 0x259   : > { %v2135_v4 = vld [vmem:[#allocation2 + $0x20] sm:$0xff]  ;;  %v2144_v19 = vperm.slane %v2138_v26, 4 }
 0x25a   : > { %v2150_v5 = vadd.f32 %v2140_v21, %v2133_v54  ;;  %v2151_v38 = vadd.f32 %v2141_v33, %v2134_v30  ;;  %v2152_v45 = vadd.f32 %v2142_v0, %v2135_v4  ;;  %v2153_v46 = vadd.f32 %v2143_v36, %v2136_v31 }
 0x25c   : > { %v2155_v50 = vmax.f32 %v2150_v5, 0.0  ;;  %v2156_v53 = vmax.f32 %v2151_v38, 0.0  ;;  %v2157_v51 = vmax.f32 %v2152_v45, 0.0  ;;  %v2158_v57 = vmax.f32 %v2153_v46, 0.0 }
 0x25d   : > { %v2137_v34 = vld [vmem:[#allocation2 + $0x18] sm:$0xff] }
 0x25e   : > { %v2154_v49 = vadd.f32 %v2144_v19, %v2137_v34  ;;  %2160 = vst [vmem:[%s2756_s24] sm:$0xff] %v2155_v50 }
 0x25f   : > { %2161 = vst [vmem:[%s2756_s24 + $0x8] sm:$0xff] %v2156_v53 }
 0x260   : > { %v2159_v24 = vmax.f32 %v2154_v49, 0.0  ;;  %2162 = vst [vmem:[%s2756_s24 + $0x10] sm:$0xff] %v2157_v51 }
 0x261   : > { %2163 = vst [vmem:[%s2756_s24 + $0x18] sm:$0xff] %v2158_v57 }
 0x262   : > { %2164 = vst [vmem:[%s2756_s24 + $0x20] sm:$0xff] %v2159_v24 }
 0x263 PF: > { %s19_s22 = sadd.s32 1, %s2574_s22   ;;  %s4794_s18 = sld [smem:[#allocation9_spill]] }
 0x264   : > { %p16_p9 = scmp.ge.s32.totalorder %s19_s22, 10   ;;  %s4795_s17 = sld [smem:[#allocation13_spill]] }
 0x265   : > { %s4796_s10 = sld [smem:[#allocation10_spill]]  ;;  %s4799_s12 = smov %s2538_s13 }
 0x266   : > { %s4797_s20 = sld [smem:[#allocation11_spill]]  ;;  %s4800_s13 = smov %s2542_s14 }
 0x267   : > { %s4798_s27 = sld [smem:[#allocation12_spill]]  ;;  %s4801_s14 = smov %s2689_s7 }
 0x268   : > { %s4802_s15 = smov %s2550_s16  ;;  %s4805_s19 = smov %s2570_s21 }
 0x269   : > { %s4803_s16 = smov %s4794_s18  ;;  %18 = sbr.rel (!%p16_p9) target bundleno = 11 (0xb), region = 96 }
 0x26b   : > { %s4804_s18 = smov %s4796_s10 }
 0x26d   : > { %s4806_s21 = smov %s4798_s27 }
 0x26e   :  { %2187 = vsyncpa [#allocation4], 1 }
 0x26f   :  { %2189 = vsyncpa [#allocation4 + $0x1], 1 }
 0x270   :  { %2190 = vsyncpa [#allocation6], 1 }
 0x271   :  { %2192 = vsyncpa [#allocation6 + $0x1], 1 }

// kernel: dsprites_vae_forward.7
= control target key start
LH: loop header
LB: loop body
LE: loop exit
PB: predicated region body
PF: predicated region fallthrough
CT: control target
= control target key end

     0   :  { %s4833_s0 = inlined_call_operand.vmem [shape: f32[8,1280], index: 0, kind: input, shape index: {}]   ;;  %s4834_s1 = inlined_call_operand.hbm [shape: bf16[1280,4096], index: 1, kind: input, shape index: {}]   ;;  %s4835_s2 = inlined_call_operand.hbm [shape: f32[1,4096], index: 2, kind: input, shape index: {}]   ;;  %s4836_s3 = inlined_call_operand.hbm [shape: f32[8,4096], index: 3, kind: output, shape index: {}]  }
   0x1   :  { %4923 = sst [smem:[#allocation40_spill]] %s4834_s1 }
   0x2   :  { %8 = vsyncpa [#allocation4], 0 }
   0x3   :  { %10 = vsyncpa [#allocation4 + $0x1], 0 }
   0x4   :  { %11 = vsyncpa [#allocation7], 0 }
   0x5   :  { %13 = vsyncpa [#allocation7 + $0x1], 0 }
   0x6   :  { %14 = vsyncpa [#allocation5], 0 }
   0x7   :  { %16 = vsyncpa [#allocation5 + $0x1], 0  ;;  %s2803_s12 = smov 0   ;;  %s2805_s13 = smov 0  }
   0x8   :  { %s2807_s14 = smov 0   ;;  %s2809_s15 = smov 0  }
   0x9   :  { %s2811_s16 = smov 0   ;;  %s2813_s17 = smov 0  }
   0xa   :  { %s2815_s18 = smov 0   ;;  %s2817_s19 = smov 0  }
   0xb   :  { %s2819_s20 = smov 0   ;;  %s2821_s21 = smov 0  }
   0xc   :  { %s2823_s22 = smov 0  }
   0xd LB: > { %4924 = sst [smem:[#allocation12_spill]] %s2769_s20  ;;  %s31_s23 = sadd.s32 1, %s2769_s20  ;;  %s2777_s22 = sphi %s2823_s22, %s22_s22   ;;  %s2773_s21 = sphi %s2821_s21, %s5120_s21   ;;  %s2769_s20 = sphi %s2819_s20, %s5119_s20   ;;  %s2765_s19 = sphi %s2817_s19, %s5118_s19   ;;  %s2761_s18 = sphi %s2815_s18, %s5117_s18   ;;  %s2757_s17 = sphi %s2813_s17, %s5126_s17   ;;  %s2753_s16 = sphi %s2811_s16, %s5125_s16   ;;  %s2749_s15 = sphi %s2809_s15, %s5124_s15   ;;  %s2745_s14 = sphi %s2807_s14, %s5123_s14   ;;  %s2741_s13 = sphi %s2805_s13, %s5122_s13   ;;  %s2737_s12 = sphi %s2803_s12, %s5121_s12  }
   0xe   : > { %4925 = sst [smem:[#allocation13_spill]] %s2773_s21  ;;  %s34_s24 = sadd.s32 1, %s2773_s21 }
   0xf   : > { %p32_p0 = scmp.ge.s32.totalorder %s31_s23, 2  ;;  %p76_p1 = scmp.ne.s32.totalorder %s2757_s17, %s2753_s16 }
  0x10   : > { %p77_p2 = scmp.eq.s32.totalorder %s2777_s22, 0  ;;  %p2457_p4 = scmp.lt.s32.totalorder %s2777_s22, 8 }
  0x11   : > { %s5128_s23 = smov (%p32_p0, %s31_s23), 0  ;;  %s5130_s24 = smov (!%p32_p0, %s34_s24), %s2773_s21 }
  0x12   : > { %4926 = sst [smem:[#allocation14_spill]] %s5128_s23  ;;  %s64_s26 = ssub.s32 %s2769_s20, %s5128_s23 }
  0x13   : > { %p78_p3 = por %p77_p2, %p76_p1  ;;  %s167_s27 = sand.u32 1, %s2757_s17  }
  0x14   : > { %s2412_s28 = sshll.u32 %s2773_s21, 3  ;;  %s2438_s29 = smul.u32 2560, %s167_s27 }
  0x15   : > { %s2436_s30 = smul.u32 2560, %s2769_s20  ;;  %p2447_p5 = pnand %p2457_p4, %p78_p3 }
  0x16   : > { %s171_s5 = scalar_lea.vmem [#allocation3], %s2438_s29  ;;  %s4927_s1 = sld [smem:[#allocation40_spill]] }
  0x17   : > { %s177_s4 = sadd.s32 %s2436_s30, %s2412_s28  ;;  %s182_s6 = sshll.u32 %s171_s5, 4  ;;  %s183_s6 = int_to_ptr.vmem [resolvable:$true] %s182_s6 }
  0x18   : > { %s2414_s7 = sshll.u32 %s177_s4, 2  ;;  %s168_s25 = scalar_lea.sflag [#allocation4], %s167_s27 }
  0x19   : > { %s2779_s30 = smov 2048   ;;  %s2780_s29 = smov 512  }
  0x1a   : > { %s2781_s4 = smov 32   ;;  %p2417_p6 = scmp.ge.s32.totalorder %s2777_s22, 1 }
  0x1b   : > { %p209_p7 = scmp.lt.s32.totalorder %s2777_s22, 9  ;;  %s2408_s27 = sadd.s32 4294967295, %s2777_s22  }
  0x1c   : > { %s179_s10 = scalar_lea.hbm %s4927_s1, %s2414_s7  ;;  %s2409_s7 = sadd.s32 4294967294, %s2777_s22  }
  0x1d   : > { %s180_s11 = sshll.u32 %s179_s10, 4  ;;  %p2886_p8 = pnand %p2417_p6, %p209_p7  ;;  %s181_s11 = int_to_ptr.hbm [resolvable:$true] %s180_s11 }
  0x1e   : > { %2449 = dma.hbm_to_vmem [thread:$0]  (!%p2447_p5), %s181_s11, 40960, %s183_s6, %s168_s25, %s2779_s30, %s2780_s29, %s2781_s4  }
  0x1f   : > { %p36_p9 = scmp.ge.s32.totalorder %s5130_s24, 4  ;;  %p82_p10 = scmp.ne.s32.totalorder %s2753_s16, %s2749_s15 }
  0x20   : > { %p2895_p11 = scmp.eq.s32.totalorder %s2408_s27, 0  ;;  %s95_s6 = sadd.s32 1, %s2745_s14 }
  0x21   : > { %s5132_s24 = smov (%p36_p9, %s5130_s24), 0  ;;  %p102_p13 = scmp.ne.s32.totalorder %s2745_s14, %s2741_s13 }
  0x22   : > { %4930 = sst [smem:[#allocation15_spill]] %s5132_s24  ;;  %p2904_p12 = por %p2895_p11, %p82_p10 }
  0x23   : > { %s65_s9 = ssub.s32 %s2773_s21, %s5132_s24  ;;  %p2918_p3 = por %p102_p13, %p77_p2 }
  0x24   : > { %s66_s15 = sor.u32 %s65_s9, %s64_s26  ;;  %p93_p0 = scmp.eq.s32.totalorder %s65_s9, 0 }
  0x25   : > { %p67_p1 = scmp.eq.s32.totalorder %s66_s15, 0  ;;  %s4933_s30 = sadd.s32 1, %s2757_s17 }
  0x26   : > { %s2923_s11 = scalar_select %p93_p0, %s2745_s14, %s95_s6  }
  0x27   : > { %s2928_s29 = scalar_select %p67_p1, %s2757_s17, %s4933_s30  }
  0x28   : > { %p108_p5 = scmp.ne.s32.totalorder %s2741_s13, %s2737_s12  ;;  %p132_p6 = scmp.eq.s32.totalorder %s2408_s27, 7 }
  0x29   : > { %4934 = sst [smem:[#allocation16_spill]] %s2928_s29  ;;  %p138_p7 = scmp.eq.s32.totalorder %s2409_s7, 7 }
  0x2a   : > { %s192_s4 = sand.u32 1, %s2745_s14   ;;  %p2935_p9 = por %p108_p5, %p2895_p11 }
  0x2b   : > { %p2939_p2 = por %p132_p6, %p102_p13  ;;  %p2943_p10 = por %p138_p7, %p108_p5 }
  0x2c   : > { %s2415_s15 = sshll.u32 %s192_s4, 3  ;;  %s200_s27 = scalar_lea.hbm %s4835_s2, %s2412_s28 }
  0x2d   : > { %s202_s7 = sshll.u32 %s200_s27, 4  ;;  %s196_s8 = scalar_lea.vmem [#allocation6], %s2415_s15  ;;  %s203_s7 = int_to_ptr.hbm [resolvable:$true] %s202_s7 }
  0x2e   : > { %s204_s24 = sshll.u32 %s196_s8, 4  ;;  %p2450_p11 = pnand %p2457_p4, %p2918_p3  ;;  %s205_s24 = int_to_ptr.vmem [resolvable:$true] %s204_s24 }
  0x2f   : > { %s193_s23 = scalar_lea.sflag [#allocation7], %s192_s4  ;;  %213 = sbr.rel (%p2886_p8) target bundleno = 661 (0x295), region = 32 }
  0x30   : > { %2452 = dma.hbm_to_vmem [thread:$0]  (!%p2450_p11), %s203_s7, 128, %s205_s24, %s193_s23  }
  0x34   : > { %s215_s21 = sand.u32 1, %s2753_s16  }
  0x35   : > { %s2439_s20 = smul.u32 2560, %s215_s21  ;;  %s216_s29 = scalar_lea.sflag [#allocation4], %s215_s21 }
  0x37   : > { %s2959_s1 = scalar_lea.vmem [#allocation3], %s2439_s20 }
  0x38   : > { %2724 = dma.done.wait (%p2904_p12), %s216_s29, 40960  }
  0x39   : > { %2726 = vsyncadd (%p2904_p12), %s216_s29, 4294926336  ;;  %s2966_s28 = sand.u32 1, %s2741_s13  }
  0x3a   : > { %s2418_s23 = sshll.u32 %s2966_s28, 3  ;;  %s226_s24 = scalar_lea.sflag [#allocation7], %s2966_s28 }
  0x3b   : > { %s2970_s5 = scalar_lea.vmem [#allocation6], %s2418_s23 }
  0x3c   : > { %2728 = dma.done.wait (%p2935_p9), %s226_s24, 128  }
  0x3d   : > { %2730 = vsyncadd (%p2935_p9), %s226_s24, 4294967168  ;;  %s2419_s20 = sshll.u32 %s2966_s28, 6  ;;  %s263_s21 = smul.u32 5, %s2761_s18 }
  0x3e   : > { %s2983_s15 = scalar_lea.vmem [#allocation8], %s2419_s20  ;;  %p2421_p8 = scmp.ne.s32.totalorder %s2761_s18, 0 }
  0x3f   : > { %p264_p4 = scmp.lt.s32.totalorder %s263_s21, 9 }
  0x40   : > { %276 = sbr.rel (%p2421_p8) target bundleno = 78 (0x4e), region = 44 }
  0x41   : > { %s5134_s21 = smov (!%p264_p4, %s263_s21), 9 }
  0x42   : > { %s2420_s25 = sshll.u32 %s5134_s21, 3 }
  0x43   : > { %s2981_s4 = scalar_lea.vmem %s4833_s0, %s2420_s25 }
  0x45   : > { %v2782_v0 = vmov 0.0  }
  0x46   : > { %277 = vst [vmem:[#allocation2 + $0x30] sm:$0xff] %v2782_v0 }
  0x47   : > { %278 = vst [vmem:[#allocation2] sm:$0xff] %v2782_v0 }
  0x48   : > { %279 = vst [vmem:[#allocation2 + $0x18] sm:$0xff] %v2782_v0 }
  0x49   : > { %280 = vst [vmem:[#allocation2 + $0x10] sm:$0xff] %v2782_v0 }
  0x4a   : > { %281 = vst [vmem:[#allocation2 + $0x8] sm:$0xff] %v2782_v0 }
  0x4b   : > { %282 = vst [vmem:[#allocation2 + $0x20] sm:$0xff] %v2782_v0 }
  0x4c   : > { %283 = vst [vmem:[#allocation2 + $0x28] sm:$0xff] %v2782_v0 }
  0x4d   : > { %284 = vst [vmem:[#allocation2 + $0x38] sm:$0xff] %v2782_v0 }
  0x4e PF: > { %v2987_v1 = vld [vmem:[%s2959_s1 + $0x1e0] sm:$0xff]  ;;  %p2422_p12 = scmp.ne.s32.totalorder %s2761_s18, 1 }
  0x4f   : > { %v2990_v2 = vld [vmem:[%s2959_s1 + $0x5e0] sm:$0xff]  ;;  %v738_v4 = vunpack.c.l.bf16 %v2987_v1 }
  0x50   : > { %v2993_v3 = vld [vmem:[%s2959_s1 + $0x1c0] sm:$0xff]  ;;  %v994_v5 = vunpack.c.l.bf16 %v2990_v2 }
  0x51   : > { %v730_v6 = vunpack.c.l.bf16 %v2993_v3  ;;  %v2999_v7 = vld [vmem:[%s2959_s1 + $0x3e0] sm:$0xff]  ;;  %1258 = vmatpush.msra.mxu0 %v738_v4 }
  0x52   : > { %v3002_v8 = vld [vmem:[%s2959_s1 + $0x5c0] sm:$0xff]  ;;  %v866_v10 = vunpack.c.l.bf16 %v2999_v7  ;;  %1298 = vmatpush.msra.mxu2 %v994_v5 }
  0x53   : > { %v3005_v9 = vld [vmem:[%s2959_s1 + $0x7e0] sm:$0xff]  ;;  %v986_v11 = vunpack.c.l.bf16 %v3002_v8  ;;  %1259 = vmatpush.msra.mxu0 %v730_v6 }
  0x54   : > { %4938 = vst [vmem:[#allocation17_spill] sm:$0xff] %v3005_v9  ;;  %v1122_v12 = vunpack.c.l.bf16 %v3005_v9  ;;  %v3011_v13 = vld [vmem:[%s2959_s1 + $0x1a0] sm:$0xff]  ;;  %1278 = vmatpush.msra.mxu1 %v866_v10 }
  0x55   : > { %v3014_v14 = vld [vmem:[%s2959_s1 + $0x3c0] sm:$0xff]  ;;  %v722_v16 = vunpack.c.l.bf16 %v3011_v13  ;;  %1299 = vmatpush.msra.mxu2 %v986_v11 }
  0x56   : > { %v3017_v15 = vld [vmem:[%s2959_s1 + $0x5a0] sm:$0xff]  ;;  %v858_v17 = vunpack.c.l.bf16 %v3014_v14  ;;  %1318 = vmatpush.msra.mxu3 %v1122_v12 }
  0x57   : > { %v978_v18 = vunpack.c.l.bf16 %v3017_v15  ;;  %v3023_v19 = vld [vmem:[%s2959_s1 + $0x7c0] sm:$0xff]  ;;  %1260 = vmatpush.msra.mxu0 %v722_v16 }
  0x58   : > { %4939 = vst [vmem:[#allocation18_spill] sm:$0xff] %v3023_v19  ;;  %v3026_v20 = vld [vmem:[%s2959_s1 + $0x180] sm:$0xff]  ;;  %v1114_v22 = vunpack.c.l.bf16 %v3023_v19  ;;  %1279 = vmatpush.msra.mxu1 %v858_v17 }
  0x59   : > { %v3029_v21 = vld [vmem:[%s2959_s1 + $0x3a0] sm:$0xff]  ;;  %v714_v27 = vunpack.c.l.bf16 %v3026_v20  ;;  %1300 = vmatpush.msra.mxu2 %v978_v18 }
  0x5a   : > { %v850_v23 = vunpack.c.l.bf16 %v3029_v21  ;;  %v3034_v24 = vld [vmem:[%s2959_s1 + $0x580] sm:$0xff]  ;;  %1319 = vmatpush.msra.mxu3 %v1114_v22 }
  0x5b   : > { %v3037_v25 = vld [vmem:[%s2959_s1 + $0x7a0] sm:$0xff]  ;;  %v970_v28 = vunpack.c.l.bf16 %v3034_v24  ;;  %1261 = vmatpush.msra.mxu0 %v714_v27 }
  0x5c   : > { %4940 = vst [vmem:[#allocation19_spill] sm:$0xff] %v3037_v25  ;;  %v3040_v26 = vld [vmem:[%s2959_s1 + $0x160] sm:$0xff]  ;;  %v1106_v29 = vunpack.c.l.bf16 %v3037_v25  ;;  %1280 = vmatpush.msra.mxu1 %v850_v23 }
  0x5d   : > { %v3046_v30 = vld [vmem:[%s2959_s1 + $0x380] sm:$0xff]  ;;  %v706_v38 = vunpack.c.l.bf16 %v3040_v26  ;;  %1301 = vmatpush.msra.mxu2 %v970_v28 }
  0x5e   : > { %v3049_v31 = vld [vmem:[%s2959_s1 + $0x560] sm:$0xff]  ;;  %v842_v33 = vunpack.c.l.bf16 %v3046_v30  ;;  %1320 = vmatpush.msra.mxu3 %v1106_v29 }
  0x5f   : > { %v3052_v32 = vld [vmem:[%s2959_s1 + $0x780] sm:$0xff]  ;;  %v962_v39 = vunpack.c.l.bf16 %v3049_v31  ;;  %1262 = vmatpush.msra.mxu0 %v706_v38 }
  0x60   : > { %4941 = vst [vmem:[#allocation20_spill] sm:$0xff] %v3052_v32  ;;  %v1098_v34 = vunpack.c.l.bf16 %v3052_v32  ;;  %v3057_v35 = vld [vmem:[%s2959_s1 + $0x140] sm:$0xff]  ;;  %1281 = vmatpush.msra.mxu1 %v842_v33 }
  0x61   : > { %v3060_v36 = vld [vmem:[%s2959_s1 + $0x360] sm:$0xff]  ;;  %v698_v47 = vunpack.c.l.bf16 %v3057_v35  ;;  %1302 = vmatpush.msra.mxu2 %v962_v39 }
  0x62   : > { %v3063_v37 = vld [vmem:[%s2959_s1 + $0x540] sm:$0xff]  ;;  %v834_v42 = vunpack.c.l.bf16 %v3060_v36  ;;  %1321 = vmatpush.msra.mxu3 %v1098_v34 }
  0x63   : > { %v3068_v40 = vld [vmem:[%s2959_s1 + $0x760] sm:$0xff]  ;;  %v954_v48 = vunpack.c.l.bf16 %v3063_v37  ;;  %1263 = vmatpush.msra.mxu0 %v698_v47 }
  0x64   : > { %4942 = vst [vmem:[#allocation21_spill] sm:$0xff] %v3068_v40  ;;  %v3071_v41 = vld [vmem:[%s2959_s1 + $0x340] sm:$0xff]  ;;  %v1090_v43 = vunpack.c.l.bf16 %v3068_v40  ;;  %1282 = vmatpush.msra.mxu1 %v834_v42 }
  0x65   : > { %v3076_v44 = vld [vmem:[%s2959_s1 + $0x120] sm:$0xff]  ;;  %v826_v51 = vunpack.c.l.bf16 %v3071_v41  ;;  %1303 = vmatpush.msra.mxu2 %v954_v48 }
  0x66   : > { %v3079_v45 = vld [vmem:[%s2959_s1 + $0x520] sm:$0xff]  ;;  %v690_v55 = vunpack.c.l.bf16 %v3076_v44  ;;  %1322 = vmatpush.msra.mxu3 %v1090_v43 }
  0x67   : > { %v3082_v46 = vld [vmem:[%s2959_s1 + $0x740] sm:$0xff]  ;;  %v946_v56 = vunpack.c.l.bf16 %v3079_v45  ;;  %1283 = vmatpush.msra.mxu1 %v826_v51 }
  0x68   : > { %4943 = vst [vmem:[#allocation22_spill] sm:$0xff] %v3082_v46  ;;  %v3087_v49 = vld [vmem:[%s2959_s1 + $0x320] sm:$0xff]  ;;  %v1082_v52 = vunpack.c.l.bf16 %v3082_v46  ;;  %1264 = vmatpush.msra.mxu0 %v690_v55 }
  0x69   : > { %v3090_v50 = vld [vmem:[%s2959_s1 + $0x720] sm:$0xff]  ;;  %v818_v59 = vunpack.c.l.bf16 %v3087_v49  ;;  %1304 = vmatpush.msra.mxu2 %v946_v56 }
  0x6a   : > { %4944 = vst [vmem:[#allocation23_spill] sm:$0xff] %v3090_v50  ;;  %v3095_v53 = vld [vmem:[%s2959_s1 + $0x100] sm:$0xff]  ;;  %v1074_v60 = vunpack.c.l.bf16 %v3090_v50  ;;  %1323 = vmatpush.msra.mxu3 %v1082_v52 }
  0x6b   : > { %v3098_v54 = vld [vmem:[%s2959_s1 + $0x500] sm:$0xff]  ;;  %v682_v63 = vunpack.c.l.bf16 %v3095_v53  ;;  %1284 = vmatpush.msra.mxu1 %v818_v59 }
  0x6c   : > { %v3103_v57 = vld [vmem:[%s2959_s1 + $0x300] sm:$0xff]  ;;  %v938_v0 = vunpack.c.l.bf16 %v3098_v54  ;;  %1324 = vmatpush.msra.mxu3 %v1074_v60 }
  0x6d   : > { %v3106_v58 = vld [vmem:[%s2959_s1 + $0x700] sm:$0xff]  ;;  %v810_v6 = vunpack.c.l.bf16 %v3103_v57  ;;  %1265 = vmatpush.msra.mxu0 %v682_v63 }
  0x6e   : > { %4945 = vst [vmem:[#allocation24_spill] sm:$0xff] %v3106_v58  ;;  %v3111_v61 = vld [vmem:[%s2959_s1 + $0xe0] sm:$0xff]  ;;  %v1066_v10 = vunpack.c.l.bf16 %v3106_v58  ;;  %1305 = vmatpush.msra.mxu2 %v938_v0 }
  0x6f   : > { %v3114_v62 = vld [vmem:[%s2959_s1 + $0x4e0] sm:$0xff]  ;;  %v674_v16 = vunpack.c.l.bf16 %v3111_v61  ;;  %1285 = vmatpush.msra.mxu1 %v810_v6 }
  0x70   : > { %v3119_v4 = vld [vmem:[%s2959_s1 + $0x2e0] sm:$0xff]  ;;  %v930_v17 = vunpack.c.l.bf16 %v3114_v62  ;;  %1325 = vmatpush.msra.mxu3 %v1066_v10 }
  0x71   : > { %v3122_v5 = vld [vmem:[%s2959_s1 + $0x6e0] sm:$0xff]  ;;  %v802_v23 = vunpack.c.l.bf16 %v3119_v4  ;;  %1266 = vmatpush.msra.mxu0 %v674_v16 }
  0x72   : > { %4946 = vst [vmem:[#allocation25_spill] sm:$0xff] %v3122_v5  ;;  %v3127_v11 = vld [vmem:[%s2959_s1 + $0xc0] sm:$0xff]  ;;  %v1058_v27 = vunpack.c.l.bf16 %v3122_v5  ;;  %1306 = vmatpush.msra.mxu2 %v930_v17 }
  0x73   : > { %v3130_v12 = vld [vmem:[%s2959_s1 + $0x4c0] sm:$0xff]  ;;  %v666_v33 = vunpack.c.l.bf16 %v3127_v11  ;;  %1286 = vmatpush.msra.mxu1 %v802_v23 }
  0x74   : > { %v3135_v18 = vld [vmem:[%s2959_s1 + $0x2c0] sm:$0xff]  ;;  %v922_v34 = vunpack.c.l.bf16 %v3130_v12  ;;  %1326 = vmatpush.msra.mxu3 %v1058_v27 }
  0x75   : > { %v3138_v22 = vld [vmem:[%s2959_s1 + $0x6c0] sm:$0xff]  ;;  %v794_v42 = vunpack.c.l.bf16 %v3135_v18  ;;  %1267 = vmatpush.msra.mxu0 %v666_v33 }
  0x76   : > { %4947 = vst [vmem:[#allocation26_spill] sm:$0xff] %v3138_v22  ;;  %v3143_v28 = vld [vmem:[%s2959_s1 + $0xa0] sm:$0xff]  ;;  %v1050_v43 = vunpack.c.l.bf16 %v3138_v22  ;;  %1307 = vmatpush.msra.mxu2 %v922_v34 }
  0x77   : > { %v3146_v29 = vld [vmem:[%s2959_s1 + $0x4a0] sm:$0xff]  ;;  %v658_v51 = vunpack.c.l.bf16 %v3143_v28  ;;  %1287 = vmatpush.msra.mxu1 %v794_v42 }
  0x78   : > { %v3151_v38 = vld [vmem:[%s2959_s1 + $0x2a0] sm:$0xff]  ;;  %v914_v52 = vunpack.c.l.bf16 %v3146_v29  ;;  %1327 = vmatpush.msra.mxu3 %v1050_v43 }
  0x79   : > { %v3154_v39 = vld [vmem:[%s2959_s1 + $0x6a0] sm:$0xff]  ;;  %v786_v59 = vunpack.c.l.bf16 %v3151_v38  ;;  %1268 = vmatpush.msra.mxu0 %v658_v51 }
  0x7a   : > { %4948 = vst [vmem:[#allocation27_spill] sm:$0xff] %v3154_v39  ;;  %v3159_v47 = vld [vmem:[%s2959_s1 + $0x80] sm:$0xff]  ;;  %v1042_v60 = vunpack.c.l.bf16 %v3154_v39  ;;  %1308 = vmatpush.msra.mxu2 %v914_v52 }
  0x7b   : > { %v3162_v48 = vld [vmem:[%s2959_s1 + $0x480] sm:$0xff]  ;;  %v650_v6 = vunpack.c.l.bf16 %v3159_v47  ;;  %1288 = vmatpush.msra.mxu1 %v786_v59 }
  0x7c   : > { %v3167_v55 = vld [vmem:[%s2959_s1 + $0x280] sm:$0xff]  ;;  %v906_v10 = vunpack.c.l.bf16 %v3162_v48  ;;  %1328 = vmatpush.msra.mxu3 %v1042_v60 }
  0x7d   : > { %v3170_v56 = vld [vmem:[%s2959_s1 + $0x680] sm:$0xff]  ;;  %v778_v23 = vunpack.c.l.bf16 %v3167_v55  ;;  %1269 = vmatpush.msra.mxu0 %v650_v6 }
  0x7e   : > { %4949 = vst [vmem:[#allocation28_spill] sm:$0xff] %v3170_v56  ;;  %v3175_v63 = vld [vmem:[%s2959_s1 + $0x60] sm:$0xff]  ;;  %v1034_v27 = vunpack.c.l.bf16 %v3170_v56  ;;  %1309 = vmatpush.msra.mxu2 %v906_v10 }
  0x7f   : > { %v3178_v0 = vld [vmem:[%s2959_s1 + $0x460] sm:$0xff]  ;;  %v642_v39 = vunpack.c.l.bf16 %v3175_v63  ;;  %1289 = vmatpush.msra.mxu1 %v778_v23 }
  0x80   : > { %v3183_v16 = vld [vmem:[%s2959_s1 + $0x260] sm:$0xff]  ;;  %v898_v22 = vunpack.c.l.bf16 %v3178_v0  ;;  %1329 = vmatpush.msra.mxu3 %v1034_v27 }
  0x81   : > { %v3186_v17 = vld [vmem:[%s2959_s1 + $0x660] sm:$0xff]  ;;  %v770_v56 = vunpack.c.l.bf16 %v3183_v16  ;;  %1270 = vmatpush.msra.mxu0 %v642_v39 }
  0x82   : > { %4950 = vst [vmem:[#allocation29_spill] sm:$0xff] %v3186_v17  ;;  %v3191_v33 = vld [vmem:[%s2959_s1 + $0x40] sm:$0xff]  ;;  %v1026_v5 = vunpack.c.l.bf16 %v3186_v17  ;;  %1310 = vmatpush.msra.mxu2 %v898_v22 }
  0x83   : > { %v3194_v34 = vld [vmem:[%s2959_s1 + $0x440] sm:$0xff]  ;;  %v634_v58 = vunpack.c.l.bf16 %v3191_v33  ;;  %1290 = vmatpush.msra.mxu1 %v770_v56  ;;  %v867_v56 = vunpack.c.h.bf16 %v2999_v7  ;;  %v995_v7 = vunpack.c.h.bf16 %v2990_v2 }
  0x84   : > { %v3199_v42 = vld [vmem:[%s2959_s1 + $0x240] sm:$0xff]  ;;  %v890_v50 = vunpack.c.l.bf16 %v3194_v34  ;;  %1330 = vmatpush.msra.mxu3 %v1026_v5 }
  0x85   : > { %v3202_v43 = vld [vmem:[%s2959_s1 + $0x640] sm:$0xff]  ;;  %v762_v60 = vunpack.c.l.bf16 %v3199_v42  ;;  %1271 = vmatpush.msra.mxu0 %v634_v58 }
  0x86   : > { %4951 = vst [vmem:[#allocation30_spill] sm:$0xff] %v3202_v43  ;;  %v3207_v51 = vld [vmem:[%s2959_s1 + $0x20] sm:$0xff]  ;;  %v1018_v17 = vunpack.c.l.bf16 %v3202_v43  ;;  %1311 = vmatpush.msra.mxu2 %v890_v50 }
  0x87   : > { %v3210_v52 = vld [vmem:[%s2959_s1 + $0x420] sm:$0xff]  ;;  %v626_v10 = vunpack.c.l.bf16 %v3207_v51  ;;  %1291 = vmatpush.msra.mxu1 %v762_v60  ;;  %v859_v60 = vunpack.c.h.bf16 %v3014_v14  ;;  %v723_v14 = vunpack.c.h.bf16 %v3011_v13  ;;  %v971_v13 = vunpack.c.h.bf16 %v3034_v24 }
  0x88   : > { %v3215_v46 = vld [vmem:[%s2959_s1 + $0x220] sm:$0xff]  ;;  %v882_v32 = vunpack.c.l.bf16 %v3210_v52  ;;  %1331 = vmatpush.msra.mxu3 %v1018_v17  ;;  %v739_v17 = vunpack.c.h.bf16 %v2987_v1  ;;  %v987_v1 = vunpack.c.h.bf16 %v3002_v8 }
  0x89   : > { %v3218_v59 = vld [vmem:[%s2959_s1 + $0x620] sm:$0xff]  ;;  %v754_v23 = vunpack.c.l.bf16 %v3215_v46  ;;  %1272 = vmatpush.msra.mxu0 %v626_v10 }
  0x8a   : > { %4952 = vst [vmem:[#allocation31_spill] sm:$0xff] %v3218_v59  ;;  %v3223_v40 = vld [vmem:[%s2959_s1] sm:$0xff]  ;;  %v1010_v27 = vunpack.c.l.bf16 %v3218_v59  ;;  %1312 = vmatpush.msra.mxu2 %v882_v32 }
  0x8b   : > { %v3226_v6 = vld [vmem:[%s2959_s1 + $0x400] sm:$0xff]  ;;  %v618_v22 = vunpack.c.l.bf16 %v3223_v40  ;;  %1292 = vmatpush.msra.mxu1 %v754_v23  ;;  %v731_v23 = vunpack.c.h.bf16 %v2993_v3  ;;  %v979_v3 = vunpack.c.h.bf16 %v3017_v15 }
  0x8c   : > { %4953 = vst [vmem:[#allocation32_spill] sm:$0xff] %v3226_v6  ;;  %v3231_v25 = vld [vmem:[%s2959_s1 + $0x9e0] sm:$0xff]  ;;  %v874_v39 = vunpack.c.l.bf16 %v3226_v6  ;;  %1332 = vmatpush.msra.mxu3 %v1010_v27  ;;  %v851_v27 = vunpack.c.h.bf16 %v3029_v21  ;;  %v715_v21 = vunpack.c.h.bf16 %v3026_v20  ;;  %v963_v20 = vunpack.c.h.bf16 %v3049_v31 }
  0x8d   : > { %v3236_v43 = vld [vmem:[%s2959_s1 + $0x200] sm:$0xff]  ;;  %v1250_v5 = vunpack.c.l.bf16 %v3231_v25  ;;  %1273 = vmatpush.msra.mxu0 %v618_v22 }
  0x8e   : > { %v3239_v19 = vld [vmem:[%s2959_s1 + $0x600] sm:$0xff]  ;;  %v746_v59 = vunpack.c.l.bf16 %v3236_v43  ;;  %1313 = vmatpush.msra.mxu2 %v874_v39  ;;  %v843_v39 = vunpack.c.h.bf16 %v3046_v30  ;;  %v707_v30 = vunpack.c.h.bf16 %v3040_v26  ;;  %v955_v26 = vunpack.c.h.bf16 %v3063_v37 }
  0x8f   : > { %v3244_v9 = vld [vmem:[%s2959_s1 + $0x9c0] sm:$0xff]  ;;  %v1002_v58 = vunpack.c.l.bf16 %v3239_v19  ;;  %1338 = vmatpush.msrb.mxu0 %v1250_v5 }
  0x90   : > { %v3251_v50 = vld [vmem:[%s2959_s1 + $0x9a0] sm:$0xff]  ;;  %v1242_v6 = vunpack.c.l.bf16 %v3244_v9  ;;  %1378 = vmatpush.msrb.mxu2 %v867_v56  ;;  %1293 = vmatpush.msra.mxu1 %v746_v59  ;;  %v827_v56 = vunpack.c.h.bf16 %v3071_v41  ;;  %v691_v41 = vunpack.c.h.bf16 %v3076_v44  ;;  %v939_v44 = vunpack.c.h.bf16 %v3098_v54 }
  0x91   : > { %v3258_v32 = vld [vmem:[%s2959_s1 + $0x980] sm:$0xff]  ;;  %v1234_v10 = vunpack.c.l.bf16 %v3251_v50  ;;  %1333 = vmatpush.msra.mxu3 %v1002_v58 }
  0x92   : > { %v3265_v22 = vld [vmem:[%s2959_s1 + $0x960] sm:$0xff]  ;;  %1339 = vmatpush.msrb.mxu0 %v1242_v6  ;;  %1358 = vmatpush.msrb.mxu1 %v739_v17  ;;  %v1226_v2 = vunpack.c.l.bf16 %v3258_v32  ;;  %v835_v6 = vunpack.c.h.bf16 %v3060_v36  ;;  %v699_v36 = vunpack.c.h.bf16 %v3057_v35  ;;  %v819_v17 = vunpack.c.h.bf16 %v3087_v49 }
  0x93   : > { %1379 = vmatpush.msrb.mxu2 %v859_v60  ;;  %1398 = vmatpush.msrb.mxu3 %v995_v7  ;;  %v3272_v59 = vld [vmem:[%s2959_s1 + $0x940] sm:$0xff]  ;;  %v1218_v8 = vunpack.c.l.bf16 %v3265_v22  ;;  %v811_v7 = vunpack.c.h.bf16 %v3103_v57  ;;  %v947_v35 = vunpack.c.h.bf16 %v3079_v45  ;;  %v683_v49 = vunpack.c.h.bf16 %v3095_v53 }
  0x94   : > { %1340 = vmatpush.msrb.mxu0 %v1234_v10  ;;  %1359 = vmatpush.msrb.mxu1 %v731_v23  ;;  %v3279_v5 = vld [vmem:[%s2959_s1 + $0x920] sm:$0xff]  ;;  %v1210_v15 = vunpack.c.l.bf16 %v3272_v59  ;;  %v803_v23 = vunpack.c.h.bf16 %v3119_v4  ;;  %v675_v57 = vunpack.c.h.bf16 %v3111_v61  ;;  %v931_v53 = vunpack.c.h.bf16 %v3114_v62 }
  0x95   : > { %1380 = vmatpush.msrb.mxu2 %v851_v27  ;;  %1399 = vmatpush.msrb.mxu3 %v987_v1  ;;  %v3286_v58 = vld [vmem:[%s2959_s1 + $0x900] sm:$0xff]  ;;  %v1202_v24 = vunpack.c.l.bf16 %v3279_v5  ;;  %v795_v1 = vunpack.c.h.bf16 %v3135_v18  ;;  %v667_v4 = vunpack.c.h.bf16 %v3127_v11  ;;  %v923_v61 = vunpack.c.h.bf16 %v3130_v12 }
  0x96   : > { %1341 = vmatpush.msrb.mxu0 %v1226_v2  ;;  %1360 = vmatpush.msrb.mxu1 %v723_v14  ;;  %v3293_v60 = vld [vmem:[%s2959_s1 + $0x8e0] sm:$0xff]  ;;  %v1194_v31 = vunpack.c.l.bf16 %v3286_v58  ;;  %v787_v14 = vunpack.c.h.bf16 %v3151_v38  ;;  %v659_v18 = vunpack.c.h.bf16 %v3143_v28  ;;  %v915_v11 = vunpack.c.h.bf16 %v3146_v29 }
  0x97   : > { %1381 = vmatpush.msrb.mxu2 %v843_v39  ;;  %1400 = vmatpush.msrb.mxu3 %v979_v3  ;;  %v3300_v10 = vld [vmem:[%s2959_s1 + $0x8c0] sm:$0xff]  ;;  %v1186_v37 = vunpack.c.l.bf16 %v3293_v60  ;;  %v779_v3 = vunpack.c.h.bf16 %v3167_v55  ;;  %v651_v38 = vunpack.c.h.bf16 %v3159_v47  ;;  %v907_v28 = vunpack.c.h.bf16 %v3162_v48 }
  0x98   : > { %1342 = vmatpush.msrb.mxu0 %v1218_v8  ;;  %1361 = vmatpush.msrb.mxu1 %v715_v21  ;;  %v3307_v27 = vld [vmem:[%s2959_s1 + $0x8a0] sm:$0xff]  ;;  %v1178_v45 = vunpack.c.l.bf16 %v3300_v10  ;;  %v771_v21 = vunpack.c.h.bf16 %v3183_v16  ;;  %v643_v55 = vunpack.c.h.bf16 %v3175_v63  ;;  %v899_v47 = vunpack.c.h.bf16 %v3178_v0 }
  0x99   : > { %1382 = vmatpush.msrb.mxu2 %v835_v6  ;;  %1401 = vmatpush.msrb.mxu3 %v971_v13  ;;  %v3314_v2 = vld [vmem:[%s2959_s1 + $0x880] sm:$0xff]  ;;  %v1170_v54 = vunpack.c.l.bf16 %v3307_v27  ;;  %v763_v13 = vunpack.c.h.bf16 %v3199_v42  ;;  %v635_v16 = vunpack.c.h.bf16 %v3191_v33  ;;  %v755_v63 = vunpack.c.h.bf16 %v3215_v46  ;;  %v3350_v42 = vld [vmem:[%s2981_s4 + $0x10] sm:$0xff] }
  0x9a   : > { %1343 = vmatpush.msrb.mxu0 %v1210_v15  ;;  %1362 = vmatpush.msrb.mxu1 %v707_v30  ;;  %v3321_v39 = vld [vmem:[%s2959_s1 + $0x860] sm:$0xff]  ;;  %v1162_v62 = vunpack.c.l.bf16 %v3314_v2  ;;  %v891_v30 = vunpack.c.h.bf16 %v3194_v34  ;;  %v747_v33 = vunpack.c.h.bf16 %v3236_v43  ;;  %v883_v46 = vunpack.c.h.bf16 %v3210_v52  ;;  %v4954_v34 = vld [vmem:[#allocation17_spill] sm:$0xff]  ;;  %v3372_v52 = vld [vmem:[%s2959_s1 + $0x3e8] sm:$0xff] }
  0x9b   : > { %1383 = vmatpush.msrb.mxu2 %v827_v56  ;;  %1402 = vmatpush.msrb.mxu3 %v963_v20  ;;  %v3328_v8 = vld [vmem:[%s2959_s1 + $0x840] sm:$0xff]  ;;  %v1154_v12 = vunpack.c.l.bf16 %v3321_v39  ;;  %v627_v56 = vunpack.c.h.bf16 %v3207_v51  ;;  %v3355_v20 = vld [vmem:[%s2959_s1 + $0x1e8] sm:$0xff]  ;;  %v3364_v51 = vld [vmem:[%s2981_s4 + $0x18] sm:$0xff] }
  0x9c   : > { %1344 = vmatpush.msrb.mxu0 %v1202_v24  ;;  %1363 = vmatpush.msrb.mxu1 %v699_v36  ;;  %v3335_v6 = vld [vmem:[%s2959_s1 + $0x820] sm:$0xff]  ;;  %v1146_v29 = vunpack.c.l.bf16 %v3328_v8  ;;  %v1123_v24 = vunpack.c.h.bf16 %v4954_v34  ;;  %v740_v43 = vunpack.c.l.bf16 %v3355_v20 }
  0x9d   : > { %1384 = vmatpush.msrb.mxu2 %v819_v17  ;;  %1403 = vmatpush.msrb.mxu3 %v955_v26  ;;  %v3342_v15 = vld [vmem:[%s2959_s1 + $0x800] sm:$0xff]  ;;  %v1138_v48 = vunpack.c.l.bf16 %v3335_v6  ;;  %v619_v17 = vunpack.c.h.bf16 %v3223_v40  ;;  %v3369_v26 = vld [vmem:[%s2959_s1 + $0x1c8] sm:$0xff] }
  0x9e   : > { %1345 = vmatpush.msrb.mxu0 %v1194_v31  ;;  %1364 = vmatpush.msrb.mxu1 %v691_v41  ;;  %v1130_v0 = vunpack.c.l.bf16 %v3342_v15  ;;  %v3360_v36 = vld [vmem:[%s2981_s4] sm:$0xff]  ;;  %v4955_v31 = vld [vmem:[#allocation32_spill] sm:$0xff] }
  0x9f   : > { %1385 = vmatpush.msrb.mxu2 %v811_v7  ;;  %1404 = vmatpush.msrb.mxu3 %v947_v35  ;;  %v875_v41 = vunpack.c.h.bf16 %v4955_v31  ;;  %v4956_v7 = vld [vmem:[#allocation18_spill] sm:$0xff]  ;;  %v3382_v40 = vld [vmem:[%s2959_s1 + $0x1a8] sm:$0xff] }
  0xa0   : > { %1346 = vmatpush.msrb.mxu0 %v1186_v37  ;;  %1365 = vmatpush.msrb.mxu1 %v683_v49  ;;  %v1115_v35 = vunpack.c.h.bf16 %v4956_v7  ;;  %v1251_v37 = vunpack.c.h.bf16 %v3231_v25  ;;  %v3379_v49 = vld [vmem:[%s2981_s4 + $0x8] sm:$0xff]  ;;  %v1243_v25 = vunpack.c.h.bf16 %v3244_v9 }
  0xa1   : > { %1386 = vmatpush.msrb.mxu2 %v803_v23  ;;  %1405 = vmatpush.msrb.mxu3 %v939_v44  ;;  %v3385_v23 = vld [vmem:[%s2959_s1 + $0x3c8] sm:$0xff]  ;;  %v732_v44 = vunpack.c.l.bf16 %v3369_v26 }
  0xa2   : > { %1347 = vmatpush.msrb.mxu0 %v1178_v45  ;;  %1366 = vmatpush.msrb.mxu1 %v675_v57  ;;  %v868_v45 = vunpack.c.l.bf16 %v3372_v52  ;;  %v4957_v57 = vld [vmem:[#allocation19_spill] sm:$0xff]  ;;  %v3404_v9 = vld [vmem:[%s2959_s1 + $0x168] sm:$0xff] }
  0xa3   : > { %1387 = vmatpush.msrb.mxu2 %v795_v1  ;;  %1406 = vmatpush.msrb.mxu3 %v931_v53  ;;  %v1107_v1 = vunpack.c.h.bf16 %v4957_v57  ;;  %v3393_v53 = vld [vmem:[%s2959_s1 + $0x188] sm:$0xff]  ;;  %v4963_v57 = vld [vmem:[#allocation25_spill] sm:$0xff] }
  0xa4   : > { %1348 = vmatpush.msrb.mxu0 %v1170_v54  ;;  %1367 = vmatpush.msrb.mxu1 %v667_v4  ;;  %v3396_v54 = vld [vmem:[%s2959_s1 + $0x3a8] sm:$0xff]  ;;  %v724_v4 = vunpack.c.l.bf16 %v3382_v40 }
  0xa5   : > { %1388 = vmatpush.msrb.mxu2 %v787_v14  ;;  %1407 = vmatpush.msrb.mxu3 %v923_v61  ;;  %v860_v14 = vunpack.c.l.bf16 %v3385_v23  ;;  %v4958_v61 = vld [vmem:[#allocation20_spill] sm:$0xff] }
  0xa6   : > { %1349 = vmatpush.msrb.mxu0 %v1162_v62  ;;  %1368 = vmatpush.msrb.mxu1 %v659_v18  ;;  %v1099_v62 = vunpack.c.h.bf16 %v4958_v61  ;;  %v1235_v18 = vunpack.c.h.bf16 %v3251_v50  ;;  %v3413_v50 = vld [vmem:[%s2959_s1 + $0x148] sm:$0xff] }
  0xa7   : > { %1389 = vmatpush.msrb.mxu2 %v779_v3  ;;  %1408 = vmatpush.msrb.mxu3 %v915_v11  ;;  %v716_v3 = vunpack.c.l.bf16 %v3393_v53  ;;  %v852_v11 = vunpack.c.l.bf16 %v3396_v54  ;;  %v3447_v31 = vld [vmem:[%s2959_s1 + $0xe8] sm:$0xff] }
  0xa8   : > { %1350 = vmatpush.msrb.mxu0 %v1154_v12  ;;  %1369 = vmatpush.msrb.mxu1 %v651_v38  ;;  %v3409_v12 = vld [vmem:[%s2959_s1 + $0x388] sm:$0xff]  ;;  %v1227_v38 = vunpack.c.h.bf16 %v3258_v32 }
  0xa9   : > { %1390 = vmatpush.msrb.mxu2 %v771_v21  ;;  %1409 = vmatpush.msrb.mxu3 %v907_v28  ;;  %v4959_v21 = vld [vmem:[#allocation21_spill] sm:$0xff]  ;;  %v844_v32 = vunpack.c.l.bf16 %v3409_v12  ;;  %v3467_v61 = vld [vmem:[%s2959_s1 + $0xa8] sm:$0xff] }
  0xaa   : > { %1351 = vmatpush.msrb.mxu0 %v1146_v29  ;;  %1370 = vmatpush.msrb.mxu1 %v643_v55  ;;  %v1091_v28 = vunpack.c.h.bf16 %v4959_v21  ;;  %v3417_v29 = vld [vmem:[%s2981_s4 + $0x20] sm:$0xff]  ;;  %v708_v55 = vunpack.c.l.bf16 %v3404_v9  ;;  %v3477_v21 = vld [vmem:[%s2959_s1 + $0x88] sm:$0xff] }
  0xab   : > { %1391 = vmatpush.msrb.mxu2 %v763_v13  ;;  %1410 = vmatpush.msrb.mxu3 %v899_v47  ;;  %v3421_v13 = vld [vmem:[%s2959_s1 + $0x368] sm:$0xff]  ;;  %v1219_v47 = vunpack.c.h.bf16 %v3265_v22 }
  0xac   : > { %1352 = vmatpush.msrb.mxu0 %v1138_v48  ;;  %1371 = vmatpush.msrb.mxu1 %v635_v16  ;;  %v3426_v48 = vld [vmem:[%s2959_s1 + $0x128] sm:$0xff]  ;;  %v4960_v16 = vld [vmem:[#allocation22_spill] sm:$0xff]  ;;  %v836_v22 = vunpack.c.l.bf16 %v3421_v13 }
  0xad   : > { %1392 = vmatpush.msrb.mxu2 %v755_v63  ;;  %1411 = vmatpush.msrb.mxu3 %v891_v30  ;;  %v1083_v63 = vunpack.c.h.bf16 %v4960_v16  ;;  %v700_v30 = vunpack.c.l.bf16 %v3413_v50  ;;  %v1171_v16 = vunpack.c.h.bf16 %v3307_v27 }
  0xae   : > { %1314 = vmatmul.f32.vlgmr.msra.gmra.mxu2 %v3350_v42  ;;  %1353 = vmatpush.msrb.mxu0 %v1130_v0  ;;  %v3431_v0 = vld [vmem:[%s2959_s1 + $0x348] sm:$0xff] }
  0xaf   : > { %1372 = vmatpush.msrb.mxu1 %v627_v56  ;;  %1393 = vmatpush.msrb.mxu2 %v747_v33  ;;  %v1211_v56 = vunpack.c.h.bf16 %v3272_v59  ;;  %v3437_v33 = vld [vmem:[%s2959_s1 + $0x108] sm:$0xff]  ;;  %v828_v59 = vunpack.c.l.bf16 %v3431_v0 }
  0xb0   : > { %1412 = vmatpush.msrb.mxu3 %v883_v46  ;;  %1274 = vmatmul.f32.vlgmr.msra.gmra.mxu0 %v3360_v36  ;;  %v4961_v46 = vld [vmem:[#allocation23_spill] sm:$0xff] }
  0xb1   : > { %1334 = vmatmul.f32.vlgmr.msra.gmra.mxu3 %v3364_v51  ;;  %1418 = vmatpush.msra.mxu0 %v1123_v24  ;;  %v1075_v34 = vunpack.c.h.bf16 %v4961_v46  ;;  %v692_v24 = vunpack.c.l.bf16 %v3426_v48  ;;  %v3492_v46 = vld [vmem:[%s2959_s1 + $0x288] sm:$0xff] }
  0xb2   : > { %1458 = vmatpush.msra.mxu2 %v740_v43  ;;  %1373 = vmatpush.msrb.mxu1 %v619_v17  ;;  %v3442_v43 = vld [vmem:[%s2959_s1 + $0x328] sm:$0xff]  ;;  %v1203_v17 = vunpack.c.h.bf16 %v3279_v5  ;;  %4969 = vst [vmem:[#allocation18_spill] sm:$0xff] %v3492_v46 }
  0xb3   : > { %1413 = vmatpush.msrb.mxu3 %v875_v41  ;;  %1294 = vmatmul.f32.vlgmr.msra.gmra.mxu1 %v3379_v49  ;;  %v4962_v41 = vld [vmem:[#allocation24_spill] sm:$0xff]  ;;  %v820_v5 = vunpack.c.l.bf16 %v3442_v43 }
  0xb4   : > { %1419 = vmatpush.msra.mxu0 %v1115_v35  ;;  %1438 = vmatpush.msra.mxu1 %v1251_v37  ;;  %v1067_v7 = vunpack.c.h.bf16 %v4962_v41  ;;  %v684_v35 = vunpack.c.l.bf16 %v3437_v33  ;;  %v3452_v37 = vld [vmem:[%s2959_s1 + $0x308] sm:$0xff] }
  0xb5   : > { %1459 = vmatpush.msra.mxu2 %v732_v44  ;;  %1478 = vmatpush.msra.mxu3 %v868_v45  ;;  %v1195_v44 = vunpack.c.h.bf16 %v3286_v58  ;;  %v3457_v45 = vld [vmem:[%s2959_s1 + $0xc8] sm:$0xff]  ;;  %v812_v58 = vunpack.c.l.bf16 %v3452_v37 }
  0xb6   : > { %1420 = vmatpush.msra.mxu0 %v1107_v1  ;;  %1439 = vmatpush.msra.mxu1 %v1243_v25  ;;  %v1059_v1 = vunpack.c.h.bf16 %v4963_v57  ;;  %v676_v25 = vunpack.c.l.bf16 %v3447_v31 }
  0xb7   : > { %1460 = vmatpush.msra.mxu2 %v724_v4  ;;  %1479 = vmatpush.msra.mxu3 %v860_v14  ;;  %v3462_v4 = vld [vmem:[%s2959_s1 + $0x2e8] sm:$0xff]  ;;  %v1187_v14 = vunpack.c.h.bf16 %v3293_v60 }
  0xb8   : > { %1421 = vmatpush.msra.mxu0 %v1099_v62  ;;  %1440 = vmatpush.msra.mxu1 %v1235_v18  ;;  %v4964_v62 = vld [vmem:[#allocation26_spill] sm:$0xff]  ;;  %v804_v60 = vunpack.c.l.bf16 %v3462_v4 }
  0xb9   : > { %1461 = vmatpush.msra.mxu2 %v716_v3  ;;  %1480 = vmatpush.msra.mxu3 %v852_v11  ;;  %v1051_v18 = vunpack.c.h.bf16 %v4964_v62  ;;  %v668_v3 = vunpack.c.l.bf16 %v3457_v45  ;;  %v3472_v11 = vld [vmem:[%s2959_s1 + $0x2c8] sm:$0xff] }
  0xba   : > { %1354 = vmatmul.f32.vlgmr.msrb.gmra.mxu0 %v3417_v29  ;;  %1441 = vmatpush.msra.mxu1 %v1227_v38  ;;  %4965 = vst [vmem:[#allocation17_spill] sm:$0xff] %v3472_v11  ;;  %v1179_v38 = vunpack.c.h.bf16 %v3300_v10  ;;  %v796_v10 = vunpack.c.l.bf16 %v3472_v11  ;;  %v3651_v11 = vld [vmem:[%s2959_s1 + $0x6e8] sm:$0xff] }
  0xbb   : > { %1422 = vmatpush.msra.mxu0 %v1091_v28  ;;  %1462 = vmatpush.msra.mxu2 %v708_v55  ;;  %v4966_v28 = vld [vmem:[#allocation27_spill] sm:$0xff] }
  0xbc   : > { %1481 = vmatpush.msra.mxu3 %v844_v32  ;;  %1442 = vmatpush.msra.mxu1 %v1219_v47  ;;  %v1043_v55 = vunpack.c.h.bf16 %v4966_v28  ;;  %v660_v47 = vunpack.c.l.bf16 %v3467_v61  ;;  %v3482_v32 = vld [vmem:[%s2959_s1 + $0x2a8] sm:$0xff]  ;;  %v1003_v28 = vunpack.c.h.bf16 %v3239_v19 }
  0xbd   : > { %1423 = vmatpush.msra.mxu0 %v1083_v63  ;;  %1463 = vmatpush.msra.mxu2 %v700_v30  ;;  %4967 = vst [vmem:[#allocation32_spill] sm:$0xff] %v3482_v32  ;;  %v3487_v63 = vld [vmem:[%s2959_s1 + $0x68] sm:$0xff]  ;;  %v788_v27 = vunpack.c.l.bf16 %v3482_v32 }
  0xbe   : > { %1482 = vmatpush.msra.mxu3 %v836_v22  ;;  %1443 = vmatpush.msra.mxu1 %v1211_v56  ;;  %v4968_v30 = vld [vmem:[#allocation28_spill] sm:$0xff]  ;;  %v652_v22 = vunpack.c.l.bf16 %v3477_v21  ;;  %v644_v41 = vunpack.c.l.bf16 %v3487_v63 }
  0xbf   : > { %1424 = vmatpush.msra.mxu0 %v1075_v34  ;;  %1464 = vmatpush.msra.mxu2 %v692_v24  ;;  %v1035_v56 = vunpack.c.h.bf16 %v4968_v30  ;;  %v1163_v34 = vunpack.c.h.bf16 %v3314_v2  ;;  %v3497_v24 = vld [vmem:[%s2959_s1 + $0x48] sm:$0xff]  ;;  %v780_v2 = vunpack.c.l.bf16 %v3492_v46 }
  0xc0   : > { %1483 = vmatpush.msra.mxu3 %v828_v59  ;;  %1444 = vmatpush.msra.mxu1 %v1203_v17  ;;  %v4970_v17 = vld [vmem:[#allocation29_spill] sm:$0xff]  ;;  %v3536_v30 = vld [vmem:[%s2959_s1 + $0x208] sm:$0xff] }
  0xc1   : > { %1425 = vmatpush.msra.mxu0 %v1067_v7  ;;  %1465 = vmatpush.msra.mxu2 %v684_v35  ;;  %v1027_v59 = vunpack.c.h.bf16 %v4970_v17  ;;  %v3502_v7 = vld [vmem:[%s2959_s1 + $0x268] sm:$0xff]  ;;  %v1155_v35 = vunpack.c.h.bf16 %v3321_v39  ;;  %4976 = vst [vmem:[#allocation22_spill] sm:$0xff] %v3536_v30  ;;  %v748_v17 = vunpack.c.l.bf16 %v3536_v30 }
  0xc2   : > { %1484 = vmatpush.msra.mxu3 %v820_v5  ;;  %1445 = vmatpush.msra.mxu1 %v1195_v44  ;;  %4971 = vst [vmem:[#allocation19_spill] sm:$0xff] %v3502_v7  ;;  %v3507_v44 = vld [vmem:[%s2959_s1 + $0x28] sm:$0xff]  ;;  %v4972_v5 = vld [vmem:[#allocation30_spill] sm:$0xff]  ;;  %v772_v39 = vunpack.c.l.bf16 %v3502_v7 }
  0xc3   : > { %1426 = vmatpush.msra.mxu0 %v1059_v1  ;;  %1466 = vmatpush.msra.mxu2 %v676_v25  ;;  %v1019_v57 = vunpack.c.h.bf16 %v4972_v5  ;;  %v636_v1 = vunpack.c.l.bf16 %v3497_v24  ;;  %v3512_v25 = vld [vmem:[%s2959_s1 + $0x248] sm:$0xff] }
  0xc4   : > { %1485 = vmatpush.msra.mxu3 %v812_v58  ;;  %1446 = vmatpush.msra.mxu1 %v1187_v14  ;;  %4973 = vst [vmem:[#allocation20_spill] sm:$0xff] %v3512_v25  ;;  %v1147_v14 = vunpack.c.h.bf16 %v3328_v8  ;;  %v4974_v58 = vld [vmem:[#allocation31_spill] sm:$0xff]  ;;  %v764_v8 = vunpack.c.l.bf16 %v3512_v25  ;;  %v3624_v30 = vld [vmem:[%s2959_s1 + $0x728] sm:$0xff] }
  0xc5   : > { %1427 = vmatpush.msra.mxu0 %v1051_v18  ;;  %1467 = vmatpush.msra.mxu2 %v668_v3  ;;  %v1011_v62 = vunpack.c.h.bf16 %v4974_v58  ;;  %v628_v18 = vunpack.c.l.bf16 %v3507_v44  ;;  %v3519_v3 = vld [vmem:[%s2959_s1 + $0x8] sm:$0xff] }
  0xc6   : > { %1486 = vmatpush.msra.mxu3 %v804_v60  ;;  %1447 = vmatpush.msra.mxu1 %v1179_v38  ;;  %v3522_v38 = vld [vmem:[%s2959_s1 + $0x228] sm:$0xff] }
  0xc7   : > { %1428 = vmatpush.msra.mxu0 %v1043_v55  ;;  %1468 = vmatpush.msra.mxu2 %v660_v47  ;;  %4975 = vst [vmem:[#allocation21_spill] sm:$0xff] %v3522_v38  ;;  %v3526_v60 = vld [vmem:[%s2959_s1 + $0x5e8] sm:$0xff]  ;;  %v1139_v55 = vunpack.c.h.bf16 %v3335_v6 }
  0xc8   : > { %1487 = vmatpush.msra.mxu3 %v796_v10  ;;  %1448 = vmatpush.msra.mxu1 %v1171_v16  ;;  %v3531_v47 = vld [vmem:[%s2959_s1 + $0x9e8] sm:$0xff]  ;;  %v620_v16 = vunpack.c.l.bf16 %v3519_v3  ;;  %v756_v10 = vunpack.c.l.bf16 %v3522_v38  ;;  %v996_v19 = vunpack.c.l.bf16 %v3526_v60 }
  0xc9   : > { %1429 = vmatpush.msra.mxu0 %v1035_v56  ;;  %1469 = vmatpush.msra.mxu2 %v652_v22  ;;  %v3540_v6 = vld [vmem:[%s2959_s1 + $0x5c8] sm:$0xff]  ;;  %v1131_v22 = vunpack.c.h.bf16 %v3342_v15 }
  0xca   : > { %1488 = vmatpush.msra.mxu3 %v788_v27  ;;  %1449 = vmatpush.msra.mxu1 %v1163_v34  ;;  %v3543_v56 = vld [vmem:[%s2959_s1 + $0x7e8] sm:$0xff]  ;;  %v1252_v34 = vunpack.c.l.bf16 %v3531_v47  ;;  %v988_v15 = vunpack.c.l.bf16 %v3540_v6 }
  0xcb   : > { %1430 = vmatpush.msra.mxu0 %v1027_v59  ;;  %1470 = vmatpush.msra.mxu2 %v644_v41  ;;  %v3549_v27 = vld [vmem:[%s2959_s1 + $0x9c8] sm:$0xff] }
  0xcc   : > { %1489 = vmatpush.msra.mxu3 %v780_v2  ;;  %1450 = vmatpush.msra.mxu1 %v1155_v35  ;;  %v3553_v59 = vld [vmem:[%s2959_s1 + $0x5a8] sm:$0xff]  ;;  %v1124_v35 = vunpack.c.l.bf16 %v3543_v56  ;;  %v1244_v5 = vunpack.c.l.bf16 %v3549_v27 }
  0xcd   : > { %1431 = vmatpush.msra.mxu0 %v1019_v57  ;;  %1471 = vmatpush.msra.mxu2 %v636_v1  ;;  %v3556_v41 = vld [vmem:[%s2959_s1 + $0x7c8] sm:$0xff]  ;;  %v741_v57 = vunpack.c.h.bf16 %v3355_v20  ;;  %v733_v20 = vunpack.c.h.bf16 %v3369_v26  ;;  %v725_v26 = vunpack.c.h.bf16 %v3382_v40  ;;  %v717_v40 = vunpack.c.h.bf16 %v3393_v53 }
  0xce   : > { %1490 = vmatpush.msra.mxu3 %v772_v39  ;;  %1451 = vmatpush.msra.mxu1 %v1147_v14  ;;  %v3561_v2 = vld [vmem:[%s2959_s1 + $0x9a8] sm:$0xff]  ;;  %v980_v39 = vunpack.c.l.bf16 %v3553_v59  ;;  %v1116_v58 = vunpack.c.l.bf16 %v3556_v41 }
  0xcf   : > { %1432 = vmatpush.msra.mxu0 %v1011_v62  ;;  %1472 = vmatpush.msra.mxu2 %v628_v18  ;;  %v3567_v1 = vld [vmem:[%s2959_s1 + $0x588] sm:$0xff]  ;;  %v1236_v18 = vunpack.c.l.bf16 %v3561_v2 }
  0xd0   : > { %1491 = vmatpush.msra.mxu3 %v764_v8  ;;  %1394 = vmatmul.f32.vlgmr.msrb.gmra.mxu2 %v3379_v49  ;;  %v3570_v14 = vld [vmem:[%s2959_s1 + $0x7a8] sm:$0xff] }
  0xd1   : > { %1433 = vmatpush.msra.mxu0 %v1003_v28  ;;  %1452 = vmatpush.msra.mxu1 %v1139_v55  ;;  %v3575_v62 = vld [vmem:[%s2959_s1 + $0x988] sm:$0xff]  ;;  %v972_v28 = vunpack.c.l.bf16 %v3567_v1  ;;  %v1108_v55 = vunpack.c.l.bf16 %v3570_v14 }
  0xd2   : > { %1473 = vmatpush.msra.mxu2 %v620_v16  ;;  %1492 = vmatpush.msra.mxu3 %v756_v10  ;;  %v3581_v8 = vld [vmem:[%s2959_s1 + $0x788] sm:$0xff] }
  0xd3   : > { %1414 = vmatmul.f32.vlgmr.msrb.gmra.mxu3 %v3350_v42  ;;  %1498 = vmatpush.msrb.mxu0 %v996_v19  ;;  %v3586_v16 = vld [vmem:[%s2959_s1 + $0x568] sm:$0xff]  ;;  %v1228_v19 = vunpack.c.l.bf16 %v3575_v62 }
  0xd4   : > { %1538 = vmatpush.msrb.mxu2 %v1252_v34  ;;  %1453 = vmatpush.msra.mxu1 %v1131_v22  ;;  %v3589_v10 = vld [vmem:[%s2959_s1 + $0x968] sm:$0xff]  ;;  %v1100_v22 = vunpack.c.l.bf16 %v3581_v8 }
  0xd5   : > { %1493 = vmatpush.msra.mxu3 %v748_v17  ;;  %1374 = vmatmul.f32.vlgmr.msrb.gmra.mxu1 %v3360_v36  ;;  %v3595_v34 = vld [vmem:[%s2959_s1 + $0x548] sm:$0xff] }
  0xd6   : > { %1499 = vmatpush.msrb.mxu0 %v988_v15  ;;  %1518 = vmatpush.msrb.mxu1 %v1124_v35  ;;  %v3598_v17 = vld [vmem:[%s2959_s1 + $0x768] sm:$0xff]  ;;  %v964_v15 = vunpack.c.l.bf16 %v3586_v16  ;;  %v1220_v35 = vunpack.c.l.bf16 %v3589_v10 }
  0xd7   : > { %1539 = vmatpush.msrb.mxu2 %v1244_v5  ;;  %1558 = vmatpush.msrb.mxu3 %v741_v57  ;;  %v3603_v5 = vld [vmem:[%s2959_s1 + $0x948] sm:$0xff] }
  0xd8   : > { %1500 = vmatpush.msrb.mxu0 %v980_v39  ;;  %1519 = vmatpush.msrb.mxu1 %v1116_v58  ;;  %v3607_v57 = vld [vmem:[%s2959_s1 + $0x528] sm:$0xff]  ;;  %v956_v58 = vunpack.c.l.bf16 %v3595_v34  ;;  %v1212_v53 = vunpack.c.l.bf16 %v3603_v5 }
  0xd9   : > { %1540 = vmatpush.msrb.mxu2 %v1236_v18  ;;  %1559 = vmatpush.msrb.mxu3 %v733_v20  ;;  %v3610_v39 = vld [vmem:[%s2959_s1 + $0x748] sm:$0xff]  ;;  %v1092_v18 = vunpack.c.l.bf16 %v3598_v17 }
  0xda   : > { %1501 = vmatpush.msrb.mxu0 %v972_v28  ;;  %1520 = vmatpush.msrb.mxu1 %v1108_v55  ;;  %v3615_v20 = vld [vmem:[%s2959_s1 + $0x928] sm:$0xff]  ;;  %v709_v28 = vunpack.c.h.bf16 %v3404_v9 }
  0xdb   : > { %1541 = vmatpush.msrb.mxu2 %v1228_v19  ;;  %1560 = vmatpush.msrb.mxu3 %v725_v26  ;;  %v3621_v55 = vld [vmem:[%s2959_s1 + $0x508] sm:$0xff]  ;;  %v948_v19 = vunpack.c.l.bf16 %v3607_v57  ;;  %v1084_v26 = vunpack.c.l.bf16 %v3610_v39  ;;  %v1204_v9 = vunpack.c.l.bf16 %v3615_v20 }
  0xdc   : > { %1434 = vmatmul.f32.vlgmr.msra.gmra.mxu0 %v3364_v51  ;;  %1521 = vmatpush.msrb.mxu1 %v1100_v22  ;;  %4977 = vst [vmem:[#allocation23_spill] sm:$0xff] %v3621_v55  ;;  %v3629_v38 = vld [vmem:[%s2959_s1 + $0x908] sm:$0xff]  ;;  %v701_v22 = vunpack.c.h.bf16 %v3413_v50  ;;  %v693_v50 = vunpack.c.h.bf16 %v3426_v48  ;;  %v685_v48 = vunpack.c.h.bf16 %v3437_v33  ;;  %v677_v33 = vunpack.c.h.bf16 %v3447_v31 }
  0xdd   : > { %1502 = vmatpush.msrb.mxu0 %v964_v15  ;;  %1542 = vmatpush.msrb.mxu2 %v1220_v35  ;;  %4978 = vst [vmem:[#allocation24_spill] sm:$0xff] %v3629_v38  ;;  %v3635_v25 = vld [vmem:[%s2959_s1 + $0x4e8] sm:$0xff]  ;;  %v940_v15 = vunpack.c.l.bf16 %v3621_v55  ;;  %v1076_v35 = vunpack.c.l.bf16 %v3624_v30  ;;  %v669_v31 = vunpack.c.h.bf16 %v3457_v45  ;;  %v661_v45 = vunpack.c.h.bf16 %v3467_v61 }
  0xde   : > { %1561 = vmatpush.msrb.mxu3 %v717_v40  ;;  %1454 = vmatmul.f32.vlgmr.msra.gmra.mxu1 %v3417_v29  ;;  %4979 = vst [vmem:[#allocation25_spill] sm:$0xff] %v3635_v25  ;;  %v3638_v7 = vld [vmem:[%s2959_s1 + $0x708] sm:$0xff]  ;;  %v1196_v40 = vunpack.c.l.bf16 %v3629_v38  ;;  %v653_v61 = vunpack.c.h.bf16 %v3477_v21  ;;  %v645_v21 = vunpack.c.h.bf16 %v3487_v63 }
  0xdf   : > { %1503 = vmatpush.msrb.mxu0 %v956_v58  ;;  %1522 = vmatpush.msrb.mxu1 %v1092_v18  ;;  %v3643_v46 = vld [vmem:[%s2959_s1 + $0x8e8] sm:$0xff]  ;;  %v932_v58 = vunpack.c.l.bf16 %v3635_v25  ;;  %v1068_v18 = vunpack.c.l.bf16 %v3638_v7 }
  0xe0   : > { %4980 = vst [vmem:[#allocation26_spill] sm:$0xff] %v3643_v46  ;;  %1543 = vmatpush.msrb.mxu2 %v1212_v53  ;;  %1562 = vmatpush.msrb.mxu3 %v709_v28  ;;  %v3648_v32 = vld [vmem:[%s2959_s1 + $0x4c8] sm:$0xff]  ;;  %v1188_v53 = vunpack.c.l.bf16 %v3643_v46 }
  0xe1   : > { %4981 = vst [vmem:[#allocation27_spill] sm:$0xff] %v3648_v32  ;;  %1504 = vmatpush.msrb.mxu0 %v948_v19  ;;  %1523 = vmatpush.msrb.mxu1 %v1084_v26  ;;  %v3656_v55 = vld [vmem:[%s2959_s1 + $0x8c8] sm:$0xff]  ;;  %v924_v19 = vunpack.c.l.bf16 %v3648_v32  ;;  %v1060_v26 = vunpack.c.l.bf16 %v3651_v11 }
  0xe2   : > { %4982 = vst [vmem:[#allocation28_spill] sm:$0xff] %v3656_v55  ;;  %1544 = vmatpush.msrb.mxu2 %v1204_v9  ;;  %1563 = vmatpush.msrb.mxu3 %v701_v22  ;;  %v3661_v28 = vld [vmem:[%s2959_s1 + $0x4a8] sm:$0xff]  ;;  %v1180_v9 = vunpack.c.l.bf16 %v3656_v55 }
  0xe3   : > { %4983 = vst [vmem:[#allocation29_spill] sm:$0xff] %v3661_v28  ;;  %v3664_v38 = vld [vmem:[%s2959_s1 + $0x6c8] sm:$0xff]  ;;  %1505 = vmatpush.msrb.mxu0 %v940_v15  ;;  %1524 = vmatpush.msrb.mxu1 %v1076_v35  ;;  %v916_v15 = vunpack.c.l.bf16 %v3661_v28 }
  0xe4   : > { %v3669_v25 = vld [vmem:[%s2959_s1 + $0x8a8] sm:$0xff]  ;;  %1545 = vmatpush.msrb.mxu2 %v1196_v40  ;;  %1564 = vmatpush.msrb.mxu3 %v693_v50  ;;  %v1052_v35 = vunpack.c.l.bf16 %v3664_v38 }
  0xe5   : > { %4984 = vst [vmem:[#allocation30_spill] sm:$0xff] %v3669_v25  ;;  %v3674_v22 = vld [vmem:[%s2959_s1 + $0x488] sm:$0xff]  ;;  %1506 = vmatpush.msrb.mxu0 %v932_v58  ;;  %1525 = vmatpush.msrb.mxu1 %v1068_v18  ;;  %v1172_v40 = vunpack.c.l.bf16 %v3669_v25 }
  0xe6   : > { %4985 = vst [vmem:[#allocation31_spill] sm:$0xff] %v3674_v22  ;;  %v3677_v46 = vld [vmem:[%s2959_s1 + $0x6a8] sm:$0xff]  ;;  %1546 = vmatpush.msrb.mxu2 %v1188_v53  ;;  %1565 = vmatpush.msrb.mxu3 %v685_v48  ;;  %v908_v58 = vunpack.c.l.bf16 %v3674_v22 }
  0xe7   : > { %v3682_v32 = vld [vmem:[%s2959_s1 + $0x888] sm:$0xff]  ;;  %1507 = vmatpush.msrb.mxu0 %v924_v19  ;;  %1526 = vmatpush.msrb.mxu1 %v1060_v26  ;;  %v1044_v18 = vunpack.c.l.bf16 %v3677_v46 }
  0xe8   : > { %4986 = vst [vmem:[#allocation33_spill] sm:$0xff] %v3682_v32  ;;  %v3687_v50 = vld [vmem:[%s2959_s1 + $0x468] sm:$0xff]  ;;  %1547 = vmatpush.msrb.mxu2 %v1180_v9  ;;  %1566 = vmatpush.msrb.mxu3 %v677_v33  ;;  %v1164_v53 = vunpack.c.l.bf16 %v3682_v32 }
  0xe9   : > { %4987 = vst [vmem:[#allocation34_spill] sm:$0xff] %v3687_v50  ;;  %v3690_v55 = vld [vmem:[%s2959_s1 + $0x688] sm:$0xff]  ;;  %1508 = vmatpush.msrb.mxu0 %v916_v15  ;;  %1527 = vmatpush.msrb.mxu1 %v1052_v35  ;;  %v900_v19 = vunpack.c.l.bf16 %v3687_v50 }
  0xea   : > { %v3695_v28 = vld [vmem:[%s2959_s1 + $0x868] sm:$0xff]  ;;  %v1036_v26 = vunpack.c.l.bf16 %v3690_v55  ;;  %1548 = vmatpush.msrb.mxu2 %v1172_v40  ;;  %1567 = vmatpush.msrb.mxu3 %v669_v31 }
  0xeb   : > { %4988 = vst [vmem:[#allocation35_spill] sm:$0xff] %v3695_v28  ;;  %v3700_v48 = vld [vmem:[%s2959_s1 + $0x448] sm:$0xff]  ;;  %v1156_v9 = vunpack.c.l.bf16 %v3695_v28  ;;  %1509 = vmatpush.msrb.mxu0 %v908_v58  ;;  %1528 = vmatpush.msrb.mxu1 %v1044_v18 }
  0xec   : > { %4989 = vst [vmem:[#allocation36_spill] sm:$0xff] %v3700_v48  ;;  %v3703_v25 = vld [vmem:[%s2959_s1 + $0x668] sm:$0xff]  ;;  %v892_v15 = vunpack.c.l.bf16 %v3700_v48  ;;  %1549 = vmatpush.msrb.mxu2 %v1164_v53  ;;  %1568 = vmatpush.msrb.mxu3 %v661_v45  ;;  %v637_v45 = vunpack.c.h.bf16 %v3497_v24  ;;  %v1125_v24 = vunpack.c.h.bf16 %v3543_v56  ;;  %v853_v56 = vunpack.c.h.bf16 %v3396_v54 }
  0xed   : > { %v3708_v22 = vld [vmem:[%s2959_s1 + $0x848] sm:$0xff]  ;;  %v1028_v35 = vunpack.c.l.bf16 %v3703_v25  ;;  %1510 = vmatpush.msrb.mxu0 %v900_v19  ;;  %1529 = vmatpush.msrb.mxu1 %v1036_v26  ;;  %v1237_v54 = vunpack.c.h.bf16 %v3561_v2  ;;  %v965_v2 = vunpack.c.h.bf16 %v3586_v16  ;;  %v949_v16 = vunpack.c.h.bf16 %v3607_v57 }
  0xee   : > { %v3713_v33 = vld [vmem:[%s2959_s1 + $0x428] sm:$0xff]  ;;  %v1148_v40 = vunpack.c.l.bf16 %v3708_v22  ;;  %1550 = vmatpush.msrb.mxu2 %v1156_v9  ;;  %1569 = vmatpush.msrb.mxu3 %v653_v61  ;;  %v629_v9 = vunpack.c.h.bf16 %v3507_v44  ;;  %v869_v61 = vunpack.c.h.bf16 %v3372_v52  ;;  %v1117_v52 = vunpack.c.h.bf16 %v3556_v41 }
  0xef   : > { %4990 = vst [vmem:[#allocation37_spill] sm:$0xff] %v3713_v33  ;;  %v3716_v32 = vld [vmem:[%s2959_s1 + $0x648] sm:$0xff]  ;;  %v884_v58 = vunpack.c.l.bf16 %v3713_v33  ;;  %1511 = vmatpush.msrb.mxu0 %v892_v15  ;;  %1530 = vmatpush.msrb.mxu1 %v1028_v35  ;;  %v621_v35 = vunpack.c.h.bf16 %v3519_v3  ;;  %v1253_v44 = vunpack.c.h.bf16 %v3531_v47  ;;  %v1109_v3 = vunpack.c.h.bf16 %v3570_v14 }
  0xf0   : > { %v3721_v50 = vld [vmem:[%s2959_s1 + $0x828] sm:$0xff]  ;;  %v1020_v18 = vunpack.c.l.bf16 %v3716_v32  ;;  %1551 = vmatpush.msrb.mxu2 %v1148_v40  ;;  %1570 = vmatpush.msrb.mxu3 %v645_v21  ;;  %v861_v40 = vunpack.c.h.bf16 %v3385_v23  ;;  %v997_v21 = vunpack.c.h.bf16 %v3526_v60  ;;  %v1245_v23 = vunpack.c.h.bf16 %v3549_v27 }
  0xf1   : > { %v3726_v31 = vld [vmem:[%s2959_s1 + $0x408] sm:$0xff]  ;;  %v1140_v53 = vunpack.c.l.bf16 %v3721_v50  ;;  %1512 = vmatpush.msrb.mxu0 %v884_v58  ;;  %1474 = vmatmul.f32.vlgmr.msra.gmra.mxu2 %v3360_v36  ;;  %v989_v58 = vunpack.c.h.bf16 %v3540_v6  ;;  %v845_v60 = vunpack.c.h.bf16 %v3409_v12  ;;  %v981_v47 = vunpack.c.h.bf16 %v3553_v59 }
  0xf2   : > { %v3731_v48 = vld [vmem:[%s2959_s1 + $0x628] sm:$0xff]  ;;  %v876_v63 = vunpack.c.l.bf16 %v3726_v31  ;;  %1531 = vmatpush.msrb.mxu1 %v1020_v18  ;;  %1571 = vmatpush.msrb.mxu3 %v637_v45  ;;  %v837_v6 = vunpack.c.h.bf16 %v3421_v13  ;;  %v973_v27 = vunpack.c.h.bf16 %v3567_v1  ;;  %v1093_v12 = vunpack.c.h.bf16 %v3598_v17 }
  0xf3   : > { %v3734_v28 = vld [vmem:[%s2959_s1 + $0x808] sm:$0xff]  ;;  %v1012_v19 = vunpack.c.l.bf16 %v3731_v48  ;;  %1552 = vmatpush.msrb.mxu2 %v1140_v53  ;;  %1494 = vmatmul.f32.vlgmr.msra.gmra.mxu3 %v3379_v49  ;;  %v1101_v49 = vunpack.c.h.bf16 %v3581_v8  ;;  %v1229_v41 = vunpack.c.h.bf16 %v3575_v62  ;;  %v829_v59 = vunpack.c.h.bf16 %v3431_v0 }
  0xf4   : > { %v1132_v26 = vunpack.c.l.bf16 %v3734_v28  ;;  %v3742_v33 = vld [vmem:[%s2959_s1 + $0x608] sm:$0xff]  ;;  %1513 = vmatpush.msrb.mxu0 %v876_v63  ;;  %1572 = vmatpush.msrb.mxu3 %v629_v9  ;;  %v1085_v13 = vunpack.c.h.bf16 %v3610_v39  ;;  %v1221_v1 = vunpack.c.h.bf16 %v3589_v10  ;;  %v821_v14 = vunpack.c.h.bf16 %v3442_v43  ;;  %v4993_v39 = vld [vmem:[#allocation17_spill] sm:$0xff] }
  0xf5   : > { %v1004_v15 = vunpack.c.l.bf16 %v3742_v33  ;;  %1532 = vmatpush.msrb.mxu1 %v1012_v19  ;;  %1514 = vmatmul.f32.vlgmr.msrb.gmra.mxu0 %v3350_v42  ;;  %v957_v62 = vunpack.c.h.bf16 %v3595_v34  ;;  %v1077_v8 = vunpack.c.h.bf16 %v3624_v30  ;;  %v1213_v42 = vunpack.c.h.bf16 %v3603_v5  ;;  %v4996_v45 = vld [vmem:[#allocation32_spill] sm:$0xff] }
  0xf6   : > { %1553 = vmatpush.msrb.mxu2 %v1132_v26  ;;  %1578 = vmatpush.msra.mxu0 %v869_v61  ;;  %v813_v0 = vunpack.c.h.bf16 %v3452_v37  ;;  %v1069_v10 = vunpack.c.h.bf16 %v3638_v7  ;;  %v1205_v43 = vunpack.c.h.bf16 %v3615_v20  ;;  %v805_v34 = vunpack.c.h.bf16 %v3462_v4  ;;  %v4992_v37 = vld [vmem:[#allocation24_spill] sm:$0xff]  ;;  %v4994_v7 = vld [vmem:[#allocation25_spill] sm:$0xff]  ;;  %v4995_v4 = vld [vmem:[#allocation26_spill] sm:$0xff] }
  0xf7   : > { %1533 = vmatpush.msrb.mxu1 %v1004_v15  ;;  %1573 = vmatpush.msrb.mxu3 %v621_v35  ;;  %v1061_v17 = vunpack.c.h.bf16 %v3651_v11  ;;  %v1197_v5 = vunpack.c.h.bf16 %v4992_v37  ;;  %v797_v57 = vunpack.c.h.bf16 %v4993_v39  ;;  %v933_v18 = vunpack.c.h.bf16 %v4994_v7  ;;  %v4997_v11 = vld [vmem:[#allocation27_spill] sm:$0xff]  ;;  %v4998_v9 = vld [vmem:[#allocation28_spill] sm:$0xff]  ;;  %v3840_v37 = vld [vmem:[%s2959_s1 + $0x3d0] sm:$0xff] }
  0xf8   : > { %1618 = vmatpush.msra.mxu2 %v1125_v24  ;;  %1579 = vmatpush.msra.mxu0 %v861_v40  ;;  %v1053_v20 = vunpack.c.h.bf16 %v3664_v38  ;;  %v1189_v53 = vunpack.c.h.bf16 %v4995_v4  ;;  %v789_v63 = vunpack.c.h.bf16 %v4996_v45  ;;  %v925_v19 = vunpack.c.h.bf16 %v4997_v11  ;;  %v4999_v24 = vld [vmem:[#allocation18_spill] sm:$0xff]  ;;  %v5000_v38 = vld [vmem:[#allocation29_spill] sm:$0xff] }
  0xf9   : > { %1598 = vmatpush.msra.mxu1 %v997_v21  ;;  %1638 = vmatpush.msra.mxu3 %v1253_v44  ;;  %v1045_v26 = vunpack.c.h.bf16 %v3677_v46  ;;  %v1181_v61 = vunpack.c.h.bf16 %v4998_v9  ;;  %v781_v15 = vunpack.c.h.bf16 %v4999_v24  ;;  %v917_v35 = vunpack.c.h.bf16 %v5000_v38  ;;  %v5001_v21 = vld [vmem:[#allocation30_spill] sm:$0xff]  ;;  %v5002_v44 = vld [vmem:[#allocation19_spill] sm:$0xff]  ;;  %v3848_v7 = vld [vmem:[%s2959_s1 + $0x7d0] sm:$0xff] }
  0xfa   : > { %1619 = vmatpush.msra.mxu2 %v1117_v52  ;;  %1580 = vmatpush.msra.mxu0 %v853_v56  ;;  %v1037_v40 = vunpack.c.h.bf16 %v3690_v55  ;;  %v1173_v52 = vunpack.c.h.bf16 %v5001_v21  ;;  %v773_v56 = vunpack.c.h.bf16 %v5002_v44  ;;  %v5003_v46 = vld [vmem:[#allocation31_spill] sm:$0xff]  ;;  %v5006_v55 = vld [vmem:[#allocation34_spill] sm:$0xff]  ;;  %5013 = vst [vmem:[#allocation24_spill] sm:$0xff] %v3848_v7  ;;  %v862_v4 = vunpack.c.l.bf16 %v3840_v37  ;;  %v3862_v45 = vld [vmem:[%s2959_s1 + $0x590] sm:$0xff] }
  0xfb   : > { %1599 = vmatpush.msra.mxu1 %v989_v58  ;;  %1639 = vmatpush.msra.mxu3 %v1245_v23  ;;  %v909_v58 = vunpack.c.h.bf16 %v5003_v46  ;;  %v5004_v23 = vld [vmem:[#allocation33_spill] sm:$0xff]  ;;  %v1118_v11 = vunpack.c.l.bf16 %v3848_v7  ;;  %v3893_v44 = vld [vmem:[%s2981_s4 + $0x18] sm:$0xff] }
  0xfc   : > { %1620 = vmatpush.msra.mxu2 %v1109_v3  ;;  %1581 = vmatpush.msra.mxu0 %v845_v60  ;;  %v1029_v3 = vunpack.c.h.bf16 %v3703_v25  ;;  %v1165_v60 = vunpack.c.h.bf16 %v5004_v23  ;;  %v3876_v24 = vld [vmem:[%s2959_s1 + $0x390] sm:$0xff]  ;;  %5016 = vst [vmem:[#allocation26_spill] sm:$0xff] %v3893_v44 }
  0xfd   : > { %1554 = vmatmul.f32.vlgmr.msrb.gmra.mxu2 %v3417_v29  ;;  %1600 = vmatpush.msra.mxu1 %v981_v47  ;;  %v5005_v47 = vld [vmem:[#allocation20_spill] sm:$0xff]  ;;  %v3887_v21 = vld [vmem:[%s2959_s1 + $0x150] sm:$0xff] }
  0xfe   : > { %1621 = vmatpush.msra.mxu2 %v1101_v49  ;;  %1640 = vmatpush.msra.mxu3 %v1237_v54  ;;  %v765_v49 = vunpack.c.h.bf16 %v5005_v47  ;;  %v901_v54 = vunpack.c.h.bf16 %v5006_v55  ;;  %v3909_v47 = vld [vmem:[%s2959_s1 + $0x350] sm:$0xff]  ;;  %v702_v55 = vunpack.c.l.bf16 %v3887_v21 }
  0xff   : > { %1582 = vmatpush.msra.mxu0 %v837_v6  ;;  %1601 = vmatpush.msra.mxu1 %v973_v27  ;;  %v1021_v6 = vunpack.c.h.bf16 %v3716_v32  ;;  %v5007_v27 = vld [vmem:[#allocation35_spill] sm:$0xff]  ;;  %v1149_v32 = vunpack.c.h.bf16 %v3708_v22 }
 0x100   : > { %1622 = vmatpush.msra.mxu2 %v1093_v12  ;;  %1641 = vmatpush.msra.mxu3 %v1229_v41  ;;  %v1157_v12 = vunpack.c.h.bf16 %v5007_v27  ;;  %v5008_v41 = vld [vmem:[#allocation21_spill] sm:$0xff] }
 0x101   : > { %1534 = vmatmul.f32.vlgmr.msrb.gmra.mxu1 %v3364_v51  ;;  %1583 = vmatpush.msra.mxu0 %v829_v59  ;;  %v4991_v51 = vld [vmem:[#allocation23_spill] sm:$0xff]  ;;  %v757_v25 = vunpack.c.h.bf16 %v5008_v41  ;;  %v5009_v59 = vld [vmem:[#allocation36_spill] sm:$0xff]  ;;  %v3921_v27 = vld [vmem:[%s2959_s1 + $0x750] sm:$0xff] }
 0x102   : > { %1602 = vmatpush.msra.mxu1 %v965_v2  ;;  %1623 = vmatpush.msra.mxu2 %v1085_v13  ;;  %v941_v30 = vunpack.c.h.bf16 %v4991_v51  ;;  %v893_v2 = vunpack.c.h.bf16 %v5009_v59  ;;  %v1013_v13 = vunpack.c.h.bf16 %v3731_v48  ;;  %v1141_v48 = vunpack.c.h.bf16 %v3721_v50  ;;  %v3829_v51 = vld [vmem:[%s2959_s1 + $0x5d0] sm:$0xff]  ;;  %5019 = vst [vmem:[#allocation28_spill] sm:$0xff] %v3921_v27 }
 0x103   : > { %1642 = vmatpush.msra.mxu3 %v1221_v1  ;;  %1584 = vmatpush.msra.mxu0 %v821_v14  ;;  %v3810_v1 = vld [vmem:[%s2959_s1 + $0x1f0] sm:$0xff]  ;;  %v5010_v14 = vld [vmem:[#allocation22_spill] sm:$0xff]  ;;  %v877_v50 = vunpack.c.h.bf16 %v3726_v31 }
 0x104   : > { %1603 = vmatpush.msra.mxu1 %v957_v62  ;;  %1624 = vmatpush.msra.mxu2 %v1077_v8  ;;  %v749_v62 = vunpack.c.h.bf16 %v5010_v14  ;;  %v3815_v8 = vld [vmem:[%s2959_s1 + $0x5f0] sm:$0xff]  ;;  %v742_v22 = vunpack.c.l.bf16 %v3810_v1 }
 0x105   : > { %1643 = vmatpush.msra.mxu3 %v1213_v42  ;;  %1585 = vmatpush.msra.mxu0 %v813_v0  ;;  %v5011_v42 = vld [vmem:[#allocation37_spill] sm:$0xff] }
 0x106   : > { %1604 = vmatpush.msra.mxu1 %v949_v16  ;;  %1625 = vmatpush.msra.mxu2 %v1069_v10  ;;  %v885_v0 = vunpack.c.h.bf16 %v5011_v42  ;;  %v1005_v16 = vunpack.c.h.bf16 %v3742_v33  ;;  %v3822_v10 = vld [vmem:[%s2959_s1 + $0x1d0] sm:$0xff]  ;;  %v1086_v42 = vunpack.c.l.bf16 %v3921_v27 }
 0x107   : > { %1644 = vmatpush.msra.mxu3 %v1205_v43  ;;  %1586 = vmatpush.msra.mxu0 %v805_v34  ;;  %v3825_v43 = vld [vmem:[%s2959_s1 + $0x3f0] sm:$0xff]  ;;  %v998_v34 = vunpack.c.l.bf16 %v3815_v8 }
 0x108   : > { %1605 = vmatpush.msra.mxu1 %v941_v30  ;;  %1626 = vmatpush.msra.mxu2 %v1061_v17  ;;  %v3832_v33 = vld [vmem:[%s2959_s1 + $0x7f0] sm:$0xff]  ;;  %v1133_v30 = vunpack.c.h.bf16 %v3734_v28  ;;  %v870_v39 = vunpack.c.l.bf16 %v3825_v43  ;;  %v990_v28 = vunpack.c.l.bf16 %v3829_v51 }
 0x109   : > { %1645 = vmatpush.msra.mxu3 %v1197_v5  ;;  %1587 = vmatpush.msra.mxu0 %v797_v57  ;;  %5012 = vst [vmem:[#allocation23_spill] sm:$0xff] %v3832_v33  ;;  %v3837_v17 = vld [vmem:[%s2959_s1 + $0x1b0] sm:$0xff]  ;;  %v734_v5 = vunpack.c.l.bf16 %v3822_v10  ;;  %v1126_v31 = vunpack.c.l.bf16 %v3832_v33 }
 0x10a   : > { %1606 = vmatpush.msra.mxu1 %v933_v18  ;;  %1627 = vmatpush.msra.mxu2 %v1053_v20  ;;  %v3845_v57 = vld [vmem:[%s2959_s1 + $0x5b0] sm:$0xff]  ;;  %v726_v20 = vunpack.c.l.bf16 %v3837_v17 }
 0x10b   : > { %1646 = vmatpush.msra.mxu3 %v1189_v53  ;;  %1588 = vmatpush.msra.mxu0 %v789_v63  ;;  %v3853_v18 = vld [vmem:[%s2959_s1 + $0x190] sm:$0xff]  ;;  %v982_v63 = vunpack.c.l.bf16 %v3845_v57 }
 0x10c   : > { %1607 = vmatpush.msra.mxu1 %v925_v19  ;;  %1628 = vmatpush.msra.mxu2 %v1045_v26  ;;  %v3859_v53 = vld [vmem:[%s2959_s1 + $0x3b0] sm:$0xff] }
 0x10d   : > { %1647 = vmatpush.msra.mxu3 %v1181_v61  ;;  %1589 = vmatpush.msra.mxu0 %v781_v15  ;;  %v3867_v19 = vld [vmem:[%s2959_s1 + $0x7b0] sm:$0xff]  ;;  %v854_v9 = vunpack.c.l.bf16 %v3859_v53  ;;  %v974_v61 = vunpack.c.l.bf16 %v3862_v45 }
 0x10e   : > { %1608 = vmatpush.msra.mxu1 %v917_v35  ;;  %1629 = vmatpush.msra.mxu2 %v1037_v40  ;;  %5014 = vst [vmem:[#allocation17_spill] sm:$0xff] %v3867_v19  ;;  %v3871_v26 = vld [vmem:[%s2959_s1 + $0x170] sm:$0xff]  ;;  %v1110_v38 = vunpack.c.l.bf16 %v3867_v19 }
 0x10f   : > { %1648 = vmatpush.msra.mxu3 %v1173_v52  ;;  %1590 = vmatpush.msra.mxu0 %v773_v56  ;;  %v3879_v15 = vld [vmem:[%s2959_s1 + $0x570] sm:$0xff]  ;;  %v710_v40 = vunpack.c.l.bf16 %v3871_v26  ;;  %v846_v56 = vunpack.c.l.bf16 %v3876_v24 }
 0x110   : > { %1609 = vmatpush.msra.mxu1 %v909_v58  ;;  %1630 = vmatpush.msra.mxu2 %v1029_v3  ;;  %v3883_v35 = vld [vmem:[%s2959_s1 + $0x790] sm:$0xff]  ;;  %v966_v46 = vunpack.c.l.bf16 %v3879_v15 }
 0x111   : > { %1649 = vmatpush.msra.mxu3 %v1165_v60  ;;  %1591 = vmatpush.msra.mxu0 %v765_v49  ;;  %5015 = vst [vmem:[#allocation25_spill] sm:$0xff] %v3883_v35  ;;  %v3890_v52 = vld [vmem:[%s2959_s1 + $0x370] sm:$0xff]  ;;  %v1102_v23 = vunpack.c.l.bf16 %v3883_v35  ;;  %v3912_v49 = vld [vmem:[%s2981_s4 + $0x8] sm:$0xff] }
 0x112   : > { %1610 = vmatpush.msra.mxu1 %v901_v54  ;;  %1631 = vmatpush.msra.mxu2 %v1021_v6  ;;  %v3899_v58 = vld [vmem:[%s2959_s1 + $0x550] sm:$0xff]  ;;  %5018 = vst [vmem:[#allocation27_spill] sm:$0xff] %v3912_v49  ;;  %v838_v54 = vunpack.c.l.bf16 %v3890_v52 }
 0x113   : > { %1650 = vmatpush.msra.mxu3 %v1157_v12  ;;  %1592 = vmatpush.msra.mxu0 %v757_v25  ;;  %v3902_v3 = vld [vmem:[%s2959_s1 + $0x770] sm:$0xff]  ;;  %v958_v12 = vunpack.c.l.bf16 %v3899_v58 }
 0x114   : > { %1611 = vmatpush.msra.mxu1 %v893_v2  ;;  %1632 = vmatpush.msra.mxu2 %v1013_v13  ;;  %5017 = vst [vmem:[#allocation32_spill] sm:$0xff] %v3902_v3  ;;  %v3906_v60 = vld [vmem:[%s2959_s1 + $0x130] sm:$0xff]  ;;  %v1094_v41 = vunpack.c.l.bf16 %v3902_v3  ;;  %v830_v13 = vunpack.c.l.bf16 %v3909_v47 }
 0x115   : > { %1651 = vmatpush.msra.mxu3 %v1149_v32  ;;  %1593 = vmatpush.msra.mxu0 %v749_v62  ;;  %v3918_v6 = vld [vmem:[%s2959_s1 + $0x530] sm:$0xff]  ;;  %v694_v2 = vunpack.c.l.bf16 %v3906_v60 }
 0x116   : > { %1612 = vmatpush.msra.mxu1 %v885_v0  ;;  %1633 = vmatpush.msra.mxu2 %v1005_v16  ;;  %v3927_v25 = vld [vmem:[%s2959_s1 + $0x110] sm:$0xff]  ;;  %v950_v62 = vunpack.c.l.bf16 %v3918_v6 }
 0x117   : > { %1652 = vmatpush.msra.mxu3 %v1141_v48  ;;  %1658 = vmatpush.msrb.mxu0 %v742_v22  ;;  %v3930_v59 = vld [vmem:[%s2959_s1 + $0x330] sm:$0xff]  ;;  %v686_v48 = vunpack.c.l.bf16 %v3927_v25 }
 0x118   : > { %1574 = vmatmul.f32.vlgmr.msrb.gmra.mxu3 %v3360_v36  ;;  %1698 = vmatpush.msrb.mxu2 %v998_v34  ;;  %v718_v36 = vunpack.c.l.bf16 %v3853_v18  ;;  %v3938_v32 = vld [vmem:[%s2959_s1 + $0x730] sm:$0xff]  ;;  %v822_v22 = vunpack.c.l.bf16 %v3930_v59 }
 0x119   : > { %1613 = vmatpush.msra.mxu1 %v877_v50  ;;  %1653 = vmatpush.msra.mxu3 %v1133_v30  ;;  %5020 = vst [vmem:[#allocation18_spill] sm:$0xff] %v3938_v32  ;;  %v3941_v14 = vld [vmem:[%s2981_s4 + $0x10] sm:$0xff] }
 0x11a   : > { %1659 = vmatpush.msrb.mxu0 %v734_v5  ;;  %1699 = vmatpush.msrb.mxu2 %v990_v28  ;;  %5021 = vst [vmem:[#allocation29_spill] sm:$0xff] %v3941_v14  ;;  %v3947_v0 = vld [vmem:[%s2959_s1 + $0xf0] sm:$0xff]  ;;  %v1078_v5 = vunpack.c.l.bf16 %v3938_v32 }
 0x11b   : > { %1678 = vmatpush.msrb.mxu1 %v870_v39  ;;  %1718 = vmatpush.msrb.mxu3 %v1126_v31  ;;  %v3950_v16 = vld [vmem:[%s2959_s1 + $0x310] sm:$0xff]  ;;  %v678_v31 = vunpack.c.l.bf16 %v3947_v0 }
 0x11c   : > { %1660 = vmatpush.msrb.mxu0 %v726_v20  ;;  %1700 = vmatpush.msrb.mxu2 %v982_v63  ;;  %v3955_v34 = vld [vmem:[%s2959_s1 + $0x4f0] sm:$0xff]  ;;  %v814_v20 = vunpack.c.l.bf16 %v3950_v16 }
 0x11d   : > { %1679 = vmatpush.msrb.mxu1 %v862_v4  ;;  %1719 = vmatpush.msrb.mxu3 %v1118_v11  ;;  %v3958_v50 = vld [vmem:[%s2959_s1 + $0x710] sm:$0xff]  ;;  %v934_v11 = vunpack.c.l.bf16 %v3955_v34 }
 0x11e   : > { %1634 = vmatmul.f32.vlgmr.msra.gmra.mxu2 %v3893_v44  ;;  %1661 = vmatpush.msrb.mxu0 %v718_v36  ;;  %5022 = vst [vmem:[#allocation30_spill] sm:$0xff] %v3958_v50  ;;  %v3963_v39 = vld [vmem:[%s2959_s1 + $0xd0] sm:$0xff]  ;;  %v1070_v36 = vunpack.c.l.bf16 %v3958_v50 }
 0x11f   : > { %1680 = vmatpush.msrb.mxu1 %v854_v9  ;;  %1701 = vmatpush.msrb.mxu2 %v974_v61  ;;  %v3966_v28 = vld [vmem:[%s2959_s1 + $0x2f0] sm:$0xff] }
 0x120   : > { %1720 = vmatpush.msrb.mxu3 %v1110_v38  ;;  %1594 = vmatmul.f32.vlgmr.msra.gmra.mxu0 %v3912_v49  ;;  %v3971_v4 = vld [vmem:[%s2959_s1 + $0x4d0] sm:$0xff]  ;;  %v670_v38 = vunpack.c.l.bf16 %v3963_v39 }
 0x121   : > { %1654 = vmatmul.f32.vlgmr.msra.gmra.mxu3 %v3417_v29  ;;  %1662 = vmatpush.msrb.mxu0 %v710_v40  ;;  %v3935_v29 = vld [vmem:[%s2959_s1 + $0x510] sm:$0xff]  ;;  %v806_v40 = vunpack.c.l.bf16 %v3966_v28 }
 0x122   : > { %1681 = vmatpush.msrb.mxu1 %v846_v56  ;;  %1702 = vmatpush.msrb.mxu2 %v966_v46  ;;  %v942_v30 = vunpack.c.l.bf16 %v3935_v29  ;;  %v3974_v63 = vld [vmem:[%s2959_s1 + $0x6f0] sm:$0xff] }
 0x123   : > { %1721 = vmatpush.msrb.mxu3 %v1102_v23  ;;  %1614 = vmatmul.f32.vlgmr.msra.gmra.mxu1 %v3941_v14  ;;  %5023 = vst [vmem:[#allocation19_spill] sm:$0xff] %v3974_v63  ;;  %v3979_v9 = vld [vmem:[%s2959_s1 + $0xb0] sm:$0xff]  ;;  %v926_v23 = vunpack.c.l.bf16 %v3971_v4 }
 0x124   : > { %1663 = vmatpush.msrb.mxu0 %v702_v55  ;;  %1682 = vmatpush.msrb.mxu1 %v838_v54  ;;  %v3982_v61 = vld [vmem:[%s2959_s1 + $0x2d0] sm:$0xff]  ;;  %v1062_v55 = vunpack.c.l.bf16 %v3974_v63 }
 0x125   : > { %1703 = vmatpush.msrb.mxu2 %v958_v12  ;;  %1722 = vmatpush.msrb.mxu3 %v1094_v41  ;;  %v3987_v56 = vld [vmem:[%s2959_s1 + $0x4b0] sm:$0xff]  ;;  %v662_v41 = vunpack.c.l.bf16 %v3979_v9 }
 0x126   : > { %1664 = vmatpush.msrb.mxu0 %v694_v2  ;;  %1683 = vmatpush.msrb.mxu1 %v830_v13  ;;  %v3990_v46 = vld [vmem:[%s2959_s1 + $0x6d0] sm:$0xff]  ;;  %v798_v2 = vunpack.c.l.bf16 %v3982_v61 }
 0x127   : > { %1704 = vmatpush.msrb.mxu2 %v950_v62  ;;  %1723 = vmatpush.msrb.mxu3 %v1086_v42  ;;  %5024 = vst [vmem:[#allocation31_spill] sm:$0xff] %v3990_v46  ;;  %v3995_v54 = vld [vmem:[%s2959_s1 + $0x90] sm:$0xff]  ;;  %v918_v42 = vunpack.c.l.bf16 %v3987_v56 }
 0x128   : > { %1665 = vmatpush.msrb.mxu0 %v686_v48  ;;  %1684 = vmatpush.msrb.mxu1 %v822_v22  ;;  %v3998_v12 = vld [vmem:[%s2959_s1 + $0x2b0] sm:$0xff]  ;;  %v1054_v48 = vunpack.c.l.bf16 %v3990_v46 }
 0x129   : > { %1705 = vmatpush.msrb.mxu2 %v942_v30  ;;  %1724 = vmatpush.msrb.mxu3 %v1078_v5  ;;  %v4003_v13 = vld [vmem:[%s2959_s1 + $0x490] sm:$0xff]  ;;  %v654_v5 = vunpack.c.l.bf16 %v3995_v54 }
 0x12a   : > { %1666 = vmatpush.msrb.mxu0 %v678_v31  ;;  %1685 = vmatpush.msrb.mxu1 %v814_v20  ;;  %v4006_v62 = vld [vmem:[%s2959_s1 + $0x6b0] sm:$0xff]  ;;  %v790_v31 = vunpack.c.l.bf16 %v3998_v12 }
 0x12b   : > { %5025 = vst [vmem:[#allocation33_spill] sm:$0xff] %v4006_v62  ;;  %1706 = vmatpush.msrb.mxu2 %v934_v11  ;;  %1725 = vmatpush.msrb.mxu3 %v1070_v36  ;;  %v4011_v22 = vld [vmem:[%s2959_s1 + $0x70] sm:$0xff]  ;;  %v910_v36 = vunpack.c.l.bf16 %v4003_v13  ;;  %v1046_v46 = vunpack.c.l.bf16 %v4006_v62 }
 0x12c   : > { %v4014_v30 = vld [vmem:[%s2959_s1 + $0x290] sm:$0xff]  ;;  %1667 = vmatpush.msrb.mxu0 %v670_v38  ;;  %1686 = vmatpush.msrb.mxu1 %v806_v40  ;;  %v646_v50 = vunpack.c.l.bf16 %v4011_v22 }
 0x12d   : > { %v4019_v20 = vld [vmem:[%s2959_s1 + $0x470] sm:$0xff]  ;;  %1707 = vmatpush.msrb.mxu2 %v926_v23  ;;  %1726 = vmatpush.msrb.mxu3 %v1062_v55  ;;  %v1275_v63 = vpop.f32.mrf.mxu0  ;;  %v782_v23 = vunpack.c.l.bf16 %v4014_v30 }
 0x12e   : > { %v4022_v11 = vld [vmem:[%s2959_s1 + $0x690] sm:$0xff]  ;;  %1668 = vmatpush.msrb.mxu0 %v662_v41  ;;  %1687 = vmatpush.msrb.mxu1 %v798_v2  ;;  %v902_v62 = vunpack.c.l.bf16 %v4019_v20 }
 0x12f   : > { %5026 = vst [vmem:[#allocation20_spill] sm:$0xff] %v4022_v11  ;;  %v4027_v38 = vld [vmem:[%s2959_s1 + $0x50] sm:$0xff]  ;;  %1708 = vmatpush.msrb.mxu2 %v918_v42  ;;  %1727 = vmatpush.msrb.mxu3 %v1054_v48  ;;  %v1038_v27 = vunpack.c.l.bf16 %v4022_v11 }
 0x130   : > { %5027 = vst [vmem:[#allocation34_spill] sm:$0xff] %v4027_v38  ;;  %v4030_v40 = vld [vmem:[%s2959_s1 + $0x270] sm:$0xff]  ;;  %1669 = vmatpush.msrb.mxu0 %v654_v5  ;;  %1688 = vmatpush.msrb.mxu1 %v790_v31  ;;  %v638_v3 = vunpack.c.l.bf16 %v4027_v38  ;;  %v1295_v48 = vpop.f32.mrf.mxu1 }
 0x131   : > { %v4035_v55 = vld [vmem:[%s2959_s1 + $0x450] sm:$0xff]  ;;  %v774_v35 = vunpack.c.l.bf16 %v4030_v40  ;;  %1709 = vmatpush.msrb.mxu2 %v910_v36  ;;  %1728 = vmatpush.msrb.mxu3 %v1046_v46  ;;  %v1296_v44 = vadd.f32 %v1295_v48, %v1275_v63  ;;  %v1315_v7 = vpop.f32.mrf.mxu2 }
 0x132   : > { %5028 = vst [vmem:[#allocation35_spill] sm:$0xff] %v4035_v55  ;;  %v4038_v32 = vld [vmem:[%s2959_s1 + $0x670] sm:$0xff]  ;;  %v894_v11 = vunpack.c.l.bf16 %v4035_v55  ;;  %1670 = vmatpush.msrb.mxu0 %v646_v50  ;;  %1689 = vmatpush.msrb.mxu1 %v782_v23 }
 0x133   : > { %5029 = vst [vmem:[#allocation21_spill] sm:$0xff] %v4038_v32  ;;  %v4043_v41 = vld [vmem:[%s2959_s1 + $0x30] sm:$0xff]  ;;  %v1030_v19 = vunpack.c.l.bf16 %v4038_v32  ;;  %1710 = vmatpush.msrb.mxu2 %v902_v62  ;;  %1729 = vmatpush.msrb.mxu3 %v1038_v27  ;;  %v1316_v50 = vadd.f32 %v1315_v7, %v1296_v44  ;;  %v871_v44 = vunpack.c.h.bf16 %v3825_v43  ;;  %v863_v43 = vunpack.c.h.bf16 %v3840_v37 }
 0x134   : > { %5030 = vst [vmem:[#allocation36_spill] sm:$0xff] %v4043_v41  ;;  %v4046_v2 = vld [vmem:[%s2959_s1 + $0x250] sm:$0xff]  ;;  %v630_v14 = vunpack.c.l.bf16 %v4043_v41  ;;  %1671 = vmatpush.msrb.mxu0 %v638_v3  ;;  %1690 = vmatpush.msrb.mxu1 %v774_v35  ;;  %v1335_v27 = vpop.f32.mrf.mxu3  ;;  %v727_v37 = vunpack.c.h.bf16 %v3837_v17  ;;  %v839_v17 = vunpack.c.h.bf16 %v3890_v52  ;;  %v703_v52 = vunpack.c.h.bf16 %v3887_v21 }
 0x135   : > { %v4051_v49 = vld [vmem:[%s2959_s1 + $0x430] sm:$0xff]  ;;  %v766_v36 = vunpack.c.l.bf16 %v4046_v2  ;;  %1711 = vmatpush.msrb.mxu2 %v894_v11  ;;  %1730 = vmatpush.msrb.mxu3 %v1030_v19  ;;  %v1336_v7 = vadd.f32 %v1335_v27, %v1316_v50  ;;  %v951_v21 = vunpack.c.h.bf16 %v3918_v6 }
 0x136   : > { %5031 = vst [vmem:[#allocation22_spill] sm:$0xff] %v4051_v49  ;;  %v4054_v42 = vld [vmem:[%s2959_s1 + $0x650] sm:$0xff]  ;;  %v886_v32 = vunpack.c.l.bf16 %v4051_v49  ;;  %1672 = vmatpush.msrb.mxu0 %v630_v14 }
 0x137   : > { %5032 = vst [vmem:[#allocation37_spill] sm:$0xff] %v4054_v42  ;;  %v4059_v5 = vld [vmem:[%s2959_s1 + $0x10] sm:$0xff]  ;;  %v1022_v63 = vunpack.c.l.bf16 %v4054_v42  ;;  %1691 = vmatpush.msrb.mxu1 %v766_v36  ;;  %v743_v36 = vunpack.c.h.bf16 %v3810_v1  ;;  %v855_v1 = vunpack.c.h.bf16 %v3859_v53  ;;  %v719_v53 = vunpack.c.h.bf16 %v3853_v18 }
 0x138   : > { %v4062_v31 = vld [vmem:[%s2959_s1 + $0x230] sm:$0xff]  ;;  %v622_v23 = vunpack.c.l.bf16 %v4059_v5  ;;  %1712 = vmatpush.msrb.mxu2 %v886_v32  ;;  %v999_v32 = vunpack.c.h.bf16 %v3815_v8  ;;  %v967_v18 = vunpack.c.h.bf16 %v3879_v15 }
 0x139   : > { %v4067_v46 = vld [vmem:[%s2959_s1 + $0x410] sm:$0xff]  ;;  %v758_v41 = vunpack.c.l.bf16 %v4062_v31  ;;  %1731 = vmatpush.msrb.mxu3 %v1022_v63 }
 0x13a   : > { %5033 = vst [vmem:[#allocation38_spill] sm:$0xff] %v4067_v46  ;;  %v4070_v33 = vld [vmem:[%s2959_s1 + $0x630] sm:$0xff]  ;;  %v878_v62 = vunpack.c.l.bf16 %v4067_v46  ;;  %1673 = vmatpush.msrb.mxu0 %v622_v23 }
 0x13b   : > { %5034 = vst [vmem:[#allocation39_spill] sm:$0xff] %v4070_v33  ;;  %v4075_v48 = vld [vmem:[%s2959_s1 + $0x9f0] sm:$0xff]  ;;  %v1014_v42 = vunpack.c.l.bf16 %v4070_v33  ;;  %v1355_v33 = vpop.f32.mrf.mxu0  ;;  %1692 = vmatpush.msrb.mxu1 %v758_v41  ;;  %v735_v41 = vunpack.c.h.bf16 %v3822_v10  ;;  %v847_v10 = vunpack.c.h.bf16 %v3876_v24  ;;  %v711_v24 = vunpack.c.h.bf16 %v3871_v26 }
 0x13c   : > { %v4080_v55 = vld [vmem:[%s2959_s1 + $0x210] sm:$0xff]  ;;  %v1254_v35 = vunpack.c.l.bf16 %v4075_v48  ;;  %v1356_v50 = vadd.f32 %v1355_v33, %v1336_v7  ;;  %1713 = vmatpush.msrb.mxu2 %v878_v62  ;;  %v991_v33 = vunpack.c.h.bf16 %v3829_v51  ;;  %v975_v7 = vunpack.c.h.bf16 %v3862_v45 }
 0x13d   : > { %v4083_v38 = vld [vmem:[%s2959_s1 + $0x610] sm:$0xff]  ;;  %v750_v3 = vunpack.c.l.bf16 %v4080_v55  ;;  %1732 = vmatpush.msrb.mxu3 %v1014_v42  ;;  %v959_v26 = vunpack.c.h.bf16 %v3899_v58 }
 0x13e   : > { %v4088_v49 = vld [vmem:[%s2959_s1 + $0x9d0] sm:$0xff]  ;;  %v1006_v19 = vunpack.c.l.bf16 %v4083_v38  ;;  %1738 = vmatpush.msra.mxu0 %v1254_v35  ;;  %1778 = vmatpush.msra.mxu2 %v871_v44  ;;  %v831_v44 = vunpack.c.h.bf16 %v3909_v47  ;;  %v695_v47 = vunpack.c.h.bf16 %v3906_v60  ;;  %v943_v60 = vunpack.c.h.bf16 %v3935_v29 }
 0x13f   : > { %v4095_v11 = vld [vmem:[%s2959_s1 + $0x9b0] sm:$0xff]  ;;  %v1246_v14 = vunpack.c.l.bf16 %v4088_v49  ;;  %1693 = vmatpush.msrb.mxu1 %v750_v3 }
 0x140   : > { %v285_v46 = vld [vmem:[#allocation2 + $0x30] sm:$0xff]  ;;  %v1238_v27 = vunpack.c.l.bf16 %v4095_v11  ;;  %1733 = vmatpush.msrb.mxu3 %v1006_v19  ;;  %1779 = vmatpush.msra.mxu2 %v863_v43  ;;  %v823_v19 = vunpack.c.h.bf16 %v3930_v59  ;;  %v687_v59 = vunpack.c.h.bf16 %v3927_v25  ;;  %v807_v43 = vunpack.c.h.bf16 %v3966_v28 }
 0x141   : > { %v4102_v63 = vld [vmem:[%s2959_s1 + $0x990] sm:$0xff]  ;;  %v2058_v23 = vadd.f32 %v1356_v50, %v285_v46  ;;  %1739 = vmatpush.msra.mxu0 %v1246_v14  ;;  %1758 = vmatpush.msra.mxu1 %v743_v36  ;;  %v983_v46 = vunpack.c.h.bf16 %v3845_v57  ;;  %v815_v36 = vunpack.c.h.bf16 %v3950_v16  ;;  %v679_v16 = vunpack.c.h.bf16 %v3947_v0 }
 0x142   : > { %v4109_v42 = vld [vmem:[%s2959_s1 + $0x970] sm:$0xff]  ;;  %v1230_v8 = vunpack.c.l.bf16 %v4102_v63  ;;  %1798 = vmatpush.msra.mxu3 %v999_v32  ;;  %1780 = vmatpush.msra.mxu2 %v855_v1  ;;  %v935_v25 = vunpack.c.h.bf16 %v3955_v34  ;;  %v671_v28 = vunpack.c.h.bf16 %v3963_v39  ;;  %v927_v0 = vunpack.c.h.bf16 %v3971_v4 }
 0x143   : > { %2066 = vst [vmem:[#allocation2 + $0x30] sm:$0xff] %v2058_v23  ;;  %v4116_v62 = vld [vmem:[%s2959_s1 + $0x950] sm:$0xff]  ;;  %1740 = vmatpush.msra.mxu0 %v1238_v27  ;;  %1759 = vmatpush.msra.mxu1 %v735_v41  ;;  %v1222_v51 = vunpack.c.l.bf16 %v4109_v42  ;;  %v799_v27 = vunpack.c.h.bf16 %v3982_v61  ;;  %v791_v23 = vunpack.c.h.bf16 %v3998_v12  ;;  %v663_v61 = vunpack.c.h.bf16 %v3979_v9 }
 0x144   : > { %1799 = vmatpush.msra.mxu3 %v991_v33  ;;  %v4123_v35 = vld [vmem:[%s2959_s1 + $0x930] sm:$0xff]  ;;  %v1214_v57 = vunpack.c.l.bf16 %v4116_v62  ;;  %1781 = vmatpush.msra.mxu2 %v847_v10  ;;  %v783_v33 = vunpack.c.h.bf16 %v4014_v30  ;;  %v919_v39 = vunpack.c.h.bf16 %v3987_v56  ;;  %v655_v12 = vunpack.c.h.bf16 %v3995_v54 }
 0x145   : > { %1741 = vmatpush.msra.mxu0 %v1230_v8  ;;  %1760 = vmatpush.msra.mxu1 %v727_v37  ;;  %v4130_v3 = vld [vmem:[%s2959_s1 + $0x910] sm:$0xff]  ;;  %v1206_v45 = vunpack.c.l.bf16 %v4123_v35  ;;  %v775_v37 = vunpack.c.h.bf16 %v4030_v40  ;;  %v911_v9 = vunpack.c.h.bf16 %v4003_v13  ;;  %v647_v30 = vunpack.c.h.bf16 %v4011_v22  ;;  %v5035_v40 = vld [vmem:[#allocation34_spill] sm:$0xff] }
 0x146   : > { %1800 = vmatpush.msra.mxu3 %v983_v46  ;;  %1782 = vmatpush.msra.mxu2 %v839_v17  ;;  %v4137_v14 = vld [vmem:[%s2959_s1 + $0x8f0] sm:$0xff]  ;;  %v1198_v15 = vunpack.c.l.bf16 %v4130_v3  ;;  %v767_v46 = vunpack.c.h.bf16 %v4046_v2  ;;  %v903_v54 = vunpack.c.h.bf16 %v4019_v20  ;;  %v759_v22 = vunpack.c.h.bf16 %v4062_v31  ;;  %v5038_v31 = vld [vmem:[#allocation22_spill] sm:$0xff] }
 0x147   : > { %1742 = vmatpush.msra.mxu0 %v1222_v51  ;;  %1761 = vmatpush.msra.mxu1 %v719_v53  ;;  %v4144_v50 = vld [vmem:[%s2959_s1 + $0x8d0] sm:$0xff]  ;;  %v1190_v58 = vunpack.c.l.bf16 %v4137_v14  ;;  %v639_v53 = vunpack.c.h.bf16 %v5035_v40 }
 0x148   : > { %1801 = vmatpush.msra.mxu3 %v975_v7  ;;  %1783 = vmatpush.msra.mxu2 %v831_v44  ;;  %v4151_v32 = vld [vmem:[%s2959_s1 + $0x8b0] sm:$0xff]  ;;  %v1182_v6 = vunpack.c.l.bf16 %v4144_v50  ;;  %v5036_v7 = vld [vmem:[#allocation35_spill] sm:$0xff]  ;;  %v5037_v44 = vld [vmem:[#allocation36_spill] sm:$0xff] }
 0x149   : > { %1743 = vmatpush.msra.mxu0 %v1214_v57  ;;  %1762 = vmatpush.msra.mxu1 %v711_v24  ;;  %v4158_v41 = vld [vmem:[%s2959_s1 + $0x890] sm:$0xff]  ;;  %v1174_v29 = vunpack.c.l.bf16 %v4151_v32  ;;  %v895_v57 = vunpack.c.h.bf16 %v5036_v7 }
 0x14a   : > { %1802 = vmatpush.msra.mxu3 %v967_v18  ;;  %1784 = vmatpush.msra.mxu2 %v823_v19  ;;  %v4165_v1 = vld [vmem:[%s2959_s1 + $0x870] sm:$0xff]  ;;  %v1166_v34 = vunpack.c.l.bf16 %v4158_v41  ;;  %v631_v18 = vunpack.c.h.bf16 %v5037_v44  ;;  %v887_v19 = vunpack.c.h.bf16 %v5038_v31 }
 0x14b   : > { %1744 = vmatpush.msra.mxu0 %v1206_v45  ;;  %1763 = vmatpush.msra.mxu1 %v703_v52  ;;  %v4172_v8 = vld [vmem:[%s2959_s1 + $0x850] sm:$0xff]  ;;  %v1158_v4 = vunpack.c.l.bf16 %v4165_v1  ;;  %v751_v45 = vunpack.c.h.bf16 %v4080_v55  ;;  %v4196_v52 = vld [vmem:[%s2959_s1 + $0x1f8] sm:$0xff] }
 0x14c   : > { %1803 = vmatpush.msra.mxu3 %v959_v26  ;;  %1785 = vmatpush.msra.mxu2 %v815_v36  ;;  %v4179_v10 = vld [vmem:[%s2959_s1 + $0x830] sm:$0xff]  ;;  %v1150_v56 = vunpack.c.l.bf16 %v4172_v8  ;;  %v744_v55 = vunpack.c.l.bf16 %v4196_v52 }
 0x14d   : > { %1745 = vmatpush.msra.mxu0 %v1198_v15  ;;  %1764 = vmatpush.msra.mxu1 %v695_v47  ;;  %v4186_v51 = vld [vmem:[%s2959_s1 + $0x810] sm:$0xff]  ;;  %v1142_v13 = vunpack.c.l.bf16 %v4179_v10  ;;  %v5039_v15 = vld [vmem:[#allocation23_spill] sm:$0xff] }
 0x14e   : > { %1804 = vmatpush.msra.mxu3 %v951_v21  ;;  %1786 = vmatpush.msra.mxu2 %v807_v43  ;;  %v1134_v20 = vunpack.c.l.bf16 %v4186_v51  ;;  %v1127_v47 = vunpack.c.h.bf16 %v5039_v15  ;;  %v5040_v21 = vld [vmem:[#allocation29_spill] sm:$0xff]  ;;  %v4207_v43 = vld [vmem:[%s2959_s1 + $0x3f8] sm:$0xff] }
 0x14f   : > { %1746 = vmatpush.msra.mxu0 %v1190_v58  ;;  %1765 = vmatpush.msra.mxu1 %v687_v59  ;;  %v623_v58 = vunpack.c.h.bf16 %v4059_v5  ;;  %v4204_v59 = vld [vmem:[%s2959_s1 + $0x1d8] sm:$0xff]  ;;  %v1255_v5 = vunpack.c.h.bf16 %v4075_v48  ;;  %v1247_v48 = vunpack.c.h.bf16 %v4088_v49  ;;  %v5046_v40 = vld [vmem:[#allocation25_spill] sm:$0xff]  ;;  %v1239_v49 = vunpack.c.h.bf16 %v4095_v11  ;;  %v5047_v11 = vld [vmem:[#allocation32_spill] sm:$0xff] }
 0x150   : > { %1805 = vmatpush.msra.mxu3 %v943_v60  ;;  %1787 = vmatpush.msra.mxu2 %v799_v27  ;;  %v5041_v60 = vld [vmem:[#allocation38_spill] sm:$0xff]  ;;  %v4211_v27 = vld [vmem:[%s2981_s4] sm:$0xff]  ;;  %v1095_v44 = vunpack.c.h.bf16 %v5047_v11  ;;  %v5054_v11 = vld [vmem:[#allocation33_spill] sm:$0xff] }
 0x151   : > { %1747 = vmatpush.msra.mxu0 %v1182_v6  ;;  %1766 = vmatpush.msra.mxu1 %v679_v16  ;;  %v879_v6 = vunpack.c.h.bf16 %v5041_v60  ;;  %v4272_v60 = vld [vmem:[%s2959_s1 + $0x118] sm:$0xff] }
 0x152   : > { %1806 = vmatpush.msra.mxu3 %v935_v25  ;;  %1788 = vmatpush.msra.mxu2 %v791_v23  ;;  %v1375_v17 = vpop.f32.mrf.mxu1  ;;  %v5042_v25 = vld [vmem:[#allocation24_spill] sm:$0xff]  ;;  %v4220_v23 = vld [vmem:[%s2959_s1 + $0x3d8] sm:$0xff] }
 0x153   : > { %1748 = vmatpush.msra.mxu0 %v1174_v29  ;;  %1767 = vmatpush.msra.mxu1 %v671_v28  ;;  %v1395_v24 = vpop.f32.mrf.mxu2  ;;  %v1119_v29 = vunpack.c.h.bf16 %v5042_v25  ;;  %v4217_v28 = vld [vmem:[%s2959_s1 + $0x1b8] sm:$0xff] }
 0x154   : > { %1807 = vmatpush.msra.mxu3 %v927_v0  ;;  %1789 = vmatpush.msra.mxu2 %v783_v33  ;;  %v1396_v2 = vadd.f32 %v1395_v24, %v1375_v17  ;;  %v872_v33 = vunpack.c.l.bf16 %v4207_v43  ;;  %v4239_v17 = vld [vmem:[%s2959_s1 + $0x178] sm:$0xff] }
 0x155   : > { %1749 = vmatpush.msra.mxu0 %v1166_v34  ;;  %1768 = vmatpush.msra.mxu1 %v663_v61  ;;  %v5043_v34 = vld [vmem:[#allocation26_spill] sm:$0xff]  ;;  %v736_v61 = vunpack.c.l.bf16 %v4204_v59 }
 0x156   : > { %1808 = vmatpush.msra.mxu3 %v919_v39  ;;  %1790 = vmatpush.msra.mxu2 %v775_v37  ;;  %v1415_v26 = vpop.f32.mrf.mxu3  ;;  %v286_v39 = vld [vmem:[#allocation2] sm:$0xff]  ;;  %v4244_v24 = vld [vmem:[%s2959_s1 + $0x398] sm:$0xff] }
 0x157   : > { %1750 = vmatpush.msra.mxu0 %v1158_v4  ;;  %1769 = vmatpush.msra.mxu1 %v655_v12  ;;  %v1416_v36 = vadd.f32 %v1415_v26, %v1396_v2  ;;  %v5044_v12 = vld [vmem:[#allocation17_spill] sm:$0xff]  ;;  %v4248_v2 = vld [vmem:[%s2959_s1 + $0x158] sm:$0xff]  ;;  %v848_v31 = vunpack.c.l.bf16 %v4244_v24  ;;  %v5048_v26 = vld [vmem:[#allocation28_spill] sm:$0xff] }
 0x158   : > { %1809 = vmatpush.msra.mxu3 %v911_v9  ;;  %1791 = vmatpush.msra.mxu2 %v767_v46  ;;  %v1111_v37 = vunpack.c.h.bf16 %v5044_v12  ;;  %v4228_v9 = vld [vmem:[%s2959_s1 + $0x198] sm:$0xff]  ;;  %v5045_v46 = vld [vmem:[#allocation27_spill] sm:$0xff]  ;;  %v1087_v15 = vunpack.c.h.bf16 %v5048_v26  ;;  %v1199_v12 = vunpack.c.h.bf16 %v4130_v3  ;;  %v1175_v26 = vunpack.c.h.bf16 %v4151_v32 }
 0x159   : > { %1751 = vmatpush.msra.mxu0 %v1150_v56  ;;  %1770 = vmatpush.msra.mxu1 %v647_v30  ;;  %v1435_v16 = vpop.f32.mrf.mxu0  ;;  %v4231_v56 = vld [vmem:[%s2959_s1 + $0x3b8] sm:$0xff]  ;;  %v720_v7 = vunpack.c.l.bf16 %v4228_v9 }
 0x15a   : > { %1810 = vmatpush.msra.mxu3 %v903_v54  ;;  %1792 = vmatpush.msra.mxu2 %v759_v22  ;;  %v1436_v0 = vadd.f32 %v1435_v16, %v1416_v36  ;;  %v728_v54 = vunpack.c.l.bf16 %v4217_v28  ;;  %v4263_v36 = vld [vmem:[%s2959_s1 + $0x358] sm:$0xff] }
 0x15b   : > { %1752 = vmatpush.msra.mxu0 %v1142_v13  ;;  %1771 = vmatpush.msra.mxu1 %v639_v53  ;;  %v1455_v4 = vpop.f32.mrf.mxu1  ;;  %v864_v13 = vunpack.c.l.bf16 %v4220_v23  ;;  %v1103_v53 = vunpack.c.h.bf16 %v5046_v40  ;;  %v1191_v40 = vunpack.c.h.bf16 %v4137_v14  ;;  %v4302_v3 = vld [vmem:[%s2959_s1 + $0xb8] sm:$0xff] }
 0x15c   : > { %1811 = vmatpush.msra.mxu3 %v895_v57  ;;  %1714 = vmatmul.f32.vlgmr.msrb.gmra.mxu2 %v5040_v21  ;;  %v1456_v30 = vadd.f32 %v1455_v4, %v1436_v0  ;;  %v856_v57 = vunpack.c.l.bf16 %v4231_v56  ;;  %v1207_v0 = vunpack.c.h.bf16 %v4123_v35  ;;  %v4292_v35 = vld [vmem:[%s2959_s1 + $0xd8] sm:$0xff] }
 0x15d   : > { %1753 = vmatpush.msra.mxu0 %v1134_v20  ;;  %1772 = vmatpush.msra.mxu1 %v631_v18  ;;  %v1231_v20 = vunpack.c.h.bf16 %v4102_v63  ;;  %v712_v18 = vunpack.c.l.bf16 %v4239_v17  ;;  %v1223_v63 = vunpack.c.h.bf16 %v4109_v42  ;;  %v1215_v42 = vunpack.c.h.bf16 %v4116_v62  ;;  %v4282_v62 = vld [vmem:[%s2959_s1 + $0xf8] sm:$0xff] }
 0x15e   : > { %1793 = vmatpush.msra.mxu2 %v751_v45  ;;  %1812 = vmatpush.msra.mxu3 %v887_v19  ;;  %v2059_v22 = vadd.f32 %v1456_v30, %v286_v39  ;;  %v4253_v45 = vld [vmem:[%s2959_s1 + $0x378] sm:$0xff]  ;;  %v680_v30 = vunpack.c.l.bf16 %v4282_v62 }
 0x15f   : > { %1674 = vmatmul.f32.vlgmr.msrb.gmra.mxu0 %v4211_v27  ;;  %1734 = vmatmul.f32.vlgmr.msrb.gmra.mxu3 %v5043_v34  ;;  %v4258_v19 = vld [vmem:[%s2959_s1 + $0x138] sm:$0xff] }
 0x160   : > { %1818 = vmatpush.msrb.mxu0 %v1127_v47  ;;  %1858 = vmatpush.msrb.mxu2 %v744_v55  ;;  %2067 = vst [vmem:[#allocation2] sm:$0xff] %v2059_v22  ;;  %v704_v47 = vunpack.c.l.bf16 %v4248_v2  ;;  %v4266_v55 = vld [vmem:[%s2981_s4 + $0x20] sm:$0xff]  ;;  %v696_v25 = vunpack.c.l.bf16 %v4258_v19  ;;  %v5050_v34 = vld [vmem:[#allocation30_spill] sm:$0xff]  ;;  %v672_v22 = vunpack.c.l.bf16 %v4292_v35 }
 0x161   : > { %1773 = vmatpush.msra.mxu1 %v623_v58  ;;  %1813 = vmatpush.msra.mxu3 %v879_v6  ;;  %v840_v58 = vunpack.c.l.bf16 %v4253_v45  ;;  %v5049_v6 = vld [vmem:[#allocation18_spill] sm:$0xff] }
 0x162   : > { %1694 = vmatmul.f32.vlgmr.msrb.gmra.mxu1 %v5045_v46  ;;  %1819 = vmatpush.msrb.mxu0 %v1119_v29  ;;  %v1079_v16 = vunpack.c.h.bf16 %v5049_v6  ;;  %v4277_v29 = vld [vmem:[%s2959_s1 + $0x338] sm:$0xff] }
 0x163   : > { %1838 = vmatpush.msrb.mxu1 %v1255_v5  ;;  %1859 = vmatpush.msrb.mxu2 %v736_v61  ;;  %v832_v5 = vunpack.c.l.bf16 %v4263_v36  ;;  %v1071_v61 = vunpack.c.h.bf16 %v5050_v34  ;;  %v4287_v39 = vld [vmem:[%s2959_s1 + $0x318] sm:$0xff]  ;;  %v824_v4 = vunpack.c.l.bf16 %v4277_v29 }
 0x164   : > { %1878 = vmatpush.msrb.mxu3 %v872_v33  ;;  %1820 = vmatpush.msrb.mxu0 %v1111_v37  ;;  %v688_v33 = vunpack.c.l.bf16 %v4272_v60  ;;  %v5051_v37 = vld [vmem:[#allocation19_spill] sm:$0xff]  ;;  %v4312_v14 = vld [vmem:[%s2959_s1 + $0x98] sm:$0xff] }
 0x165   : > { %1839 = vmatpush.msrb.mxu1 %v1247_v48  ;;  %1860 = vmatpush.msrb.mxu2 %v728_v54  ;;  %v1063_v48 = vunpack.c.h.bf16 %v5051_v37  ;;  %v4297_v54 = vld [vmem:[%s2959_s1 + $0x2f8] sm:$0xff] }
 0x166   : > { %1879 = vmatpush.msrb.mxu3 %v864_v13  ;;  %1821 = vmatpush.msrb.mxu0 %v1103_v53  ;;  %v816_v13 = vunpack.c.l.bf16 %v4287_v39  ;;  %v5052_v53 = vld [vmem:[#allocation31_spill] sm:$0xff]  ;;  %v4332_v32 = vld [vmem:[%s2959_s1 + $0x58] sm:$0xff] }
 0x167   : > { %1840 = vmatpush.msrb.mxu1 %v1239_v49  ;;  %1861 = vmatpush.msrb.mxu2 %v720_v7  ;;  %v1055_v49 = vunpack.c.h.bf16 %v5052_v53  ;;  %v4307_v7 = vld [vmem:[%s2959_s1 + $0x2d8] sm:$0xff]  ;;  %v640_v37 = vunpack.c.l.bf16 %v4332_v32 }
 0x168   : > { %1880 = vmatpush.msrb.mxu3 %v856_v57  ;;  %1754 = vmatmul.f32.vlgmr.msra.gmra.mxu0 %v4266_v55  ;;  %5053 = vst [vmem:[#allocation34_spill] sm:$0xff] %v4307_v7  ;;  %v808_v57 = vunpack.c.l.bf16 %v4297_v54  ;;  %v4337_v34 = vld [vmem:[%s2959_s1 + $0x278] sm:$0xff] }
 0x169   : > { %1841 = vmatpush.msrb.mxu1 %v1231_v20  ;;  %1822 = vmatpush.msrb.mxu0 %v1095_v44  ;;  %v1183_v20 = vunpack.c.h.bf16 %v4144_v50  ;;  %v1047_v44 = vunpack.c.h.bf16 %v5054_v11  ;;  %v4322_v50 = vld [vmem:[%s2959_s1 + $0x78] sm:$0xff]  ;;  %5059 = vst [vmem:[#allocation22_spill] sm:$0xff] %v4337_v34  ;;  %v1007_v11 = vunpack.c.h.bf16 %v4083_v38 }
 0x16a   : > { %1862 = vmatpush.msrb.mxu2 %v712_v18  ;;  %1881 = vmatpush.msrb.mxu3 %v848_v31  ;;  %v664_v18 = vunpack.c.l.bf16 %v4302_v3  ;;  %v4317_v31 = vld [vmem:[%s2959_s1 + $0x2b8] sm:$0xff] }
 0x16b   : > { %1842 = vmatpush.msrb.mxu1 %v1223_v63  ;;  %1823 = vmatpush.msrb.mxu0 %v1087_v15  ;;  %5055 = vst [vmem:[#allocation35_spill] sm:$0xff] %v4317_v31  ;;  %v800_v63 = vunpack.c.l.bf16 %v4307_v7  ;;  %v5056_v15 = vld [vmem:[#allocation20_spill] sm:$0xff]  ;;  %v792_v6 = vunpack.c.l.bf16 %v4317_v31  ;;  %v4375_v38 = vld [vmem:[%s2959_s1 + $0x5d8] sm:$0xff] }
 0x16c   : > { %1863 = vmatpush.msrb.mxu2 %v704_v47  ;;  %1882 = vmatpush.msrb.mxu3 %v840_v58  ;;  %v1039_v47 = vunpack.c.h.bf16 %v5056_v15  ;;  %v656_v58 = vunpack.c.l.bf16 %v4312_v14  ;;  %v4371_v15 = vld [vmem:[%s2959_s1 + $0x218] sm:$0xff] }
 0x16d   : > { %1843 = vmatpush.msrb.mxu1 %v1215_v42  ;;  %1824 = vmatpush.msrb.mxu0 %v1079_v16  ;;  %v4327_v42 = vld [vmem:[%s2959_s1 + $0x298] sm:$0xff]  ;;  %v1167_v16 = vunpack.c.h.bf16 %v4158_v41  ;;  %5064 = vst [vmem:[#allocation38_spill] sm:$0xff] %v4371_v15 }
 0x16e   : > { %1864 = vmatpush.msrb.mxu2 %v696_v25  ;;  %1883 = vmatpush.msrb.mxu3 %v832_v5  ;;  %5057 = vst [vmem:[#allocation36_spill] sm:$0xff] %v4327_v42  ;;  %v5058_v25 = vld [vmem:[#allocation21_spill] sm:$0xff]  ;;  %v4342_v41 = vld [vmem:[%s2959_s1 + $0x38] sm:$0xff] }
 0x16f   : > { %1844 = vmatpush.msrb.mxu1 %v1207_v0  ;;  %1825 = vmatpush.msrb.mxu0 %v1071_v61  ;;  %v1031_v5 = vunpack.c.h.bf16 %v5058_v25  ;;  %v648_v0 = vunpack.c.l.bf16 %v4322_v50  ;;  %v784_v61 = vunpack.c.l.bf16 %v4327_v42  ;;  %v632_v53 = vunpack.c.l.bf16 %v4342_v41  ;;  %v4384_v25 = vld [vmem:[%s2959_s1 + $0x9d8] sm:$0xff] }
 0x170   : > { %1865 = vmatpush.msrb.mxu2 %v688_v33  ;;  %1884 = vmatpush.msrb.mxu3 %v824_v4  ;;  %v1159_v33 = vunpack.c.h.bf16 %v4165_v1  ;;  %v5060_v4 = vld [vmem:[#allocation37_spill] sm:$0xff]  ;;  %v5062_v1 = vld [vmem:[#allocation39_spill] sm:$0xff]  ;;  %v4489_v42 = vld [vmem:[%s2959_s1 + $0x6f8] sm:$0xff] }
 0x171   : > { %1845 = vmatpush.msrb.mxu1 %v1199_v12  ;;  %1826 = vmatpush.msrb.mxu0 %v1063_v48  ;;  %v1023_v12 = vunpack.c.h.bf16 %v5060_v4  ;;  %v4347_v48 = vld [vmem:[%s2959_s1 + $0x258] sm:$0xff] }
 0x172   : > { %1866 = vmatpush.msrb.mxu2 %v680_v30  ;;  %1885 = vmatpush.msrb.mxu3 %v816_v13  ;;  %5061 = vst [vmem:[#allocation23_spill] sm:$0xff] %v4347_v48  ;;  %v776_v30 = vunpack.c.l.bf16 %v4337_v34  ;;  %v1151_v13 = vunpack.c.h.bf16 %v4172_v8  ;;  %v1515_v4 = vpop.f32.mrf.mxu0  ;;  %v4486_v34 = vld [vmem:[%s2959_s1 + $0x4d8] sm:$0xff] }
 0x173   : > { %1846 = vmatpush.msrb.mxu1 %v1191_v40  ;;  %1827 = vmatpush.msrb.mxu0 %v1055_v49  ;;  %v1015_v40 = vunpack.c.h.bf16 %v5062_v1  ;;  %v4354_v49 = vld [vmem:[%s2959_s1 + $0x18] sm:$0xff]  ;;  %5067 = vst [vmem:[#allocation17_spill] sm:$0xff] %v4486_v34 }
 0x174   : > { %1867 = vmatpush.msrb.mxu2 %v672_v22  ;;  %1886 = vmatpush.msrb.mxu3 %v808_v57  ;;  %v4357_v22 = vld [vmem:[%s2959_s1 + $0x238] sm:$0xff]  ;;  %v768_v57 = vunpack.c.l.bf16 %v4347_v48  ;;  %v1475_v8 = vpop.f32.mrf.mxu2 }
 0x175   : > { %1847 = vmatpush.msrb.mxu1 %v1183_v20  ;;  %1828 = vmatpush.msrb.mxu0 %v1047_v44  ;;  %5063 = vst [vmem:[#allocation29_spill] sm:$0xff] %v4357_v22  ;;  %v4361_v20 = vld [vmem:[%s2959_s1 + $0x5f8] sm:$0xff]  ;;  %v1143_v44 = vunpack.c.h.bf16 %v4179_v10 }
 0x176   : > { %1868 = vmatpush.msrb.mxu2 %v664_v18  ;;  %1887 = vmatpush.msrb.mxu3 %v800_v63  ;;  %v4366_v18 = vld [vmem:[%s2959_s1 + $0x9f8] sm:$0xff]  ;;  %v624_v63 = vunpack.c.l.bf16 %v4354_v49 }
 0x177   : > { %1848 = vmatpush.msrb.mxu1 %v1175_v26  ;;  %1829 = vmatpush.msrb.mxu0 %v1039_v47  ;;  %v760_v26 = vunpack.c.l.bf16 %v4357_v22  ;;  %v1000_v47 = vunpack.c.l.bf16 %v4361_v20  ;;  %v4378_v10 = vld [vmem:[%s2959_s1 + $0x7f8] sm:$0xff] }
 0x178   : > { %1869 = vmatpush.msrb.mxu2 %v656_v58  ;;  %1888 = vmatpush.msrb.mxu3 %v792_v6  ;;  %v1495_v58 = vpop.f32.mrf.mxu3  ;;  %v1256_v6 = vunpack.c.l.bf16 %v4366_v18  ;;  %v4402_v1 = vld [vmem:[%s2959_s1 + $0x598] sm:$0xff] }
 0x179   : > { %1849 = vmatpush.msrb.mxu1 %v1167_v16  ;;  %1830 = vmatpush.msrb.mxu0 %v1031_v5  ;;  %v1135_v16 = vunpack.c.h.bf16 %v4186_v51  ;;  %v1496_v5 = vadd.f32 %v1495_v58, %v1475_v8  ;;  %v1128_v51 = vunpack.c.l.bf16 %v4378_v10  ;;  %v4410_v8 = vld [vmem:[%s2959_s1 + $0x998] sm:$0xff] }
 0x17a   : > { %1870 = vmatpush.msrb.mxu2 %v648_v0  ;;  %1889 = vmatpush.msrb.mxu3 %v784_v61  ;;  %v752_v0 = vunpack.c.l.bf16 %v4371_v15  ;;  %v4388_v61 = vld [vmem:[%s2959_s1 + $0x5b8] sm:$0xff] }
 0x17b   : > { %1850 = vmatpush.msrb.mxu1 %v1159_v33  ;;  %1831 = vmatpush.msrb.mxu0 %v1023_v12  ;;  %v4391_v33 = vld [vmem:[%s2959_s1 + $0x7d8] sm:$0xff] }
 0x17c   : > { %1871 = vmatpush.msrb.mxu2 %v640_v37  ;;  %1890 = vmatpush.msrb.mxu3 %v776_v30  ;;  %v4396_v12 = vld [vmem:[%s2959_s1 + $0x9b8] sm:$0xff]  ;;  %v1516_v37 = vadd.f32 %v1515_v4, %v1496_v5  ;;  %v1248_v30 = vunpack.c.l.bf16 %v4384_v25 }
 0x17d   : > { %1851 = vmatpush.msrb.mxu1 %v1151_v13  ;;  %1832 = vmatpush.msrb.mxu0 %v1015_v40  ;;  %v745_v13 = vunpack.c.h.bf16 %v4196_v52  ;;  %v4405_v40 = vld [vmem:[%s2959_s1 + $0x7b8] sm:$0xff]  ;;  %v1240_v52 = vunpack.c.l.bf16 %v4396_v12 }
 0x17e   : > { %1872 = vmatpush.msrb.mxu2 %v632_v53  ;;  %1891 = vmatpush.msrb.mxu3 %v768_v57  ;;  %v984_v53 = vunpack.c.l.bf16 %v4388_v61  ;;  %v1120_v57 = vunpack.c.l.bf16 %v4391_v33  ;;  %v1112_v58 = vunpack.c.l.bf16 %v4405_v40  ;;  %v287_v5 = vld [vmem:[#allocation2 + $0x18] sm:$0xff] }
 0x17f   : > { %1794 = vmatmul.f32.vlgmr.msra.gmra.mxu2 %v5045_v46  ;;  %1833 = vmatpush.msrb.mxu0 %v1007_v11  ;;  %v992_v46 = vunpack.c.l.bf16 %v4375_v38  ;;  %v737_v11 = vunpack.c.h.bf16 %v4204_v59  ;;  %v1232_v59 = vunpack.c.l.bf16 %v4410_v8  ;;  %v4473_v15 = vld [vmem:[%s2959_s1 + $0x4f8] sm:$0xff] }
 0x180   : > { %1852 = vmatpush.msrb.mxu1 %v1143_v44  ;;  %1873 = vmatpush.msrb.mxu2 %v624_v63  ;;  %v4416_v44 = vld [vmem:[%s2959_s1 + $0x798] sm:$0xff]  ;;  %5065 = vst [vmem:[#allocation24_spill] sm:$0xff] %v4473_v15 }
 0x181   : > { %1892 = vmatpush.msrb.mxu3 %v760_v26  ;;  %1898 = vmatpush.msra.mxu0 %v1000_v47  ;;  %v1555_v26 = vpop.f32.mrf.mxu2  ;;  %v976_v47 = vunpack.c.l.bf16 %v4402_v1  ;;  %v4476_v22 = vld [vmem:[%s2959_s1 + $0x718] sm:$0xff] }
 0x182   : > { %1814 = vmatmul.f32.vlgmr.msra.gmra.mxu3 %v5040_v21  ;;  %1938 = vmatpush.msra.mxu2 %v1256_v6  ;;  %v1535_v21 = vpop.f32.mrf.mxu1  ;;  %v4421_v6 = vld [vmem:[%s2959_s1 + $0x578] sm:$0xff] }
 0x183   : > { %1853 = vmatpush.msrb.mxu1 %v1135_v16  ;;  %1893 = vmatpush.msrb.mxu3 %v752_v0  ;;  %v1536_v63 = vadd.f32 %v1535_v21, %v1516_v37  ;;  %v4424_v16 = vld [vmem:[%s2959_s1 + $0x978] sm:$0xff]  ;;  %v729_v0 = vunpack.c.h.bf16 %v4217_v28 }
 0x184   : > { %1774 = vmatmul.f32.vlgmr.msra.gmra.mxu1 %v4211_v27  ;;  %1899 = vmatpush.msra.mxu0 %v992_v46  ;;  %v1104_v46 = vunpack.c.l.bf16 %v4416_v44  ;;  %v4433_v37 = vld [vmem:[%s2959_s1 + $0x778] sm:$0xff] }
 0x185   : > { %1918 = vmatpush.msra.mxu1 %v1128_v51  ;;  %1939 = vmatpush.msra.mxu2 %v1248_v30  ;;  %v1556_v4 = vadd.f32 %v1555_v26, %v1536_v63  ;;  %v4430_v51 = vld [vmem:[%s2959_s1 + $0x558] sm:$0xff]  ;;  %v968_v30 = vunpack.c.l.bf16 %v4421_v6 }
 0x186   : > { %1958 = vmatpush.msra.mxu3 %v745_v13  ;;  %1900 = vmatpush.msra.mxu0 %v984_v53  ;;  %v1224_v13 = vunpack.c.l.bf16 %v4424_v16  ;;  %v4438_v28 = vld [vmem:[%s2959_s1 + $0x958] sm:$0xff]  ;;  %v721_v53 = vunpack.c.h.bf16 %v4228_v9 }
 0x187   : > { %1919 = vmatpush.msra.mxu1 %v1120_v57  ;;  %1940 = vmatpush.msra.mxu2 %v1240_v52  ;;  %v2060_v21 = vadd.f32 %v1556_v4, %v287_v5  ;;  %v4442_v57 = vld [vmem:[%s2959_s1 + $0x538] sm:$0xff]  ;;  %v960_v52 = vunpack.c.l.bf16 %v4430_v51  ;;  %v1216_v9 = vunpack.c.l.bf16 %v4438_v28 }
 0x188   : > { %1959 = vmatpush.msra.mxu3 %v737_v11  ;;  %1901 = vmatpush.msra.mxu0 %v976_v47  ;;  %v4445_v63 = vld [vmem:[%s2959_s1 + $0x758] sm:$0xff]  ;;  %v1096_v11 = vunpack.c.l.bf16 %v4433_v37 }
 0x189   : > { %1920 = vmatpush.msra.mxu1 %v1112_v58  ;;  %1941 = vmatpush.msra.mxu2 %v1232_v59  ;;  %v4450_v26 = vld [vmem:[%s2959_s1 + $0x938] sm:$0xff]  ;;  %2068 = vst [vmem:[#allocation2 + $0x18] sm:$0xff] %v2060_v21  ;;  %v713_v58 = vunpack.c.h.bf16 %v4239_v17  ;;  %v1088_v4 = vunpack.c.l.bf16 %v4445_v63 }
 0x18a   : > { %1960 = vmatpush.msra.mxu3 %v729_v0  ;;  %v4453_v47 = vld [vmem:[%s2981_s4 + $0x18] sm:$0xff]  ;;  %1902 = vmatpush.msra.mxu0 %v968_v30  ;;  %v952_v0 = vunpack.c.l.bf16 %v4442_v57  ;;  %v1208_v17 = vunpack.c.l.bf16 %v4450_v26 }
 0x18b   : > { %1834 = vmatmul.f32.vlgmr.msrb.gmra.mxu0 %v4453_v47  ;;  %1921 = vmatpush.msra.mxu1 %v1104_v46  ;;  %v4459_v5 = vld [vmem:[%s2959_s1 + $0x518] sm:$0xff]  ;;  %v705_v46 = vunpack.c.h.bf16 %v4248_v2  ;;  %v697_v2 = vunpack.c.h.bf16 %v4258_v19  ;;  %v689_v19 = vunpack.c.h.bf16 %v4272_v60  ;;  %v681_v60 = vunpack.c.h.bf16 %v4282_v62 }
 0x18c   : > { %v4462_v59 = vld [vmem:[%s2959_s1 + $0x738] sm:$0xff]  ;;  %1942 = vmatpush.msra.mxu2 %v1224_v13  ;;  %1961 = vmatpush.msra.mxu3 %v721_v53  ;;  %v944_v30 = vunpack.c.l.bf16 %v4459_v5  ;;  %v673_v62 = vunpack.c.h.bf16 %v4292_v35  ;;  %v665_v35 = vunpack.c.h.bf16 %v4302_v3  ;;  %v657_v3 = vunpack.c.h.bf16 %v4312_v14 }
 0x18d   : > { %v4467_v21 = vld [vmem:[%s2959_s1 + $0x918] sm:$0xff]  ;;  %1854 = vmatmul.f32.vlgmr.msrb.gmra.mxu1 %v4266_v55  ;;  %1903 = vmatpush.msra.mxu0 %v960_v52  ;;  %v1080_v13 = vunpack.c.l.bf16 %v4462_v59  ;;  %v936_v52 = vunpack.c.l.bf16 %v4473_v15  ;;  %v649_v14 = vunpack.c.h.bf16 %v4322_v50 }
 0x18e   : > { %1922 = vmatpush.msra.mxu1 %v1096_v11  ;;  %v4481_v48 = vld [vmem:[%s2959_s1 + $0x8f8] sm:$0xff]  ;;  %1943 = vmatpush.msra.mxu2 %v1216_v9  ;;  %v1200_v53 = vunpack.c.l.bf16 %v4467_v21  ;;  %v1072_v11 = vunpack.c.l.bf16 %v4476_v22 }
 0x18f   : > { %5066 = vst [vmem:[#allocation26_spill] sm:$0xff] %v4481_v48  ;;  %1962 = vmatpush.msra.mxu3 %v713_v58  ;;  %1904 = vmatpush.msra.mxu0 %v952_v0  ;;  %v4494_v31 = vld [vmem:[%s2959_s1 + $0x8d8] sm:$0xff]  ;;  %v1192_v9 = vunpack.c.l.bf16 %v4481_v48  ;;  %v928_v0 = vunpack.c.l.bf16 %v4486_v34 }
 0x190   : > { %1923 = vmatpush.msra.mxu1 %v1088_v4  ;;  %5068 = vst [vmem:[#allocation27_spill] sm:$0xff] %v4494_v31  ;;  %1944 = vmatpush.msra.mxu2 %v1208_v17  ;;  %v4499_v58 = vld [vmem:[%s2959_s1 + $0x4b8] sm:$0xff]  ;;  %v1064_v4 = vunpack.c.l.bf16 %v4489_v42  ;;  %v1184_v17 = vunpack.c.l.bf16 %v4494_v31 }
 0x191   : > { %1963 = vmatpush.msra.mxu3 %v705_v46  ;;  %5069 = vst [vmem:[#allocation25_spill] sm:$0xff] %v4499_v58  ;;  %v4502_v7 = vld [vmem:[%s2959_s1 + $0x6d8] sm:$0xff]  ;;  %1905 = vmatpush.msra.mxu0 %v944_v30  ;;  %v920_v30 = vunpack.c.l.bf16 %v4499_v58 }
 0x192   : > { %1924 = vmatpush.msra.mxu1 %v1080_v13  ;;  %v4507_v15 = vld [vmem:[%s2959_s1 + $0x8b8] sm:$0xff]  ;;  %1945 = vmatpush.msra.mxu2 %v1200_v53  ;;  %v1056_v13 = vunpack.c.l.bf16 %v4502_v7 }
 0x193   : > { %5070 = vst [vmem:[#allocation32_spill] sm:$0xff] %v4507_v15  ;;  %1964 = vmatpush.msra.mxu3 %v697_v2  ;;  %v4512_v46 = vld [vmem:[%s2959_s1 + $0x498] sm:$0xff]  ;;  %1906 = vmatpush.msra.mxu0 %v936_v52  ;;  %v1176_v53 = vunpack.c.l.bf16 %v4507_v15 }
 0x194   : > { %5071 = vst [vmem:[#allocation28_spill] sm:$0xff] %v4512_v46  ;;  %v4515_v48 = vld [vmem:[%s2959_s1 + $0x6b8] sm:$0xff]  ;;  %1925 = vmatpush.msra.mxu1 %v1072_v11  ;;  %1946 = vmatpush.msra.mxu2 %v1192_v9  ;;  %v912_v52 = vunpack.c.l.bf16 %v4512_v46 }
 0x195   : > { %v4520_v34 = vld [vmem:[%s2959_s1 + $0x898] sm:$0xff]  ;;  %1965 = vmatpush.msra.mxu3 %v689_v19  ;;  %1907 = vmatpush.msra.mxu0 %v928_v0  ;;  %v1048_v11 = vunpack.c.l.bf16 %v4515_v48 }
 0x196   : > { %5072 = vst [vmem:[#allocation18_spill] sm:$0xff] %v4520_v34  ;;  %v4525_v2 = vld [vmem:[%s2959_s1 + $0x478] sm:$0xff]  ;;  %1926 = vmatpush.msra.mxu1 %v1064_v4  ;;  %1947 = vmatpush.msra.mxu2 %v1184_v17  ;;  %v1168_v9 = vunpack.c.l.bf16 %v4520_v34 }
 0x197   : > { %5073 = vst [vmem:[#allocation30_spill] sm:$0xff] %v4525_v2  ;;  %v4528_v31 = vld [vmem:[%s2959_s1 + $0x698] sm:$0xff]  ;;  %1966 = vmatpush.msra.mxu3 %v681_v60  ;;  %1908 = vmatpush.msra.mxu0 %v920_v30  ;;  %v904_v0 = vunpack.c.l.bf16 %v4525_v2 }
 0x198   : > { %v4533_v58 = vld [vmem:[%s2959_s1 + $0x878] sm:$0xff]  ;;  %1927 = vmatpush.msra.mxu1 %v1056_v13  ;;  %v1040_v4 = vunpack.c.l.bf16 %v4528_v31  ;;  %1948 = vmatpush.msra.mxu2 %v1176_v53 }
 0x199   : > { %5074 = vst [vmem:[#allocation19_spill] sm:$0xff] %v4533_v58  ;;  %v4538_v19 = vld [vmem:[%s2959_s1 + $0x458] sm:$0xff]  ;;  %1967 = vmatpush.msra.mxu3 %v673_v62  ;;  %v1160_v17 = vunpack.c.l.bf16 %v4533_v58  ;;  %1909 = vmatpush.msra.mxu0 %v912_v52 }
 0x19a   : > { %5075 = vst [vmem:[#allocation31_spill] sm:$0xff] %v4538_v19  ;;  %v4541_v15 = vld [vmem:[%s2959_s1 + $0x678] sm:$0xff]  ;;  %1928 = vmatpush.msra.mxu1 %v1048_v11  ;;  %v896_v30 = vunpack.c.l.bf16 %v4538_v19  ;;  %1949 = vmatpush.msra.mxu2 %v1168_v9 }
 0x19b   : > { %v4546_v46 = vld [vmem:[%s2959_s1 + $0x858] sm:$0xff]  ;;  %v1032_v13 = vunpack.c.l.bf16 %v4541_v15  ;;  %1968 = vmatpush.msra.mxu3 %v665_v35  ;;  %1910 = vmatpush.msra.mxu0 %v904_v0  ;;  %v641_v35 = vunpack.c.h.bf16 %v4332_v32  ;;  %v1129_v32 = vunpack.c.h.bf16 %v4378_v10  ;;  %v1257_v10 = vunpack.c.h.bf16 %v4366_v18 }
 0x19c   : > { %v4551_v60 = vld [vmem:[%s2959_s1 + $0x438] sm:$0xff]  ;;  %v1152_v53 = vunpack.c.l.bf16 %v4546_v46  ;;  %1929 = vmatpush.msra.mxu1 %v1040_v4  ;;  %1950 = vmatpush.msra.mxu2 %v1160_v17  ;;  %v633_v17 = vunpack.c.h.bf16 %v4342_v41  ;;  %v865_v41 = vunpack.c.h.bf16 %v4220_v23  ;;  %v1113_v23 = vunpack.c.h.bf16 %v4405_v40  ;;  %v288_v40 = vld [vmem:[#allocation2 + $0x10] sm:$0xff] }
 0x19d   : > { %5076 = vst [vmem:[#allocation33_spill] sm:$0xff] %v4551_v60  ;;  %v4554_v34 = vld [vmem:[%s2959_s1 + $0x658] sm:$0xff]  ;;  %v888_v52 = vunpack.c.l.bf16 %v4551_v60  ;;  %1969 = vmatpush.msra.mxu3 %v657_v3  ;;  %1911 = vmatpush.msra.mxu0 %v896_v30  ;;  %v873_v3 = vunpack.c.h.bf16 %v4207_v43  ;;  %v1001_v43 = vunpack.c.h.bf16 %v4361_v20  ;;  %v1249_v20 = vunpack.c.h.bf16 %v4384_v25 }
 0x19e   : > { %v4559_v2 = vld [vmem:[%s2959_s1 + $0x838] sm:$0xff]  ;;  %v1024_v11 = vunpack.c.l.bf16 %v4554_v34  ;;  %1930 = vmatpush.msra.mxu1 %v1032_v13  ;;  %1951 = vmatpush.msra.mxu2 %v1152_v53  ;;  %v625_v13 = vunpack.c.h.bf16 %v4354_v49  ;;  %v1595_v53 = vpop.f32.mrf.mxu0  ;;  %v857_v49 = vunpack.c.h.bf16 %v4231_v56  ;;  %v849_v18 = vunpack.c.h.bf16 %v4244_v24 }
 0x19f   : > { %5077 = vst [vmem:[#allocation20_spill] sm:$0xff] %v4559_v2  ;;  %v4564_v62 = vld [vmem:[%s2959_s1 + $0x418] sm:$0xff]  ;;  %v1144_v9 = vunpack.c.l.bf16 %v4559_v2  ;;  %1970 = vmatpush.msra.mxu3 %v649_v14  ;;  %1912 = vmatpush.msra.mxu0 %v888_v52  ;;  %v1575_v2 = vpop.f32.mrf.mxu3  ;;  %v1121_v52 = vunpack.c.h.bf16 %v4391_v33  ;;  %v1105_v56 = vunpack.c.h.bf16 %v4416_v44  ;;  %v977_v24 = vunpack.c.h.bf16 %v4402_v1 }
 0x1a0   : > { %v4569_v19 = vld [vmem:[%s2959_s1 + $0x638] sm:$0xff]  ;;  %v880_v50 = vunpack.c.l.bf16 %v4564_v62  ;;  %1931 = vmatpush.msra.mxu1 %v1024_v11  ;;  %1874 = vmatmul.f32.vlgmr.msrb.gmra.mxu2 %v4211_v27  ;;  %v1596_v14 = vadd.f32 %v1595_v53, %v1575_v2  ;;  %v4593_v11 = vld [vmem:[%s2981_s4 + $0x8] sm:$0xff]  ;;  %v1233_v44 = vunpack.c.h.bf16 %v4410_v8  ;;  %v1089_v1 = vunpack.c.h.bf16 %v4445_v63 }
 0x1a1   : > { %v4572_v58 = vld [vmem:[%s2959_s1 + $0x818] sm:$0xff]  ;;  %v1016_v0 = vunpack.c.l.bf16 %v4569_v19  ;;  %1952 = vmatpush.msra.mxu2 %v1144_v9  ;;  %1971 = vmatpush.msra.mxu3 %v641_v35  ;;  %v993_v9 = vunpack.c.h.bf16 %v4375_v38  ;;  %v1615_v35 = vpop.f32.mrf.mxu1  ;;  %v1635_v33 = vpop.f32.mrf.mxu2  ;;  %v825_v8 = vunpack.c.h.bf16 %v4277_v29  ;;  %v817_v63 = vunpack.c.h.bf16 %v4287_v39 }
 0x1a2   : > { %v1136_v4 = vunpack.c.l.bf16 %v4572_v58  ;;  %v4580_v60 = vld [vmem:[%s2959_s1 + $0x618] sm:$0xff]  ;;  %1913 = vmatpush.msra.mxu0 %v880_v50  ;;  %1894 = vmatmul.f32.vlgmr.msrb.gmra.mxu3 %v4593_v11  ;;  %v1616_v2 = vadd.f32 %v1615_v35, %v1596_v14  ;;  %v985_v50 = vunpack.c.h.bf16 %v4388_v61  ;;  %v1097_v61 = vunpack.c.h.bf16 %v4433_v37  ;;  %v5081_v14 = vld [vmem:[#allocation35_spill] sm:$0xff] }
 0x1a3   : > { %v1008_v30 = vunpack.c.l.bf16 %v4580_v60  ;;  %1932 = vmatpush.msra.mxu1 %v1016_v0  ;;  %1972 = vmatpush.msra.mxu3 %v633_v17  ;;  %v1241_v0 = vunpack.c.h.bf16 %v4396_v12  ;;  %v833_v12 = vunpack.c.h.bf16 %v4263_v36  ;;  %v1225_v37 = vunpack.c.h.bf16 %v4424_v16  ;;  %v5078_v53 = vld [vmem:[#allocation34_spill] sm:$0xff] }
 0x1a4   : > { %1953 = vmatpush.msra.mxu2 %v1136_v4  ;;  %1978 = vmatpush.msrb.mxu0 %v873_v3  ;;  %v1636_v38 = vadd.f32 %v1635_v33, %v1616_v2  ;;  %v841_v4 = vunpack.c.h.bf16 %v4253_v45  ;;  %v969_v45 = vunpack.c.h.bf16 %v4421_v6  ;;  %v961_v36 = vunpack.c.h.bf16 %v4430_v51  ;;  %v5086_v2 = vld [vmem:[#allocation32_spill] sm:$0xff] }
 0x1a5   : > { %1933 = vmatpush.msra.mxu1 %v1008_v30  ;;  %1973 = vmatpush.msra.mxu3 %v625_v13  ;;  %v1081_v30 = vunpack.c.h.bf16 %v4462_v59  ;;  %v1217_v6 = vunpack.c.h.bf16 %v4438_v28  ;;  %v953_v16 = vunpack.c.h.bf16 %v4442_v57  ;;  %v1073_v29 = vunpack.c.h.bf16 %v4476_v22  ;;  %v5079_v22 = vld [vmem:[#allocation24_spill] sm:$0xff] }
 0x1a6   : > { %2018 = vmatpush.msrb.mxu2 %v1129_v32  ;;  %1979 = vmatpush.msrb.mxu0 %v865_v41  ;;  %v4611_v32 = vld [vmem:[%s2981_s4 + $0x10] sm:$0xff]  ;;  %v1209_v13 = vunpack.c.h.bf16 %v4450_v26  ;;  %v809_v51 = vunpack.c.h.bf16 %v4297_v54  ;;  %v945_v59 = vunpack.c.h.bf16 %v4459_v5  ;;  %v1065_v28 = vunpack.c.h.bf16 %v4489_v42  ;;  %v5080_v54 = vld [vmem:[#allocation26_spill] sm:$0xff] }
 0x1a7   : > { %1998 = vmatpush.msrb.mxu1 %v1001_v43  ;;  %2038 = vmatpush.msrb.mxu3 %v1257_v10  ;;  %v1655_v25 = vpop.f32.mrf.mxu3  ;;  %v1201_v39 = vunpack.c.h.bf16 %v4467_v21  ;;  %v801_v57 = vunpack.c.h.bf16 %v5078_v53  ;;  %v937_v41 = vunpack.c.h.bf16 %v5079_v22  ;;  %v1057_v26 = vunpack.c.h.bf16 %v4502_v7  ;;  %v5082_v42 = vld [vmem:[#allocation17_spill] sm:$0xff]  ;;  %v5083_v10 = vld [vmem:[#allocation27_spill] sm:$0xff] }
 0x1a8   : > { %2019 = vmatpush.msrb.mxu2 %v1121_v52  ;;  %1980 = vmatpush.msrb.mxu0 %v857_v49  ;;  %v1656_v17 = vadd.f32 %v1655_v25, %v1636_v38  ;;  %v1193_v43 = vunpack.c.h.bf16 %v5080_v54  ;;  %v793_v5 = vunpack.c.h.bf16 %v5081_v14  ;;  %v929_v52 = vunpack.c.h.bf16 %v5082_v42  ;;  %v5085_v7 = vld [vmem:[#allocation25_spill] sm:$0xff]  ;;  %v5090_v25 = vld [vmem:[#allocation23_spill] sm:$0xff] }
 0x1a9   : > { %1999 = vmatpush.msrb.mxu1 %v993_v9  ;;  %2039 = vmatpush.msrb.mxu3 %v1249_v20  ;;  %v1049_v21 = vunpack.c.h.bf16 %v4515_v48  ;;  %v1185_v49 = vunpack.c.h.bf16 %v5083_v10  ;;  %v5084_v9 = vld [vmem:[#allocation36_spill] sm:$0xff]  ;;  %v1041_v20 = vunpack.c.h.bf16 %v4528_v31  ;;  %v1177_v33 = vunpack.c.h.bf16 %v5086_v2  ;;  %v5091_v31 = vld [vmem:[#allocation30_spill] sm:$0xff] }
 0x1aa   : > { %2020 = vmatpush.msrb.mxu2 %v1113_v23  ;;  %1981 = vmatpush.msrb.mxu0 %v849_v18  ;;  %v2061_v3 = vadd.f32 %v1656_v17, %v288_v40  ;;  %v785_v35 = vunpack.c.h.bf16 %v5084_v9  ;;  %v921_v23 = vunpack.c.h.bf16 %v5085_v7  ;;  %v5087_v18 = vld [vmem:[#allocation22_spill] sm:$0xff]  ;;  %v5088_v48 = vld [vmem:[#allocation28_spill] sm:$0xff]  ;;  %v1033_v38 = vunpack.c.h.bf16 %v4541_v15 }
 0x1ab   : > { %1954 = vmatmul.f32.vlgmr.msra.gmra.mxu2 %v4266_v55  ;;  %2000 = vmatpush.msrb.mxu1 %v985_v50  ;;  %v777_v50 = vunpack.c.h.bf16 %v5087_v18  ;;  %v1025_v17 = vunpack.c.h.bf16 %v4554_v34  ;;  %v5096_v34 = vld [vmem:[#allocation33_spill] sm:$0xff]  ;;  %v291_v7 = vld [vmem:[#allocation2 + $0x28] sm:$0xff] }
 0x1ac   : > { %2021 = vmatpush.msrb.mxu2 %v1105_v56  ;;  %2040 = vmatpush.msrb.mxu3 %v1241_v0  ;;  %2069 = vst [vmem:[#allocation2 + $0x10] sm:$0xff] %v2061_v3  ;;  %v913_v56 = vunpack.c.h.bf16 %v5088_v48  ;;  %v5089_v0 = vld [vmem:[#allocation18_spill] sm:$0xff]  ;;  %v5094_v3 = vld [vmem:[#allocation31_spill] sm:$0xff] }
 0x1ad   : > { %1914 = vmatmul.f32.vlgmr.msra.gmra.mxu0 %v4611_v32  ;;  %2001 = vmatpush.msrb.mxu1 %v977_v24  ;;  %v1169_v40 = vunpack.c.h.bf16 %v5089_v0  ;;  %v905_v24 = vunpack.c.h.bf16 %v5091_v31  ;;  %v292_v0 = vld [vmem:[#allocation2 + $0x38] sm:$0xff] }
 0x1ae   : > { %1982 = vmatpush.msrb.mxu0 %v841_v4  ;;  %2022 = vmatpush.msrb.mxu2 %v1097_v61  ;;  %v769_v4 = vunpack.c.h.bf16 %v5090_v25  ;;  %v5092_v61 = vld [vmem:[#allocation19_spill] sm:$0xff] }
 0x1af   : > { %2041 = vmatpush.msrb.mxu3 %v1233_v44  ;;  %1934 = vmatmul.f32.vlgmr.msra.gmra.mxu1 %v4453_v47  ;;  %v1161_v44 = vunpack.c.h.bf16 %v5092_v61 }
 0x1b0   : > { %1983 = vmatpush.msrb.mxu0 %v833_v12  ;;  %2002 = vmatpush.msrb.mxu1 %v969_v45  ;;  %v5093_v12 = vld [vmem:[#allocation29_spill] sm:$0xff]  ;;  %v897_v45 = vunpack.c.h.bf16 %v5094_v3 }
 0x1b1   : > { %2023 = vmatpush.msrb.mxu2 %v1089_v1  ;;  %2042 = vmatpush.msrb.mxu3 %v1225_v37  ;;  %v761_v15 = vunpack.c.h.bf16 %v5093_v12  ;;  %v1017_v1 = vunpack.c.h.bf16 %v4569_v19  ;;  %v1153_v37 = vunpack.c.h.bf16 %v4546_v46  ;;  %v881_v19 = vunpack.c.h.bf16 %v4564_v62 }
 0x1b2   : > { %1984 = vmatpush.msrb.mxu0 %v825_v8  ;;  %2003 = vmatpush.msrb.mxu1 %v961_v36  ;;  %v5095_v8 = vld [vmem:[#allocation38_spill] sm:$0xff]  ;;  %v1137_v46 = vunpack.c.h.bf16 %v4572_v58 }
 0x1b3   : > { %2024 = vmatpush.msrb.mxu2 %v1081_v30  ;;  %2043 = vmatpush.msrb.mxu3 %v1217_v6  ;;  %v753_v36 = vunpack.c.h.bf16 %v5095_v8  ;;  %v889_v30 = vunpack.c.h.bf16 %v5096_v34  ;;  %v1009_v6 = vunpack.c.h.bf16 %v4580_v60 }
 0x1b4   : > { %1985 = vmatpush.msrb.mxu0 %v817_v63  ;;  %2004 = vmatpush.msrb.mxu1 %v953_v16  ;;  %v5097_v63 = vld [vmem:[#allocation20_spill] sm:$0xff] }
 0x1b5   : > { %2025 = vmatpush.msrb.mxu2 %v1073_v29  ;;  %2044 = vmatpush.msrb.mxu3 %v1209_v13  ;;  %v1145_v16 = vunpack.c.h.bf16 %v5097_v63 }
 0x1b6   : > { %1986 = vmatpush.msrb.mxu0 %v809_v51  ;;  %2005 = vmatpush.msrb.mxu1 %v945_v59  ;;  %v289_v59 = vld [vmem:[#allocation2 + $0x8] sm:$0xff] }
 0x1b7   : > { %2026 = vmatpush.msrb.mxu2 %v1065_v28  ;;  %2045 = vmatpush.msrb.mxu3 %v1201_v39 }
 0x1b8   : > { %1987 = vmatpush.msrb.mxu0 %v801_v57  ;;  %2006 = vmatpush.msrb.mxu1 %v937_v41 }
 0x1b9   : > { %2027 = vmatpush.msrb.mxu2 %v1057_v26  ;;  %2046 = vmatpush.msrb.mxu3 %v1193_v43 }
 0x1ba   : > { %1988 = vmatpush.msrb.mxu0 %v793_v5  ;;  %2007 = vmatpush.msrb.mxu1 %v929_v52 }
 0x1bb   : > { %2028 = vmatpush.msrb.mxu2 %v1049_v21  ;;  %2047 = vmatpush.msrb.mxu3 %v1185_v49 }
 0x1bc   : > { %1989 = vmatpush.msrb.mxu0 %v785_v35  ;;  %2008 = vmatpush.msrb.mxu1 %v921_v23 }
 0x1bd   : > { %2029 = vmatpush.msrb.mxu2 %v1041_v20  ;;  %2048 = vmatpush.msrb.mxu3 %v1177_v33 }
 0x1be   : > { %1990 = vmatpush.msrb.mxu0 %v777_v50  ;;  %2009 = vmatpush.msrb.mxu1 %v913_v56 }
 0x1bf   : > { %2030 = vmatpush.msrb.mxu2 %v1033_v38  ;;  %2049 = vmatpush.msrb.mxu3 %v1169_v40 }
 0x1c0   : > { %1991 = vmatpush.msrb.mxu0 %v769_v4  ;;  %1974 = vmatmul.f32.vlgmr.msra.gmra.mxu3 %v4211_v27 }
 0x1c1   : > { %2010 = vmatpush.msrb.mxu1 %v905_v24  ;;  %2031 = vmatpush.msrb.mxu2 %v1025_v17 }
 0x1c2   : > { %2050 = vmatpush.msrb.mxu3 %v1161_v44  ;;  %1992 = vmatpush.msrb.mxu0 %v761_v15 }
 0x1c3   : > { %2011 = vmatpush.msrb.mxu1 %v897_v45  ;;  %2032 = vmatpush.msrb.mxu2 %v1017_v1 }
 0x1c4   : > { %2051 = vmatpush.msrb.mxu3 %v1153_v37  ;;  %1993 = vmatpush.msrb.mxu0 %v753_v36 }
 0x1c5   : > { %2012 = vmatpush.msrb.mxu1 %v889_v30  ;;  %2033 = vmatpush.msrb.mxu2 %v1009_v6 }
 0x1c6   : > { %2052 = vmatpush.msrb.mxu3 %v1145_v16  ;;  %1994 = vmatmul.f32.vlgmr.msrb.gmra.mxu0 %v4593_v11 }
 0x1c7   : > { %2034 = vmatmul.f32.vlgmr.msrb.gmra.mxu2 %v4453_v47  ;;  %2013 = vmatpush.msrb.mxu1 %v881_v19 }
 0x1c8   : > { %2053 = vmatpush.msrb.mxu3 %v1137_v46  ;;  %2014 = vmatmul.f32.vlgmr.msrb.gmra.mxu1 %v4611_v32 }
 0x1c9   : > { %2054 = vmatmul.f32.vlgmr.msrb.gmra.mxu3 %v4266_v55  ;;  %v290_v55 = vld [vmem:[#allocation2 + $0x20] sm:$0xff] }
 0x1dc   : > { %v1675_v27 = vpop.f32.mrf.mxu0 }
 0x1df   : > { %v1695_v60 = vpop.f32.mrf.mxu1  ;;  %v1715_v62 = vpop.f32.mrf.mxu2 }
 0x1e0   : > { %v1696_v29 = vadd.f32 %v1695_v60, %v1675_v27 }
 0x1e2   : > { %v1716_v13 = vadd.f32 %v1715_v62, %v1696_v29  ;;  %v1735_v58 = vpop.f32.mrf.mxu3 }
 0x1e4   : > { %v1736_v51 = vadd.f32 %v1735_v58, %v1716_v13 }
 0x1e5   : > { %v1755_v28 = vpop.f32.mrf.mxu0 }
 0x1e6   : > { %v1756_v39 = vadd.f32 %v1755_v28, %v1736_v51 }
 0x1e8   : > { %v2062_v53 = vadd.f32 %v1756_v39, %v289_v59 }
 0x1ea   : > { %2070 = vst [vmem:[#allocation2 + $0x8] sm:$0xff] %v2062_v53 }
 0x201   : > { %v1775_v11 = vpop.f32.mrf.mxu1 }
 0x202   : > { %v1795_v47 = vpop.f32.mrf.mxu2 }
 0x203   : > { %v1796_v57 = vadd.f32 %v1795_v47, %v1775_v11 }
 0x205   : > { %v1815_v22 = vpop.f32.mrf.mxu3 }
 0x206   : > { %v1816_v41 = vadd.f32 %v1815_v22, %v1796_v57 }
 0x208   : > { %v1835_v32 = vpop.f32.mrf.mxu0 }
 0x209   : > { %v1836_v26 = vadd.f32 %v1835_v32, %v1816_v41 }
 0x20a   : > { %v1855_v54 = vpop.f32.mrf.mxu1 }
 0x20b   : > { %v1856_v43 = vadd.f32 %v1855_v54, %v1836_v26 }
 0x20d   : > { %v2063_v14 = vadd.f32 %v1856_v43, %v290_v55 }
 0x20f   : > { %2071 = vst [vmem:[#allocation2 + $0x20] sm:$0xff] %v2063_v14 }
 0x223   : > { %v1875_v5 = vpop.f32.mrf.mxu2 }
 0x225   : > { %v1895_v42 = vpop.f32.mrf.mxu3 }
 0x226   : > { %v1896_v52 = vadd.f32 %v1895_v42, %v1875_v5 }
 0x22a   : > { %v1915_v21 = vpop.f32.mrf.mxu0 }
 0x22b   : > { %v1916_v10 = vadd.f32 %v1915_v21, %v1896_v52 }
 0x22c   : > { %v1935_v49 = vpop.f32.mrf.mxu1 }
 0x22d   : > { %v1936_v9 = vadd.f32 %v1935_v49, %v1916_v10 }
 0x22e   : > { %v1955_v35 = vpop.f32.mrf.mxu2 }
 0x22f   : > { %v1956_v23 = vadd.f32 %v1955_v35, %v1936_v9 }
 0x231   : > { %v2064_v20 = vadd.f32 %v1956_v23, %v291_v7 }
 0x233   : > { %2072 = vst [vmem:[#allocation2 + $0x28] sm:$0xff] %v2064_v20 }
 0x243   : > { %v1975_v2 = vpop.f32.mrf.mxu3  ;;  %v1995_v33 = vpop.f32.mrf.mxu0 }
 0x244   : > { %v1996_v18 = vadd.f32 %v1995_v33, %v1975_v2 }
 0x245   : > { %v2015_v50 = vpop.f32.mrf.mxu1 }
 0x246   : > { %v2016_v48 = vadd.f32 %v2015_v50, %v1996_v18 }
 0x24a   : > { %v2035_v56 = vpop.f32.mrf.mxu2 }
 0x24b   : > { %v2036_v38 = vadd.f32 %v2035_v56, %v2016_v48 }
 0x24c   : > { %v2055_v40 = vpop.f32.mrf.mxu3 }
 0x24d   : > { %v2056_v25 = vadd.f32 %v2055_v40, %v2036_v38  ;;  %2077 = sbr.rel (%p2422_p12) target bundleno = 646 (0x286), region = 48 }
 0x24f   : > { %v2065_v4 = vadd.f32 %v2056_v25, %v292_v0 }
 0x251   : > { %2073 = vst [vmem:[#allocation2 + $0x38] sm:$0xff] %v2065_v4 }
 0x252   : > { %v2078_v31 = vld [vmem:[#allocation2 + $0x30] sm:$0xff]  ;;  %v2086_v24 = vld [vmem:[%s2970_s5] sm:$0xff]  ;;  %v2080_v12 = vld [vmem:[#allocation2 + $0x18] sm:$0xff] }
 0x253   : > { %v2079_v17 = vld [vmem:[#allocation2] sm:$0xff]  ;;  %v2088_v61 = vperm.slane %v2086_v24, 0  ;;  %v2089_v44 = vperm.slane %v2086_v24, 1  ;;  %v2090_v15 = vperm.slane %v2086_v24, 2  ;;  %v2081_v3 = vld [vmem:[#allocation2 + $0x10] sm:$0xff]  ;;  %v2091_v45 = vperm.slane %v2086_v24, 3 }
 0x254   : > { %v2082_v1 = vld [vmem:[#allocation2 + $0x8] sm:$0xff]  ;;  %v2092_v37 = vperm.slane %v2086_v24, 4  ;;  %v2083_v8 = vld [vmem:[#allocation2 + $0x20] sm:$0xff]  ;;  %v2093_v36 = vperm.slane %v2086_v24, 5  ;;  %v2094_v62 = vperm.slane %v2086_v24, 6  ;;  %v2095_v51 = vperm.slane %v2086_v24, 7 }
 0x255   : > { %v2104_v34 = vadd.f32 %v2088_v61, %v2078_v31  ;;  %v2105_v30 = vadd.f32 %v2089_v44, %v2079_v17  ;;  %v2106_v6 = vadd.f32 %v2090_v15, %v2080_v12  ;;  %v2107_v63 = vadd.f32 %v2091_v45, %v2081_v3  ;;  %v2084_v58 = vld [vmem:[#allocation2 + $0x28] sm:$0xff] }
 0x256   : > { %v2108_v16 = vadd.f32 %v2092_v37, %v2082_v1  ;;  %v2109_v19 = vadd.f32 %v2093_v36, %v2083_v8  ;;  %v2110_v39 = vadd.f32 %v2094_v62, %v2084_v58 }
 0x257   : > { %v2423_v46 = vmul.f32 -1.442695, %v2104_v34  ;;  %v2424_v27 = vmul.f32 -1.442695, %v2105_v30  ;;  %v2425_v60 = vmul.f32 -1.442695, %v2106_v6 }
 0x258   : > { %v2426_v29 = vmul.f32 -1.442695, %v2107_v63  ;;  %v2427_v13 = vmul.f32 -1.442695, %v2108_v16  ;;  %v2428_v59 = vmul.f32 -1.442695, %v2109_v19 }
 0x259   : > { %2559 = vpow2.f32 %v2423_v46  ;;  %v2085_v28 = vld [vmem:[#allocation2 + $0x38] sm:$0xff]  ;;  %v2429_v22 = vmul.f32 -1.442695, %v2110_v39 }
 0x25a   : > { %2561 = vpow2.f32 %v2424_v27  ;;  %v2111_v53 = vadd.f32 %v2095_v51, %v2085_v28 }
 0x25b   : > { %2563 = vpow2.f32 %v2425_v60 }
 0x25c   : > { %2565 = vpow2.f32 %v2426_v29  ;;  %v2430_v26 = vmul.f32 -1.442695, %v2111_v53 }
 0x25d   : > { %2567 = vpow2.f32 %v2427_v13 }
 0x25e   : > { %2569 = vpow2.f32 %v2428_v59 }
 0x25f   : > { %v2560_v11 = vpop.eup %2559 }
 0x260   : > { %v2562_v47 = vpop.eup %2561  ;;  %v2136_v57 = vadd.f32 1.0, %v2560_v11 }
 0x261   : > { %v2564_v41 = vpop.eup %2563  ;;  %v4667_v32 = vadd.f32 1.0, %v2562_v47 }
 0x262   : > { %v2566_v55 = vpop.eup %2565  ;;  %2571 = vrcp.f32 %v2136_v57  ;;  %v2153_v43 = vand.u32 2147483647, %v2136_v57  ;;  %v2155_v5 = vand.u32 2147483648, %v2136_v57  ;;  %v4670_v42 = vadd.f32 1.0, %v2564_v41 }
 0x263   : > { %v2568_v54 = vpop.eup %2567  ;;  %2573 = vrcp.f32 %v4667_v32  ;;  %v4672_v52 = vadd.f32 1.0, %v2566_v55  ;;  %v2168_v21 = vand.u32 2147483647, %v4667_v32  ;;  %v2170_v10 = vand.u32 2147483648, %v4667_v32 }
 0x264   : > { %v2570_v14 = vpop.eup %2569  ;;  %2575 = vpow2.f32 %v2429_v22  ;;  %v4676_v49 = vadd.f32 1.0, %v2568_v54  ;;  %vm2149_vm0 = vweird.f32 %v2136_v57  ;;  %vm2164_vm1 = vweird.f32 %v4667_v32 }
 0x265   : > { %2577 = vpow2.f32 %v2430_v26  ;;  %v2185_v9 = vand.u32 2147483648, %v4670_v42  ;;  %vm4681_vm2 = vcmp.eq.f32.partialorder %v2153_v43, 8.507059e+37  ;;  %v2183_v7 = vand.u32 2147483647, %v4670_v42 }
 0x266   : > { %2579 = vrcp.f32 %v4670_v42  ;;  %v4687_v23 = vadd.f32 1.0, %v2570_v14  ;;  %v2156_v2 = vor.u32 1.1754944e-38, %v2155_v5  ;;  %v2198_v33 = vand.u32 2147483647, %v4672_v52 }
 0x267   : > { %2581 = vrcp.f32 %v4672_v52  ;;  %v2200_v18 = vand.u32 2147483648, %v4672_v52  ;;  %vm4692_vm3 = vcmp.eq.f32.partialorder %v2168_v21, 8.507059e+37  ;;  %v2171_v38 = vor.u32 1.1754944e-38, %v2170_v10 }
 0x268   : > { %v2572_v20 = vpop.eup %2571  ;;  %2583 = vrcp.f32 %v4676_v49  ;;  %vm2179_vm4 = vweird.f32 %v4670_v42  ;;  %v2186_v25 = vor.u32 1.1754944e-38, %v2185_v9  ;;  %vm2194_vm5 = vweird.f32 %v4672_v52 }
 0x269   : > { %v2574_v50 = vpop.eup %2573  ;;  %v2145_v48 = vmul.f32 %v2572_v20, %v2136_v57  ;;  %v2215_v4 = vand.u32 2147483648, %v4676_v49  ;;  %vm2150_vm6 = vweird.f32 %v2572_v20  ;;  %vm4700_vm7 = vcmp.eq.f32.partialorder %v2183_v7, 8.507059e+37 }
 0x26a   : > { %v2576_v0 = vpop.eup %2575  ;;  %v2160_v40 = vmul.f32 %v2574_v50, %v4667_v32  ;;  %vm2209_vm8 = vweird.f32 %v4676_v49  ;;  %2585 = vrcp.f32 %v4687_v23  ;;  %vm2165_vm9 = vweird.f32 %v2574_v50  ;;  %vm4716_vm12 = vmor %vm2149_vm0, %vm2150_vm6 }
 0x26b   : > { %v2578_v31 = vpop.eup %2577  ;;  %v2146_v24 = vsub.f32 1.0, %v2145_v48  ;;  %vm4706_vm10 = vcmp.eq.f32.partialorder %v2198_v33, 8.507059e+37  ;;  %v2201_v15 = vor.u32 1.1754944e-38, %v2200_v18  ;;  %v2213_v3 = vand.u32 2147483647, %v4676_v49  ;;  %vm4724_vm14 = vmor %vm2164_vm1, %vm2165_vm9 }
 0x26c   : > { %v2580_v61 = vpop.eup %2579  ;;  %v2161_v44 = vsub.f32 1.0, %v2160_v40  ;;  %vm2224_vm11 = vweird.f32 %v4687_v23  ;;  %v2228_v8 = vand.u32 2147483647, %v4687_v23  ;;  %v2216_v63 = vor.u32 1.1754944e-38, %v2215_v4 }
 0x26d   : > { %v2582_v45 = vpop.eup %2581  ;;  %v2147_v1 = vmul.f32 %v2572_v20, %v2146_v24  ;;  %v2175_v37 = vmul.f32 %v2580_v61, %v4670_v42  ;;  %vm2180_vm13 = vweird.f32 %v2580_v61  ;;  %v2142_v62 = vadd.f32 1.0, %v2576_v0 }
 0x26e   : > { %v2584_v36 = vpop.eup %2583  ;;  %v2162_v30 = vmul.f32 %v2574_v50, %v2161_v44  ;;  %v2190_v6 = vmul.f32 %v2582_v45, %v4672_v52  ;;  %vm2195_vm15 = vweird.f32 %v2582_v45  ;;  %v2143_v28 = vadd.f32 1.0, %v2578_v31  ;;  %vm4738_vm1 = vmor %vm2179_vm4, %vm2180_vm13 }
 0x26f   : > { %v2148_v16 = vadd.f32 %v2572_v20, %v2147_v1  ;;  %v2176_v46 = vsub.f32 1.0, %v2175_v37  ;;  %v2205_v27 = vmul.f32 %v2584_v36, %v4676_v49  ;;  %vm2210_vm0 = vweird.f32 %v2584_v36 }
 0x270   : > { %v2163_v60 = vadd.f32 %v2574_v50, %v2162_v30  ;;  %v2191_v29 = vsub.f32 1.0, %v2190_v6  ;;  %v2586_v13 = vpop.eup %2585  ;;  %v2230_v55 = vand.u32 2147483648, %v4687_v23  ;;  %vm4758_vm4 = vmor %vm2209_vm8, %vm2210_vm0  ;;  %2587 = vrcp.f32 %v2142_v62 }
 0x271   : > { %v2152_v58 = vsel %vm4716_vm12, %v2572_v20, %v2148_v16  ;;  %v2177_v51 = vmul.f32 %v2580_v61, %v2176_v46  ;;  %v2206_v59 = vsub.f32 1.0, %v2205_v27  ;;  %v2220_v57 = vmul.f32 %v2586_v13, %v4687_v23 }
 0x272   : > { %v2157_v39 = vsel %vm4681_vm2, %v2156_v2, %v2152_v58  ;;  %v2167_v53 = vsel %vm4724_vm14, %v2574_v50, %v2163_v60  ;;  %v2192_v47 = vmul.f32 %v2582_v45, %v2191_v29  ;;  %vm4749_vm2 = vmor %vm2194_vm5, %vm2195_vm15  ;;  %vm2214_vm5 = vcmp.eq.f32.partialorder %v2213_v3, 8.507059e+37 }
 0x273   : > { %2264 = vst [vmem:[%s2983_s15] sm:$0xff] %v2157_v39  ;;  %v2172_v22 = vsel %vm4692_vm3, %v2171_v38, %v2167_v53  ;;  %v2178_v41 = vadd.f32 %v2580_v61, %v2177_v51  ;;  %v2207_v26 = vmul.f32 %v2584_v36, %v2206_v59  ;;  %v2221_v14 = vsub.f32 1.0, %v2220_v57 }
 0x274   : > { %2265 = vst [vmem:[%s2983_s15 + $0x8] sm:$0xff] %v2172_v22  ;;  %v2193_v54 = vadd.f32 %v2582_v45, %v2192_v47  ;;  %vm2225_vm3 = vweird.f32 %v2586_v13  ;;  %2589 = vrcp.f32 %v2143_v28  ;;  %v2231_v35 = vor.u32 1.1754944e-38, %v2230_v55 }
 0x275   : > { %v2182_v5 = vsel %vm4738_vm1, %v2580_v61, %v2178_v41  ;;  %v2208_v42 = vadd.f32 %v2584_v36, %v2207_v26  ;;  %v2222_v10 = vmul.f32 %v2586_v13, %v2221_v14  ;;  %vm2226_vm6 = vmor %vm2224_vm11, %vm2225_vm3  ;;  %vm2239_vm8 = vweird.f32 %v2142_v62 }
 0x276   : > { %v2187_v52 = vsel %vm4700_vm7, %v2186_v25, %v2182_v5  ;;  %v2197_v21 = vsel %vm4749_vm2, %v2582_v45, %v2193_v54  ;;  %vm2229_vm7 = vcmp.eq.f32.partialorder %v2228_v8, 8.507059e+37  ;;  %v2588_v2 = vpop.eup %2587  ;;  %v2245_v56 = vand.u32 2147483648, %v2142_v62 }
 0x277   : > { %2266 = vst [vmem:[%s2983_s15 + $0x10] sm:$0xff] %v2187_v52  ;;  %v2202_v49 = vsel %vm4706_vm10, %v2201_v15, %v2197_v21  ;;  %v2212_v9 = vsel %vm4758_vm4, %v2584_v36, %v2208_v42  ;;  %v2223_v20 = vadd.f32 %v2586_v13, %v2222_v10  ;;  %v2235_v50 = vmul.f32 %v2588_v2, %v2142_v62 }
 0x278   : > { %2267 = vst [vmem:[%s2983_s15 + $0x18] sm:$0xff] %v2202_v49  ;;  %v2217_v7 = vsel %vm2214_vm5, %v2216_v63, %v2212_v9  ;;  %vm2240_vm9 = vweird.f32 %v2588_v2  ;;  %v2243_v0 = vand.u32 2147483647, %v2142_v62  ;;  %vm2254_vm10 = vweird.f32 %v2143_v28 }
 0x279   : > { %2268 = vst [vmem:[%s2983_s15 + $0x20] sm:$0xff] %v2217_v7  ;;  %v2227_v33 = vsel %vm2226_vm6, %v2586_v13, %v2223_v20  ;;  %v2236_v38 = vsub.f32 1.0, %v2235_v50  ;;  %v2260_v23 = vand.u32 2147483648, %v2143_v28  ;;  %v2258_v31 = vand.u32 2147483647, %v2143_v28  ;;  %vm2241_vm12 = vmor %vm2239_vm8, %vm2240_vm9 }
 0x27a   : > { %v2232_v18 = vsel %vm2229_vm7, %v2231_v35, %v2227_v33  ;;  %v2590_v48 = vpop.eup %2589  ;;  %v2246_v24 = vor.u32 1.1754944e-38, %v2245_v56  ;;  %vm2244_vm13 = vcmp.eq.f32.partialorder %v2243_v0, 8.507059e+37 }
 0x27b   : > { %2269 = vst [vmem:[%s2983_s15 + $0x28] sm:$0xff] %v2232_v18  ;;  %v2250_v40 = vmul.f32 %v2590_v48, %v2143_v28  ;;  %v2237_v25 = vmul.f32 %v2588_v2, %v2236_v38  ;;  %vm2255_vm11 = vweird.f32 %v2590_v48  ;;  %v2261_v44 = vor.u32 1.1754944e-38, %v2260_v23 }
 0x27c   : > { %vm2256_vm14 = vmor %vm2254_vm10, %vm2255_vm11  ;;  %vm2259_vm15 = vcmp.eq.f32.partialorder %v2258_v31, 8.507059e+37 }
 0x27d   : > { %v2251_v4 = vsub.f32 1.0, %v2250_v40  ;;  %v2238_v17 = vadd.f32 %v2588_v2, %v2237_v25 }
 0x27f   : > { %v2252_v61 = vmul.f32 %v2590_v48, %v2251_v4  ;;  %v2242_v12 = vsel %vm2241_vm12, %v2588_v2, %v2238_v17 }
 0x280   : > { %v2247_v3 = vsel %vm2244_vm13, %v2246_v24, %v2242_v12 }
 0x281   : > { %v2253_v15 = vadd.f32 %v2590_v48, %v2252_v61  ;;  %2270 = vst [vmem:[%s2983_s15 + $0x30] sm:$0xff] %v2247_v3 }
 0x283   : > { %v2257_v45 = vsel %vm2256_vm14, %v2590_v48, %v2253_v15 }
 0x284   : > { %v2262_v1 = vsel %vm2259_vm15, %v2261_v44, %v2257_v45 }
 0x285   : > { %2271 = vst [vmem:[%s2983_s15 + $0x38] sm:$0xff] %v2262_v1 }
 0x286 PF: > { %s2437_s18 = sshll.u32 %s2765_s19, 6  ;;  %s2286_s7 = sshll.u32 %s2983_s15, 4  ;;  %s2287_s7 = int_to_ptr.vmem [resolvable:$true] %s2286_s7 }
 0x287   : > { %s2284_s27 = scalar_lea.hbm %s4836_s3, %s2437_s18  ;;  %s2273_s1 = scalar_lea.sflag [#allocation5], %s2966_s28 }
 0x288   : > { %s2288_s8 = sshll.u32 %s2284_s27, 4  ;;  %s2671_s19 = scalar_lea.hbm %s4836_s3, 256  ;;  %s2289_s8 = int_to_ptr.hbm [resolvable:$true] %s2288_s8 }
 0x289   : > { %s2665_s23 = sshra.s32 %s2289_s8, 4  ;;  %s2666_s23 = int_to_ptr.hbm [resolvable:$true] %s2665_s23 }
 0x28a   : > { %s2667_s24 = scalar_lea.hbm %s2666_s23, 64  ;;  %p2672_p3 = scmp.lt.s32.totalorder %s2666_s23, %s4836_s3 }
 0x28b   : > { %p2668_p13 = scmp.ne.s32.totalorder %s2666_s23, %s2667_s24  ;;  %p2673_p5 = scmp.lt.s32.totalorder %s2671_s19, %s2667_s24 }
 0x28d   : > { %p2669_p0 = pnand %p2668_p13, %p2939_p2  ;;  %p2674_p6 = por %p2673_p5, %p2672_p3 }
 0x28f   : > { %p2670_p1 = pneg %p2669_p0 }
 0x291   : > { %p2675_p7 = pnand %p2674_p6, %p2670_p1 }
 0x293   : > { %2678 = shalt.err (!%p2675_p7)
}
 0x294   : > { %2444 = dma.vmem_to_hbm [thread:$0]  (%p2939_p2), %s2287_s7, 1024, %s2289_s8, %s2273_s1  }
 0x295 PF: > { %p2458_p9 = scmp.ge.s32.totalorder %s2777_s22, 2  ;;  %s2300_s28 = sand.u32 1, %s2737_s12  }
 0x296   : > { %s2301_s10 = scalar_lea.sflag [#allocation5], %s2300_s28 }
 0x297   : > { %p2454_p11 = pnand %p2458_p9, %p2943_p10 }
 0x299   : > { %p2455_p4 = pneg %p2454_p11 }
 0x29b   : > { %2732 = dma.done.wait (%p2455_p4), %s2301_s10, 1024  }
 0x29c   : > { %2734 = vsyncadd (%p2455_p4), %s2301_s10, 4294966272  ;;  %s22_s22 = sadd.s32 1, %s2777_s22   ;;  %s5116_s9 = sld [smem:[#allocation16_spill]] }
 0x29d   : > { %p19_p8 = scmp.ge.s32.totalorder %s22_s22, 10   ;;  %s5117_s18 = sld [smem:[#allocation12_spill]] }
 0x29e   : > { %s5118_s19 = sld [smem:[#allocation13_spill]]  ;;  %s5121_s12 = smov %s2741_s13 }
 0x29f   : > { %s5119_s20 = sld [smem:[#allocation14_spill]]  ;;  %s5122_s13 = smov %s2745_s14 }
 0x2a0   : > { %s5120_s21 = sld [smem:[#allocation15_spill]]  ;;  %s5123_s14 = smov %s2923_s11 }
 0x2a1   : > { %s5124_s15 = smov %s2753_s16  ;;  %s5125_s16 = smov %s2757_s17 }
 0x2a2   : > { %s5126_s17 = smov %s5116_s9  ;;  %21 = sbr.rel (!%p19_p8) target bundleno = 13 (0xd), region = 101 }
 0x2a7   :  { %2307 = vsyncpa [#allocation4], 1 }
 0x2a8   :  { %2309 = vsyncpa [#allocation4 + $0x1], 1 }
 0x2a9   :  { %2310 = vsyncpa [#allocation7], 1 }
 0x2aa   :  { %2312 = vsyncpa [#allocation7 + $0x1], 1 }
 0x2ab   :  { %2313 = vsyncpa [#allocation5], 1 }
 0x2ac   :  { %2315 = vsyncpa [#allocation5 + $0x1], 1 }

</bundles_post_ra>
